<compile_context>
chip_gen: v7x
topology: tpu7x:2x2x1
jax: 0.10.0
libtpu: 0.0.40
codegen_flags: <defaults>
</compile_context>

<pallas_src>
import math

import jax
import jax.numpy as jnp
from jax.experimental import pallas as pl
from jax.experimental.pallas import tpu as pltpu

WIDTH = 768
IN_FEATURES = (19 + 1) * 3          # 60
OUT_FEATURES = 19
BN_EPS = 1e-5
K_PAD = 128                         # fc_in contraction dim padded 60 -> 128
OUT_PAD = 128                       # head output dim padded 19 -> 128
MXU_DTYPE = jnp.bfloat16            # MXU feed dtype for the 768-wide matmuls
_INV_SQRT2 = 1.0 / math.sqrt(2.0)
_VMEM_LIMIT = 32 * 1024 * 1024      # operands ~7.7 MiB; safe even on v7x (64 MiB)


def _gelu_exact(y):
    # exact erf GELU (torch.nn.GELU default, approximate='none')
    return 0.5 * y * (1.0 + jax.lax.erf(y * _INV_SQRT2))


# ----------------------------------------------------------------------------
# Fused kernel: fc_in -> 2x (3x [BN -> GELU -> Linear]) + residual -> head
# Everything (weights, activations, residuals, BN stats) stays in VMEM.
# ----------------------------------------------------------------------------
def _fused_forward_kernel(x_ref, fc_w_ref, fc_b_ref,
                          gam_ref, bet_ref, w_ref, b_ref,
                          hgam_ref, hbet_ref, hw_ref, hb_ref,
                          o_ref):
    def bn_gelu(h, gamma, beta):
        # train-mode BatchNorm1d: batch mean + biased batch variance (two-pass)
        mean = jnp.mean(h, axis=0, keepdims=True)
        centered = h - mean
        var = jnp.mean(centered * centered, axis=0, keepdims=True)
        y = centered * (gamma * jax.lax.rsqrt(var + BN_EPS)) + beta
        return _gelu_exact(y)

    # fc_in: x (N,128) @ W (128,768); kept f32 (K=60 is tiny, exact numerics).
    h = jnp.dot(x_ref[...], fc_w_ref[...],
                preferred_element_type=jnp.float32) + fc_b_ref[...]

    # Two ResidualBlocks of three BasicBlocks each (statically unrolled);
    # residuals never leave VMEM.
    for r in range(2):
        res = h
        for k in range(3):
            idx = 3 * r + k
            g = bn_gelu(h, gam_ref[idx], bet_ref[idx])
            h = jnp.dot(g.astype(MXU_DTYPE), w_ref[idx],
                        preferred_element_type=jnp.float32) + b_ref[idx]
        h = h + res

    # Head BasicBlock(768 -> 19); output dim pre-padded to 128 lanes.
    g = bn_gelu(h, hgam_ref[...], hbet_ref[...])
    out = jnp.dot(g.astype(MXU_DTYPE), hw_ref[...],
                  preferred_element_type=jnp.float32) + hb_ref[...]
    o_ref[...] = out.astype(o_ref.dtype)


def neural_network_forward(params, x):
    n = x.shape[0]
    assert n >= 2, "train-mode BatchNorm1d needs a batch of at least 2"
    # Whole batch lives in one VMEM block (BN needs global batch statistics).
    assert n * WIDTH * 4 <= 8 * 1024 * 1024, "batch too large for fused kernel"

    x_pad = jnp.pad(x.astype(jnp.float32), ((0, 0), (0, K_PAD - IN_FEATURES)))

    vmem = pl.BlockSpec(memory_space=pltpu.MemorySpace.VMEM)
    out = pl.pallas_call(
        _fused_forward_kernel,
        out_shape=jax.ShapeDtypeStruct((n, OUT_PAD), jnp.float32),
        in_specs=[vmem] * 11,
        out_specs=vmem,
        compiler_params=pltpu.CompilerParams(vmem_limit_bytes=_VMEM_LIMIT),
    )(x_pad,
      params["fc_w"], params["fc_b"],
      params["gammas"], params["betas"], params["ws"], params["bs"],
      params["head_gamma"], params["head_beta"],
      params["head_w"], params["head_b"])
    return out[:, :OUT_FEATURES]


# ----------------------------------------------------------------------------
# Pure-JAX reference (torch semantics); mxu_dtype mimics the kernel's MXU feed.
# ----------------------------------------------------------------------------
def reference_forward(tparams, x, mxu_dtype=None):
    def mxu_dot(a, b):
        if mxu_dtype is not None:
            a, b = a.astype(mxu_dtype), b.astype(mxu_dtype)
        return jnp.dot(a, b, preferred_element_type=jnp.float32)

    def basic_block(h, p):
        mean = jnp.mean(h, axis=0, keepdims=True)
        centered = h - mean
        var = jnp.mean(centered * centered, axis=0, keepdims=True)
        y = centered * (p["gamma"] * jax.lax.rsqrt(var + BN_EPS)) + p["beta"]
        return mxu_dot(_gelu_exact(y), p["w_t"]) + p["b"]

    h = jnp.dot(x, tparams["fc_in"]["w_t"],
                preferred_element_type=jnp.float32) + tparams["fc_in"]["b"]
    for name in ("res1", "res2"):
        res = h
        for p in tparams[name]:
            h = basic_block(h, p)
        h = h + res
    return basic_block(h, tparams["head"])


# ----------------------------------------------------------------------------
# Deterministic parameter construction (mirrors init_weights semantics) and
# one-time packing (pad / stack / transpose / bf16-cast, hoisted out of forward)
# ----------------------------------------------------------------------------
def _kaiming_uniform(key, out_features, in_features):
    # torch.nn.init.kaiming_uniform_ default: bound = sqrt(6 / fan_in)
    bound = math.sqrt(6.0 / in_features)
    return jax.random.uniform(key, (out_features, in_features),
                              dtype=jnp.float32, minval=-bound, maxval=bound)


def init_torch_params(key):
    keys = iter(jax.random.split(key, 8))

    def lin(in_w, out_w):
        w = _kaiming_uniform(next(keys), out_w, in_w)        # torch layout (out, in)
        return {"w_t": w.T, "b": jnp.full((out_w,), 0.01, dtype=jnp.float32)}

    def bb(in_w, out_w):
        p = lin(in_w, out_w)
        p["gamma"] = jnp.ones((in_w,), dtype=jnp.float32)    # fresh BatchNorm1d
        p["beta"] = jnp.zeros((in_w,), dtype=jnp.float32)
        return p

    return {
        "fc_in": lin(IN_FEATURES, WIDTH),
        "res1": [bb(WIDTH, WIDTH) for _ in range(3)],
        "res2": [bb(WIDTH, WIDTH) for _ in range(3)],
        "head": bb(WIDTH, OUT_FEATURES),
    }


def pack_params(tparams, mxu_dtype=MXU_DTYPE):
    """One-time packing: lane-dense padding, layer stacking, bf16 weight cast."""
    fc = tparams["fc_in"]
    fc_w = jnp.pad(fc["w_t"], ((0, K_PAD - IN_FEATURES), (0, 0)))       # (128, 768)
    fc_b = fc["b"].reshape(1, WIDTH)

    blocks = tparams["res1"] + tparams["res2"]
    gammas = jnp.stack([p["gamma"] for p in blocks]).reshape(6, 1, WIDTH)
    betas = jnp.stack([p["beta"] for p in blocks]).reshape(6, 1, WIDTH)
    bs = jnp.stack([p["b"] for p in blocks]).reshape(6, 1, WIDTH)
    ws = jnp.stack([p["w_t"] for p in blocks]).astype(mxu_dtype)        # (6, 768, 768)

    head = tparams["head"]
    head_w = jnp.pad(head["w_t"],
                     ((0, 0), (0, OUT_PAD - OUT_FEATURES))).astype(mxu_dtype)
    head_b = jnp.pad(head["b"], (0, OUT_PAD - OUT_FEATURES)).reshape(1, OUT_PAD)

    return {
        "fc_w": fc_w, "fc_b": fc_b,
        "gammas": gammas, "betas": betas, "ws": ws, "bs": bs,
        "head_gamma": head["gamma"].reshape(1, WIDTH),
        "head_beta": head["beta"].reshape(1, WIDTH),
        "head_w": head_w, "head_b": head_b,
    }


if __name__ == "__main__":
    N = 16  # small batch, multiple of 8 (sublane width); BatchNorm needs N > 1

    key = jax.random.PRNGKey(0)
    kp, kx = jax.random.split(key)
    tparams = init_torch_params(kp)
    kparams = pack_params(tparams)
    x = jax.random.normal(kx, (N, IN_FEATURES), dtype=jnp.float32)

    fwd = jax.jit(neural_network_forward)
    out = fwd(kparams, x)
    jax.block_until_ready(out)
    assert out.shape == (N, OUT_FEATURES)

    # 1) Tight check vs a JAX reference that applies the same bf16 MXU feed:
    #    verifies the fused kernel's BN stats / GELU / matmul / residual math.
    ref_mxu = reference_forward(tparams, x, mxu_dtype=MXU_DTYPE)
    assert jnp.allclose(out, ref_mxu, atol=1e-2, rtol=1e-2), (
        "mismatch vs bf16-feed reference: max abs diff = "
        f"{float(jnp.max(jnp.abs(out - ref_mxu)))}")

    # 2) Loose check vs the pure-f32 (torch-semantics) reference: bounds the
    #    drift from feeding the MXU bf16 through the 7 stacked layers.
    ref_f32 = reference_forward(tparams, x)
    assert jnp.allclose(out, ref_f32, atol=1.5e-1, rtol=1.5e-1), (
        "mismatch vs f32 reference: max abs diff = "
        f"{float(jnp.max(jnp.abs(out - ref_f32)))}")

    print("KERNEL_OK")
</pallas_src>

<mosaic_0001>
module attributes {stable_mosaic.version = 11 : i64} {
  func.func @_fused_forward_kernel(%arg0: memref<16x128xf32, #tpu.memory_space<vmem>>, %arg1: memref<128x768xf32, #tpu.memory_space<vmem>>, %arg2: memref<1x768xf32, #tpu.memory_space<vmem>>, %arg3: memref<6x1x768xf32, #tpu.memory_space<vmem>>, %arg4: memref<6x1x768xf32, #tpu.memory_space<vmem>>, %arg5: memref<6x768x768xbf16, #tpu.memory_space<vmem>>, %arg6: memref<6x1x768xf32, #tpu.memory_space<vmem>>, %arg7: memref<1x768xf32, #tpu.memory_space<vmem>>, %arg8: memref<1x768xf32, #tpu.memory_space<vmem>>, %arg9: memref<768x128xbf16, #tpu.memory_space<vmem>>, %arg10: memref<1x128xf32, #tpu.memory_space<vmem>>, %arg11: memref<16x128xf32, #tpu.memory_space<vmem>>) attributes {dimension_semantics = [], scalar_prefetch = 0 : i64, scratch_operands = 0 : i64, tpu.core_type = #tpu.core_type<tc>} {
    %c0 = arith.constant 0 : index
    %c0_0 = arith.constant 0 : index
    %0 = vector.load %arg0[%c0, %c0_0] : memref<16x128xf32, #tpu.memory_space<vmem>>, vector<16x128xf32>
    %c0_1 = arith.constant 0 : index
    %c0_2 = arith.constant 0 : index
    %1 = vector.load %arg1[%c0_1, %c0_2] : memref<128x768xf32, #tpu.memory_space<vmem>>, vector<128x768xf32>
    %cst = arith.constant dense<0.000000e+00> : vector<16x768xf32>
    %2 = tpu.matmul %0, %1, %cst {dimension_numbers = #tpu.dot_dimension_numbers<[1], [0], [0], [1], [0, 0, 1, 1], [], []>} : vector<16x128xf32>, vector<128x768xf32>, vector<16x768xf32> -> vector<16x768xf32>
    %c0_3 = arith.constant 0 : index
    %c0_4 = arith.constant 0 : index
    %3 = vector.load %arg2[%c0_3, %c0_4] : memref<1x768xf32, #tpu.memory_space<vmem>>, vector<1x768xf32>
    %4 = vector.broadcast %3 : vector<1x768xf32> to vector<16x768xf32>
    %5 = arith.addf %2, %4 : vector<16x768xf32>
    %c0_5 = arith.constant 0 : index
    %c0_6 = arith.constant 0 : index
    %c0_7 = arith.constant 0 : index
    %6 = vector.load %arg3[%c0_5, %c0_6, %c0_7] : memref<6x1x768xf32, #tpu.memory_space<vmem>>, vector<1x1x768xf32>
    %7 = vector.shape_cast %6 : vector<1x1x768xf32> to vector<1x768xf32>
    %c0_8 = arith.constant 0 : index
    %c0_9 = arith.constant 0 : index
    %c0_10 = arith.constant 0 : index
    %8 = vector.load %arg4[%c0_8, %c0_9, %c0_10] : memref<6x1x768xf32, #tpu.memory_space<vmem>>, vector<1x1x768xf32>
    %9 = vector.shape_cast %8 : vector<1x1x768xf32> to vector<1x768xf32>
    %cst_11 = arith.constant dense<0.000000e+00> : vector<768xf32>
    %10 = vector.multi_reduction <add>, %5, %cst_11 [0] : vector<16x768xf32> to vector<768xf32>
    %11 = vector.shape_cast %10 : vector<768xf32> to vector<1x768xf32>
    %cst_12 = arith.constant 1.600000e+01 : f32
    %12 = vector.broadcast %cst_12 : f32 to vector<1x768xf32>
    %13 = arith.divf %11, %12 : vector<1x768xf32>
    %14 = vector.broadcast %13 : vector<1x768xf32> to vector<16x768xf32>
    %15 = arith.subf %5, %14 : vector<16x768xf32>
    %16 = arith.mulf %15, %15 : vector<16x768xf32>
    %cst_13 = arith.constant dense<0.000000e+00> : vector<768xf32>
    %17 = vector.multi_reduction <add>, %16, %cst_13 [0] : vector<16x768xf32> to vector<768xf32>
    %18 = vector.shape_cast %17 : vector<768xf32> to vector<1x768xf32>
    %cst_14 = arith.constant 1.600000e+01 : f32
    %19 = vector.broadcast %cst_14 : f32 to vector<1x768xf32>
    %20 = arith.divf %18, %19 : vector<1x768xf32>
    %cst_15 = arith.constant 9.99999974E-6 : f32
    %21 = vector.broadcast %cst_15 : f32 to vector<1x768xf32>
    %22 = arith.addf %20, %21 : vector<1x768xf32>
    %23 = math.rsqrt %22 : vector<1x768xf32>
    %24 = arith.mulf %7, %23 : vector<1x768xf32>
    %25 = vector.broadcast %24 : vector<1x768xf32> to vector<16x768xf32>
    %26 = arith.mulf %15, %25 : vector<16x768xf32>
    %27 = vector.broadcast %9 : vector<1x768xf32> to vector<16x768xf32>
    %28 = arith.addf %26, %27 : vector<16x768xf32>
    %cst_16 = arith.constant 5.000000e-01 : f32
    %29 = vector.broadcast %cst_16 : f32 to vector<16x768xf32>
    %30 = arith.mulf %29, %28 : vector<16x768xf32>
    %cst_17 = arith.constant 0.707106769 : f32
    %31 = vector.broadcast %cst_17 : f32 to vector<16x768xf32>
    %32 = arith.mulf %28, %31 : vector<16x768xf32>
    %33 = math.erf %32 : vector<16x768xf32>
    %cst_18 = arith.constant 1.000000e+00 : f32
    %34 = vector.broadcast %cst_18 : f32 to vector<16x768xf32>
    %35 = arith.addf %34, %33 : vector<16x768xf32>
    %36 = arith.mulf %30, %35 : vector<16x768xf32>
    %37 = arith.truncf %36 : vector<16x768xf32> to vector<16x768xbf16>
    %c0_19 = arith.constant 0 : index
    %c0_20 = arith.constant 0 : index
    %c0_21 = arith.constant 0 : index
    %38 = vector.load %arg5[%c0_19, %c0_20, %c0_21] : memref<6x768x768xbf16, #tpu.memory_space<vmem>>, vector<1x768x768xbf16>
    %39 = vector.shape_cast %38 : vector<1x768x768xbf16> to vector<768x768xbf16>
    %cst_22 = arith.constant dense<0.000000e+00> : vector<16x768xf32>
    %40 = tpu.matmul %37, %39, %cst_22 {dimension_numbers = #tpu.dot_dimension_numbers<[1], [0], [0], [1], [0, 0, 1, 1], [], []>} : vector<16x768xbf16>, vector<768x768xbf16>, vector<16x768xf32> -> vector<16x768xf32>
    %c0_23 = arith.constant 0 : index
    %c0_24 = arith.constant 0 : index
    %c0_25 = arith.constant 0 : index
    %41 = vector.load %arg6[%c0_23, %c0_24, %c0_25] : memref<6x1x768xf32, #tpu.memory_space<vmem>>, vector<1x1x768xf32>
    %42 = vector.shape_cast %41 : vector<1x1x768xf32> to vector<1x768xf32>
    %43 = vector.broadcast %42 : vector<1x768xf32> to vector<16x768xf32>
    %44 = arith.addf %40, %43 : vector<16x768xf32>
    %c1 = arith.constant 1 : index
    %c0_26 = arith.constant 0 : index
    %c0_27 = arith.constant 0 : index
    %45 = vector.load %arg3[%c1, %c0_26, %c0_27] : memref<6x1x768xf32, #tpu.memory_space<vmem>>, vector<1x1x768xf32>
    %46 = vector.shape_cast %45 : vector<1x1x768xf32> to vector<1x768xf32>
    %c1_28 = arith.constant 1 : index
    %c0_29 = arith.constant 0 : index
    %c0_30 = arith.constant 0 : index
    %47 = vector.load %arg4[%c1_28, %c0_29, %c0_30] : memref<6x1x768xf32, #tpu.memory_space<vmem>>, vector<1x1x768xf32>
    %48 = vector.shape_cast %47 : vector<1x1x768xf32> to vector<1x768xf32>
    %cst_31 = arith.constant dense<0.000000e+00> : vector<768xf32>
    %49 = vector.multi_reduction <add>, %44, %cst_31 [0] : vector<16x768xf32> to vector<768xf32>
    %50 = vector.shape_cast %49 : vector<768xf32> to vector<1x768xf32>
    %cst_32 = arith.constant 1.600000e+01 : f32
    %51 = vector.broadcast %cst_32 : f32 to vector<1x768xf32>
    %52 = arith.divf %50, %51 : vector<1x768xf32>
    %53 = vector.broadcast %52 : vector<1x768xf32> to vector<16x768xf32>
    %54 = arith.subf %44, %53 : vector<16x768xf32>
    %55 = arith.mulf %54, %54 : vector<16x768xf32>
    %cst_33 = arith.constant dense<0.000000e+00> : vector<768xf32>
    %56 = vector.multi_reduction <add>, %55, %cst_33 [0] : vector<16x768xf32> to vector<768xf32>
    %57 = vector.shape_cast %56 : vector<768xf32> to vector<1x768xf32>
    %cst_34 = arith.constant 1.600000e+01 : f32
    %58 = vector.broadcast %cst_34 : f32 to vector<1x768xf32>
    %59 = arith.divf %57, %58 : vector<1x768xf32>
    %cst_35 = arith.constant 9.99999974E-6 : f32
    %60 = vector.broadcast %cst_35 : f32 to vector<1x768xf32>
    %61 = arith.addf %59, %60 : vector<1x768xf32>
    %62 = math.rsqrt %61 : vector<1x768xf32>
    %63 = arith.mulf %46, %62 : vector<1x768xf32>
    %64 = vector.broadcast %63 : vector<1x768xf32> to vector<16x768xf32>
    %65 = arith.mulf %54, %64 : vector<16x768xf32>
    %66 = vector.broadcast %48 : vector<1x768xf32> to vector<16x768xf32>
    %67 = arith.addf %65, %66 : vector<16x768xf32>
    %cst_36 = arith.constant 5.000000e-01 : f32
    %68 = vector.broadcast %cst_36 : f32 to vector<16x768xf32>
    %69 = arith.mulf %68, %67 : vector<16x768xf32>
    %cst_37 = arith.constant 0.707106769 : f32
    %70 = vector.broadcast %cst_37 : f32 to vector<16x768xf32>
    %71 = arith.mulf %67, %70 : vector<16x768xf32>
    %72 = math.erf %71 : vector<16x768xf32>
    %cst_38 = arith.constant 1.000000e+00 : f32
    %73 = vector.broadcast %cst_38 : f32 to vector<16x768xf32>
    %74 = arith.addf %73, %72 : vector<16x768xf32>
    %75 = arith.mulf %69, %74 : vector<16x768xf32>
    %76 = arith.truncf %75 : vector<16x768xf32> to vector<16x768xbf16>
    %c1_39 = arith.constant 1 : index
    %c0_40 = arith.constant 0 : index
    %c0_41 = arith.constant 0 : index
    %77 = vector.load %arg5[%c1_39, %c0_40, %c0_41] : memref<6x768x768xbf16, #tpu.memory_space<vmem>>, vector<1x768x768xbf16>
    %78 = vector.shape_cast %77 : vector<1x768x768xbf16> to vector<768x768xbf16>
    %cst_42 = arith.constant dense<0.000000e+00> : vector<16x768xf32>
    %79 = tpu.matmul %76, %78, %cst_42 {dimension_numbers = #tpu.dot_dimension_numbers<[1], [0], [0], [1], [0, 0, 1, 1], [], []>} : vector<16x768xbf16>, vector<768x768xbf16>, vector<16x768xf32> -> vector<16x768xf32>
    %c1_43 = arith.constant 1 : index
    %c0_44 = arith.constant 0 : index
    %c0_45 = arith.constant 0 : index
    %80 = vector.load %arg6[%c1_43, %c0_44, %c0_45] : memref<6x1x768xf32, #tpu.memory_space<vmem>>, vector<1x1x768xf32>
    %81 = vector.shape_cast %80 : vector<1x1x768xf32> to vector<1x768xf32>
    %82 = vector.broadcast %81 : vector<1x768xf32> to vector<16x768xf32>
    %83 = arith.addf %79, %82 : vector<16x768xf32>
    %c2 = arith.constant 2 : index
    %c0_46 = arith.constant 0 : index
    %c0_47 = arith.constant 0 : index
    %84 = vector.load %arg3[%c2, %c0_46, %c0_47] : memref<6x1x768xf32, #tpu.memory_space<vmem>>, vector<1x1x768xf32>
    %85 = vector.shape_cast %84 : vector<1x1x768xf32> to vector<1x768xf32>
    %c2_48 = arith.constant 2 : index
    %c0_49 = arith.constant 0 : index
    %c0_50 = arith.constant 0 : index
    %86 = vector.load %arg4[%c2_48, %c0_49, %c0_50] : memref<6x1x768xf32, #tpu.memory_space<vmem>>, vector<1x1x768xf32>
    %87 = vector.shape_cast %86 : vector<1x1x768xf32> to vector<1x768xf32>
    %cst_51 = arith.constant dense<0.000000e+00> : vector<768xf32>
    %88 = vector.multi_reduction <add>, %83, %cst_51 [0] : vector<16x768xf32> to vector<768xf32>
    %89 = vector.shape_cast %88 : vector<768xf32> to vector<1x768xf32>
    %cst_52 = arith.constant 1.600000e+01 : f32
    %90 = vector.broadcast %cst_52 : f32 to vector<1x768xf32>
    %91 = arith.divf %89, %90 : vector<1x768xf32>
    %92 = vector.broadcast %91 : vector<1x768xf32> to vector<16x768xf32>
    %93 = arith.subf %83, %92 : vector<16x768xf32>
    %94 = arith.mulf %93, %93 : vector<16x768xf32>
    %cst_53 = arith.constant dense<0.000000e+00> : vector<768xf32>
    %95 = vector.multi_reduction <add>, %94, %cst_53 [0] : vector<16x768xf32> to vector<768xf32>
    %96 = vector.shape_cast %95 : vector<768xf32> to vector<1x768xf32>
    %cst_54 = arith.constant 1.600000e+01 : f32
    %97 = vector.broadcast %cst_54 : f32 to vector<1x768xf32>
    %98 = arith.divf %96, %97 : vector<1x768xf32>
    %cst_55 = arith.constant 9.99999974E-6 : f32
    %99 = vector.broadcast %cst_55 : f32 to vector<1x768xf32>
    %100 = arith.addf %98, %99 : vector<1x768xf32>
    %101 = math.rsqrt %100 : vector<1x768xf32>
    %102 = arith.mulf %85, %101 : vector<1x768xf32>
    %103 = vector.broadcast %102 : vector<1x768xf32> to vector<16x768xf32>
    %104 = arith.mulf %93, %103 : vector<16x768xf32>
    %105 = vector.broadcast %87 : vector<1x768xf32> to vector<16x768xf32>
    %106 = arith.addf %104, %105 : vector<16x768xf32>
    %cst_56 = arith.constant 5.000000e-01 : f32
    %107 = vector.broadcast %cst_56 : f32 to vector<16x768xf32>
    %108 = arith.mulf %107, %106 : vector<16x768xf32>
    %cst_57 = arith.constant 0.707106769 : f32
    %109 = vector.broadcast %cst_57 : f32 to vector<16x768xf32>
    %110 = arith.mulf %106, %109 : vector<16x768xf32>
    %111 = math.erf %110 : vector<16x768xf32>
    %cst_58 = arith.constant 1.000000e+00 : f32
    %112 = vector.broadcast %cst_58 : f32 to vector<16x768xf32>
    %113 = arith.addf %112, %111 : vector<16x768xf32>
    %114 = arith.mulf %108, %113 : vector<16x768xf32>
    %115 = arith.truncf %114 : vector<16x768xf32> to vector<16x768xbf16>
    %c2_59 = arith.constant 2 : index
    %c0_60 = arith.constant 0 : index
    %c0_61 = arith.constant 0 : index
    %116 = vector.load %arg5[%c2_59, %c0_60, %c0_61] : memref<6x768x768xbf16, #tpu.memory_space<vmem>>, vector<1x768x768xbf16>
    %117 = vector.shape_cast %116 : vector<1x768x768xbf16> to vector<768x768xbf16>
    %cst_62 = arith.constant dense<0.000000e+00> : vector<16x768xf32>
    %118 = tpu.matmul %115, %117, %cst_62 {dimension_numbers = #tpu.dot_dimension_numbers<[1], [0], [0], [1], [0, 0, 1, 1], [], []>} : vector<16x768xbf16>, vector<768x768xbf16>, vector<16x768xf32> -> vector<16x768xf32>
    %c2_63 = arith.constant 2 : index
    %c0_64 = arith.constant 0 : index
    %c0_65 = arith.constant 0 : index
    %119 = vector.load %arg6[%c2_63, %c0_64, %c0_65] : memref<6x1x768xf32, #tpu.memory_space<vmem>>, vector<1x1x768xf32>
    %120 = vector.shape_cast %119 : vector<1x1x768xf32> to vector<1x768xf32>
    %121 = vector.broadcast %120 : vector<1x768xf32> to vector<16x768xf32>
    %122 = arith.addf %118, %121 : vector<16x768xf32>
    %123 = arith.addf %122, %5 : vector<16x768xf32>
    %c3 = arith.constant 3 : index
    %c0_66 = arith.constant 0 : index
    %c0_67 = arith.constant 0 : index
    %124 = vector.load %arg3[%c3, %c0_66, %c0_67] : memref<6x1x768xf32, #tpu.memory_space<vmem>>, vector<1x1x768xf32>
    %125 = vector.shape_cast %124 : vector<1x1x768xf32> to vector<1x768xf32>
    %c3_68 = arith.constant 3 : index
    %c0_69 = arith.constant 0 : index
    %c0_70 = arith.constant 0 : index
    %126 = vector.load %arg4[%c3_68, %c0_69, %c0_70] : memref<6x1x768xf32, #tpu.memory_space<vmem>>, vector<1x1x768xf32>
    %127 = vector.shape_cast %126 : vector<1x1x768xf32> to vector<1x768xf32>
    %cst_71 = arith.constant dense<0.000000e+00> : vector<768xf32>
    %128 = vector.multi_reduction <add>, %123, %cst_71 [0] : vector<16x768xf32> to vector<768xf32>
    %129 = vector.shape_cast %128 : vector<768xf32> to vector<1x768xf32>
    %cst_72 = arith.constant 1.600000e+01 : f32
    %130 = vector.broadcast %cst_72 : f32 to vector<1x768xf32>
    %131 = arith.divf %129, %130 : vector<1x768xf32>
    %132 = vector.broadcast %131 : vector<1x768xf32> to vector<16x768xf32>
    %133 = arith.subf %123, %132 : vector<16x768xf32>
    %134 = arith.mulf %133, %133 : vector<16x768xf32>
    %cst_73 = arith.constant dense<0.000000e+00> : vector<768xf32>
    %135 = vector.multi_reduction <add>, %134, %cst_73 [0] : vector<16x768xf32> to vector<768xf32>
    %136 = vector.shape_cast %135 : vector<768xf32> to vector<1x768xf32>
    %cst_74 = arith.constant 1.600000e+01 : f32
    %137 = vector.broadcast %cst_74 : f32 to vector<1x768xf32>
    %138 = arith.divf %136, %137 : vector<1x768xf32>
    %cst_75 = arith.constant 9.99999974E-6 : f32
    %139 = vector.broadcast %cst_75 : f32 to vector<1x768xf32>
    %140 = arith.addf %138, %139 : vector<1x768xf32>
    %141 = math.rsqrt %140 : vector<1x768xf32>
    %142 = arith.mulf %125, %141 : vector<1x768xf32>
    %143 = vector.broadcast %142 : vector<1x768xf32> to vector<16x768xf32>
    %144 = arith.mulf %133, %143 : vector<16x768xf32>
    %145 = vector.broadcast %127 : vector<1x768xf32> to vector<16x768xf32>
    %146 = arith.addf %144, %145 : vector<16x768xf32>
    %cst_76 = arith.constant 5.000000e-01 : f32
    %147 = vector.broadcast %cst_76 : f32 to vector<16x768xf32>
    %148 = arith.mulf %147, %146 : vector<16x768xf32>
    %cst_77 = arith.constant 0.707106769 : f32
    %149 = vector.broadcast %cst_77 : f32 to vector<16x768xf32>
    %150 = arith.mulf %146, %149 : vector<16x768xf32>
    %151 = math.erf %150 : vector<16x768xf32>
    %cst_78 = arith.constant 1.000000e+00 : f32
    %152 = vector.broadcast %cst_78 : f32 to vector<16x768xf32>
    %153 = arith.addf %152, %151 : vector<16x768xf32>
    %154 = arith.mulf %148, %153 : vector<16x768xf32>
    %155 = arith.truncf %154 : vector<16x768xf32> to vector<16x768xbf16>
    %c3_79 = arith.constant 3 : index
    %c0_80 = arith.constant 0 : index
    %c0_81 = arith.constant 0 : index
    %156 = vector.load %arg5[%c3_79, %c0_80, %c0_81] : memref<6x768x768xbf16, #tpu.memory_space<vmem>>, vector<1x768x768xbf16>
    %157 = vector.shape_cast %156 : vector<1x768x768xbf16> to vector<768x768xbf16>
    %cst_82 = arith.constant dense<0.000000e+00> : vector<16x768xf32>
    %158 = tpu.matmul %155, %157, %cst_82 {dimension_numbers = #tpu.dot_dimension_numbers<[1], [0], [0], [1], [0, 0, 1, 1], [], []>} : vector<16x768xbf16>, vector<768x768xbf16>, vector<16x768xf32> -> vector<16x768xf32>
    %c3_83 = arith.constant 3 : index
    %c0_84 = arith.constant 0 : index
    %c0_85 = arith.constant 0 : index
    %159 = vector.load %arg6[%c3_83, %c0_84, %c0_85] : memref<6x1x768xf32, #tpu.memory_space<vmem>>, vector<1x1x768xf32>
    %160 = vector.shape_cast %159 : vector<1x1x768xf32> to vector<1x768xf32>
    %161 = vector.broadcast %160 : vector<1x768xf32> to vector<16x768xf32>
    %162 = arith.addf %158, %161 : vector<16x768xf32>
    %c4 = arith.constant 4 : index
    %c0_86 = arith.constant 0 : index
    %c0_87 = arith.constant 0 : index
    %163 = vector.load %arg3[%c4, %c0_86, %c0_87] : memref<6x1x768xf32, #tpu.memory_space<vmem>>, vector<1x1x768xf32>
    %164 = vector.shape_cast %163 : vector<1x1x768xf32> to vector<1x768xf32>
    %c4_88 = arith.constant 4 : index
    %c0_89 = arith.constant 0 : index
    %c0_90 = arith.constant 0 : index
    %165 = vector.load %arg4[%c4_88, %c0_89, %c0_90] : memref<6x1x768xf32, #tpu.memory_space<vmem>>, vector<1x1x768xf32>
    %166 = vector.shape_cast %165 : vector<1x1x768xf32> to vector<1x768xf32>
    %cst_91 = arith.constant dense<0.000000e+00> : vector<768xf32>
    %167 = vector.multi_reduction <add>, %162, %cst_91 [0] : vector<16x768xf32> to vector<768xf32>
    %168 = vector.shape_cast %167 : vector<768xf32> to vector<1x768xf32>
    %cst_92 = arith.constant 1.600000e+01 : f32
    %169 = vector.broadcast %cst_92 : f32 to vector<1x768xf32>
    %170 = arith.divf %168, %169 : vector<1x768xf32>
    %171 = vector.broadcast %170 : vector<1x768xf32> to vector<16x768xf32>
    %172 = arith.subf %162, %171 : vector<16x768xf32>
    %173 = arith.mulf %172, %172 : vector<16x768xf32>
    %cst_93 = arith.constant dense<0.000000e+00> : vector<768xf32>
    %174 = vector.multi_reduction <add>, %173, %cst_93 [0] : vector<16x768xf32> to vector<768xf32>
    %175 = vector.shape_cast %174 : vector<768xf32> to vector<1x768xf32>
    %cst_94 = arith.constant 1.600000e+01 : f32
    %176 = vector.broadcast %cst_94 : f32 to vector<1x768xf32>
    %177 = arith.divf %175, %176 : vector<1x768xf32>
    %cst_95 = arith.constant 9.99999974E-6 : f32
    %178 = vector.broadcast %cst_95 : f32 to vector<1x768xf32>
    %179 = arith.addf %177, %178 : vector<1x768xf32>
    %180 = math.rsqrt %179 : vector<1x768xf32>
    %181 = arith.mulf %164, %180 : vector<1x768xf32>
    %182 = vector.broadcast %181 : vector<1x768xf32> to vector<16x768xf32>
    %183 = arith.mulf %172, %182 : vector<16x768xf32>
    %184 = vector.broadcast %166 : vector<1x768xf32> to vector<16x768xf32>
    %185 = arith.addf %183, %184 : vector<16x768xf32>
    %cst_96 = arith.constant 5.000000e-01 : f32
    %186 = vector.broadcast %cst_96 : f32 to vector<16x768xf32>
    %187 = arith.mulf %186, %185 : vector<16x768xf32>
    %cst_97 = arith.constant 0.707106769 : f32
    %188 = vector.broadcast %cst_97 : f32 to vector<16x768xf32>
    %189 = arith.mulf %185, %188 : vector<16x768xf32>
    %190 = math.erf %189 : vector<16x768xf32>
    %cst_98 = arith.constant 1.000000e+00 : f32
    %191 = vector.broadcast %cst_98 : f32 to vector<16x768xf32>
    %192 = arith.addf %191, %190 : vector<16x768xf32>
    %193 = arith.mulf %187, %192 : vector<16x768xf32>
    %194 = arith.truncf %193 : vector<16x768xf32> to vector<16x768xbf16>
    %c4_99 = arith.constant 4 : index
    %c0_100 = arith.constant 0 : index
    %c0_101 = arith.constant 0 : index
    %195 = vector.load %arg5[%c4_99, %c0_100, %c0_101] : memref<6x768x768xbf16, #tpu.memory_space<vmem>>, vector<1x768x768xbf16>
    %196 = vector.shape_cast %195 : vector<1x768x768xbf16> to vector<768x768xbf16>
    %cst_102 = arith.constant dense<0.000000e+00> : vector<16x768xf32>
    %197 = tpu.matmul %194, %196, %cst_102 {dimension_numbers = #tpu.dot_dimension_numbers<[1], [0], [0], [1], [0, 0, 1, 1], [], []>} : vector<16x768xbf16>, vector<768x768xbf16>, vector<16x768xf32> -> vector<16x768xf32>
    %c4_103 = arith.constant 4 : index
    %c0_104 = arith.constant 0 : index
    %c0_105 = arith.constant 0 : index
    %198 = vector.load %arg6[%c4_103, %c0_104, %c0_105] : memref<6x1x768xf32, #tpu.memory_space<vmem>>, vector<1x1x768xf32>
    %199 = vector.shape_cast %198 : vector<1x1x768xf32> to vector<1x768xf32>
    %200 = vector.broadcast %199 : vector<1x768xf32> to vector<16x768xf32>
    %201 = arith.addf %197, %200 : vector<16x768xf32>
    %c5 = arith.constant 5 : index
    %c0_106 = arith.constant 0 : index
    %c0_107 = arith.constant 0 : index
    %202 = vector.load %arg3[%c5, %c0_106, %c0_107] : memref<6x1x768xf32, #tpu.memory_space<vmem>>, vector<1x1x768xf32>
    %203 = vector.shape_cast %202 : vector<1x1x768xf32> to vector<1x768xf32>
    %c5_108 = arith.constant 5 : index
    %c0_109 = arith.constant 0 : index
    %c0_110 = arith.constant 0 : index
    %204 = vector.load %arg4[%c5_108, %c0_109, %c0_110] : memref<6x1x768xf32, #tpu.memory_space<vmem>>, vector<1x1x768xf32>
    %205 = vector.shape_cast %204 : vector<1x1x768xf32> to vector<1x768xf32>
    %cst_111 = arith.constant dense<0.000000e+00> : vector<768xf32>
    %206 = vector.multi_reduction <add>, %201, %cst_111 [0] : vector<16x768xf32> to vector<768xf32>
    %207 = vector.shape_cast %206 : vector<768xf32> to vector<1x768xf32>
    %cst_112 = arith.constant 1.600000e+01 : f32
    %208 = vector.broadcast %cst_112 : f32 to vector<1x768xf32>
    %209 = arith.divf %207, %208 : vector<1x768xf32>
    %210 = vector.broadcast %209 : vector<1x768xf32> to vector<16x768xf32>
    %211 = arith.subf %201, %210 : vector<16x768xf32>
    %212 = arith.mulf %211, %211 : vector<16x768xf32>
    %cst_113 = arith.constant dense<0.000000e+00> : vector<768xf32>
    %213 = vector.multi_reduction <add>, %212, %cst_113 [0] : vector<16x768xf32> to vector<768xf32>
    %214 = vector.shape_cast %213 : vector<768xf32> to vector<1x768xf32>
    %cst_114 = arith.constant 1.600000e+01 : f32
    %215 = vector.broadcast %cst_114 : f32 to vector<1x768xf32>
    %216 = arith.divf %214, %215 : vector<1x768xf32>
    %cst_115 = arith.constant 9.99999974E-6 : f32
    %217 = vector.broadcast %cst_115 : f32 to vector<1x768xf32>
    %218 = arith.addf %216, %217 : vector<1x768xf32>
    %219 = math.rsqrt %218 : vector<1x768xf32>
    %220 = arith.mulf %203, %219 : vector<1x768xf32>
    %221 = vector.broadcast %220 : vector<1x768xf32> to vector<16x768xf32>
    %222 = arith.mulf %211, %221 : vector<16x768xf32>
    %223 = vector.broadcast %205 : vector<1x768xf32> to vector<16x768xf32>
    %224 = arith.addf %222, %223 : vector<16x768xf32>
    %cst_116 = arith.constant 5.000000e-01 : f32
    %225 = vector.broadcast %cst_116 : f32 to vector<16x768xf32>
    %226 = arith.mulf %225, %224 : vector<16x768xf32>
    %cst_117 = arith.constant 0.707106769 : f32
    %227 = vector.broadcast %cst_117 : f32 to vector<16x768xf32>
    %228 = arith.mulf %224, %227 : vector<16x768xf32>
    %229 = math.erf %228 : vector<16x768xf32>
    %cst_118 = arith.constant 1.000000e+00 : f32
    %230 = vector.broadcast %cst_118 : f32 to vector<16x768xf32>
    %231 = arith.addf %230, %229 : vector<16x768xf32>
    %232 = arith.mulf %226, %231 : vector<16x768xf32>
    %233 = arith.truncf %232 : vector<16x768xf32> to vector<16x768xbf16>
    %c5_119 = arith.constant 5 : index
    %c0_120 = arith.constant 0 : index
    %c0_121 = arith.constant 0 : index
    %234 = vector.load %arg5[%c5_119, %c0_120, %c0_121] : memref<6x768x768xbf16, #tpu.memory_space<vmem>>, vector<1x768x768xbf16>
    %235 = vector.shape_cast %234 : vector<1x768x768xbf16> to vector<768x768xbf16>
    %cst_122 = arith.constant dense<0.000000e+00> : vector<16x768xf32>
    %236 = tpu.matmul %233, %235, %cst_122 {dimension_numbers = #tpu.dot_dimension_numbers<[1], [0], [0], [1], [0, 0, 1, 1], [], []>} : vector<16x768xbf16>, vector<768x768xbf16>, vector<16x768xf32> -> vector<16x768xf32>
    %c5_123 = arith.constant 5 : index
    %c0_124 = arith.constant 0 : index
    %c0_125 = arith.constant 0 : index
    %237 = vector.load %arg6[%c5_123, %c0_124, %c0_125] : memref<6x1x768xf32, #tpu.memory_space<vmem>>, vector<1x1x768xf32>
    %238 = vector.shape_cast %237 : vector<1x1x768xf32> to vector<1x768xf32>
    %239 = vector.broadcast %238 : vector<1x768xf32> to vector<16x768xf32>
    %240 = arith.addf %236, %239 : vector<16x768xf32>
    %241 = arith.addf %240, %123 : vector<16x768xf32>
    %c0_126 = arith.constant 0 : index
    %c0_127 = arith.constant 0 : index
    %242 = vector.load %arg7[%c0_126, %c0_127] : memref<1x768xf32, #tpu.memory_space<vmem>>, vector<1x768xf32>
    %c0_128 = arith.constant 0 : index
    %c0_129 = arith.constant 0 : index
    %243 = vector.load %arg8[%c0_128, %c0_129] : memref<1x768xf32, #tpu.memory_space<vmem>>, vector<1x768xf32>
    %cst_130 = arith.constant dense<0.000000e+00> : vector<768xf32>
    %244 = vector.multi_reduction <add>, %241, %cst_130 [0] : vector<16x768xf32> to vector<768xf32>
    %245 = vector.shape_cast %244 : vector<768xf32> to vector<1x768xf32>
    %cst_131 = arith.constant 1.600000e+01 : f32
    %246 = vector.broadcast %cst_131 : f32 to vector<1x768xf32>
    %247 = arith.divf %245, %246 : vector<1x768xf32>
    %248 = vector.broadcast %247 : vector<1x768xf32> to vector<16x768xf32>
    %249 = arith.subf %241, %248 : vector<16x768xf32>
    %250 = arith.mulf %249, %249 : vector<16x768xf32>
    %cst_132 = arith.constant dense<0.000000e+00> : vector<768xf32>
    %251 = vector.multi_reduction <add>, %250, %cst_132 [0] : vector<16x768xf32> to vector<768xf32>
    %252 = vector.shape_cast %251 : vector<768xf32> to vector<1x768xf32>
    %cst_133 = arith.constant 1.600000e+01 : f32
    %253 = vector.broadcast %cst_133 : f32 to vector<1x768xf32>
    %254 = arith.divf %252, %253 : vector<1x768xf32>
    %cst_134 = arith.constant 9.99999974E-6 : f32
    %255 = vector.broadcast %cst_134 : f32 to vector<1x768xf32>
    %256 = arith.addf %254, %255 : vector<1x768xf32>
    %257 = math.rsqrt %256 : vector<1x768xf32>
    %258 = arith.mulf %242, %257 : vector<1x768xf32>
    %259 = vector.broadcast %258 : vector<1x768xf32> to vector<16x768xf32>
    %260 = arith.mulf %249, %259 : vector<16x768xf32>
    %261 = vector.broadcast %243 : vector<1x768xf32> to vector<16x768xf32>
    %262 = arith.addf %260, %261 : vector<16x768xf32>
    %cst_135 = arith.constant 5.000000e-01 : f32
    %263 = vector.broadcast %cst_135 : f32 to vector<16x768xf32>
    %264 = arith.mulf %263, %262 : vector<16x768xf32>
    %cst_136 = arith.constant 0.707106769 : f32
    %265 = vector.broadcast %cst_136 : f32 to vector<16x768xf32>
    %266 = arith.mulf %262, %265 : vector<16x768xf32>
    %267 = math.erf %266 : vector<16x768xf32>
    %cst_137 = arith.constant 1.000000e+00 : f32
    %268 = vector.broadcast %cst_137 : f32 to vector<16x768xf32>
    %269 = arith.addf %268, %267 : vector<16x768xf32>
    %270 = arith.mulf %264, %269 : vector<16x768xf32>
    %271 = arith.truncf %270 : vector<16x768xf32> to vector<16x768xbf16>
    %c0_138 = arith.constant 0 : index
    %c0_139 = arith.constant 0 : index
    %272 = vector.load %arg9[%c0_138, %c0_139] : memref<768x128xbf16, #tpu.memory_space<vmem>>, vector<768x128xbf16>
    %cst_140 = arith.constant dense<0.000000e+00> : vector<16x128xf32>
    %273 = tpu.matmul %271, %272, %cst_140 {dimension_numbers = #tpu.dot_dimension_numbers<[1], [0], [0], [1], [0, 0, 1, 1], [], []>} : vector<16x768xbf16>, vector<768x128xbf16>, vector<16x128xf32> -> vector<16x128xf32>
    %c0_141 = arith.constant 0 : index
    %c0_142 = arith.constant 0 : index
    %274 = vector.load %arg10[%c0_141, %c0_142] : memref<1x128xf32, #tpu.memory_space<vmem>>, vector<1x128xf32>
    %275 = vector.broadcast %274 : vector<1x128xf32> to vector<16x128xf32>
    %276 = arith.addf %273, %275 : vector<16x128xf32>
    %c0_143 = arith.constant 0 : index
    %c0_144 = arith.constant 0 : index
    %277 = vector.load %arg11[%c0_143, %c0_144] : memref<16x128xf32, #tpu.memory_space<vmem>>, vector<16x128xf32>
    tpu.vector_store %arg11[%c0_143, %c0_144], %276 {strides = array<i32>} : memref<16x128xf32, #tpu.memory_space<vmem>>, vector<16x128xf32>,
    return
  }
}

</mosaic_0001>

<bundles_post_ra>
// kernel: neural_network_forward.1
= control target key start
LH: loop header
LB: loop body
LE: loop exit
PB: predicated region body
PF: predicated region fallthrough
CT: control target
= control target key end

     0   :  { %16 = vsyncpa [#allocation3], 0  ;;  %s22962_s0 = inlined_call_operand.vmem [shape: f32[16,128], index: 0, kind: input, shape index: {}]   ;;  %s22963_s1 = inlined_call_operand.hbm [shape: f32[128,768], index: 1, kind: input, shape index: {}]   ;;  %s22964_s2 = inlined_call_operand.hbm [shape: f32[1,768], index: 2, kind: input, shape index: {}]   ;;  %s22965_s3 = inlined_call_operand.hbm [shape: f32[6,1,768], index: 3, kind: input, shape index: {}]   ;;  %s22966_s4 = inlined_call_operand.hbm [shape: f32[6,1,768], index: 4, kind: input, shape index: {}]   ;;  %s22967_s5 = inlined_call_operand.hbm [shape: bf16[6,768,768], index: 5, kind: input, shape index: {}]   ;;  %s22968_s6 = inlined_call_operand.hbm [shape: f32[6,1,768], index: 6, kind: input, shape index: {}]   ;;  %s22969_s7 = inlined_call_operand.hbm [shape: f32[1,768], index: 7, kind: input, shape index: {}]   ;;  %s22970_s8 = inlined_call_operand.hbm [shape: f32[1,768], index: 8, kind: input, shape index: {}]   ;;  %s22971_s9 = inlined_call_operand.hbm [shape: bf16[768,128], index: 9, kind: input, shape index: {}]   ;;  %s22972_s10 = inlined_call_operand.hbm [shape: f32[1,128], index: 10, kind: input, shape index: {}]   ;;  %s22973_s11 = inlined_call_operand.hbm [shape: f32[16,128], index: 11, kind: output, shape index: {}]  }
   0x1   :  { %17 = vsyncpa [#allocation6], 0 }
   0x2   :  { %18 = vsyncpa [#allocation9], 0 }
   0x3   :  { %19 = vsyncpa [#allocation12], 0 }
   0x4   :  { %20 = vsyncpa [#allocation15], 0 }
   0x5   :  { %21 = vsyncpa [#allocation18], 0 }
   0x6   :  { %22 = vsyncpa [#allocation4], 0  ;;  %s21658_s17 = smov [#allocation5]   ;;  %s21402_s21 = scalar_lea.hbm %s22964_s2, 96 }
   0x7   :  { %s43_s18 = sshll.u32 %s21658_s17, 4  ;;  %p21403_p0 = scmp.ne.s32.totalorder %s22964_s2, %s21402_s21  ;;  %s44_s18 = int_to_ptr.vmem [resolvable:$true] %s43_s18 }
   0x8   :  { %p21406_p1 = scmp.lt.u32.totalorder %s21402_s21, %s22964_s2 }
   0xa   :  { %p21408_p2 = pnand %p21406_p1, %p21403_p0 }
   0xc   :  { %21411 = shalt.err (!%p21408_p2)
}
   0xd   :  { %s21412_s26 = scalar_lea.vmem %s44_s18, 96  ;;  %p21417_p4 = scmp.lt.s32.totalorder %s44_s18, %s44_s18 }
   0xe   :  { %p21413_p3 = scmp.ne.s32.totalorder %s44_s18, %s21412_s26  ;;  %p21418_p5 = scmp.lt.s32.totalorder %s21412_s26, %s21412_s26 }
  0x10   :  { %p21419_p6 = por %p21418_p5, %p21417_p4 }
  0x12   :  { %p21420_p7 = pnand %p21419_p6, %p21413_p3 }
  0x14   :  { %21423 = shalt.err (!%p21420_p7)
}
  0x15   :  { %46 = dma.hbm_to_vmem [thread:$0]  %s22964_s2, 96, %s44_s18, [#allocation6]  }
  0x16   :  { %s21659_s29 = smov [#allocation8]   ;;  %s21660_s12 = smov [#allocation11]  }
  0x17   :  { %s64_s30 = sshll.u32 %s21659_s29, 4  ;;  %s88_s13 = sshll.u32 %s21660_s12, 4  ;;  %s65_s30 = int_to_ptr.vmem [resolvable:$true] %s64_s30  ;;  %s89_s13 = int_to_ptr.vmem [resolvable:$true] %s88_s13 }
  0x18   :  { %s21424_s16 = scalar_lea.hbm %s22966_s4, 576 }
  0x19   :  { %p21425_p8 = scmp.ne.s32.totalorder %s22966_s4, %s21424_s16  ;;  %p21428_p9 = scmp.lt.u32.totalorder %s21424_s16, %s22966_s4 }
  0x1b   :  { %p21430_p10 = pnand %p21428_p9, %p21425_p8 }
  0x1d   :  { %21433 = shalt.err (!%p21430_p10)
}
  0x1e   :  { %s21434_s2 = scalar_lea.vmem %s65_s30, 576  ;;  %p21439_p12 = scmp.lt.s32.totalorder %s65_s30, %s65_s30 }
  0x1f   :  { %p21435_p11 = scmp.ne.s32.totalorder %s65_s30, %s21434_s2  ;;  %p21440_p13 = scmp.lt.s32.totalorder %s21434_s2, %s21434_s2 }
  0x21   :  { %p21441_p0 = por %p21440_p13, %p21439_p12 }
  0x23   :  { %p21442_p1 = pnand %p21441_p0, %p21435_p11 }
  0x25   :  { %21445 = shalt.err (!%p21442_p1)
}
  0x26   :  { %s21661_s18 = smov 96   ;;  %s21662_s22 = smov 6  }
  0x27   :  { %70 = dma.hbm_to_vmem [thread:$0]  %s22966_s4, 576, %s65_s30, [#allocation9], %s21661_s18, %s21661_s18, %s21662_s22  }
  0x28   :  { %s21446_s27 = scalar_lea.hbm %s22968_s6, 576 }
  0x29   :  { %p21447_p2 = scmp.ne.s32.totalorder %s22968_s6, %s21446_s27  ;;  %p21450_p3 = scmp.lt.u32.totalorder %s21446_s27, %s22968_s6 }
  0x2b   :  { %p21452_p4 = pnand %p21450_p3, %p21447_p2 }
  0x2d   :  { %21455 = shalt.err (!%p21452_p4)
}
  0x2e   :  { %s21456_s15 = scalar_lea.vmem %s89_s13, 576  ;;  %p21461_p6 = scmp.lt.s32.totalorder %s89_s13, %s89_s13 }
  0x2f   :  { %p21457_p5 = scmp.ne.s32.totalorder %s89_s13, %s21456_s15  ;;  %p21462_p7 = scmp.lt.s32.totalorder %s21456_s15, %s21456_s15 }
  0x31   :  { %p21463_p8 = por %p21462_p7, %p21461_p6 }
  0x33   :  { %p21464_p9 = pnand %p21463_p8, %p21457_p5 }
  0x35   :  { %21467 = shalt.err (!%p21464_p9)
}
  0x36   :  { %94 = dma.hbm_to_vmem [thread:$0]  %s22968_s6, 576, %s89_s13, [#allocation12], %s21661_s18, %s21661_s18, %s21662_s22  }
  0x37   :  { %s21663_s16 = smov [#allocation14]   ;;  %s21664_s19 = smov [#allocation2]  }
  0x38   :  { %s111_s17 = sshll.u32 %s21663_s16, 4  ;;  %s30_s20 = sshll.u32 %s21664_s19, 4  ;;  %s112_s17 = int_to_ptr.vmem [resolvable:$true] %s111_s17  ;;  %s31_s20 = int_to_ptr.vmem [resolvable:$true] %s30_s20 }
  0x39   :  { %s21468_s23 = scalar_lea.hbm %s22970_s8, 96 }
  0x3a   :  { %p21469_p10 = scmp.ne.s32.totalorder %s22970_s8, %s21468_s23  ;;  %p21472_p11 = scmp.lt.u32.totalorder %s21468_s23, %s22970_s8 }
  0x3c   :  { %p21474_p12 = pnand %p21472_p11, %p21469_p10 }
  0x3e   :  { %21477 = shalt.err (!%p21474_p12)
}
  0x3f   :  { %s21478_s6 = scalar_lea.vmem %s112_s17, 96  ;;  %p21483_p0 = scmp.lt.s32.totalorder %s112_s17, %s112_s17 }
  0x40   :  { %p21479_p13 = scmp.ne.s32.totalorder %s112_s17, %s21478_s6  ;;  %p21484_p1 = scmp.lt.s32.totalorder %s21478_s6, %s21478_s6 }
  0x42   :  { %p21485_p2 = por %p21484_p1, %p21483_p0 }
  0x44   :  { %p21486_p3 = pnand %p21485_p2, %p21479_p13 }
  0x46   :  { %21489 = shalt.err (!%p21486_p3)
}
  0x47   :  { %114 = dma.hbm_to_vmem [thread:$0]  %s22970_s8, 96, %s112_s17, [#allocation15]  }
  0x48   :  { %s21490_s14 = scalar_lea.hbm %s22963_s1, 12288 }
  0x49   :  { %p21491_p4 = scmp.ne.s32.totalorder %s22963_s1, %s21490_s14  ;;  %p21494_p5 = scmp.lt.u32.totalorder %s21490_s14, %s22963_s1 }
  0x4b   :  { %p21496_p6 = pnand %p21494_p5, %p21491_p4 }
  0x4d   :  { %21499 = shalt.err (!%p21496_p6)
}
  0x4e   :  { %s21500_s19 = scalar_lea.vmem %s31_s20, 12288  ;;  %p21505_p8 = scmp.lt.s32.totalorder %s31_s20, %s31_s20 }
  0x4f   :  { %p21501_p7 = scmp.ne.s32.totalorder %s31_s20, %s21500_s19  ;;  %p21506_p9 = scmp.lt.s32.totalorder %s21500_s19, %s21500_s19 }
  0x51   :  { %p21507_p10 = por %p21506_p9, %p21505_p8 }
  0x53   :  { %p21508_p11 = pnand %p21507_p10, %p21501_p7 }
  0x55   :  { %21511 = shalt.err (!%p21508_p11)
}
  0x56   :  { %s21665_s8 = smov 768   ;;  %s21666_s17 = smov 48  }
  0x57   :  { %36 = dma.hbm_to_vmem [thread:$0]  %s22963_s1, 12288, %s31_s20, [#allocation3], %s21665_s8, %s21665_s8, %s21666_s17  }
  0x58   :  { %s21667_s23 = smov [#allocation7]   ;;  %s21668_s25 = smov [#allocation10]  }
  0x59   :  { %s52_s24 = sshll.u32 %s21667_s23, 4  ;;  %s76_s26 = sshll.u32 %s21668_s25, 4  ;;  %s53_s24 = int_to_ptr.vmem [resolvable:$true] %s52_s24  ;;  %s77_s26 = int_to_ptr.vmem [resolvable:$true] %s76_s26 }
  0x5a   :  { %s21512_s13 = scalar_lea.hbm %s22965_s3, 576 }
  0x5b   :  { %p21513_p12 = scmp.ne.s32.totalorder %s22965_s3, %s21512_s13  ;;  %p21516_p13 = scmp.lt.u32.totalorder %s21512_s13, %s22965_s3 }
  0x5d   :  { %p21518_p0 = pnand %p21516_p13, %p21513_p12 }
  0x5f   :  { %21521 = shalt.err (!%p21518_p0)
}
  0x60   :  { %s21522_s1 = scalar_lea.vmem %s53_s24, 576  ;;  %p21527_p2 = scmp.lt.s32.totalorder %s53_s24, %s53_s24 }
  0x61   :  { %p21523_p1 = scmp.ne.s32.totalorder %s53_s24, %s21522_s1  ;;  %p21528_p3 = scmp.lt.s32.totalorder %s21522_s1, %s21522_s1 }
  0x63   :  { %p21529_p4 = por %p21528_p3, %p21527_p2 }
  0x65   :  { %p21530_p5 = pnand %p21529_p4, %p21523_p1 }
  0x67   :  { %21533 = shalt.err (!%p21530_p5)
}
  0x68   :  { %58 = dma.hbm_to_vmem [thread:$0]  %s22965_s3, 576, %s53_s24, [#allocation6], %s21661_s18, %s21661_s18, %s21662_s22  }
  0x69   :  { %s21534_s16 = scalar_lea.hbm %s22967_s5, 221184 }
  0x6a   :  { %p21535_p6 = scmp.ne.s32.totalorder %s22967_s5, %s21534_s16  ;;  %p21538_p7 = scmp.lt.u32.totalorder %s21534_s16, %s22967_s5 }
  0x6c   :  { %p21540_p8 = pnand %p21538_p7, %p21535_p6 }
  0x6e   :  { %21543 = shalt.err (!%p21540_p8)
}
  0x6f   :  { %s21544_s2 = scalar_lea.vmem %s77_s26, 221184  ;;  %p21549_p10 = scmp.lt.s32.totalorder %s77_s26, %s77_s26 }
  0x70   :  { %p21545_p9 = scmp.ne.s32.totalorder %s77_s26, %s21544_s2  ;;  %p21550_p11 = scmp.lt.s32.totalorder %s21544_s2, %s21544_s2 }
  0x72   :  { %p21551_p12 = por %p21550_p11, %p21549_p10 }
  0x74   :  { %p21552_p13 = pnand %p21551_p12, %p21545_p9 }
  0x76   :  { %21555 = shalt.err (!%p21552_p13)
}
  0x77   :  { %s21669_s3 = smov 384   ;;  %s21670_s18 = smov 24  }
  0x78   :  { %82 = dma.hbm_to_vmem [thread:$0]  %s22967_s5, 221184, %s77_s26, [#allocation9], %s21669_s3, %s21669_s3, %s21670_s18  }
  0x79   :  { %s21671_s24 = smov [#allocation13]   ;;  %s21672_s27 = smov [#allocation16]  }
  0x7a   :  { %s101_s25 = sshll.u32 %s21671_s24, 4  ;;  %s120_s6 = sshll.u32 %s21672_s27, 4  ;;  %s102_s25 = int_to_ptr.vmem [resolvable:$true] %s101_s25  ;;  %s121_s6 = int_to_ptr.vmem [resolvable:$true] %s120_s6 }
  0x7b   :  { %s21556_s29 = scalar_lea.hbm %s22969_s7, 96 }
  0x7c   :  { %p21557_p0 = scmp.ne.s32.totalorder %s22969_s7, %s21556_s29  ;;  %p21560_p1 = scmp.lt.u32.totalorder %s21556_s29, %s22969_s7 }
  0x7e   :  { %p21562_p2 = pnand %p21560_p1, %p21557_p0 }
  0x80   :  { %21565 = shalt.err (!%p21562_p2)
}
  0x81   :  { %s21566_s5 = scalar_lea.vmem %s102_s25, 96  ;;  %p21571_p4 = scmp.lt.s32.totalorder %s102_s25, %s102_s25 }
  0x82   :  { %p21567_p3 = scmp.ne.s32.totalorder %s102_s25, %s21566_s5  ;;  %p21572_p5 = scmp.lt.s32.totalorder %s21566_s5, %s21566_s5 }
  0x84   :  { %p21573_p6 = por %p21572_p5, %p21571_p4 }
  0x86   :  { %p21574_p7 = pnand %p21573_p6, %p21567_p3 }
  0x88   :  { %21577 = shalt.err (!%p21574_p7)
}
  0x89   :  { %104 = dma.hbm_to_vmem [thread:$0]  %s22969_s7, 96, %s102_s25, [#allocation12]  }
  0x8a   :  { %s21578_s16 = scalar_lea.hbm %s22971_s9, 6144 }
  0x8b   :  { %p21579_p8 = scmp.ne.s32.totalorder %s22971_s9, %s21578_s16  ;;  %p21582_p9 = scmp.lt.u32.totalorder %s21578_s16, %s22971_s9 }
  0x8d   :  { %p21584_p10 = pnand %p21582_p9, %p21579_p8 }
  0x8f   :  { %21587 = shalt.err (!%p21584_p10)
}
  0x90   :  { %s21588_s2 = scalar_lea.vmem %s121_s6, 6144  ;;  %p21593_p12 = scmp.lt.s32.totalorder %s121_s6, %s121_s6 }
  0x91   :  { %p21589_p11 = scmp.ne.s32.totalorder %s121_s6, %s21588_s2  ;;  %p21594_p13 = scmp.lt.s32.totalorder %s21588_s2, %s21588_s2 }
  0x93   :  { %p21595_p0 = por %p21594_p13, %p21593_p12 }
  0x95   :  { %p21596_p1 = pnand %p21595_p0, %p21589_p11 }
  0x97   :  { %21599 = shalt.err (!%p21596_p1)
}
  0x98   :  { %s21673_s7 = smov 64   ;;  %s21674_s3 = smov 4  }
  0x99   :  { %126 = dma.hbm_to_vmem [thread:$0]  %s22971_s9, 6144, %s121_s6, [#allocation15], %s21673_s7, %s21673_s7, %s21674_s3  }
  0x9a   :  { %s21675_s23 = smov [#allocation17]   ;;  %s21600_s13 = scalar_lea.hbm %s22972_s10, 16 }
  0x9b   :  { %s133_s24 = sshll.u32 %s21675_s23, 4  ;;  %p21601_p2 = scmp.ne.s32.totalorder %s22972_s10, %s21600_s13  ;;  %s134_s24 = int_to_ptr.vmem [resolvable:$true] %s133_s24 }
  0x9c   :  { %p21604_p3 = scmp.lt.u32.totalorder %s21600_s13, %s22972_s10 }
  0x9e   :  { %p21606_p4 = pnand %p21604_p3, %p21601_p2 }
  0xa0   :  { %21609 = shalt.err (!%p21606_p4)
}
  0xa1   :  { %s21610_s1 = scalar_lea.vmem %s134_s24, 16  ;;  %s21614_s9 = scalar_lea.vmem %s134_s24, 32 }
  0xa2   :  { %p21611_p5 = scmp.ne.s32.totalorder %s134_s24, %s21610_s1  ;;  %p21615_p6 = scmp.lt.s32.totalorder %s134_s24, %s134_s24 }
  0xa3   :  { %p21616_p7 = scmp.lt.s32.totalorder %s21614_s9, %s21610_s1 }
  0xa5   :  { %p21617_p8 = por %p21616_p7, %p21615_p6 }
  0xa7   :  { %p21618_p9 = pnand %p21617_p8, %p21611_p5 }
  0xa9   :  { %21621 = shalt.err (!%p21618_p9)
}
  0xaa   :  { %136 = dma.hbm_to_vmem [thread:$0]  %s22972_s10, 16, %s134_s24, [#allocation18]  }
  0xab   :  { %21644 = dma.done.wait [#allocation3], 12288  }
  0xac   :  { %21645 = vsyncadd [#allocation3], 4294955008 }
  0xad   :  { %21646 = dma.done.wait [#allocation6], 672  }
  0xae   :  { %21647 = vsyncadd [#allocation6], 4294966624 }
  0xaf   :  { %21648 = dma.done.wait [#allocation9], 221760  }
  0xb0   :  { %21649 = vsyncadd [#allocation9], 4294745536 }
  0xb1   :  { %21650 = dma.done.wait [#allocation12], 672  }
  0xb2   :  { %21651 = vsyncadd [#allocation12], 4294966624 }
  0xb3   :  { %21652 = dma.done.wait [#allocation15], 6240  }
  0xb4   :  { %21653 = vsyncadd [#allocation15], 4294961056 }
  0xb5   :  { %21654 = dma.done.wait [#allocation18], 16  }
  0xb6   :  { %21655 = vsyncadd [#allocation18], 4294967280  ;;  %v21676_v0 = vmov 0.0   ;;  %v171_v1 = vld [vmem:[#allocation2 + $0x8] sm:$0xff]  ;;  %v177_v2 = vld [vmem:[#allocation2 + $0x38] sm:$0xff] }
  0xb7   :  { %362 = vmatprep.mubr.f32.mxu0 %v21676_v0  ;;  %439 = vmatprep.mubr.f32.mxu1 %v21676_v0  ;;  %v173_v3 = vld [vmem:[#allocation2 + $0x18] sm:$0xff]  ;;  %v18175_v4 = vpack.c.bf16 %v177_v2, %v171_v1  ;;  %v179_v5 = vld [vmem:[#allocation2 + $0x48] sm:$0xff]  ;;  %v170_v6 = vld [vmem:[#allocation2] sm:$0xff] }
  0xb8   :  { %v176_v7 = vld [vmem:[#allocation2 + $0x30] sm:$0xff]  ;;  %v18207_v8 = vpack.c.bf16 %v179_v5, %v173_v3  ;;  %v178_v11 = vld [vmem:[#allocation2 + $0x40] sm:$0xff]  ;;  %v183_v12 = vld [vmem:[#allocation2 + $0x68] sm:$0xff] }
  0xb9   :  { %v18177_v9 = vpack.c.bf16 %v176_v7, %v170_v6  ;;  %v172_v10 = vld [vmem:[#allocation2 + $0x10] sm:$0xff]  ;;  %18176 = vmatprep.subr.bf16.mxu0 %v18175_v4  ;;  %v189_v14 = vld [vmem:[#allocation2 + $0x98] sm:$0xff]  ;;  %v191_v16 = vld [vmem:[#allocation2 + $0xa8] sm:$0xff] }
  0xba   :  { %v18209_v13 = vpack.c.bf16 %v178_v11, %v172_v10  ;;  %v185_v15 = vld [vmem:[#allocation2 + $0x78] sm:$0xff]  ;;  %18208 = vmatprep.subr.bf16.mxu1 %v18207_v8  ;;  %v18179_v17 = vpack.c.bf16 %v189_v14, %v183_v12  ;;  %v182_v19 = vld [vmem:[#allocation2 + $0x60] sm:$0xff]  ;;  %v188_v20 = vld [vmem:[#allocation2 + $0x90] sm:$0xff] }
  0xbb   :  { %18178 = vmatpush1.bf16.msra.mxu0 %v18177_v9  ;;  %v18211_v18 = vpack.c.bf16 %v191_v16, %v185_v15  ;;  %v184_v21 = vld [vmem:[#allocation2 + $0x70] sm:$0xff]  ;;  %v18181_v22 = vpack.c.bf16 %v188_v20, %v182_v19  ;;  %v190_v23 = vld [vmem:[#allocation2 + $0xa0] sm:$0xff]  ;;  %v195_v24 = vld [vmem:[#allocation2 + $0xc8] sm:$0xff] }
  0xbc   :  { %18210 = vmatpush1.bf16.msra.mxu1 %v18209_v13  ;;  %v201_v25 = vld [vmem:[#allocation2 + $0xf8] sm:$0xff]  ;;  %18180 = vmatprep.subr.bf16.mxu0 %v18179_v17  ;;  %v18213_v26 = vpack.c.bf16 %v190_v23, %v184_v21  ;;  %v203_v29 = vld [vmem:[#allocation2 + $0x108] sm:$0xff]  ;;  %v194_v30 = vld [vmem:[#allocation2 + $0xc0] sm:$0xff] }
  0xbd   :  { %18212 = vmatprep.subr.bf16.mxu1 %v18211_v18  ;;  %v18183_v27 = vpack.c.bf16 %v201_v25, %v195_v24  ;;  %v197_v28 = vld [vmem:[#allocation2 + $0xd8] sm:$0xff]  ;;  %v200_v32 = vld [vmem:[#allocation2 + $0xf0] sm:$0xff]  ;;  %v202_v34 = vld [vmem:[#allocation2 + $0x100] sm:$0xff] }
  0xbe   :  { %v18215_v31 = vpack.c.bf16 %v203_v29, %v197_v28  ;;  %v196_v33 = vld [vmem:[#allocation2 + $0xd0] sm:$0xff]  ;;  %v18185_v35 = vpack.c.bf16 %v200_v32, %v194_v30  ;;  %v207_v36 = vld [vmem:[#allocation2 + $0x128] sm:$0xff]  ;;  %v213_v37 = vld [vmem:[#allocation2 + $0x158] sm:$0xff] }
  0xbf   :  { %18182 = vmatpush1.bf16.msra.mxu0 %v18181_v22  ;;  %v209_v38 = vld [vmem:[#allocation2 + $0x138] sm:$0xff]  ;;  %v18217_v39 = vpack.c.bf16 %v202_v34, %v196_v33  ;;  %v18187_v40 = vpack.c.bf16 %v213_v37, %v207_v36  ;;  %v215_v41 = vld [vmem:[#allocation2 + $0x168] sm:$0xff]  ;;  %v206_v42 = vld [vmem:[#allocation2 + $0x120] sm:$0xff] }
  0xc0   :  { %18214 = vmatpush1.bf16.msra.mxu1 %v18213_v26  ;;  %18184 = vmatprep.subr.bf16.mxu0 %v18183_v27  ;;  %v212_v43 = vld [vmem:[#allocation2 + $0x150] sm:$0xff]  ;;  %v18219_v44 = vpack.c.bf16 %v215_v41, %v209_v38  ;;  %v214_v46 = vld [vmem:[#allocation2 + $0x160] sm:$0xff]  ;;  %v219_v47 = vld [vmem:[#allocation2 + $0x188] sm:$0xff] }
  0xc1   :  { %18216 = vmatprep.subr.bf16.mxu1 %v18215_v31  ;;  %v208_v45 = vld [vmem:[#allocation2 + $0x130] sm:$0xff]  ;;  %v225_v48 = vld [vmem:[#allocation2 + $0x1b8] sm:$0xff]  ;;  %v227_v50 = vld [vmem:[#allocation2 + $0x1c8] sm:$0xff]  ;;  %v18189_v51 = vpack.c.bf16 %v212_v43, %v206_v42 }
  0xc2   :  { %v221_v49 = vld [vmem:[#allocation2 + $0x198] sm:$0xff]  ;;  %v18221_v52 = vpack.c.bf16 %v214_v46, %v208_v45  ;;  %v18191_v53 = vpack.c.bf16 %v225_v48, %v219_v47  ;;  %v218_v54 = vld [vmem:[#allocation2 + $0x180] sm:$0xff]  ;;  %v224_v55 = vld [vmem:[#allocation2 + $0x1b0] sm:$0xff] }
  0xc3   :  { %18186 = vmatpush1.bf16.msra.mxu0 %v18185_v35  ;;  %v220_v56 = vld [vmem:[#allocation2 + $0x190] sm:$0xff]  ;;  %v18223_v57 = vpack.c.bf16 %v227_v50, %v221_v49  ;;  %v226_v58 = vld [vmem:[#allocation2 + $0x1c0] sm:$0xff]  ;;  %v231_v59 = vld [vmem:[#allocation2 + $0x1e8] sm:$0xff]  ;;  %v18193_v63 = vpack.c.bf16 %v224_v55, %v218_v54 }
  0xc4   :  { %18218 = vmatpush1.bf16.msra.mxu1 %v18217_v39  ;;  %18188 = vmatprep.subr.bf16.mxu0 %v18187_v40  ;;  %v237_v60 = vld [vmem:[#allocation2 + $0x218] sm:$0xff]  ;;  %v239_v62 = vld [vmem:[#allocation2 + $0x228] sm:$0xff]  ;;  %v18225_v1 = vpack.c.bf16 %v226_v58, %v220_v56  ;;  %v230_v3 = vld [vmem:[#allocation2 + $0x1e0] sm:$0xff] }
  0xc5   :  { %18220 = vmatprep.subr.bf16.mxu1 %v18219_v44  ;;  %v233_v61 = vld [vmem:[#allocation2 + $0x1f8] sm:$0xff]  ;;  %v18195_v2 = vpack.c.bf16 %v237_v60, %v231_v59  ;;  %v236_v4 = vld [vmem:[#allocation2 + $0x210] sm:$0xff]  ;;  %v238_v7 = vld [vmem:[#allocation2 + $0x220] sm:$0xff] }
  0xc6   :  { %v232_v5 = vld [vmem:[#allocation2 + $0x1f0] sm:$0xff]  ;;  %v18227_v6 = vpack.c.bf16 %v239_v62, %v233_v61  ;;  %v243_v8 = vld [vmem:[#allocation2 + $0x248] sm:$0xff]  ;;  %v249_v9 = vld [vmem:[#allocation2 + $0x278] sm:$0xff]  ;;  %v18197_v12 = vpack.c.bf16 %v236_v4, %v230_v3 }
  0xc7   :  { %18190 = vmatpush1.bf16.msra.mxu0 %v18189_v51  ;;  %v245_v10 = vld [vmem:[#allocation2 + $0x258] sm:$0xff]  ;;  %v251_v11 = vld [vmem:[#allocation2 + $0x288] sm:$0xff]  ;;  %v18229_v13 = vpack.c.bf16 %v238_v7, %v232_v5  ;;  %v18199_v14 = vpack.c.bf16 %v249_v9, %v243_v8  ;;  %v242_v15 = vld [vmem:[#allocation2 + $0x240] sm:$0xff] }
  0xc8   :  { %18222 = vmatpush1.bf16.msra.mxu1 %v18221_v52  ;;  %18192 = vmatprep.subr.bf16.mxu0 %v18191_v53  ;;  %v248_v16 = vld [vmem:[#allocation2 + $0x270] sm:$0xff]  ;;  %v18231_v18 = vpack.c.bf16 %v251_v11, %v245_v10  ;;  %v250_v19 = vld [vmem:[#allocation2 + $0x280] sm:$0xff]  ;;  %v255_v20 = vld [vmem:[#allocation2 + $0x2a8] sm:$0xff] }
  0xc9   :  { %18224 = vmatprep.subr.bf16.mxu1 %v18223_v57  ;;  %v244_v17 = vld [vmem:[#allocation2 + $0x250] sm:$0xff]  ;;  %v261_v21 = vld [vmem:[#allocation2 + $0x2d8] sm:$0xff]  ;;  %v263_v23 = vld [vmem:[#allocation2 + $0x2e8] sm:$0xff]  ;;  %v18201_v24 = vpack.c.bf16 %v248_v16, %v242_v15 }
  0xca   :  { %v257_v22 = vld [vmem:[#allocation2 + $0x2b8] sm:$0xff]  ;;  %v18233_v25 = vpack.c.bf16 %v250_v19, %v244_v17  ;;  %v18203_v26 = vpack.c.bf16 %v261_v21, %v255_v20  ;;  %v254_v27 = vld [vmem:[#allocation2 + $0x2a0] sm:$0xff]  ;;  %v260_v28 = vld [vmem:[#allocation2 + $0x2d0] sm:$0xff] }
  0xcb   :  { %18194 = vmatpush1.bf16.msra.mxu0 %v18193_v63  ;;  %v256_v29 = vld [vmem:[#allocation2 + $0x2b0] sm:$0xff]  ;;  %v18235_v30 = vpack.c.bf16 %v263_v23, %v257_v22  ;;  %v262_v31 = vld [vmem:[#allocation2 + $0x2e0] sm:$0xff]  ;;  %v175_v32 = vld [vmem:[#allocation2 + $0x28] sm:$0xff]  ;;  %v18205_v34 = vpack.c.bf16 %v260_v28, %v254_v27 }
  0xcc   :  { %18226 = vmatpush1.bf16.msra.mxu1 %v18225_v1  ;;  %18196 = vmatprep.subr.bf16.mxu0 %v18195_v2  ;;  %v181_v33 = vld [vmem:[#allocation2 + $0x58] sm:$0xff]  ;;  %v18237_v35 = vpack.c.bf16 %v262_v31, %v256_v29  ;;  %v174_v37 = vld [vmem:[#allocation2 + $0x20] sm:$0xff]  ;;  %v180_v38 = vld [vmem:[#allocation2 + $0x50] sm:$0xff] }
  0xcd   :  { %18228 = vmatprep.subr.bf16.mxu1 %v18227_v6  ;;  %v18239_v36 = vpack.c.bf16 %v181_v33, %v175_v32  ;;  %v21875_v39 = vld [vmem:[%s22962_s0] sm:$0xff]  ;;  %v187_v40 = vld [vmem:[#allocation2 + $0x88] sm:$0xff]  ;;  %v193_v41 = vld [vmem:[#allocation2 + $0xb8] sm:$0xff]  ;;  %v18241_v43 = vpack.c.bf16 %v180_v38, %v174_v37 }
  0xce   :  { %v186_v42 = vld [vmem:[#allocation2 + $0x80] sm:$0xff]  ;;  %v192_v44 = vld [vmem:[#allocation2 + $0xb0] sm:$0xff]  ;;  %v199_v45 = vld [vmem:[#allocation2 + $0xe8] sm:$0xff]  ;;  %v18243_v48 = vpack.c.bf16 %v193_v41, %v187_v40 }
  0xcf   :  { %18198 = vmatpush1.bf16.msra.mxu0 %v18197_v12  ;;  %v205_v46 = vld [vmem:[#allocation2 + $0x118] sm:$0xff]  ;;  %v169_v47 = vld [vmem:[%s22962_s0 + $0x8] sm:$0xff]  ;;  %v198_v49 = vld [vmem:[#allocation2 + $0xe0] sm:$0xff]  ;;  %v18245_v51 = vpack.c.bf16 %v192_v44, %v186_v42  ;;  %s21678_s0 = smov [#allocation19]  }
  0xd0   :  { %18230 = vmatpush1.bf16.msra.mxu1 %v18229_v13  ;;  %18200 = vmatprep.subr.bf16.mxu0 %v18199_v14  ;;  %v204_v50 = vld [vmem:[#allocation2 + $0x110] sm:$0xff]  ;;  %v211_v52 = vld [vmem:[#allocation2 + $0x148] sm:$0xff]  ;;  %v217_v53 = vld [vmem:[#allocation2 + $0x178] sm:$0xff]  ;;  %v18247_v54 = vpack.c.bf16 %v205_v46, %v199_v45  ;;  %s16315_s4 = sshll.u32 %s21678_s0, 4  ;;  %s16316_s4 = int_to_ptr.vmem [resolvable:$true] %s16315_s4 }
  0xd1   :  { %18232 = vmatprep.subr.bf16.mxu1 %v18231_v18  ;;  %v210_v55 = vld [vmem:[#allocation2 + $0x140] sm:$0xff]  ;;  %v216_v56 = vld [vmem:[#allocation2 + $0x170] sm:$0xff]  ;;  %v18249_v57 = vpack.c.bf16 %v204_v50, %v198_v49  ;;  %v223_v58 = vld [vmem:[#allocation2 + $0x1a8] sm:$0xff]  ;;  %v18251_v60 = vpack.c.bf16 %v217_v53, %v211_v52  ;;  %s21622_s30 = scalar_lea.vmem %s16316_s4, 256  ;;  %p21627_p11 = scmp.lt.s32.totalorder %s16316_s4, %s16316_s4 }
  0xd2   :  { %v229_v59 = vld [vmem:[#allocation2 + $0x1d8] sm:$0xff]  ;;  %v222_v61 = vld [vmem:[#allocation2 + $0x1a0] sm:$0xff]  ;;  %v228_v62 = vld [vmem:[#allocation2 + $0x1d0] sm:$0xff]  ;;  %v18253_v63 = vpack.c.bf16 %v216_v56, %v210_v55  ;;  %p21623_p10 = scmp.ne.s32.totalorder %s16316_s4, %s21622_s30  ;;  %p21628_p12 = scmp.lt.s32.totalorder %s21622_s30, %s21622_s30 }
  0xd3   :  { %18202 = vmatpush1.bf16.msra.mxu0 %v18201_v24  ;;  %v235_v1 = vld [vmem:[#allocation2 + $0x208] sm:$0xff]  ;;  %v241_v2 = vld [vmem:[#allocation2 + $0x238] sm:$0xff]  ;;  %v18255_v3 = vpack.c.bf16 %v229_v59, %v223_v58  ;;  %v234_v4 = vld [vmem:[#allocation2 + $0x200] sm:$0xff]  ;;  %v18257_v6 = vpack.c.bf16 %v228_v62, %v222_v61 }
  0xd4   :  { %18234 = vmatpush1.bf16.msra.mxu1 %v18233_v25  ;;  %18204 = vmatprep.subr.bf16.mxu0 %v18203_v26  ;;  %v240_v5 = vld [vmem:[#allocation2 + $0x230] sm:$0xff]  ;;  %v247_v7 = vld [vmem:[#allocation2 + $0x268] sm:$0xff]  ;;  %v253_v8 = vld [vmem:[#allocation2 + $0x298] sm:$0xff]  ;;  %v18259_v9 = vpack.c.bf16 %v241_v2, %v235_v1  ;;  %p21629_p13 = por %p21628_p12, %p21627_p11 }
  0xd5   :  { %18236 = vmatprep.subr.bf16.mxu1 %v18235_v30  ;;  %v246_v10 = vld [vmem:[#allocation2 + $0x260] sm:$0xff]  ;;  %v252_v11 = vld [vmem:[#allocation2 + $0x290] sm:$0xff]  ;;  %v18261_v12 = vpack.c.bf16 %v240_v5, %v234_v4  ;;  %v259_v13 = vld [vmem:[#allocation2 + $0x2c8] sm:$0xff]  ;;  %v18263_v15 = vpack.c.bf16 %v253_v8, %v247_v7 }
  0xd6   :  { %v265_v14 = vld [vmem:[#allocation2 + $0x2f8] sm:$0xff]  ;;  %v258_v16 = vld [vmem:[#allocation2 + $0x2c0] sm:$0xff]  ;;  %v264_v17 = vld [vmem:[#allocation2 + $0x2f0] sm:$0xff]  ;;  %v18265_v18 = vpack.c.bf16 %v252_v11, %v246_v10  ;;  %p21630_p0 = pnand %p21629_p13, %p21623_p10 }
  0xd7   :  { %18206 = vmatpush1.bf16.msra.mxu0 %v18205_v34  ;;  %v18267_v19 = vpack.c.bf16 %v265_v14, %v259_v13  ;;  %v18269_v20 = vpack.c.bf16 %v264_v17, %v258_v16  ;;  %v18512_v21 = vld [vmem:[#allocation10 + $0x4] ss:$24 sps:$4 sm:$0xff]   ;;  %v18510_v23 = vld [vmem:[#allocation10] ss:$24 sps:$4 sm:$0xff]   ;;  %v18518_v25 = vld [vmem:[#allocation10 + $0x34] ss:$24 sps:$4 sm:$0xff]  }
  0xd8   :  { %18238 = vmatpush1.bf16.msra.mxu1 %v18237_v35  ;;  %18240 = vmatprep.subr.bf16.mxu0 %v18239_v36  ;;  %v18515_v22 = vld [vmem:[#allocation10 + $0xc] ss:$24 sps:$4 sm:$0xff]   ;;  %v18513_v24 = vld [vmem:[#allocation10 + $0x8] ss:$24 sps:$4 sm:$0xff]   ;;  %v18521_v26 = vld [vmem:[#allocation10 + $0x3c] ss:$24 sps:$4 sm:$0xff]  }
  0xd9   :  { %2624 = vmatprep.subr.bf16.mxu1 %v18512_v21  ;;  %v18516_v27 = vld [vmem:[#allocation10 + $0x30] ss:$24 sps:$4 sm:$0xff]   ;;  %v18524_v29 = vld [vmem:[#allocation10 + $0x64] ss:$24 sps:$4 sm:$0xff]   ;;  %v18530_v32 = vld [vmem:[#allocation10 + $0x94] ss:$24 sps:$4 sm:$0xff]  }
  0xda   :  { %363 = vmatmul.mubr.f32.vlgmr.msra.gmra.mrb[0].mxu0 %v21875_v39  ;;  %v18519_v28 = vld [vmem:[#allocation10 + $0x38] ss:$24 sps:$4 sm:$0xff]   ;;  %v18527_v30 = vld [vmem:[#allocation10 + $0x6c] ss:$24 sps:$4 sm:$0xff]   ;;  %v18525_v31 = vld [vmem:[#allocation10 + $0x68] ss:$24 sps:$4 sm:$0xff]  }
  0xdb   :  { %440 = vmatmul.mubr.f32.vlgmr.msra.gmra.mrb[0].mxu1 %v21875_v39  ;;  %18242 = vmatpush1.bf16.msra.mxu0 %v18241_v43  ;;  %v18533_v33 = vld [vmem:[#allocation10 + $0x9c] ss:$24 sps:$4 sm:$0xff]   ;;  %v18528_v34 = vld [vmem:[#allocation10 + $0x90] ss:$24 sps:$4 sm:$0xff]   ;;  %v18539_v37 = vld [vmem:[#allocation10 + $0xcc] ss:$24 sps:$4 sm:$0xff]  }
  0xdc   :  { %368 = vmatprep.mubr.f32.mxu0 %v21676_v0  ;;  %445 = vmatprep.mubr.f32.mxu1 %v21676_v0  ;;  %v18531_v35 = vld [vmem:[#allocation10 + $0x98] ss:$24 sps:$4 sm:$0xff]   ;;  %v18536_v36 = vld [vmem:[#allocation10 + $0xc4] ss:$24 sps:$4 sm:$0xff]   ;;  %v18542_v40 = vld [vmem:[#allocation10 + $0xf4] ss:$24 sps:$4 sm:$0xff]  }
  0xdd   :  { %18244 = vmatprep.subr.bf16.mxu0 %v18243_v48  ;;  %2625 = vmatpush1.bf16.msra.mxu1 %v18510_v23  ;;  %v18534_v38 = vld [vmem:[#allocation10 + $0xc0] ss:$24 sps:$4 sm:$0xff]   ;;  %v18545_v41 = vld [vmem:[#allocation10 + $0xfc] ss:$24 sps:$4 sm:$0xff]   ;;  %v18540_v42 = vld [vmem:[#allocation10 + $0xf0] ss:$24 sps:$4 sm:$0xff]  }
  0xde   :  { %369 = vmatmul.mubr.f32.gmra.mrb[2].mxu0 %v169_v47  ;;  %2626 = vmatprep.subr.bf16.mxu1 %v18518_v25  ;;  %v18543_v43 = vld [vmem:[#allocation10 + $0xf8] ss:$24 sps:$4 sm:$0xff]   ;;  %v18548_v44 = vld [vmem:[#allocation10 + $0x124] ss:$24 sps:$4 sm:$0xff]   ;;  %v18554_v48 = vld [vmem:[#allocation10 + $0x154] ss:$24 sps:$4 sm:$0xff]  }
  0xdf   :  { %446 = vmatmul.mubr.f32.gmra.mrb[2].mxu1 %v169_v47  ;;  %18246 = vmatpush1.bf16.msra.mxu0 %v18245_v51  ;;  %v18551_v45 = vld [vmem:[#allocation10 + $0x12c] ss:$24 sps:$4 sm:$0xff]   ;;  %v18546_v46 = vld [vmem:[#allocation10 + $0x120] ss:$24 sps:$4 sm:$0xff]   ;;  %v18557_v49 = vld [vmem:[#allocation10 + $0x15c] ss:$24 sps:$4 sm:$0xff]  }
  0xe0   :  { %18248 = vmatprep.subr.bf16.mxu0 %v18247_v54  ;;  %516 = vmatprep.mubr.f32.mxu0 %v21676_v0  ;;  %v18552_v50 = vld [vmem:[#allocation10 + $0x150] ss:$24 sps:$4 sm:$0xff]   ;;  %v18560_v52 = vld [vmem:[#allocation10 + $0x184] ss:$24 sps:$4 sm:$0xff]   ;;  %v18558_v54 = vld [vmem:[#allocation10 + $0x180] ss:$24 sps:$4 sm:$0xff]  }
  0xe1   :  { %2627 = vmatpush1.bf16.msra.mxu1 %v18516_v27  ;;  %v18555_v51 = vld [vmem:[#allocation10 + $0x158] ss:$24 sps:$4 sm:$0xff]   ;;  %v18563_v53 = vld [vmem:[#allocation10 + $0x18c] ss:$24 sps:$4 sm:$0xff]   ;;  %v18561_v55 = vld [vmem:[#allocation10 + $0x188] ss:$24 sps:$4 sm:$0xff]  }
  0xe2   :  { %2628 = vmatprep.subr.bf16.mxu1 %v18524_v29  ;;  %v18566_v56 = vld [vmem:[#allocation10 + $0x1b4] ss:$24 sps:$4 sm:$0xff]   ;;  %v18564_v58 = vld [vmem:[#allocation10 + $0x1b0] ss:$24 sps:$4 sm:$0xff]   ;;  %v18570_v62 = vld [vmem:[#allocation10 + $0x1e0] ss:$24 sps:$4 sm:$0xff]  }
  0xe3   :  { %18250 = vmatpush1.bf16.msra.mxu0 %v18249_v57  ;;  %v18569_v57 = vld [vmem:[#allocation10 + $0x1bc] ss:$24 sps:$4 sm:$0xff]   ;;  %v18567_v59 = vld [vmem:[#allocation10 + $0x1b8] ss:$24 sps:$4 sm:$0xff]   ;;  %v18575_v61 = vld [vmem:[#allocation10 + $0x1ec] ss:$24 sps:$4 sm:$0xff]  }
  0xe4   :  { %18252 = vmatprep.subr.bf16.mxu0 %v18251_v60  ;;  %v18572_v60 = vld [vmem:[#allocation10 + $0x1e4] ss:$24 sps:$4 sm:$0xff]   ;;  %v18578_v1 = vld [vmem:[#allocation10 + $0x214] ss:$24 sps:$4 sm:$0xff]   ;;  %v18579_v4 = vld [vmem:[#allocation10 + $0x218] ss:$24 sps:$4 sm:$0xff]  }
  0xe5   :  { %v18581_v2 = vld [vmem:[#allocation10 + $0x21c] ss:$24 sps:$4 sm:$0xff]   ;;  %v18582_v7 = vld [vmem:[#allocation10 + $0x240] ss:$24 sps:$4 sm:$0xff]   ;;  %v18588_v11 = vld [vmem:[#allocation10 + $0x270] ss:$24 sps:$4 sm:$0xff]  }
  0xe6   :  { %v18584_v5 = vld [vmem:[#allocation10 + $0x244] ss:$24 sps:$4 sm:$0xff]   ;;  %v18585_v8 = vld [vmem:[#allocation10 + $0x248] ss:$24 sps:$4 sm:$0xff]   ;;  %v18602_v17 = vld [vmem:[#allocation10 + $0x2d4] ss:$24 sps:$4 sm:$0xff]  }
  0xe7   :  { %18254 = vmatpush1.bf16.msra.mxu0 %v18253_v63  ;;  %v18573_v63 = vld [vmem:[#allocation10 + $0x1e8] ss:$24 sps:$4 sm:$0xff]   ;;  %v18593_v10 = vld [vmem:[#allocation10 + $0x27c] ss:$24 sps:$4 sm:$0xff]   ;;  %v18599_v14 = vld [vmem:[#allocation10 + $0x2ac] ss:$24 sps:$4 sm:$0xff]  }
  0xe8   :  { %18256 = vmatprep.subr.bf16.mxu0 %v18255_v3  ;;  %v18576_v3 = vld [vmem:[#allocation10 + $0x210] ss:$24 sps:$4 sm:$0xff]   ;;  %v18596_v13 = vld [vmem:[#allocation10 + $0x2a4] ss:$24 sps:$4 sm:$0xff]  }
  0xe9   :  { %v18597_v16 = vld [vmem:[#allocation10 + $0x2a8] ss:$24 sps:$4 sm:$0xff]   ;;  %v18603_v21 = vld [vmem:[#allocation10 + $0x2d8] ss:$24 sps:$4 sm:$0xff]   ;;  %v18611_v25 = vld [vmem:[#allocation10 + $0x30c] ss:$24 sps:$4 sm:$0xff]  }
  0xeb   :  { %18258 = vmatpush1.bf16.msra.mxu0 %v18257_v6  ;;  %v18587_v6 = vld [vmem:[#allocation10 + $0x24c] ss:$24 sps:$4 sm:$0xff]  }
  0xec   :  { %18260 = vmatprep.subr.bf16.mxu0 %v18259_v9  ;;  %v18590_v9 = vld [vmem:[#allocation10 + $0x274] ss:$24 sps:$4 sm:$0xff]  }
  0xef   :  { %18262 = vmatpush1.bf16.msra.mxu0 %v18261_v12  ;;  %v18591_v12 = vld [vmem:[#allocation10 + $0x278] ss:$24 sps:$4 sm:$0xff]  }
  0xf0   :  { %18264 = vmatprep.subr.bf16.mxu0 %v18263_v15  ;;  %v18594_v15 = vld [vmem:[#allocation10 + $0x2a0] ss:$24 sps:$4 sm:$0xff]  }
  0xf3   :  { %18266 = vmatpush1.bf16.msra.mxu0 %v18265_v18  ;;  %v18605_v18 = vld [vmem:[#allocation10 + $0x2dc] ss:$24 sps:$4 sm:$0xff]  }
  0xf4   :  { %18268 = vmatprep.subr.bf16.mxu0 %v18267_v19  ;;  %v268_v19 = vlaneseq }
  0xf7   :  { %18270 = vmatpush1.bf16.msra.mxu0 %v18269_v20  ;;  %v18600_v20 = vld [vmem:[#allocation10 + $0x2d0] ss:$24 sps:$4 sm:$0xff]  }
  0xf8   :  { %2753 = vmatprep.subr.bf16.mxu0 %v18515_v22  ;;  %v21887_v22 = vshrl.u32 %v268_v19, 7 }
  0xfa   :  { %517 = vmatmul.mubr.f32.vlgmr.msra.gmra.mrb[4].mxu0 %v21875_v39  ;;  %v18537_v39 = vld [vmem:[#allocation10 + $0xc8] ss:$24 sps:$4 sm:$0xff]   ;;  %v21890_v23 = vsub.s32 2, %v21887_v22  ;;  %v21895_v27 = vsub.s32 0, %v21887_v22  ;;  %v21901_v29 = vsub.s32 1, %v21887_v22 }
  0xfb   :  { %522 = vmatprep.mubr.f32.mxu0 %v21676_v0  ;;  %2754 = vmatpush1.bf16.msra.mxu0 %v18513_v24  ;;  %v18522_v0 = vld [vmem:[#allocation10 + $0x60] ss:$24 sps:$4 sm:$0xff]   ;;  %v18608_v24 = vld [vmem:[#allocation10 + $0x304] ss:$24 sps:$4 sm:$0xff]  }
  0xfc   :  { %2755 = vmatprep.subr.bf16.mxu0 %v18521_v26  ;;  %2629 = vmatpush1.bf16.msra.mxu1 %v18522_v0  ;;  %v21892_v26 = vld [vmem:[#allocation5] sm:$0x3f] }
  0xfd   :  { %2630 = vmatprep.subr.bf16.mxu1 %v18530_v32  ;;  %v279_v0 = vrot.slane %v21892_v26, %v21890_v23 }
  0xfe   :  { %523 = vmatmul.mubr.f32.gmra.mrb[6].mxu0 %v169_v47  ;;  %v18549_v47 = vld [vmem:[#allocation10 + $0x128] ss:$24 sps:$4 sm:$0xff]  }
  0xff   :  { %2756 = vmatpush1.bf16.msra.mxu0 %v18519_v28  ;;  %v21898_v28 = vsub.s32 3, %v21887_v22 }
 0x100   :  { %2757 = vmatprep.subr.bf16.mxu0 %v18527_v30  ;;  %2631 = vmatpush1.bf16.msra.mxu1 %v18528_v34 }
 0x101   :  { %2632 = vmatprep.subr.bf16.mxu1 %v18536_v36  ;;  %v283_v34 = vrot.slane %v21892_v26, %v21898_v28 }
 0x103   :  { %2758 = vmatpush1.bf16.msra.mxu0 %v18525_v31  ;;  %v271_v31 = vrot.slane %v21892_v26, %v21895_v27 }
 0x104   :  { %2759 = vmatprep.subr.bf16.mxu0 %v18533_v33  ;;  %2633 = vmatpush1.bf16.msra.mxu1 %v18534_v38 }
 0x105   :  { %2634 = vmatprep.subr.bf16.mxu1 %v18542_v40 }
 0x107   :  { %2760 = vmatpush1.bf16.msra.mxu0 %v18531_v35  ;;  %v275_v35 = vrot.slane %v21892_v26, %v21901_v29 }
 0x108   :  { %2761 = vmatprep.subr.bf16.mxu0 %v18539_v37  ;;  %2635 = vmatpush1.bf16.msra.mxu1 %v18540_v42 }
 0x109   :  { %2636 = vmatprep.subr.bf16.mxu1 %v18548_v44 }
 0x10b   :  { %2762 = vmatpush1.bf16.msra.mxu0 %v18537_v39 }
 0x10c   :  { %2763 = vmatprep.subr.bf16.mxu0 %v18545_v41  ;;  %2637 = vmatpush1.bf16.msra.mxu1 %v18546_v46 }
 0x10d   :  { %2638 = vmatprep.subr.bf16.mxu1 %v18554_v48 }
 0x10f   :  { %2764 = vmatpush1.bf16.msra.mxu0 %v18543_v43 }
 0x110   :  { %2765 = vmatprep.subr.bf16.mxu0 %v18551_v45  ;;  %2639 = vmatpush1.bf16.msra.mxu1 %v18552_v50 }
 0x111   :  { %2640 = vmatprep.subr.bf16.mxu1 %v18560_v52 }
 0x113   :  { %2766 = vmatpush1.bf16.msra.mxu0 %v18549_v47 }
 0x114   :  { %2767 = vmatprep.subr.bf16.mxu0 %v18557_v49  ;;  %2641 = vmatpush1.bf16.msra.mxu1 %v18558_v54 }
 0x115   :  { %2642 = vmatprep.subr.bf16.mxu1 %v18566_v56 }
 0x117   :  { %2768 = vmatpush1.bf16.msra.mxu0 %v18555_v51 }
 0x118   :  { %2769 = vmatprep.subr.bf16.mxu0 %v18563_v53  ;;  %2643 = vmatpush1.bf16.msra.mxu1 %v18564_v58 }
 0x119   :  { %2644 = vmatprep.subr.bf16.mxu1 %v18572_v60 }
 0x11b   :  { %2770 = vmatpush1.bf16.msra.mxu0 %v18561_v55 }
 0x11c   :  { %2771 = vmatprep.subr.bf16.mxu0 %v18569_v57  ;;  %2645 = vmatpush1.bf16.msra.mxu1 %v18570_v62 }
 0x11d   :  { %2646 = vmatprep.subr.bf16.mxu1 %v18578_v1 }
 0x11f   :  { %2772 = vmatpush1.bf16.msra.mxu0 %v18567_v59 }
 0x120   :  { %2773 = vmatprep.subr.bf16.mxu0 %v18575_v61  ;;  %2647 = vmatpush1.bf16.msra.mxu1 %v18576_v3 }
 0x121   :  { %2648 = vmatprep.subr.bf16.mxu1 %v18584_v5 }
 0x123   :  { %2774 = vmatpush1.bf16.msra.mxu0 %v18573_v63 }
 0x124   :  { %2775 = vmatprep.subr.bf16.mxu0 %v18581_v2  ;;  %2649 = vmatpush1.bf16.msra.mxu1 %v18582_v7 }
 0x125   :  { %2650 = vmatprep.subr.bf16.mxu1 %v18590_v9 }
 0x127   :  { %2776 = vmatpush1.bf16.msra.mxu0 %v18579_v4 }
 0x128   :  { %2777 = vmatprep.subr.bf16.mxu0 %v18587_v6  ;;  %2651 = vmatpush1.bf16.msra.mxu1 %v18588_v11 }
 0x129   :  { %2652 = vmatprep.subr.bf16.mxu1 %v18596_v13 }
 0x12b   :  { %2778 = vmatpush1.bf16.msra.mxu0 %v18585_v8 }
 0x12c   :  { %2779 = vmatprep.subr.bf16.mxu0 %v18593_v10  ;;  %2653 = vmatpush1.bf16.msra.mxu1 %v18594_v15 }
 0x12d   :  { %2654 = vmatprep.subr.bf16.mxu1 %v18602_v17 }
 0x12f   :  { %2780 = vmatpush1.bf16.msra.mxu0 %v18591_v12 }
 0x130   :  { %2781 = vmatprep.subr.bf16.mxu0 %v18599_v14  ;;  %2655 = vmatpush1.bf16.msra.mxu1 %v18600_v20 }
 0x131   :  { %2667 = vmatprep.subr.bf16.mxu1 %v18608_v24 }
 0x133   :  { %2782 = vmatpush1.bf16.msra.mxu0 %v18597_v16 }
 0x134   :  { %2783 = vmatprep.subr.bf16.mxu0 %v18605_v18 }
 0x137   :  { %2784 = vmatpush1.bf16.msra.mxu0 %v18603_v21 }
 0x138   :  { %2796 = vmatprep.subr.bf16.mxu0 %v18611_v25 }
 0x1ad   :  { %v364_v30 = vpop.f32.mrb[0].mxu0 }
 0x1ae   :  { %v366_v32 = vpop.f32.mrb[1].mxu0  ;;  %v441_v33 = vpop.f32.mrb[0].mxu1  ;;  %v21913_v39 = vadd.f32 %v364_v30, %v271_v31 }
 0x1af   :  { %v443_v36 = vpop.f32.mrb[1].mxu1  ;;  %v21911_v37 = vadd.f32 %v441_v33, %v279_v0  ;;  %v21919_v44 = vadd.f32 %v366_v32, %v275_v35 }
 0x1b0   :  { %v21915_v40 = vadd.f32 %v443_v36, %v283_v34 }
 0x1b1   :  { %v370_v38 = vpop.f32.mrb[2].mxu0 }
 0x1b2   :  { %v21917_v41 = vadd.f32 %v370_v38, %v271_v31  ;;  %v447_v42 = vpop.f32.mrb[2].mxu1  ;;  %v372_v43 = vpop.f32.mrb[3].mxu0 }
 0x1b3   :  { %v21921_v45 = vadd.f32 %v447_v42, %v279_v0  ;;  %v21923_v46 = vadd.f32 %v372_v43, %v275_v35  ;;  %v449_v47 = vpop.f32.mrb[3].mxu1 }
 0x1b4   :  { %v531_v48 = vadd.f32 %v21917_v41, %v21913_v39  ;;  %v21927_v49 = vadd.f32 %v449_v47, %v283_v34  ;;  %v21976_v47 = vsub.s32 4, %v21887_v22 }
 0x1b5   :  { %v545_v50 = vadd.f32 %v21921_v45, %v21911_v37  ;;  %v538_v51 = vadd.f32 %v21923_v46, %v21919_v44 }
 0x1b6   :  { %v532_v52 = vrot.slane %v531_v48, 4  ;;  %v552_v53 = vadd.f32 %v21927_v49, %v21915_v40 }
 0x1b7   :  { %v546_v54 = vrot.slane %v545_v50, 4  ;;  %v539_v55 = vrot.slane %v538_v51, 4 }
 0x1b8   :  { %v533_v56 = vadd.f32 %v532_v52, %v531_v48  ;;  %v553_v57 = vrot.slane %v552_v53, 4 }
 0x1b9   :  { %v547_v58 = vadd.f32 %v546_v54, %v545_v50  ;;  %v540_v59 = vadd.f32 %v539_v55, %v538_v51  ;;  %v21979_v50 = vsub.s32 5, %v21887_v22  ;;  %v287_v55 = vrot.slane %v21892_v26, %v21976_v47 }
 0x1ba   :  { %v534_v60 = vrot.slane %v533_v56, 2  ;;  %v554_v61 = vadd.f32 %v553_v57, %v552_v53 }
 0x1bb   :  { %v548_v62 = vrot.slane %v547_v58, 2  ;;  %v541_v63 = vrot.slane %v540_v59, 2 }
 0x1bc   :  { %v535_v1 = vadd.f32 %v534_v60, %v533_v56  ;;  %v555_v2 = vrot.slane %v554_v61, 2 }
 0x1bd   :  { %v549_v3 = vadd.f32 %v548_v62, %v547_v58  ;;  %v542_v4 = vadd.f32 %v541_v63, %v540_v59  ;;  %v291_v58 = vrot.slane %v21892_v26, %v21979_v50 }
 0x1be   :  { %v536_v5 = vrot.slane %v535_v1, 1  ;;  %v556_v6 = vadd.f32 %v555_v2, %v554_v61 }
 0x1bf   :  { %v550_v7 = vrot.slane %v549_v3, 1  ;;  %v543_v8 = vrot.slane %v542_v4, 1 }
 0x1c0   :  { %v537_v9 = vadd.f32 %v536_v5, %v535_v1  ;;  %v557_v10 = vrot.slane %v556_v6, 1 }
 0x1c1   :  { %v551_v11 = vadd.f32 %v550_v7, %v549_v3  ;;  %v544_v12 = vadd.f32 %v543_v8, %v542_v4 }
 0x1c2   :  { %v574_v13 = vmul.f32 0.0625, %v537_v9  ;;  %v558_v14 = vadd.f32 %v557_v10, %v556_v6 }
 0x1c3   :  { %v576_v15 = vmul.f32 0.0625, %v551_v11  ;;  %v575_v16 = vmul.f32 0.0625, %v544_v12 }
 0x1c4   :  { %v21936_v17 = vsub.f32 %v21913_v39, %v574_v13  ;;  %v21939_v18 = vsub.f32 %v21917_v41, %v574_v13  ;;  %v577_v19 = vmul.f32 0.0625, %v558_v14 }
 0x1c5   :  { %v21942_v20 = vsub.f32 %v21911_v37, %v576_v15  ;;  %v21945_v21 = vsub.f32 %v21921_v45, %v576_v15  ;;  %v21948_v24 = vsub.f32 %v21919_v44, %v575_v16  ;;  %v21951_v25 = vsub.f32 %v21923_v46, %v575_v16 }
 0x1c6   :  { %v592_v30 = vmul.f32 %v21936_v17, %v21936_v17  ;;  %v598_v0 = vmul.f32 %v21939_v18, %v21939_v18  ;;  %v21958_v31 = vsub.f32 %v21915_v40, %v577_v19  ;;  %v21961_v32 = vsub.f32 %v21927_v49, %v577_v19 }
 0x1c7   :  { %v594_v33 = vmul.f32 %v21942_v20, %v21942_v20  ;;  %v600_v34 = vmul.f32 %v21945_v21, %v21945_v21  ;;  %v593_v35 = vmul.f32 %v21948_v24, %v21948_v24  ;;  %v599_v36 = vmul.f32 %v21951_v25, %v21951_v25 }
 0x1c8   :  { %v595_v38 = vmul.f32 %v21958_v31, %v21958_v31  ;;  %v601_v42 = vmul.f32 %v21961_v32, %v21961_v32  ;;  %v604_v43 = vadd.f32 %v598_v0, %v592_v30 }
 0x1c9   :  { %v618_v48 = vadd.f32 %v600_v34, %v594_v33  ;;  %v611_v51 = vadd.f32 %v599_v36, %v593_v35 }
 0x1ca   :  { %v625_v52 = vadd.f32 %v601_v42, %v595_v38  ;;  %v605_v54 = vrot.slane %v604_v43, 4 }
 0x1cb   :  { %v619_v57 = vrot.slane %v618_v48, 4  ;;  %v612_v59 = vrot.slane %v611_v51, 4 }
 0x1cc   :  { %v626_v60 = vrot.slane %v625_v52, 4  ;;  %v606_v62 = vadd.f32 %v605_v54, %v604_v43 }
 0x1cd   :  { %v518_v53 = vpop.f32.mrb[4].mxu0  ;;  %v620_v3 = vadd.f32 %v619_v57, %v618_v48  ;;  %v613_v6 = vadd.f32 %v612_v59, %v611_v51 }
 0x1ce   :  { %v520_v56 = vpop.f32.mrb[5].mxu0  ;;  %v21985_v63 = vadd.f32 %v518_v53, %v287_v55  ;;  %v627_v8 = vadd.f32 %v626_v60, %v625_v52  ;;  %v607_v9 = vrot.slane %v606_v62, 2 }
 0x1cf   :  { %v21989_v4 = vadd.f32 %v520_v56, %v291_v58  ;;  %v621_v11 = vrot.slane %v620_v3, 2  ;;  %v614_v13 = vrot.slane %v613_v6, 2 }
 0x1d0   :  { %v628_v15 = vrot.slane %v627_v8, 2  ;;  %v608_v19 = vadd.f32 %v607_v9, %v606_v62 }
 0x1d1   :  { %v524_v61 = vpop.f32.mrb[6].mxu0  ;;  %v622_v0 = vadd.f32 %v621_v11, %v620_v3  ;;  %v615_v34 = vadd.f32 %v614_v13, %v613_v6 }
 0x1d2   :  { %v21987_v1 = vadd.f32 %v524_v61, %v287_v55  ;;  %v526_v2 = vpop.f32.mrb[7].mxu0  ;;  %v629_v36 = vadd.f32 %v628_v15, %v627_v8  ;;  %v609_v42 = vrot.slane %v608_v19, 1 }
 0x1d3   :  { %v21991_v5 = vadd.f32 %v526_v2, %v291_v58  ;;  %v623_v48 = vrot.slane %v622_v0, 1  ;;  %v616_v52 = vrot.slane %v615_v34, 1 }
 0x1d4   :  { %v559_v7 = vadd.f32 %v21987_v1, %v21985_v63  ;;  %v630_v54 = vrot.slane %v629_v36, 1  ;;  %v610_v56 = vadd.f32 %v609_v42, %v608_v19 }
 0x1d5   :  { %v566_v26 = vadd.f32 %v21991_v5, %v21989_v4  ;;  %v624_v58 = vadd.f32 %v623_v48, %v622_v0  ;;  %v617_v60 = vadd.f32 %v616_v52, %v615_v34 }
 0x1d6   :  { %v560_v10 = vrot.slane %v559_v7, 4  ;;  %v631_v2 = vadd.f32 %v630_v54, %v629_v36 }
 0x1d7   :  { %v567_v12 = vrot.slane %v566_v26, 4  ;;  %v648_v9 = vmul.f32 0.0625, %v624_v58 }
 0x1d8   :  { %v561_v14 = vadd.f32 %v560_v10, %v559_v7  ;;  %v646_v7 = vmul.f32 0.0625, %v610_v56 }
 0x1d9   :  { %v568_v16 = vadd.f32 %v567_v12, %v566_v26  ;;  %v647_v12 = vmul.f32 0.0625, %v617_v60 }
 0x1da   :  { %v562_v30 = vrot.slane %v561_v14, 2 }
 0x1db   :  { %v569_v33 = vrot.slane %v568_v16, 2 }
 0x1dc   :  { %v563_v35 = vadd.f32 %v562_v30, %v561_v14  ;;  %v649_v14 = vmul.f32 0.0625, %v631_v2  ;;  %v654_v30 = vadd.f32 1e-05, %v648_v9 }
 0x1dd   :  { %v570_v38 = vadd.f32 %v569_v33, %v568_v16  ;;  %v652_v16 = vadd.f32 1e-05, %v646_v7  ;;  %v653_v33 = vadd.f32 1e-05, %v647_v12 }
 0x1de   :  { %v564_v43 = vrot.slane %v563_v35, 1 }
 0x1df   :  { %v571_v51 = vrot.slane %v570_v38, 1  ;;  %21150 = vrsqrt.f32 %v652_v16 }
 0x1e0   :  { %v565_v53 = vadd.f32 %v564_v43, %v563_v35  ;;  %v655_v35 = vadd.f32 1e-05, %v649_v14  ;;  %21152 = vrsqrt.f32 %v654_v30 }
 0x1e1   :  { %v572_v55 = vadd.f32 %v571_v51, %v570_v38  ;;  %21154 = vrsqrt.f32 %v653_v33  ;;  %v529_v33 = vld [vmem:[#allocation7] sm:$0x3f] }
 0x1e2   :  { %v578_v57 = vmul.f32 0.0625, %v565_v53  ;;  %21156 = vrsqrt.f32 %v655_v35 }
 0x1e3   :  { %v579_v59 = vmul.f32 0.0625, %v572_v55  ;;  %v21677_v55 = vmov 1966171168  }
 0x1e4   :  { %v21998_v61 = vsub.f32 %v21985_v63, %v578_v57  ;;  %v22001_v62 = vsub.f32 %v21987_v1, %v578_v57  ;;  %v674_v56 = vunpack.c.l.s4 %v21677_v55 }
 0x1e5   :  { %v22004_v3 = vsub.f32 %v21989_v4, %v579_v59  ;;  %v22007_v6 = vsub.f32 %v21991_v5, %v579_v59 }
 0x1e6   :  { %v596_v8 = vmul.f32 %v21998_v61, %v21998_v61  ;;  %v602_v26 = vmul.f32 %v22001_v62, %v22001_v62 }
 0x1e7   :  { %v597_v10 = vmul.f32 %v22004_v3, %v22004_v3  ;;  %v603_v11 = vmul.f32 %v22007_v6, %v22007_v6 }
 0x1e8   :  { %v632_v13 = vadd.f32 %v602_v26, %v596_v8  ;;  %v675_v26 = vunpack.c.0.s8 %v674_v56 }
 0x1e9   :  { %v639_v15 = vadd.f32 %v603_v11, %v597_v10  ;;  %v21151_v59 = vpop.eup %21150 }
 0x1ea   :  { %v633_v19 = vrot.slane %v632_v13, 4  ;;  %v21153_v2 = vpop.eup %21152  ;;  %v22018_v11 = vsub.s32 %v675_v26, %v21887_v22 }
 0x1eb   :  { %v640_v0 = vrot.slane %v639_v15, 4  ;;  %v21155_v8 = vpop.eup %21154 }
 0x1ec   :  { %v634_v34 = vadd.f32 %v633_v19, %v632_v13  ;;  %v21157_v9 = vpop.eup %21156  ;;  %v670_v10 = vcombine.low %v21151_v59, %v21155_v8 }
 0x1ed   :  { %v641_v36 = vadd.f32 %v640_v0, %v639_v15  ;;  %v671_v12 = vcombine.low %v21153_v2, %v21157_v9 }
 0x1ee   :  { %v635_v38 = vrot.slane %v634_v34, 2  ;;  %v679_v13 = vrot.slane %v670_v10, %v22018_v11 }
 0x1ef   :  { %v642_v42 = vrot.slane %v641_v36, 2  ;;  %v686_v14 = vrot.slane %v671_v12, %v22018_v11 }
 0x1f0   :  { %v636_v43 = vadd.f32 %v635_v38, %v634_v34 }
 0x1f1   :  { %v643_v48 = vadd.f32 %v642_v42, %v641_v36  ;;  %v694_v19 = vcombine.low %v679_v13, %v686_v14  ;;  %v530_v36 = vld [vmem:[#allocation8] sm:$0x3f] }
 0x1f2   :  { %v637_v51 = vrot.slane %v636_v43, 1  ;;  %v779_v42 = vrot.slane %v530_v36, %v21979_v50  ;;  %v771_v55 = vrot.slane %v530_v36, %v21898_v28 }
 0x1f3   :  { %v644_v52 = vrot.slane %v643_v48, 1  ;;  %v701_v34 = vrot.slane %v694_v19, %v22018_v11 }
 0x1f4   :  { %v638_v53 = vadd.f32 %v637_v51, %v636_v43  ;;  %v763_v43 = vrot.slane %v530_v36, %v21901_v29 }
 0x1f5   :  { %v645_v54 = vadd.f32 %v644_v52, %v643_v48 }
 0x1f6   :  { %v650_v57 = vmul.f32 0.0625, %v638_v53 }
 0x1f7   :  { %v651_v58 = vmul.f32 0.0625, %v645_v54  ;;  %v759_v54 = vrot.slane %v530_v36, %v21895_v27 }
 0x1f8   :  { %v656_v60 = vadd.f32 1e-05, %v650_v57 }
 0x1f9   :  { %v657_v7 = vadd.f32 1e-05, %v651_v58 }
 0x1fa   :  { %21158 = vrsqrt.f32 %v656_v60 }
 0x1fb   :  { %21160 = vrsqrt.f32 %v657_v7 }
 0x204   :  { %v21159_v15 = vpop.eup %21158 }
 0x205   :  { %v21161_v16 = vpop.eup %21160 }
 0x206   :  { %v672_v30 = vcombine.low %v21159_v15, %v21161_v16 }
 0x208   :  { %v693_v0 = vrot.slane %v672_v30, %v22018_v11 }
 0x20a   :  { %v708_v35 = vrot.slane %v693_v0, %v22018_v11 }
 0x20c   :  { %v709_v38 = vcombine.low %v701_v34, %v708_v35  ;;  %v775_v34 = vrot.slane %v530_v36, %v21976_v47 }
 0x20e   :  { %v711_v22 = vmul.f32 %v709_v38, %v529_v33 }
 0x210   :  { %v736_v48 = vrot.slane %v711_v22, %v21979_v50  ;;  %v720_v51 = vrot.slane %v711_v22, %v21901_v29  ;;  %v716_v52 = vrot.slane %v711_v22, %v21895_v27  ;;  %v728_v53 = vrot.slane %v711_v22, %v21898_v28 }
 0x211   :  { %v724_v56 = vrot.slane %v711_v22, %v21890_v23 }
 0x212   :  { %v748_v57 = vmul.f32 %v736_v48, %v22004_v3  ;;  %v754_v58 = vmul.f32 %v736_v48, %v22007_v6  ;;  %v744_v59 = vmul.f32 %v720_v51, %v21948_v24  ;;  %v750_v60 = vmul.f32 %v720_v51, %v21951_v25 }
 0x213   :  { %v743_v2 = vmul.f32 %v716_v52, %v21936_v17  ;;  %v749_v7 = vmul.f32 %v716_v52, %v21939_v18  ;;  %v746_v8 = vmul.f32 %v728_v53, %v21958_v31  ;;  %v752_v26 = vmul.f32 %v728_v53, %v21961_v32 }
 0x214   :  { %v22042_v9 = vadd.f32 %v779_v42, %v754_v58  ;;  %v787_v10 = vadd.f32 %v763_v43, %v744_v59  ;;  %v793_v12 = vadd.f32 %v763_v43, %v750_v60  ;;  %v745_v24 = vmul.f32 %v724_v56, %v21942_v20 }
 0x215   :  { %v786_v13 = vadd.f32 %v759_v54, %v743_v2  ;;  %v792_v3 = vadd.f32 %v759_v54, %v749_v7  ;;  %v789_v14 = vadd.f32 %v771_v55, %v746_v8  ;;  %v795_v6 = vadd.f32 %v771_v55, %v752_v26 }
 0x216   :  { %v811_v15 = vmul.f32 0.70710677, %v787_v10  ;;  %v767_v25 = vrot.slane %v530_v36, %v21890_v23  ;;  %v817_v17 = vmul.f32 0.70710677, %v793_v12  ;;  %v732_v18 = vrot.slane %v711_v22, %v21976_v47 }
 0x217   :  { %v810_v16 = vmul.f32 0.70710677, %v786_v13  ;;  %v816_v31 = vmul.f32 0.70710677, %v792_v3  ;;  %v813_v32 = vmul.f32 0.70710677, %v789_v14  ;;  %v751_v30 = vmul.f32 %v724_v56, %v21945_v21 }
 0x218   :  { %21162 = verf.f32 %v811_v15  ;;  %v819_v19 = vmul.f32 0.70710677, %v795_v6  ;;  %v788_v0 = vadd.f32 %v767_v25, %v745_v24  ;;  %v22048_v33 = vadd.f32 %v779_v42, %v748_v57 }
 0x219   :  { %21164 = verf.f32 %v817_v17  ;;  %v794_v20 = vadd.f32 %v767_v25, %v751_v30  ;;  %v747_v35 = vmul.f32 %v732_v18, %v21998_v61  ;;  %v753_v38 = vmul.f32 %v732_v18, %v22001_v62  ;;  %v18606_v25 = vld [vmem:[#allocation10 + $0x300] ss:$24 sps:$4 sm:$0xff]  }
 0x21a   :  { %21166 = verf.f32 %v810_v16  ;;  %v821_v22 = vmul.f32 0.70710677, %v22042_v9  ;;  %v812_v43 = vmul.f32 0.70710677, %v788_v0  ;;  %v815_v21 = vmul.f32 0.70710677, %v22048_v33 }
 0x21b   :  { %21168 = verf.f32 %v816_v31  ;;  %v818_v48 = vmul.f32 0.70710677, %v794_v20  ;;  %v22055_v51 = vadd.f32 %v775_v34, %v747_v35  ;;  %v22057_v42 = vadd.f32 %v775_v34, %v753_v38  ;;  %v18609_v17 = vld [vmem:[#allocation10 + $0x308] ss:$24 sps:$4 sm:$0xff]   ;;  %v18617_v38 = vld [vmem:[#allocation10 + $0x33c] ss:$24 sps:$4 sm:$0xff]  }
 0x21c   :  { %21170 = verf.f32 %v813_v32  ;;  %v799_v53 = vmul.f32 0.5, %v787_v10  ;;  %v805_v56 = vmul.f32 0.5, %v793_v12  ;;  %v798_v60 = vmul.f32 0.5, %v786_v13  ;;  %v18614_v13 = vld [vmem:[#allocation10 + $0x334] ss:$24 sps:$4 sm:$0xff]  }
 0x21d   :  { %21172 = verf.f32 %v819_v19  ;;  %v814_v36 = vmul.f32 0.70710677, %v22055_v51  ;;  %v820_v61 = vmul.f32 0.70710677, %v22057_v42  ;;  %v804_v26 = vmul.f32 0.5, %v792_v3 }
 0x21e   :  { %21174 = verf.f32 %v812_v43  ;;  %v801_v18 = vmul.f32 0.5, %v789_v14  ;;  %v807_v12 = vmul.f32 0.5, %v795_v6  ;;  %v18615_v6 = vld [vmem:[#allocation10 + $0x338] ss:$24 sps:$4 sm:$0xff]  }
 0x21f   :  { %21176 = verf.f32 %v818_v48 }
 0x220   :  { %21178 = verf.f32 %v815_v21  ;;  %v806_v21 = vmul.f32 0.5, %v794_v20 }
 0x221   :  { %21180 = verf.f32 %v821_v22  ;;  %v800_v22 = vmul.f32 0.5, %v788_v0 }
 0x222   :  { %v21163_v62 = vpop.eup %21162  ;;  %21182 = verf.f32 %v814_v36 }
 0x223   :  { %v21165_v52 = vpop.eup %21164  ;;  %v835_v54 = vadd.f32 1.0, %v21163_v62  ;;  %21184 = verf.f32 %v820_v61  ;;  %v18612_v62 = vld [vmem:[#allocation10 + $0x330] ss:$24 sps:$4 sm:$0xff]  }
 0x224   :  { %v21167_v55 = vpop.eup %21166  ;;  %v841_v57 = vadd.f32 1.0, %v21165_v52 }
 0x225   :  { %v21169_v58 = vpop.eup %21168  ;;  %v847_v59 = vmul.f32 %v835_v54, %v799_v53  ;;  %v834_v2 = vadd.f32 1.0, %v21167_v55  ;;  %v803_v53 = vmul.f32 0.5, %v22048_v33 }
 0x226   :  { %v21171_v7 = vpop.eup %21170  ;;  %v853_v8 = vmul.f32 %v841_v57, %v805_v56  ;;  %v840_v15 = vadd.f32 1.0, %v21169_v58  ;;  %v809_v57 = vmul.f32 0.5, %v22042_v9 }
 0x227   :  { %v21173_v24 = vpop.eup %21172  ;;  %v846_v16 = vmul.f32 %v834_v2, %v798_v60  ;;  %v837_v31 = vadd.f32 1.0, %v21171_v7  ;;  %v802_v2 = vmul.f32 0.5, %v22055_v51  ;;  %v18623_v7 = vld [vmem:[#allocation10 + $0x36c] ss:$24 sps:$4 sm:$0xff]  }
 0x228   :  { %v21175_v10 = vpop.eup %21174  ;;  %v22061_v32 = vpack.c.bf16 %v853_v8, %v847_v59  ;;  %v852_v19 = vmul.f32 %v840_v15, %v804_v26  ;;  %v843_v30 = vadd.f32 1.0, %v21173_v24  ;;  %v18620_v59 = vld [vmem:[#allocation10 + $0x364] ss:$24 sps:$4 sm:$0xff]   ;;  %v808_v15 = vmul.f32 0.5, %v22057_v42  ;;  %v18618_v24 = vld [vmem:[#allocation10 + $0x360] ss:$24 sps:$4 sm:$0xff]  }
 0x229   :  { %v21177_v34 = vpop.eup %21176  ;;  %v849_v35 = vmul.f32 %v837_v31, %v801_v18  ;;  %v836_v43 = vadd.f32 1.0, %v21175_v10  ;;  %v18626_v18 = vld [vmem:[#allocation10 + $0x394] ss:$24 sps:$4 sm:$0xff]   ;;  %v18632_v42 = vld [vmem:[#allocation10 + $0x3c4] ss:$24 sps:$4 sm:$0xff]  }
 0x22a   :  { %v21179_v3 = vpop.eup %21178  ;;  %2656 = vmatprep.mubr.bf16.mxu1 %v22061_v32  ;;  %2785 = vmatprep.mubr.bf16.mxu0 %v22061_v32  ;;  %v22065_v48 = vpack.c.bf16 %v852_v19, %v846_v16  ;;  %v855_v14 = vmul.f32 %v843_v30, %v807_v12  ;;  %v842_v36 = vadd.f32 1.0, %v21177_v34  ;;  %v18629_v31 = vld [vmem:[#allocation10 + $0x39c] ss:$24 sps:$4 sm:$0xff]   ;;  %v18624_v19 = vld [vmem:[#allocation10 + $0x390] ss:$24 sps:$4 sm:$0xff]  }
 0x22b   :  { %v21181_v61 = vpop.eup %21180  ;;  %v848_v52 = vmul.f32 %v836_v43, %v800_v22  ;;  %v839_v54 = vadd.f32 1.0, %v21179_v3  ;;  %v18627_v12 = vld [vmem:[#allocation10 + $0x398] ss:$24 sps:$4 sm:$0xff]   ;;  %v18635_v30 = vld [vmem:[#allocation10 + $0x3cc] ss:$24 sps:$4 sm:$0xff]  }
 0x22c   :  { %v21183_v55 = vpop.eup %21182  ;;  %2657 = vmatmul.mubr.bf16.vlgmr.msra.gmra.mrb[4].mxu1 %v22065_v48  ;;  %2786 = vmatmul.mubr.bf16.vlgmr.msra.gmra.mrb[8].mxu0 %v22065_v48  ;;  %v22070_v0 = vpack.c.bf16 %v855_v14, %v849_v35  ;;  %v854_v56 = vmul.f32 %v842_v36, %v806_v21  ;;  %v845_v58 = vadd.f32 1.0, %v21181_v61  ;;  %v18630_v34 = vld [vmem:[#allocation10 + $0x3c0] ss:$24 sps:$4 sm:$0xff]   ;;  %v18636_v22 = vld [vmem:[#allocation10 + $0x3f0] ss:$24 sps:$4 sm:$0xff]  }
 0x22d   :  { %v21185_v20 = vpop.eup %21184  ;;  %2668 = vmatpush1.bf16.msra.mxu1 %v18606_v25  ;;  %2797 = vmatpush1.bf16.msra.mxu0 %v18609_v17  ;;  %v851_v60 = vmul.f32 %v839_v54, %v803_v53  ;;  %v838_v33 = vadd.f32 1.0, %v21183_v55  ;;  %v18621_v25 = vld [vmem:[#allocation10 + $0x368] ss:$24 sps:$4 sm:$0xff]   ;;  %v18639_v43 = vld [vmem:[#allocation10 + $0x3f8] ss:$24 sps:$4 sm:$0xff]  }
 0x22e   :  { %2699 = vmatprep.mubr.bf16.mxu1 %v22070_v0  ;;  %2828 = vmatprep.mubr.bf16.mxu0 %v22070_v0  ;;  %v22076_v8 = vpack.c.bf16 %v854_v56, %v848_v52  ;;  %v857_v26 = vmul.f32 %v845_v58, %v809_v57  ;;  %v844_v9 = vadd.f32 1.0, %v21185_v20  ;;  %v18633_v35 = vld [vmem:[#allocation10 + $0x3c8] ss:$24 sps:$4 sm:$0xff]   ;;  %v18644_v3 = vld [vmem:[#allocation10 + $0x424] ss:$24 sps:$4 sm:$0xff]  }
 0x22f   :  { %2669 = vmatprep.subr.bf16.mxu1 %v18614_v13  ;;  %2798 = vmatprep.subr.bf16.mxu0 %v18617_v38  ;;  %v850_v17 = vmul.f32 %v838_v33, %v802_v2  ;;  %v18638_v13 = vld [vmem:[#allocation10 + $0x3f4] ss:$24 sps:$4 sm:$0xff]   ;;  %v18642_v21 = vld [vmem:[#allocation10 + $0x420] ss:$24 sps:$4 sm:$0xff]   ;;  %v18656_v53 = vld [vmem:[#allocation10 + $0x484] ss:$24 sps:$4 sm:$0xff]  }
 0x230   :  { %v22079_v16 = vpack.c.bf16 %v857_v26, %v851_v60  ;;  %v856_v51 = vmul.f32 %v844_v9, %v808_v15  ;;  %v18641_v38 = vld [vmem:[#allocation10 + $0x3fc] ss:$24 sps:$4 sm:$0xff]   ;;  %v18647_v14 = vld [vmem:[#allocation10 + $0x42c] ss:$24 sps:$4 sm:$0xff]   ;;  %v18645_v36 = vld [vmem:[#allocation10 + $0x428] ss:$24 sps:$4 sm:$0xff]  }
 0x231   :  { %2670 = vmatpush1.bf16.msra.mxu1 %v18612_v62  ;;  %2799 = vmatpush1.bf16.msra.mxu0 %v18615_v6  ;;  %v18650_v61 = vld [vmem:[#allocation10 + $0x454] ss:$24 sps:$4 sm:$0xff]   ;;  %v18648_v6 = vld [vmem:[#allocation10 + $0x450] ss:$24 sps:$4 sm:$0xff]   ;;  %v18654_v55 = vld [vmem:[#allocation10 + $0x480] ss:$24 sps:$4 sm:$0xff]  }
 0x232   :  { %2671 = vmatprep.subr.bf16.mxu1 %v18620_v59  ;;  %2800 = vmatprep.subr.bf16.mxu0 %v18623_v7  ;;  %v22081_v10 = vpack.c.bf16 %v856_v51, %v850_v17  ;;  %v18653_v62 = vld [vmem:[#allocation10 + $0x45c] ss:$24 sps:$4 sm:$0xff]   ;;  %v18651_v52 = vld [vmem:[#allocation10 + $0x458] ss:$24 sps:$4 sm:$0xff]   ;;  %v18659_v54 = vld [vmem:[#allocation10 + $0x48c] ss:$24 sps:$4 sm:$0xff]  }
 0x233   :  { %v18657_v56 = vld [vmem:[#allocation10 + $0x488] ss:$24 sps:$4 sm:$0xff]   ;;  %v18662_v57 = vld [vmem:[#allocation10 + $0x4b4] ss:$24 sps:$4 sm:$0xff]   ;;  %v18663_v59 = vld [vmem:[#allocation10 + $0x4b8] ss:$24 sps:$4 sm:$0xff]  }
 0x234   :  { %v18665_v58 = vld [vmem:[#allocation10 + $0x4bc] ss:$24 sps:$4 sm:$0xff]   ;;  %v18660_v20 = vld [vmem:[#allocation10 + $0x4b0] ss:$24 sps:$4 sm:$0xff]   ;;  %v18671_v2 = vld [vmem:[#allocation10 + $0x4ec] ss:$24 sps:$4 sm:$0xff]  }
 0x235   :  { %2672 = vmatpush1.bf16.msra.mxu1 %v18618_v24  ;;  %2801 = vmatpush1.bf16.msra.mxu0 %v18621_v25  ;;  %v18668_v60 = vld [vmem:[#allocation10 + $0x4e4] ss:$24 sps:$4 sm:$0xff]   ;;  %v18666_v33 = vld [vmem:[#allocation10 + $0x4e0] ss:$24 sps:$4 sm:$0xff]   ;;  %v18674_v26 = vld [vmem:[#allocation10 + $0x514] ss:$24 sps:$4 sm:$0xff]  }
 0x236   :  { %2673 = vmatprep.subr.bf16.mxu1 %v18626_v18  ;;  %2802 = vmatprep.subr.bf16.mxu0 %v18629_v31  ;;  %v18669_v7 = vld [vmem:[#allocation10 + $0x4e8] ss:$24 sps:$4 sm:$0xff]   ;;  %v18677_v15 = vld [vmem:[#allocation10 + $0x51c] ss:$24 sps:$4 sm:$0xff]   ;;  %v18675_v24 = vld [vmem:[#allocation10 + $0x518] ss:$24 sps:$4 sm:$0xff]  }
 0x237   :  { %v18672_v9 = vld [vmem:[#allocation10 + $0x510] ss:$24 sps:$4 sm:$0xff]   ;;  %v18680_v25 = vld [vmem:[#allocation10 + $0x544] ss:$24 sps:$4 sm:$0xff]   ;;  %v18678_v51 = vld [vmem:[#allocation10 + $0x540] ss:$24 sps:$4 sm:$0xff]  }
 0x238   :  { %v18683_v17 = vld [vmem:[#allocation10 + $0x54c] ss:$24 sps:$4 sm:$0xff]   ;;  %v18681_v18 = vld [vmem:[#allocation10 + $0x548] ss:$24 sps:$4 sm:$0xff]  }
 0x239   :  { %2674 = vmatpush1.bf16.msra.mxu1 %v18624_v19  ;;  %2803 = vmatpush1.bf16.msra.mxu0 %v18627_v12  ;;  %v18686_v31 = vld [vmem:[#allocation10 + $0x574] ss:$24 sps:$4 sm:$0xff]   ;;  %v18684_v12 = vld [vmem:[#allocation10 + $0x570] ss:$24 sps:$4 sm:$0xff]  }
 0x23a   :  { %2675 = vmatprep.subr.bf16.mxu1 %v18632_v42  ;;  %2804 = vmatprep.subr.bf16.mxu0 %v18635_v30  ;;  %v18689_v19 = vld [vmem:[#allocation10 + $0x57c] ss:$24 sps:$4 sm:$0xff]   ;;  %v18687_v42 = vld [vmem:[#allocation10 + $0x578] ss:$24 sps:$4 sm:$0xff]  }
 0x23b   :  { %v18692_v30 = vld [vmem:[#allocation10 + $0x5a4] ss:$24 sps:$4 sm:$0xff]  }
 0x23d   :  { %2676 = vmatpush1.bf16.msra.mxu1 %v18630_v34  ;;  %2805 = vmatpush1.bf16.msra.mxu0 %v18633_v35  ;;  %v18695_v34 = vld [vmem:[#allocation10 + $0x5ac] ss:$24 sps:$4 sm:$0xff]   ;;  %v18690_v35 = vld [vmem:[#allocation10 + $0x5a0] ss:$24 sps:$4 sm:$0xff]  }
 0x23e   :  { %2677 = vmatprep.subr.bf16.mxu1 %v18638_v13  ;;  %2806 = vmatprep.subr.bf16.mxu0 %v18641_v38  ;;  %v18693_v13 = vld [vmem:[#allocation10 + $0x5a8] ss:$24 sps:$4 sm:$0xff]   ;;  %v18698_v38 = vld [vmem:[#allocation10 + $0x5d4] ss:$24 sps:$4 sm:$0xff]  }
 0x241   :  { %2678 = vmatpush1.bf16.msra.mxu1 %v18636_v22  ;;  %2807 = vmatpush1.bf16.msra.mxu0 %v18639_v43  ;;  %v18701_v22 = vld [vmem:[#allocation10 + $0x5dc] ss:$24 sps:$4 sm:$0xff]   ;;  %v18696_v43 = vld [vmem:[#allocation10 + $0x5d0] ss:$24 sps:$4 sm:$0xff]  }
 0x242   :  { %2679 = vmatprep.subr.bf16.mxu1 %v18644_v3  ;;  %2808 = vmatprep.subr.bf16.mxu0 %v18647_v14  ;;  %v18699_v3 = vld [vmem:[#allocation10 + $0x5d8] ss:$24 sps:$4 sm:$0xff]   ;;  %v18704_v14 = vld [vmem:[#allocation10 + $0x604] ss:$24 sps:$4 sm:$0xff]  }
 0x245   :  { %2680 = vmatpush1.bf16.msra.mxu1 %v18642_v21  ;;  %2809 = vmatpush1.bf16.msra.mxu0 %v18645_v36  ;;  %v18707_v21 = vld [vmem:[#allocation10 + $0x60c] ss:$24 sps:$4 sm:$0xff]   ;;  %v18702_v36 = vld [vmem:[#allocation10 + $0x600] ss:$24 sps:$4 sm:$0xff]  }
 0x246   :  { %2681 = vmatprep.subr.bf16.mxu1 %v18650_v61  ;;  %2810 = vmatprep.subr.bf16.mxu0 %v18653_v62  ;;  %v18705_v61 = vld [vmem:[#allocation10 + $0x608] ss:$24 sps:$4 sm:$0xff]   ;;  %v18710_v62 = vld [vmem:[#allocation10 + $0x634] ss:$24 sps:$4 sm:$0xff]  }
 0x249   :  { %2682 = vmatpush1.bf16.msra.mxu1 %v18648_v6  ;;  %2811 = vmatpush1.bf16.msra.mxu0 %v18651_v52  ;;  %v18713_v6 = vld [vmem:[#allocation10 + $0x63c] ss:$24 sps:$4 sm:$0xff]   ;;  %v18708_v52 = vld [vmem:[#allocation10 + $0x630] ss:$24 sps:$4 sm:$0xff]  }
 0x24a   :  { %2683 = vmatprep.subr.bf16.mxu1 %v18656_v53  ;;  %2812 = vmatprep.subr.bf16.mxu0 %v18659_v54  ;;  %v18711_v53 = vld [vmem:[#allocation10 + $0x638] ss:$24 sps:$4 sm:$0xff]   ;;  %v18716_v54 = vld [vmem:[#allocation10 + $0x664] ss:$24 sps:$4 sm:$0xff]  }
 0x24d   :  { %2684 = vmatpush1.bf16.msra.mxu1 %v18654_v55  ;;  %2813 = vmatpush1.bf16.msra.mxu0 %v18657_v56  ;;  %v18719_v55 = vld [vmem:[#allocation10 + $0x66c] ss:$24 sps:$4 sm:$0xff]   ;;  %v18714_v56 = vld [vmem:[#allocation10 + $0x660] ss:$24 sps:$4 sm:$0xff]  }
 0x24e   :  { %2685 = vmatprep.subr.bf16.mxu1 %v18662_v57  ;;  %2814 = vmatprep.subr.bf16.mxu0 %v18665_v58  ;;  %v18717_v57 = vld [vmem:[#allocation10 + $0x668] ss:$24 sps:$4 sm:$0xff]   ;;  %v18722_v58 = vld [vmem:[#allocation10 + $0x694] ss:$24 sps:$4 sm:$0xff]  }
 0x251   :  { %2686 = vmatpush1.bf16.msra.mxu1 %v18660_v20  ;;  %2815 = vmatpush1.bf16.msra.mxu0 %v18663_v59  ;;  %v18725_v20 = vld [vmem:[#allocation10 + $0x69c] ss:$24 sps:$4 sm:$0xff]   ;;  %v18720_v59 = vld [vmem:[#allocation10 + $0x690] ss:$24 sps:$4 sm:$0xff]  }
 0x252   :  { %2687 = vmatprep.subr.bf16.mxu1 %v18668_v60  ;;  %2816 = vmatprep.subr.bf16.mxu0 %v18671_v2  ;;  %v18723_v60 = vld [vmem:[#allocation10 + $0x698] ss:$24 sps:$4 sm:$0xff]   ;;  %v18728_v2 = vld [vmem:[#allocation10 + $0x6c4] ss:$24 sps:$4 sm:$0xff]  }
 0x255   :  { %2688 = vmatpush1.bf16.msra.mxu1 %v18666_v33  ;;  %2817 = vmatpush1.bf16.msra.mxu0 %v18669_v7  ;;  %v18731_v33 = vld [vmem:[#allocation10 + $0x6cc] ss:$24 sps:$4 sm:$0xff]   ;;  %v18726_v7 = vld [vmem:[#allocation10 + $0x6c0] ss:$24 sps:$4 sm:$0xff]  }
 0x256   :  { %2689 = vmatprep.subr.bf16.mxu1 %v18674_v26  ;;  %2818 = vmatprep.subr.bf16.mxu0 %v18677_v15  ;;  %v18729_v26 = vld [vmem:[#allocation10 + $0x6c8] ss:$24 sps:$4 sm:$0xff]   ;;  %v18734_v15 = vld [vmem:[#allocation10 + $0x6f4] ss:$24 sps:$4 sm:$0xff]  }
 0x259   :  { %2690 = vmatpush1.bf16.msra.mxu1 %v18672_v9  ;;  %2819 = vmatpush1.bf16.msra.mxu0 %v18675_v24  ;;  %v18737_v9 = vld [vmem:[#allocation10 + $0x6fc] ss:$24 sps:$4 sm:$0xff]   ;;  %v18732_v24 = vld [vmem:[#allocation10 + $0x6f0] ss:$24 sps:$4 sm:$0xff]  }
 0x25a   :  { %2691 = vmatprep.subr.bf16.mxu1 %v18680_v25  ;;  %2820 = vmatprep.subr.bf16.mxu0 %v18683_v17  ;;  %v18735_v25 = vld [vmem:[#allocation10 + $0x6f8] ss:$24 sps:$4 sm:$0xff]   ;;  %v18740_v17 = vld [vmem:[#allocation10 + $0x724] ss:$24 sps:$4 sm:$0xff]  }
 0x25d   :  { %2692 = vmatpush1.bf16.msra.mxu1 %v18678_v51  ;;  %2821 = vmatpush1.bf16.msra.mxu0 %v18681_v18  ;;  %v18743_v51 = vld [vmem:[#allocation10 + $0x72c] ss:$24 sps:$4 sm:$0xff]   ;;  %v18738_v18 = vld [vmem:[#allocation10 + $0x720] ss:$24 sps:$4 sm:$0xff]  }
 0x25e   :  { %2693 = vmatprep.subr.bf16.mxu1 %v18686_v31  ;;  %2822 = vmatprep.subr.bf16.mxu0 %v18689_v19  ;;  %v18741_v31 = vld [vmem:[#allocation10 + $0x728] ss:$24 sps:$4 sm:$0xff]   ;;  %v18746_v19 = vld [vmem:[#allocation10 + $0x754] ss:$24 sps:$4 sm:$0xff]  }
 0x261   :  { %2694 = vmatpush1.bf16.msra.mxu1 %v18684_v12  ;;  %2823 = vmatpush1.bf16.msra.mxu0 %v18687_v42  ;;  %v18749_v12 = vld [vmem:[#allocation10 + $0x75c] ss:$24 sps:$4 sm:$0xff]   ;;  %v18744_v42 = vld [vmem:[#allocation10 + $0x750] ss:$24 sps:$4 sm:$0xff]  }
 0x262   :  { %2695 = vmatprep.subr.bf16.mxu1 %v18692_v30  ;;  %2824 = vmatprep.subr.bf16.mxu0 %v18695_v34  ;;  %v18747_v30 = vld [vmem:[#allocation10 + $0x758] ss:$24 sps:$4 sm:$0xff]   ;;  %v18752_v34 = vld [vmem:[#allocation10 + $0x784] ss:$24 sps:$4 sm:$0xff]  }
 0x265   :  { %2696 = vmatpush1.bf16.msra.mxu1 %v18690_v35  ;;  %2825 = vmatpush1.bf16.msra.mxu0 %v18693_v13  ;;  %v18755_v35 = vld [vmem:[#allocation10 + $0x78c] ss:$24 sps:$4 sm:$0xff]   ;;  %v18750_v13 = vld [vmem:[#allocation10 + $0x780] ss:$24 sps:$4 sm:$0xff]  }
 0x266   :  { %2697 = vmatprep.subr.bf16.mxu1 %v18698_v38  ;;  %2826 = vmatprep.subr.bf16.mxu0 %v18701_v22  ;;  %v18753_v38 = vld [vmem:[#allocation10 + $0x788] ss:$24 sps:$4 sm:$0xff]   ;;  %v18758_v22 = vld [vmem:[#allocation10 + $0x7b4] ss:$24 sps:$4 sm:$0xff]  }
 0x269   :  { %2698 = vmatpush1.bf16.msra.mxu1 %v18696_v43  ;;  %2827 = vmatpush1.bf16.msra.mxu0 %v18699_v3  ;;  %v18761_v43 = vld [vmem:[#allocation10 + $0x7bc] ss:$24 sps:$4 sm:$0xff]   ;;  %v18756_v3 = vld [vmem:[#allocation10 + $0x7b0] ss:$24 sps:$4 sm:$0xff]  }
 0x26a   :  { %2710 = vmatprep.subr.bf16.mxu1 %v18704_v14  ;;  %2839 = vmatprep.subr.bf16.mxu0 %v18707_v21  ;;  %v18759_v14 = vld [vmem:[#allocation10 + $0x7b8] ss:$24 sps:$4 sm:$0xff]   ;;  %v18764_v21 = vld [vmem:[#allocation10 + $0x7e4] ss:$24 sps:$4 sm:$0xff]  }
 0x26c   :  { %2700 = vmatmul.mubr.bf16.vlgmr.msra.gmra.mrb[4].mxu1 %v22076_v8  ;;  %2829 = vmatmul.mubr.bf16.vlgmr.msra.gmra.mrb[8].mxu0 %v22076_v8 }
 0x26d   :  { %2711 = vmatpush1.bf16.msra.mxu1 %v18702_v36  ;;  %2742 = vmatprep.mubr.bf16.mxu1 %v22079_v16  ;;  %v18767_v36 = vld [vmem:[#allocation10 + $0x7ec] ss:$24 sps:$4 sm:$0xff]  }
 0x26e   :  { %2840 = vmatpush1.bf16.msra.mxu0 %v18705_v61  ;;  %2871 = vmatprep.mubr.bf16.mxu0 %v22079_v16  ;;  %v18762_v61 = vld [vmem:[#allocation10 + $0x7e0] ss:$24 sps:$4 sm:$0xff]  }
 0x26f   :  { %2712 = vmatprep.subr.bf16.mxu1 %v18710_v62  ;;  %2841 = vmatprep.subr.bf16.mxu0 %v18713_v6  ;;  %v18765_v62 = vld [vmem:[#allocation10 + $0x7e8] ss:$24 sps:$4 sm:$0xff]   ;;  %v18770_v6 = vld [vmem:[#allocation10 + $0x814] ss:$24 sps:$4 sm:$0xff]  }
 0x271   :  { %2713 = vmatpush1.bf16.msra.mxu1 %v18708_v52  ;;  %v18773_v52 = vld [vmem:[#allocation10 + $0x81c] ss:$24 sps:$4 sm:$0xff]  }
 0x272   :  { %2842 = vmatpush1.bf16.msra.mxu0 %v18711_v53  ;;  %2714 = vmatprep.subr.bf16.mxu1 %v18716_v54  ;;  %v18768_v53 = vld [vmem:[#allocation10 + $0x810] ss:$24 sps:$4 sm:$0xff]  }
 0x273   :  { %2843 = vmatprep.subr.bf16.mxu0 %v18719_v55  ;;  %v18771_v54 = vld [vmem:[#allocation10 + $0x818] ss:$24 sps:$4 sm:$0xff]   ;;  %v18776_v55 = vld [vmem:[#allocation10 + $0x844] ss:$24 sps:$4 sm:$0xff]  }
 0x275   :  { %2715 = vmatpush1.bf16.msra.mxu1 %v18714_v56  ;;  %v18779_v56 = vld [vmem:[#allocation10 + $0x84c] ss:$24 sps:$4 sm:$0xff]  }
 0x276   :  { %2844 = vmatpush1.bf16.msra.mxu0 %v18717_v57  ;;  %2716 = vmatprep.subr.bf16.mxu1 %v18722_v58  ;;  %v18774_v57 = vld [vmem:[#allocation10 + $0x840] ss:$24 sps:$4 sm:$0xff]  }
 0x277   :  { %2845 = vmatprep.subr.bf16.mxu0 %v18725_v20  ;;  %v18777_v58 = vld [vmem:[#allocation10 + $0x848] ss:$24 sps:$4 sm:$0xff]   ;;  %v18782_v20 = vld [vmem:[#allocation10 + $0x874] ss:$24 sps:$4 sm:$0xff]  }
 0x279   :  { %2717 = vmatpush1.bf16.msra.mxu1 %v18720_v59  ;;  %v18785_v59 = vld [vmem:[#allocation10 + $0x87c] ss:$24 sps:$4 sm:$0xff]  }
 0x27a   :  { %2846 = vmatpush1.bf16.msra.mxu0 %v18723_v60  ;;  %2718 = vmatprep.subr.bf16.mxu1 %v18728_v2  ;;  %v18780_v60 = vld [vmem:[#allocation10 + $0x870] ss:$24 sps:$4 sm:$0xff]  }
 0x27b   :  { %2847 = vmatprep.subr.bf16.mxu0 %v18731_v33  ;;  %v18783_v2 = vld [vmem:[#allocation10 + $0x878] ss:$24 sps:$4 sm:$0xff]   ;;  %v18788_v33 = vld [vmem:[#allocation10 + $0x8a4] ss:$24 sps:$4 sm:$0xff]  }
 0x27d   :  { %2719 = vmatpush1.bf16.msra.mxu1 %v18726_v7  ;;  %v18791_v7 = vld [vmem:[#allocation10 + $0x8ac] ss:$24 sps:$4 sm:$0xff]  }
 0x27e   :  { %2848 = vmatpush1.bf16.msra.mxu0 %v18729_v26  ;;  %2720 = vmatprep.subr.bf16.mxu1 %v18734_v15  ;;  %v18786_v26 = vld [vmem:[#allocation10 + $0x8a0] ss:$24 sps:$4 sm:$0xff]  }
 0x27f   :  { %2849 = vmatprep.subr.bf16.mxu0 %v18737_v9  ;;  %v18789_v15 = vld [vmem:[#allocation10 + $0x8a8] ss:$24 sps:$4 sm:$0xff]   ;;  %v18794_v9 = vld [vmem:[#allocation10 + $0x8d4] ss:$24 sps:$4 sm:$0xff]  }
 0x281   :  { %2721 = vmatpush1.bf16.msra.mxu1 %v18732_v24  ;;  %v18797_v24 = vld [vmem:[#allocation10 + $0x8dc] ss:$24 sps:$4 sm:$0xff]  }
 0x282   :  { %2850 = vmatpush1.bf16.msra.mxu0 %v18735_v25  ;;  %2722 = vmatprep.subr.bf16.mxu1 %v18740_v17  ;;  %v18792_v25 = vld [vmem:[#allocation10 + $0x8d0] ss:$24 sps:$4 sm:$0xff]  }
 0x283   :  { %2851 = vmatprep.subr.bf16.mxu0 %v18743_v51  ;;  %v18795_v17 = vld [vmem:[#allocation10 + $0x8d8] ss:$24 sps:$4 sm:$0xff]   ;;  %v18800_v51 = vld [vmem:[#allocation10 + $0x14] ss:$24 sps:$4 sm:$0xff]  }
 0x285   :  { %2723 = vmatpush1.bf16.msra.mxu1 %v18738_v18  ;;  %v18798_v18 = vld [vmem:[#allocation10 + $0x10] ss:$24 sps:$4 sm:$0xff]  }
 0x286   :  { %2852 = vmatpush1.bf16.msra.mxu0 %v18741_v31  ;;  %2724 = vmatprep.subr.bf16.mxu1 %v18746_v19  ;;  %v18803_v31 = vld [vmem:[#allocation10 + $0x44] ss:$24 sps:$4 sm:$0xff]   ;;  %v18801_v19 = vld [vmem:[#allocation10 + $0x40] ss:$24 sps:$4 sm:$0xff]  }
 0x287   :  { %2853 = vmatprep.subr.bf16.mxu0 %v18749_v12  ;;  %v18806_v12 = vld [vmem:[#allocation10 + $0x74] ss:$24 sps:$4 sm:$0xff]  }
 0x289   :  { %2725 = vmatpush1.bf16.msra.mxu1 %v18744_v42  ;;  %v18804_v42 = vld [vmem:[#allocation10 + $0x70] ss:$24 sps:$4 sm:$0xff]  }
 0x28a   :  { %2854 = vmatpush1.bf16.msra.mxu0 %v18747_v30  ;;  %2726 = vmatprep.subr.bf16.mxu1 %v18752_v34  ;;  %v18809_v30 = vld [vmem:[#allocation10 + $0xa4] ss:$24 sps:$4 sm:$0xff]   ;;  %v18807_v34 = vld [vmem:[#allocation10 + $0xa0] ss:$24 sps:$4 sm:$0xff]  }
 0x28b   :  { %2855 = vmatprep.subr.bf16.mxu0 %v18755_v35  ;;  %v18812_v35 = vld [vmem:[#allocation10 + $0xd4] ss:$24 sps:$4 sm:$0xff]  }
 0x28d   :  { %2727 = vmatpush1.bf16.msra.mxu1 %v18750_v13  ;;  %v18810_v13 = vld [vmem:[#allocation10 + $0xd0] ss:$24 sps:$4 sm:$0xff]  }
 0x28e   :  { %2856 = vmatpush1.bf16.msra.mxu0 %v18753_v38  ;;  %2728 = vmatprep.subr.bf16.mxu1 %v18758_v22  ;;  %v18815_v38 = vld [vmem:[#allocation10 + $0x104] ss:$24 sps:$4 sm:$0xff]   ;;  %v18813_v22 = vld [vmem:[#allocation10 + $0x100] ss:$24 sps:$4 sm:$0xff]  }
 0x28f   :  { %2857 = vmatprep.subr.bf16.mxu0 %v18761_v43  ;;  %v18818_v43 = vld [vmem:[#allocation10 + $0x134] ss:$24 sps:$4 sm:$0xff]  }
 0x291   :  { %2729 = vmatpush1.bf16.msra.mxu1 %v18756_v3  ;;  %v18816_v3 = vld [vmem:[#allocation10 + $0x130] ss:$24 sps:$4 sm:$0xff]  }
 0x292   :  { %2858 = vmatpush1.bf16.msra.mxu0 %v18759_v14  ;;  %2730 = vmatprep.subr.bf16.mxu1 %v18764_v21  ;;  %v18819_v14 = vld [vmem:[#allocation10 + $0x160] ss:$24 sps:$4 sm:$0xff]   ;;  %v18824_v21 = vld [vmem:[#allocation10 + $0x194] ss:$24 sps:$4 sm:$0xff]  }
 0x293   :  { %2859 = vmatprep.subr.bf16.mxu0 %v18767_v36  ;;  %v18822_v36 = vld [vmem:[#allocation10 + $0x190] ss:$24 sps:$4 sm:$0xff]  }
 0x295   :  { %2731 = vmatpush1.bf16.msra.mxu1 %v18762_v61  ;;  %v18827_v61 = vld [vmem:[#allocation10 + $0x1c4] ss:$24 sps:$4 sm:$0xff]  }
 0x296   :  { %2860 = vmatpush1.bf16.msra.mxu0 %v18765_v62  ;;  %2732 = vmatprep.subr.bf16.mxu1 %v18770_v6  ;;  %v18825_v62 = vld [vmem:[#allocation10 + $0x1c0] ss:$24 sps:$4 sm:$0xff]   ;;  %v18830_v6 = vld [vmem:[#allocation10 + $0x1f4] ss:$24 sps:$4 sm:$0xff]  }
 0x297   :  { %2861 = vmatprep.subr.bf16.mxu0 %v18773_v52  ;;  %v18828_v52 = vld [vmem:[#allocation10 + $0x1f0] ss:$24 sps:$4 sm:$0xff]  }
 0x299   :  { %2733 = vmatpush1.bf16.msra.mxu1 %v18768_v53  ;;  %v18833_v53 = vld [vmem:[#allocation10 + $0x224] ss:$24 sps:$4 sm:$0xff]  }
 0x29a   :  { %2862 = vmatpush1.bf16.msra.mxu0 %v18771_v54  ;;  %2734 = vmatprep.subr.bf16.mxu1 %v18776_v55  ;;  %v18831_v54 = vld [vmem:[#allocation10 + $0x220] ss:$24 sps:$4 sm:$0xff]   ;;  %v18836_v55 = vld [vmem:[#allocation10 + $0x254] ss:$24 sps:$4 sm:$0xff]  }
 0x29b   :  { %2863 = vmatprep.subr.bf16.mxu0 %v18779_v56  ;;  %v18834_v56 = vld [vmem:[#allocation10 + $0x250] ss:$24 sps:$4 sm:$0xff]  }
 0x29d   :  { %2735 = vmatpush1.bf16.msra.mxu1 %v18774_v57  ;;  %v18839_v57 = vld [vmem:[#allocation10 + $0x284] ss:$24 sps:$4 sm:$0xff]  }
 0x29e   :  { %2864 = vmatpush1.bf16.msra.mxu0 %v18777_v58  ;;  %2736 = vmatprep.subr.bf16.mxu1 %v18782_v20  ;;  %v18837_v58 = vld [vmem:[#allocation10 + $0x280] ss:$24 sps:$4 sm:$0xff]   ;;  %v18842_v20 = vld [vmem:[#allocation10 + $0x2b4] ss:$24 sps:$4 sm:$0xff]  }
 0x29f   :  { %2865 = vmatprep.subr.bf16.mxu0 %v18785_v59  ;;  %v18840_v59 = vld [vmem:[#allocation10 + $0x2b0] ss:$24 sps:$4 sm:$0xff]  }
 0x2a1   :  { %2737 = vmatpush1.bf16.msra.mxu1 %v18780_v60  ;;  %v18845_v60 = vld [vmem:[#allocation10 + $0x2e4] ss:$24 sps:$4 sm:$0xff]  }
 0x2a2   :  { %2866 = vmatpush1.bf16.msra.mxu0 %v18783_v2  ;;  %2738 = vmatprep.subr.bf16.mxu1 %v18788_v33  ;;  %v18843_v2 = vld [vmem:[#allocation10 + $0x2e0] ss:$24 sps:$4 sm:$0xff]   ;;  %v18848_v33 = vld [vmem:[#allocation10 + $0x314] ss:$24 sps:$4 sm:$0xff]  }
 0x2a3   :  { %2867 = vmatprep.subr.bf16.mxu0 %v18791_v7  ;;  %v18846_v7 = vld [vmem:[#allocation10 + $0x310] ss:$24 sps:$4 sm:$0xff]  }
 0x2a5   :  { %2739 = vmatpush1.bf16.msra.mxu1 %v18786_v26  ;;  %v18851_v26 = vld [vmem:[#allocation10 + $0x344] ss:$24 sps:$4 sm:$0xff]  }
 0x2a6   :  { %2868 = vmatpush1.bf16.msra.mxu0 %v18789_v15  ;;  %2740 = vmatprep.subr.bf16.mxu1 %v18794_v9  ;;  %v18849_v15 = vld [vmem:[#allocation10 + $0x340] ss:$24 sps:$4 sm:$0xff]   ;;  %v18854_v9 = vld [vmem:[#allocation10 + $0x374] ss:$24 sps:$4 sm:$0xff]  }
 0x2a7   :  { %2869 = vmatprep.subr.bf16.mxu0 %v18797_v24  ;;  %v18852_v24 = vld [vmem:[#allocation10 + $0x370] ss:$24 sps:$4 sm:$0xff]  }
 0x2a9   :  { %2741 = vmatpush1.bf16.msra.mxu1 %v18792_v25  ;;  %v18857_v25 = vld [vmem:[#allocation10 + $0x3a4] ss:$24 sps:$4 sm:$0xff]  }
 0x2aa   :  { %2870 = vmatpush1.bf16.msra.mxu0 %v18795_v17  ;;  %2882 = vmatprep.subr.bf16.mxu1 %v18800_v51  ;;  %v18855_v17 = vld [vmem:[#allocation10 + $0x3a0] ss:$24 sps:$4 sm:$0xff]   ;;  %v18860_v51 = vld [vmem:[#allocation10 + $0x3d4] ss:$24 sps:$4 sm:$0xff]  }
 0x2ac   :  { %2743 = vmatmul.mubr.bf16.vlgmr.msra.gmra.mrb[4].mxu1 %v22081_v10 }
 0x2ad   :  { %2872 = vmatmul.mubr.bf16.vlgmr.msra.gmra.mrb[8].mxu0 %v22081_v10  ;;  %2883 = vmatpush1.bf16.msra.mxu1 %v18798_v18  ;;  %v18858_v18 = vld [vmem:[#allocation10 + $0x3d0] ss:$24 sps:$4 sm:$0xff]  }
 0x2ae   :  { %2914 = vmatprep.mubr.bf16.mxu1 %v22061_v32  ;;  %2884 = vmatprep.subr.bf16.mxu1 %v18803_v31  ;;  %v18821_v32 = vld [vmem:[#allocation10 + $0x164] ss:$24 sps:$4 sm:$0xff]  }
 0x2af   :  { %v18863_v31 = vld [vmem:[#allocation10 + $0x404] ss:$24 sps:$4 sm:$0xff]  }
 0x2b1   :  { %2885 = vmatpush1.bf16.msra.mxu1 %v18801_v19  ;;  %v18861_v19 = vld [vmem:[#allocation10 + $0x400] ss:$24 sps:$4 sm:$0xff]  }
 0x2b2   :  { %2886 = vmatprep.subr.bf16.mxu1 %v18806_v12  ;;  %v18866_v12 = vld [vmem:[#allocation10 + $0x434] ss:$24 sps:$4 sm:$0xff]  }
 0x2b5   :  { %2887 = vmatpush1.bf16.msra.mxu1 %v18804_v42  ;;  %v18869_v42 = vld [vmem:[#allocation10 + $0x464] ss:$24 sps:$4 sm:$0xff]  }
 0x2b6   :  { %2888 = vmatprep.subr.bf16.mxu1 %v18809_v30  ;;  %v18872_v30 = vld [vmem:[#allocation10 + $0x494] ss:$24 sps:$4 sm:$0xff]  }
 0x2b9   :  { %2889 = vmatpush1.bf16.msra.mxu1 %v18807_v34  ;;  %v18870_v34 = vld [vmem:[#allocation10 + $0x490] ss:$24 sps:$4 sm:$0xff]  }
 0x2ba   :  { %2890 = vmatprep.subr.bf16.mxu1 %v18812_v35  ;;  %v18875_v35 = vld [vmem:[#allocation10 + $0x4c4] ss:$24 sps:$4 sm:$0xff]  }
 0x2bd   :  { %2891 = vmatpush1.bf16.msra.mxu1 %v18810_v13  ;;  %v18873_v13 = vld [vmem:[#allocation10 + $0x4c0] ss:$24 sps:$4 sm:$0xff]  }
 0x2be   :  { %2892 = vmatprep.subr.bf16.mxu1 %v18815_v38  ;;  %v18878_v38 = vld [vmem:[#allocation10 + $0x4f4] ss:$24 sps:$4 sm:$0xff]  }
 0x2c1   :  { %2893 = vmatpush1.bf16.msra.mxu1 %v18813_v22  ;;  %v18876_v22 = vld [vmem:[#allocation10 + $0x4f0] ss:$24 sps:$4 sm:$0xff]  }
 0x2c2   :  { %2894 = vmatprep.subr.bf16.mxu1 %v18818_v43  ;;  %v18881_v43 = vld [vmem:[#allocation10 + $0x524] ss:$24 sps:$4 sm:$0xff]  }
 0x2c5   :  { %2895 = vmatpush1.bf16.msra.mxu1 %v18816_v3  ;;  %v18879_v3 = vld [vmem:[#allocation10 + $0x520] ss:$24 sps:$4 sm:$0xff]  }
 0x2c6   :  { %2896 = vmatprep.subr.bf16.mxu1 %v18821_v32  ;;  %v18884_v32 = vld [vmem:[#allocation10 + $0x554] ss:$24 sps:$4 sm:$0xff]  }
 0x2c9   :  { %2897 = vmatpush1.bf16.msra.mxu1 %v18819_v14  ;;  %v18882_v14 = vld [vmem:[#allocation10 + $0x550] ss:$24 sps:$4 sm:$0xff]  }
 0x2ca   :  { %2898 = vmatprep.subr.bf16.mxu1 %v18824_v21  ;;  %v18887_v21 = vld [vmem:[#allocation10 + $0x584] ss:$24 sps:$4 sm:$0xff]  }
 0x2cd   :  { %2899 = vmatpush1.bf16.msra.mxu1 %v18822_v36  ;;  %v18885_v36 = vld [vmem:[#allocation10 + $0x580] ss:$24 sps:$4 sm:$0xff]  }
 0x2ce   :  { %2900 = vmatprep.subr.bf16.mxu1 %v18827_v61  ;;  %v18890_v61 = vld [vmem:[#allocation10 + $0x5b4] ss:$24 sps:$4 sm:$0xff]  }
 0x2d1   :  { %2901 = vmatpush1.bf16.msra.mxu1 %v18825_v62  ;;  %v18888_v62 = vld [vmem:[#allocation10 + $0x5b0] ss:$24 sps:$4 sm:$0xff]  }
 0x2d2   :  { %2902 = vmatprep.subr.bf16.mxu1 %v18830_v6  ;;  %v18893_v6 = vld [vmem:[#allocation10 + $0x5e4] ss:$24 sps:$4 sm:$0xff]  }
 0x2d5   :  { %2903 = vmatpush1.bf16.msra.mxu1 %v18828_v52  ;;  %v18891_v52 = vld [vmem:[#allocation10 + $0x5e0] ss:$24 sps:$4 sm:$0xff]  }
 0x2d6   :  { %2904 = vmatprep.subr.bf16.mxu1 %v18833_v53  ;;  %v18896_v53 = vld [vmem:[#allocation10 + $0x614] ss:$24 sps:$4 sm:$0xff]  }
 0x2d9   :  { %2905 = vmatpush1.bf16.msra.mxu1 %v18831_v54  ;;  %v18894_v54 = vld [vmem:[#allocation10 + $0x610] ss:$24 sps:$4 sm:$0xff]  }
 0x2da   :  { %2906 = vmatprep.subr.bf16.mxu1 %v18836_v55  ;;  %v18899_v55 = vld [vmem:[#allocation10 + $0x644] ss:$24 sps:$4 sm:$0xff]  }
 0x2dd   :  { %2907 = vmatpush1.bf16.msra.mxu1 %v18834_v56  ;;  %v18897_v56 = vld [vmem:[#allocation10 + $0x640] ss:$24 sps:$4 sm:$0xff]  }
 0x2de   :  { %2908 = vmatprep.subr.bf16.mxu1 %v18839_v57  ;;  %v18902_v57 = vld [vmem:[#allocation10 + $0x674] ss:$24 sps:$4 sm:$0xff]  }
 0x2e1   :  { %2909 = vmatpush1.bf16.msra.mxu1 %v18837_v58  ;;  %v18900_v58 = vld [vmem:[#allocation10 + $0x670] ss:$24 sps:$4 sm:$0xff]  }
 0x2e2   :  { %2910 = vmatprep.subr.bf16.mxu1 %v18842_v20  ;;  %v18905_v20 = vld [vmem:[#allocation10 + $0x6a4] ss:$24 sps:$4 sm:$0xff]  }
 0x2e5   :  { %2911 = vmatpush1.bf16.msra.mxu1 %v18840_v59  ;;  %v18903_v59 = vld [vmem:[#allocation10 + $0x6a0] ss:$24 sps:$4 sm:$0xff]  }
 0x2e6   :  { %2912 = vmatprep.subr.bf16.mxu1 %v18845_v60  ;;  %v18908_v60 = vld [vmem:[#allocation10 + $0x6d4] ss:$24 sps:$4 sm:$0xff]  }
 0x2e9   :  { %2913 = vmatpush1.bf16.msra.mxu1 %v18843_v2  ;;  %v18906_v2 = vld [vmem:[#allocation10 + $0x6d0] ss:$24 sps:$4 sm:$0xff]  }
 0x2ea   :  { %2925 = vmatprep.subr.bf16.mxu1 %v18848_v33  ;;  %v18911_v33 = vld [vmem:[#allocation10 + $0x704] ss:$24 sps:$4 sm:$0xff]  }
 0x2ec   :  { %2915 = vmatmul.mubr.bf16.vlgmr.msra.gmra.mrb[8].mxu1 %v22065_v48  ;;  %v18864_v48 = vld [vmem:[#allocation10 + $0x430] ss:$24 sps:$4 sm:$0xff]  }
 0x2ed   :  { %2926 = vmatpush1.bf16.msra.mxu1 %v18846_v7  ;;  %2957 = vmatprep.mubr.bf16.mxu1 %v22070_v0  ;;  %v18867_v0 = vld [vmem:[#allocation10 + $0x460] ss:$24 sps:$4 sm:$0xff]  }
 0x2ee   :  { %2927 = vmatprep.subr.bf16.mxu1 %v18851_v26  ;;  %v18909_v7 = vld [vmem:[#allocation10 + $0x700] ss:$24 sps:$4 sm:$0xff]   ;;  %v18914_v26 = vld [vmem:[#allocation10 + $0x734] ss:$24 sps:$4 sm:$0xff]  }
 0x2f1   :  { %2928 = vmatpush1.bf16.msra.mxu1 %v18849_v15  ;;  %v18917_v15 = vld [vmem:[#allocation10 + $0x764] ss:$24 sps:$4 sm:$0xff]  }
 0x2f2   :  { %2929 = vmatprep.subr.bf16.mxu1 %v18854_v9  ;;  %v18920_v9 = vld [vmem:[#allocation10 + $0x794] ss:$24 sps:$4 sm:$0xff]  }
 0x2f5   :  { %2930 = vmatpush1.bf16.msra.mxu1 %v18852_v24  ;;  %v18918_v24 = vld [vmem:[#allocation10 + $0x790] ss:$24 sps:$4 sm:$0xff]  }
 0x2f6   :  { %2931 = vmatprep.subr.bf16.mxu1 %v18857_v25  ;;  %v18923_v25 = vld [vmem:[#allocation10 + $0x7c4] ss:$24 sps:$4 sm:$0xff]  }
 0x2f9   :  { %2932 = vmatpush1.bf16.msra.mxu1 %v18855_v17  ;;  %v18921_v17 = vld [vmem:[#allocation10 + $0x7c0] ss:$24 sps:$4 sm:$0xff]  }
 0x2fa   :  { %2933 = vmatprep.subr.bf16.mxu1 %v18860_v51  ;;  %v18926_v51 = vld [vmem:[#allocation10 + $0x7f4] ss:$24 sps:$4 sm:$0xff]  }
 0x2fd   :  { %2934 = vmatpush1.bf16.msra.mxu1 %v18858_v18  ;;  %v18924_v18 = vld [vmem:[#allocation10 + $0x7f0] ss:$24 sps:$4 sm:$0xff]  }
 0x2fe   :  { %2935 = vmatprep.subr.bf16.mxu1 %v18863_v31  ;;  %v18929_v31 = vld [vmem:[#allocation10 + $0x824] ss:$24 sps:$4 sm:$0xff]  }
 0x301   :  { %2936 = vmatpush1.bf16.msra.mxu1 %v18861_v19  ;;  %v18927_v19 = vld [vmem:[#allocation10 + $0x820] ss:$24 sps:$4 sm:$0xff]  }
 0x302   :  { %2937 = vmatprep.subr.bf16.mxu1 %v18866_v12  ;;  %v18932_v12 = vld [vmem:[#allocation10 + $0x854] ss:$24 sps:$4 sm:$0xff]  }
 0x305   :  { %2938 = vmatpush1.bf16.msra.mxu1 %v18864_v48  ;;  %v18930_v48 = vld [vmem:[#allocation10 + $0x850] ss:$24 sps:$4 sm:$0xff]  }
 0x306   :  { %2939 = vmatprep.subr.bf16.mxu1 %v18869_v42  ;;  %v18935_v42 = vld [vmem:[#allocation10 + $0x884] ss:$24 sps:$4 sm:$0xff]  }
 0x309   :  { %2940 = vmatpush1.bf16.msra.mxu1 %v18867_v0  ;;  %v18933_v0 = vld [vmem:[#allocation10 + $0x880] ss:$24 sps:$4 sm:$0xff]  }
 0x30a   :  { %2941 = vmatprep.subr.bf16.mxu1 %v18872_v30  ;;  %v18938_v30 = vld [vmem:[#allocation10 + $0x8b4] ss:$24 sps:$4 sm:$0xff]  }
 0x30d   :  { %2942 = vmatpush1.bf16.msra.mxu1 %v18870_v34  ;;  %v18936_v34 = vld [vmem:[#allocation10 + $0x8b0] ss:$24 sps:$4 sm:$0xff]  }
 0x30e   :  { %2943 = vmatprep.subr.bf16.mxu1 %v18875_v35  ;;  %v18941_v35 = vld [vmem:[#allocation10 + $0x8e4] ss:$24 sps:$4 sm:$0xff]  }
 0x311   :  { %2944 = vmatpush1.bf16.msra.mxu1 %v18873_v13  ;;  %v18939_v13 = vld [vmem:[#allocation10 + $0x8e0] ss:$24 sps:$4 sm:$0xff]  }
 0x312   :  { %2945 = vmatprep.subr.bf16.mxu1 %v18878_v38  ;;  %v22095_v38 = vld [vmem:[#allocation11] sm:$0x3f] }
 0x315   :  { %2946 = vmatpush1.bf16.msra.mxu1 %v18876_v22  ;;  %v1157_v22 = vrot.slane %v22095_v38, %v21895_v27 }
 0x316   :  { %2947 = vmatprep.subr.bf16.mxu1 %v18881_v43 }
 0x319   :  { %2948 = vmatpush1.bf16.msra.mxu1 %v18879_v3  ;;  %v1165_v3 = vrot.slane %v22095_v38, %v21890_v23 }
 0x31a   :  { %2949 = vmatprep.subr.bf16.mxu1 %v18884_v32  ;;  %v1161_v32 = vrot.slane %v22095_v38, %v21901_v29 }
 0x31d   :  { %2950 = vmatpush1.bf16.msra.mxu1 %v18882_v14 }
 0x31e   :  { %2951 = vmatprep.subr.bf16.mxu1 %v18887_v21 }
 0x321   :  { %2952 = vmatpush1.bf16.msra.mxu1 %v18885_v36  ;;  %v1169_v36 = vrot.slane %v22095_v38, %v21898_v28 }
 0x322   :  { %2953 = vmatprep.subr.bf16.mxu1 %v18890_v61 }
 0x325   :  { %2954 = vmatpush1.bf16.msra.mxu1 %v18888_v62 }
 0x326   :  { %2955 = vmatprep.subr.bf16.mxu1 %v18893_v6 }
 0x329   :  { %2956 = vmatpush1.bf16.msra.mxu1 %v18891_v52 }
 0x32a   :  { %2968 = vmatprep.subr.bf16.mxu1 %v18896_v53 }
 0x32c   :  { %2958 = vmatmul.mubr.bf16.vlgmr.msra.gmra.mrb[8].mxu1 %v22076_v8  ;;  %v18912_v8 = vld [vmem:[#allocation10 + $0x730] ss:$24 sps:$4 sm:$0xff]  }
 0x32d   :  { %2969 = vmatpush1.bf16.msra.mxu1 %v18894_v54  ;;  %3000 = vmatprep.mubr.bf16.mxu1 %v22079_v16  ;;  %v18915_v16 = vld [vmem:[#allocation10 + $0x760] ss:$24 sps:$4 sm:$0xff]  }
 0x32e   :  { %2970 = vmatprep.subr.bf16.mxu1 %v18899_v55 }
 0x331   :  { %2971 = vmatpush1.bf16.msra.mxu1 %v18897_v56 }
 0x332   :  { %2972 = vmatprep.subr.bf16.mxu1 %v18902_v57 }
 0x335   :  { %2973 = vmatpush1.bf16.msra.mxu1 %v18900_v58 }
 0x336   :  { %2974 = vmatprep.subr.bf16.mxu1 %v18905_v20 }
 0x339   :  { %2975 = vmatpush1.bf16.msra.mxu1 %v18903_v59 }
 0x33a   :  { %2976 = vmatprep.subr.bf16.mxu1 %v18908_v60 }
 0x33d   :  { %2977 = vmatpush1.bf16.msra.mxu1 %v18906_v2 }
 0x33e   :  { %2978 = vmatprep.subr.bf16.mxu1 %v18911_v33 }
 0x341   :  { %2979 = vmatpush1.bf16.msra.mxu1 %v18909_v7 }
 0x342   :  { %2980 = vmatprep.subr.bf16.mxu1 %v18914_v26 }
 0x345   :  { %2981 = vmatpush1.bf16.msra.mxu1 %v18912_v8 }
 0x346   :  { %2982 = vmatprep.subr.bf16.mxu1 %v18917_v15 }
 0x349   :  { %2983 = vmatpush1.bf16.msra.mxu1 %v18915_v16 }
 0x34a   :  { %2984 = vmatprep.subr.bf16.mxu1 %v18920_v9 }
 0x34d   :  { %2985 = vmatpush1.bf16.msra.mxu1 %v18918_v24 }
 0x34e   :  { %2986 = vmatprep.subr.bf16.mxu1 %v18923_v25 }
 0x351   :  { %2987 = vmatpush1.bf16.msra.mxu1 %v18921_v17 }
 0x352   :  { %2988 = vmatprep.subr.bf16.mxu1 %v18926_v51 }
 0x355   :  { %2989 = vmatpush1.bf16.msra.mxu1 %v18924_v18 }
 0x356   :  { %2990 = vmatprep.subr.bf16.mxu1 %v18929_v31 }
 0x359   :  { %2991 = vmatpush1.bf16.msra.mxu1 %v18927_v19 }
 0x35a   :  { %2992 = vmatprep.subr.bf16.mxu1 %v18932_v12 }
 0x35d   :  { %2993 = vmatpush1.bf16.msra.mxu1 %v18930_v48 }
 0x35e   :  { %2994 = vmatprep.subr.bf16.mxu1 %v18935_v42 }
 0x361   :  { %2995 = vmatpush1.bf16.msra.mxu1 %v18933_v0 }
 0x362   :  { %2996 = vmatprep.subr.bf16.mxu1 %v18938_v30 }
 0x365   :  { %2997 = vmatpush1.bf16.msra.mxu1 %v18936_v34 }
 0x366   :  { %2998 = vmatprep.subr.bf16.mxu1 %v18941_v35 }
 0x369   :  { %2999 = vmatpush1.bf16.msra.mxu1 %v18939_v13 }
 0x36c   :  { %3001 = vmatmul.mubr.bf16.vlgmr.msra.gmra.mrb[8].mxu1 %v22081_v10 }
 0x37f   :  { %v2744_v43 = vpop.f32.mrb[4].mxu1 }
 0x380   :  { %v2873_v14 = vpop.f32.mrb[8].mxu0  ;;  %v2746_v21 = vpop.f32.mrb[5].mxu1  ;;  %v18271_v10 = vadd.f32 %v2744_v43, %v1157_v22 }
 0x381   :  { %v2875_v61 = vpop.f32.mrb[9].mxu0  ;;  %v2748_v62 = vpop.f32.mrb[6].mxu1  ;;  %v18275_v54 = vadd.f32 %v2873_v14, %v1165_v3  ;;  %v18272_v55 = vadd.f32 %v2746_v21, %v1161_v32 }
 0x382   :  { %v18273_v6 = vadd.f32 %v2748_v62, %v1157_v22  ;;  %v2877_v52 = vpop.f32.mrb[10].mxu0  ;;  %v2750_v53 = vpop.f32.mrb[7].mxu1  ;;  %v18276_v20 = vadd.f32 %v2875_v61, %v1169_v36 }
 0x383   :  { %v18277_v56 = vadd.f32 %v2877_v52, %v1165_v3  ;;  %v18274_v57 = vadd.f32 %v2750_v53, %v1161_v32  ;;  %v2879_v58 = vpop.f32.mrb[11].mxu0 }
 0x384   :  { %v3015_v59 = vadd.f32 %v18273_v6, %v18271_v10  ;;  %v18278_v60 = vadd.f32 %v2879_v58, %v1169_v36 }
 0x385   :  { %v3029_v2 = vadd.f32 %v18277_v56, %v18275_v54  ;;  %v3022_v33 = vadd.f32 %v18274_v57, %v18272_v55 }
 0x386   :  { %v3016_v7 = vrot.slane %v3015_v59, 4  ;;  %v3036_v26 = vadd.f32 %v18278_v60, %v18276_v20 }
 0x387   :  { %v3030_v8 = vrot.slane %v3029_v2, 4  ;;  %v3023_v15 = vrot.slane %v3022_v33, 4 }
 0x388   :  { %v3017_v16 = vadd.f32 %v3016_v7, %v3015_v59  ;;  %v3037_v9 = vrot.slane %v3036_v26, 4 }
 0x389   :  { %v3031_v24 = vadd.f32 %v3030_v8, %v3029_v2  ;;  %v3024_v25 = vadd.f32 %v3023_v15, %v3022_v33 }
 0x38a   :  { %v3018_v17 = vrot.slane %v3017_v16, 2  ;;  %v3038_v51 = vadd.f32 %v3037_v9, %v3036_v26 }
 0x38b   :  { %v3032_v18 = vrot.slane %v3031_v24, 2  ;;  %v3025_v31 = vrot.slane %v3024_v25, 2 }
 0x38c   :  { %v3019_v19 = vadd.f32 %v3018_v17, %v3017_v16  ;;  %v3039_v12 = vrot.slane %v3038_v51, 2 }
 0x38d   :  { %v3033_v48 = vadd.f32 %v3032_v18, %v3031_v24  ;;  %v3026_v42 = vadd.f32 %v3025_v31, %v3024_v25 }
 0x38e   :  { %v3020_v0 = vrot.slane %v3019_v19, 1  ;;  %v3040_v30 = vadd.f32 %v3039_v12, %v3038_v51 }
 0x38f   :  { %v3034_v34 = vrot.slane %v3033_v48, 1  ;;  %v3027_v35 = vrot.slane %v3026_v42, 1 }
 0x390   :  { %v3021_v13 = vadd.f32 %v3020_v0, %v3019_v19  ;;  %v3041_v22 = vrot.slane %v3040_v30, 1 }
 0x391   :  { %v3035_v43 = vadd.f32 %v3034_v34, %v3033_v48  ;;  %v3028_v3 = vadd.f32 %v3027_v35, %v3026_v42 }
 0x392   :  { %v3057_v32 = vmul.f32 0.0625, %v3021_v13  ;;  %v3042_v14 = vadd.f32 %v3041_v22, %v3040_v30 }
 0x393   :  { %v3059_v21 = vmul.f32 0.0625, %v3035_v43  ;;  %v3058_v36 = vmul.f32 0.0625, %v3028_v3 }
 0x394   :  { %v22105_v61 = vsub.f32 %v18271_v10, %v3057_v32  ;;  %v22107_v62 = vsub.f32 %v18273_v6, %v3057_v32  ;;  %v3060_v52 = vmul.f32 0.0625, %v3042_v14 }
 0x395   :  { %v22109_v53 = vsub.f32 %v18275_v54, %v3059_v21  ;;  %v22111_v58 = vsub.f32 %v18277_v56, %v3059_v21  ;;  %v22113_v59 = vsub.f32 %v18272_v55, %v3058_v36  ;;  %v22115_v2 = vsub.f32 %v18274_v57, %v3058_v36 }
 0x396   :  { %v3075_v33 = vmul.f32 %v22105_v61, %v22105_v61  ;;  %v3081_v7 = vmul.f32 %v22107_v62, %v22107_v62  ;;  %v22121_v26 = vsub.f32 %v18276_v20, %v3060_v52  ;;  %v22123_v10 = vsub.f32 %v18278_v60, %v3060_v52 }
 0x397   :  { %v3077_v6 = vmul.f32 %v22109_v53, %v22109_v53  ;;  %v3083_v54 = vmul.f32 %v22111_v58, %v22111_v58  ;;  %v3076_v55 = vmul.f32 %v22113_v59, %v22113_v59  ;;  %v3082_v56 = vmul.f32 %v22115_v2, %v22115_v2 }
 0x398   :  { %v3087_v57 = vadd.f32 %v3081_v7, %v3075_v33  ;;  %v3078_v8 = vmul.f32 %v22121_v26, %v22121_v26  ;;  %v3084_v20 = vmul.f32 %v22123_v10, %v22123_v10 }
 0x399   :  { %v3101_v60 = vadd.f32 %v3083_v54, %v3077_v6  ;;  %v3094_v15 = vadd.f32 %v3082_v56, %v3076_v55 }
 0x39a   :  { %v3088_v16 = vrot.slane %v3087_v57, 4  ;;  %v3108_v9 = vadd.f32 %v3084_v20, %v3078_v8 }
 0x39b   :  { %v3102_v24 = vrot.slane %v3101_v60, 4  ;;  %v3095_v25 = vrot.slane %v3094_v15, 4 }
 0x39c   :  { %v3089_v17 = vadd.f32 %v3088_v16, %v3087_v57  ;;  %v3109_v51 = vrot.slane %v3108_v9, 4 }
 0x39d   :  { %v3103_v18 = vadd.f32 %v3102_v24, %v3101_v60  ;;  %v3096_v31 = vadd.f32 %v3095_v25, %v3094_v15 }
 0x39e   :  { %v3090_v19 = vrot.slane %v3089_v17, 2  ;;  %v3110_v12 = vadd.f32 %v3109_v51, %v3108_v9 }
 0x39f   :  { %v3104_v48 = vrot.slane %v3103_v18, 2  ;;  %v3097_v42 = vrot.slane %v3096_v31, 2 }
 0x3a0   :  { %v3091_v0 = vadd.f32 %v3090_v19, %v3089_v17  ;;  %v3111_v30 = vrot.slane %v3110_v12, 2  ;;  %v18942_v19 = vld [vmem:[#allocation10 + $0x900] ss:$24 sps:$4 sm:$0xff]  }
 0x3a1   :  { %v3105_v34 = vadd.f32 %v3104_v48, %v3103_v18  ;;  %v3098_v35 = vadd.f32 %v3097_v42, %v3096_v31  ;;  %v18944_v18 = vld [vmem:[#allocation10 + $0x904] ss:$24 sps:$4 sm:$0xff]   ;;  %v18950_v48 = vld [vmem:[#allocation10 + $0x934] ss:$24 sps:$4 sm:$0xff]  }
 0x3a2   :  { %v3092_v13 = vrot.slane %v3091_v0, 1  ;;  %v3112_v22 = vadd.f32 %v3111_v30, %v3110_v12  ;;  %v18947_v31 = vld [vmem:[#allocation10 + $0x90c] ss:$24 sps:$4 sm:$0xff]   ;;  %v18945_v12 = vld [vmem:[#allocation10 + $0x908] ss:$24 sps:$4 sm:$0xff]   ;;  %5109 = vmatprep.subr.bf16.mxu0 %v18944_v18 }
 0x3a3   :  { %v3106_v43 = vrot.slane %v3105_v34, 1  ;;  %v3099_v3 = vrot.slane %v3098_v35, 1  ;;  %5238 = vmatprep.subr.bf16.mxu1 %v18947_v31  ;;  %5110 = vmatpush1.bf16.msra.mxu0 %v18942_v19  ;;  %v18953_v42 = vld [vmem:[#allocation10 + $0x93c] ss:$24 sps:$4 sm:$0xff]   ;;  %v18951_v30 = vld [vmem:[#allocation10 + $0x938] ss:$24 sps:$4 sm:$0xff]  }
 0x3a4   :  { %v3093_v32 = vadd.f32 %v3092_v13, %v3091_v0  ;;  %v3113_v14 = vrot.slane %v3112_v22, 1  ;;  %5239 = vmatpush1.bf16.msra.mxu1 %v18945_v12  ;;  %v18948_v0 = vld [vmem:[#allocation10 + $0x930] ss:$24 sps:$4 sm:$0xff]   ;;  %5111 = vmatprep.subr.bf16.mxu0 %v18950_v48  ;;  %v18954_v13 = vld [vmem:[#allocation10 + $0x960] ss:$24 sps:$4 sm:$0xff]  }
 0x3a5   :  { %v3107_v21 = vadd.f32 %v3106_v43, %v3105_v34  ;;  %v3100_v36 = vadd.f32 %v3099_v3, %v3098_v35  ;;  %5240 = vmatprep.subr.bf16.mxu1 %v18953_v42  ;;  %v18956_v34 = vld [vmem:[#allocation10 + $0x964] ss:$24 sps:$4 sm:$0xff]   ;;  %v18962_v43 = vld [vmem:[#allocation10 + $0x994] ss:$24 sps:$4 sm:$0xff]   ;;  %v18990_v31 = vld [vmem:[#allocation10 + $0xa80] ss:$24 sps:$4 sm:$0xff]  }
 0x3a6   :  { %v3129_v52 = vmul.f32 0.0625, %v3093_v32  ;;  %v3114_v33 = vadd.f32 %v3113_v14, %v3112_v22  ;;  %v18959_v35 = vld [vmem:[#allocation10 + $0x96c] ss:$24 sps:$4 sm:$0xff]   ;;  %v18957_v22 = vld [vmem:[#allocation10 + $0x968] ss:$24 sps:$4 sm:$0xff]  }
 0x3a7   :  { %v3131_v7 = vmul.f32 0.0625, %v3107_v21  ;;  %v3130_v6 = vmul.f32 0.0625, %v3100_v36  ;;  %5112 = vmatpush1.bf16.msra.mxu0 %v18948_v0  ;;  %v18965_v3 = vld [vmem:[#allocation10 + $0x99c] ss:$24 sps:$4 sm:$0xff]   ;;  %v18960_v32 = vld [vmem:[#allocation10 + $0x990] ss:$24 sps:$4 sm:$0xff]  }
 0x3a8   :  { %v3135_v54 = vadd.f32 1e-05, %v3129_v52  ;;  %v3132_v55 = vmul.f32 0.0625, %v3114_v33  ;;  %5241 = vmatpush1.bf16.msra.mxu1 %v18951_v30  ;;  %5113 = vmatprep.subr.bf16.mxu0 %v18956_v34  ;;  %v18963_v14 = vld [vmem:[#allocation10 + $0x998] ss:$24 sps:$4 sm:$0xff]  }
 0x3a9   :  { %v3137_v56 = vadd.f32 1e-05, %v3131_v7  ;;  %v3136_v57 = vadd.f32 1e-05, %v3130_v6  ;;  %5242 = vmatprep.subr.bf16.mxu1 %v18959_v35  ;;  %v18968_v21 = vld [vmem:[#allocation10 + $0x9c4] ss:$24 sps:$4 sm:$0xff]  }
 0x3aa   :  { %21186 = vrsqrt.f32 %v3135_v54  ;;  %v3138_v8 = vadd.f32 1e-05, %v3132_v55  ;;  %v18971_v36 = vld [vmem:[#allocation10 + $0x9cc] ss:$24 sps:$4 sm:$0xff]   ;;  %v18966_v52 = vld [vmem:[#allocation10 + $0x9c0] ss:$24 sps:$4 sm:$0xff]  }
 0x3ab   :  { %21188 = vrsqrt.f32 %v3137_v56  ;;  %5114 = vmatpush1.bf16.msra.mxu0 %v18954_v13  ;;  %v18969_v33 = vld [vmem:[#allocation10 + $0x9c8] ss:$24 sps:$4 sm:$0xff]   ;;  %v18974_v7 = vld [vmem:[#allocation10 + $0x9f4] ss:$24 sps:$4 sm:$0xff]   ;;  %v18975_v55 = vld [vmem:[#allocation10 + $0x9f8] ss:$24 sps:$4 sm:$0xff]  }
 0x3ac   :  { %21190 = vrsqrt.f32 %v3136_v57  ;;  %5243 = vmatpush1.bf16.msra.mxu1 %v18957_v22  ;;  %5115 = vmatprep.subr.bf16.mxu0 %v18962_v43  ;;  %v18977_v6 = vld [vmem:[#allocation10 + $0x9fc] ss:$24 sps:$4 sm:$0xff]   ;;  %v18972_v54 = vld [vmem:[#allocation10 + $0x9f0] ss:$24 sps:$4 sm:$0xff]   ;;  %v18983_v57 = vld [vmem:[#allocation10 + $0xa2c] ss:$24 sps:$4 sm:$0xff]  }
 0x3ad   :  { %21192 = vrsqrt.f32 %v3138_v8  ;;  %5244 = vmatprep.subr.bf16.mxu1 %v18965_v3  ;;  %v18980_v56 = vld [vmem:[#allocation10 + $0xa24] ss:$24 sps:$4 sm:$0xff]   ;;  %v18978_v8 = vld [vmem:[#allocation10 + $0xa20] ss:$24 sps:$4 sm:$0xff]   ;;  %v18998_v12 = vld [vmem:[#allocation10 + $0xab4] ss:$24 sps:$4 sm:$0xff]  }
 0x3ae   :  { %v18995_v18 = vld [vmem:[#allocation10 + $0xa8c] ss:$24 sps:$4 sm:$0xff]   ;;  %v18993_v19 = vld [vmem:[#allocation10 + $0xa88] ss:$24 sps:$4 sm:$0xff]   ;;  %v19001_v48 = vld [vmem:[#allocation10 + $0xabc] ss:$24 sps:$4 sm:$0xff]  }
 0x3af   :  { %5116 = vmatpush1.bf16.msra.mxu0 %v18960_v32  ;;  %v18996_v42 = vld [vmem:[#allocation10 + $0xab0] ss:$24 sps:$4 sm:$0xff]   ;;  %v19004_v30 = vld [vmem:[#allocation10 + $0xae4] ss:$24 sps:$4 sm:$0xff]   ;;  %v19002_v35 = vld [vmem:[#allocation10 + $0xae0] ss:$24 sps:$4 sm:$0xff]  }
 0x3b0   :  { %5245 = vmatpush1.bf16.msra.mxu1 %v18963_v14  ;;  %5117 = vmatprep.subr.bf16.mxu0 %v18968_v21  ;;  %v18999_v0 = vld [vmem:[#allocation10 + $0xab8] ss:$24 sps:$4 sm:$0xff]   ;;  %v19007_v34 = vld [vmem:[#allocation10 + $0xaec] ss:$24 sps:$4 sm:$0xff]   ;;  %v19005_v13 = vld [vmem:[#allocation10 + $0xae8] ss:$24 sps:$4 sm:$0xff]  }
 0x3b1   :  { %5246 = vmatprep.subr.bf16.mxu1 %v18971_v36  ;;  %v19010_v22 = vld [vmem:[#allocation10 + $0xb14] ss:$24 sps:$4 sm:$0xff]   ;;  %v19008_v3 = vld [vmem:[#allocation10 + $0xb10] ss:$24 sps:$4 sm:$0xff]   ;;  %v19016_v14 = vld [vmem:[#allocation10 + $0xb44] ss:$24 sps:$4 sm:$0xff]  }
 0x3b2   :  { %v19013_v43 = vld [vmem:[#allocation10 + $0xb1c] ss:$24 sps:$4 sm:$0xff]   ;;  %v19011_v32 = vld [vmem:[#allocation10 + $0xb18] ss:$24 sps:$4 sm:$0xff]   ;;  %v19019_v21 = vld [vmem:[#allocation10 + $0xb4c] ss:$24 sps:$4 sm:$0xff]  }
 0x3b3   :  { %5118 = vmatpush1.bf16.msra.mxu0 %v18966_v52  ;;  %v19014_v36 = vld [vmem:[#allocation10 + $0xb40] ss:$24 sps:$4 sm:$0xff]  }
 0x3b4   :  { %v21187_v20 = vpop.eup %21186  ;;  %5247 = vmatpush1.bf16.msra.mxu1 %v18969_v33  ;;  %5119 = vmatprep.subr.bf16.mxu0 %v18974_v7  ;;  %v19017_v52 = vld [vmem:[#allocation10 + $0xb48] ss:$24 sps:$4 sm:$0xff]   ;;  %v19022_v33 = vld [vmem:[#allocation10 + $0xb74] ss:$24 sps:$4 sm:$0xff]  }
 0x3b5   :  { %v21189_v60 = vpop.eup %21188  ;;  %5248 = vmatprep.subr.bf16.mxu1 %v18977_v6  ;;  %v19025_v7 = vld [vmem:[#allocation10 + $0xb7c] ss:$24 sps:$4 sm:$0xff]   ;;  %v19020_v6 = vld [vmem:[#allocation10 + $0xb70] ss:$24 sps:$4 sm:$0xff]  }
 0x3b6   :  { %v21191_v15 = vpop.eup %21190 }
 0x3b7   :  { %v21193_v16 = vpop.eup %21192  ;;  %v3153_v9 = vcombine.low %v21187_v20, %v21191_v15  ;;  %5120 = vmatpush1.bf16.msra.mxu0 %v18972_v54  ;;  %v18981_v20 = vld [vmem:[#allocation10 + $0xa28] ss:$24 sps:$4 sm:$0xff]   ;;  %v18989_v15 = vld [vmem:[#allocation10 + $0xa5c] ss:$24 sps:$4 sm:$0xff]   ;;  %v19023_v54 = vld [vmem:[#allocation10 + $0xb78] ss:$24 sps:$4 sm:$0xff]  }
 0x3b8   :  { %v3154_v24 = vcombine.low %v21189_v60, %v21193_v16  ;;  %5249 = vmatpush1.bf16.msra.mxu1 %v18975_v55  ;;  %5121 = vmatprep.subr.bf16.mxu0 %v18980_v56  ;;  %v18986_v60 = vld [vmem:[#allocation10 + $0xa54] ss:$24 sps:$4 sm:$0xff]   ;;  %v18984_v16 = vld [vmem:[#allocation10 + $0xa50] ss:$24 sps:$4 sm:$0xff]   ;;  %v19028_v55 = vld [vmem:[#allocation10 + $0xba4] ss:$24 sps:$4 sm:$0xff]  }
 0x3b9   :  { %v22138_v25 = vrot.slane %v3153_v9, %v22018_v11  ;;  %5250 = vmatprep.subr.bf16.mxu1 %v18983_v57  ;;  %v18987_v9 = vld [vmem:[#allocation10 + $0xa58] ss:$24 sps:$4 sm:$0xff]   ;;  %v19031_v56 = vld [vmem:[#allocation10 + $0xbac] ss:$24 sps:$4 sm:$0xff]  }
 0x3ba   :  { %v22141_v17 = vrot.slane %v3154_v24, %v22018_v11  ;;  %v18992_v24 = vld [vmem:[#allocation10 + $0xa84] ss:$24 sps:$4 sm:$0xff]   ;;  %v19026_v57 = vld [vmem:[#allocation10 + $0xba0] ss:$24 sps:$4 sm:$0xff]  }
 0x3bb   :  { %5122 = vmatpush1.bf16.msra.mxu0 %v18978_v8  ;;  %v19029_v8 = vld [vmem:[#allocation10 + $0xba8] ss:$24 sps:$4 sm:$0xff]  }
 0x3bc   :  { %v3177_v51 = vcombine.low %v22138_v25, %v22141_v17  ;;  %5251 = vmatpush1.bf16.msra.mxu1 %v18981_v20  ;;  %5123 = vmatprep.subr.bf16.mxu0 %v18986_v60  ;;  %v19034_v20 = vld [vmem:[#allocation10 + $0xbd4] ss:$24 sps:$4 sm:$0xff]  }
 0x3bd   :  { %5252 = vmatprep.subr.bf16.mxu1 %v18989_v15  ;;  %v19037_v60 = vld [vmem:[#allocation10 + $0xbdc] ss:$24 sps:$4 sm:$0xff]   ;;  %v19032_v15 = vld [vmem:[#allocation10 + $0xbd0] ss:$24 sps:$4 sm:$0xff]  }
 0x3bf   :  { %5124 = vmatpush1.bf16.msra.mxu0 %v18984_v16  ;;  %v19035_v16 = vld [vmem:[#allocation10 + $0xbd8] ss:$24 sps:$4 sm:$0xff]  }
 0x3c0   :  { %5253 = vmatpush1.bf16.msra.mxu1 %v18987_v9  ;;  %5125 = vmatprep.subr.bf16.mxu0 %v18992_v24  ;;  %v19040_v9 = vld [vmem:[#allocation10 + $0xc04] ss:$24 sps:$4 sm:$0xff]  }
 0x3c1   :  { %5254 = vmatprep.subr.bf16.mxu1 %v18995_v18  ;;  %v19043_v24 = vld [vmem:[#allocation10 + $0xc0c] ss:$24 sps:$4 sm:$0xff]   ;;  %v1173_v18 = vrot.slane %v22095_v38, %v21976_v47 }
 0x3c3   :  { %5126 = vmatpush1.bf16.msra.mxu0 %v18990_v31 }
 0x3c4   :  { %5255 = vmatpush1.bf16.msra.mxu1 %v18993_v19  ;;  %5127 = vmatprep.subr.bf16.mxu0 %v18998_v12  ;;  %v1177_v19 = vrot.slane %v22095_v38, %v21979_v50 }
 0x3c5   :  { %5256 = vmatprep.subr.bf16.mxu1 %v19001_v48 }
 0x3c7   :  { %5128 = vmatpush1.bf16.msra.mxu0 %v18996_v42 }
 0x3c8   :  { %5257 = vmatpush1.bf16.msra.mxu1 %v18999_v0  ;;  %5129 = vmatprep.subr.bf16.mxu0 %v19004_v30 }
 0x3c9   :  { %5258 = vmatprep.subr.bf16.mxu1 %v19007_v34 }
 0x3cb   :  { %5130 = vmatpush1.bf16.msra.mxu0 %v19002_v35 }
 0x3cc   :  { %5259 = vmatpush1.bf16.msra.mxu1 %v19005_v13  ;;  %5131 = vmatprep.subr.bf16.mxu0 %v19010_v22 }
 0x3cd   :  { %5260 = vmatprep.subr.bf16.mxu1 %v19013_v43 }
 0x3cf   :  { %5132 = vmatpush1.bf16.msra.mxu0 %v19008_v3 }
 0x3d0   :  { %5261 = vmatpush1.bf16.msra.mxu1 %v19011_v32  ;;  %5133 = vmatprep.subr.bf16.mxu0 %v19016_v14 }
 0x3d1   :  { %5262 = vmatprep.subr.bf16.mxu1 %v19019_v21 }
 0x3d3   :  { %5134 = vmatpush1.bf16.msra.mxu0 %v19014_v36 }
 0x3d4   :  { %5263 = vmatpush1.bf16.msra.mxu1 %v19017_v52  ;;  %5135 = vmatprep.subr.bf16.mxu0 %v19022_v33 }
 0x3d5   :  { %5264 = vmatprep.subr.bf16.mxu1 %v19025_v7 }
 0x3d7   :  { %5136 = vmatpush1.bf16.msra.mxu0 %v19020_v6 }
 0x3d8   :  { %5265 = vmatpush1.bf16.msra.mxu1 %v19023_v54  ;;  %5137 = vmatprep.subr.bf16.mxu0 %v19028_v55 }
 0x3d9   :  { %5266 = vmatprep.subr.bf16.mxu1 %v19031_v56 }
 0x3db   :  { %5138 = vmatpush1.bf16.msra.mxu0 %v19026_v57 }
 0x3dc   :  { %5267 = vmatpush1.bf16.msra.mxu1 %v19029_v8  ;;  %5139 = vmatprep.subr.bf16.mxu0 %v19034_v20 }
 0x3dd   :  { %5268 = vmatprep.subr.bf16.mxu1 %v19037_v60 }
 0x3df   :  { %5140 = vmatpush1.bf16.msra.mxu0 %v19032_v15 }
 0x3e0   :  { %5269 = vmatpush1.bf16.msra.mxu1 %v19035_v16  ;;  %5152 = vmatprep.subr.bf16.mxu0 %v19040_v9 }
 0x3e1   :  { %5281 = vmatprep.subr.bf16.mxu1 %v19043_v24 }
 0x43f   :  { %v3002_v31 = vpop.f32.mrb[8].mxu1 }
 0x440   :  { %v3004_v12 = vpop.f32.mrb[9].mxu1  ;;  %v18279_v42 = vadd.f32 %v3002_v31, %v1173_v18 }
 0x441   :  { %v3006_v48 = vpop.f32.mrb[10].mxu1  ;;  %v18280_v34 = vadd.f32 %v3004_v12, %v1177_v19 }
 0x442   :  { %v18281_v0 = vadd.f32 %v3006_v48, %v1173_v18  ;;  %v3008_v30 = vpop.f32.mrb[11].mxu1 }
 0x443   :  { %v18282_v35 = vadd.f32 %v3008_v30, %v1177_v19 }
 0x444   :  { %v3043_v13 = vadd.f32 %v18281_v0, %v18279_v42 }
 0x445   :  { %v3050_v22 = vadd.f32 %v18282_v35, %v18280_v34 }
 0x446   :  { %v3044_v43 = vrot.slane %v3043_v13, 4 }
 0x447   :  { %v3051_v3 = vrot.slane %v3050_v22, 4 }
 0x448   :  { %v3045_v32 = vadd.f32 %v3044_v43, %v3043_v13 }
 0x449   :  { %v3052_v14 = vadd.f32 %v3051_v3, %v3050_v22 }
 0x44a   :  { %v3046_v21 = vrot.slane %v3045_v32, 2 }
 0x44b   :  { %v3053_v36 = vrot.slane %v3052_v14, 2 }
 0x44c   :  { %v3047_v52 = vadd.f32 %v3046_v21, %v3045_v32 }
 0x44d   :  { %v3054_v33 = vadd.f32 %v3053_v36, %v3052_v14 }
 0x44e   :  { %v3048_v7 = vrot.slane %v3047_v52, 1 }
 0x44f   :  { %v3055_v6 = vrot.slane %v3054_v33, 1 }
 0x450   :  { %v3049_v38 = vadd.f32 %v3048_v7, %v3047_v52 }
 0x451   :  { %v3056_v54 = vadd.f32 %v3055_v6, %v3054_v33 }
 0x452   :  { %v3061_v55 = vmul.f32 0.0625, %v3049_v38  ;;  %v3184_v38 = vrot.slane %v3177_v51, %v22018_v11 }
 0x453   :  { %v3062_v56 = vmul.f32 0.0625, %v3056_v54 }
 0x454   :  { %v22149_v57 = vsub.f32 %v18279_v42, %v3061_v55  ;;  %v22151_v8 = vsub.f32 %v18281_v0, %v3061_v55  ;;  %v3012_v55 = vld [vmem:[#allocation7 + $0x6] sm:$0x3f] }
 0x455   :  { %v3068_v20 = vsub.f32 %v18280_v34, %v3062_v56  ;;  %v3074_v60 = vsub.f32 %v18282_v35, %v3062_v56  ;;  %v3014_v56 = vld [vmem:[#allocation8 + $0x6] sm:$0x3f] }
 0x456   :  { %v3079_v15 = vmul.f32 %v22149_v57, %v22149_v57  ;;  %v3085_v16 = vmul.f32 %v22151_v8, %v22151_v8  ;;  %v3242_v25 = vrot.slane %v3014_v56, %v21895_v27  ;;  %v3254_v17 = vrot.slane %v3014_v56, %v21898_v28 }
 0x457   :  { %v3080_v9 = vmul.f32 %v3068_v20, %v3068_v20  ;;  %v3086_v24 = vmul.f32 %v3074_v60, %v3074_v60 }
 0x458   :  { %v3115_v18 = vadd.f32 %v3085_v16, %v3079_v15 }
 0x459   :  { %v3122_v31 = vadd.f32 %v3086_v24, %v3080_v9  ;;  %v3262_v9 = vrot.slane %v3014_v56, %v21979_v50  ;;  %v3246_v24 = vrot.slane %v3014_v56, %v21901_v29 }
 0x45a   :  { %v3116_v19 = vrot.slane %v3115_v18, 4 }
 0x45b   :  { %v3123_v12 = vrot.slane %v3122_v31, 4 }
 0x45c   :  { %v3117_v48 = vadd.f32 %v3116_v19, %v3115_v18 }
 0x45d   :  { %v3124_v30 = vadd.f32 %v3123_v12, %v3122_v31 }
 0x45e   :  { %v3118_v42 = vrot.slane %v3117_v48, 2 }
 0x45f   :  { %v3125_v13 = vrot.slane %v3124_v30, 2 }
 0x460   :  { %v3119_v0 = vadd.f32 %v3118_v42, %v3117_v48 }
 0x461   :  { %v3126_v22 = vadd.f32 %v3125_v13, %v3124_v30 }
 0x462   :  { %v3120_v34 = vrot.slane %v3119_v0, 1 }
 0x463   :  { %v3127_v35 = vrot.slane %v3126_v22, 1 }
 0x464   :  { %v3121_v43 = vadd.f32 %v3120_v34, %v3119_v0 }
 0x465   :  { %v3128_v3 = vadd.f32 %v3127_v35, %v3126_v22 }
 0x466   :  { %v3133_v32 = vmul.f32 0.0625, %v3121_v43 }
 0x467   :  { %v3134_v14 = vmul.f32 0.0625, %v3128_v3 }
 0x468   :  { %v3139_v21 = vadd.f32 1e-05, %v3133_v32 }
 0x469   :  { %v3140_v36 = vadd.f32 1e-05, %v3134_v14 }
 0x46a   :  { %21194 = vrsqrt.f32 %v3139_v21 }
 0x46b   :  { %21196 = vrsqrt.f32 %v3140_v36 }
 0x474   :  { %v21195_v52 = vpop.eup %21194 }
 0x475   :  { %v21197_v33 = vpop.eup %21196 }
 0x476   :  { %v3155_v7 = vcombine.low %v21195_v52, %v21197_v33 }
 0x478   :  { %v3176_v6 = vrot.slane %v3155_v7, %v22018_v11 }
 0x47a   :  { %v3191_v54 = vrot.slane %v3176_v6, %v22018_v11  ;;  %v3258_v6 = vrot.slane %v3014_v56, %v21976_v47 }
 0x47c   :  { %v3192_v15 = vcombine.low %v3184_v38, %v3191_v54 }
 0x47e   :  { %v3194_v16 = vmul.f32 %v3192_v15, %v3012_v55 }
 0x480   :  { %v3219_v18 = vrot.slane %v3194_v16, %v21979_v50  ;;  %v3203_v31 = vrot.slane %v3194_v16, %v21901_v29  ;;  %v3199_v19 = vrot.slane %v3194_v16, %v21895_v27  ;;  %v3211_v12 = vrot.slane %v3194_v16, %v21898_v28 }
 0x481   :  { %v3207_v51 = vrot.slane %v3194_v16, %v21890_v23 }
 0x482   :  { %v3231_v48 = vmul.f32 %v3219_v18, %v3068_v20  ;;  %v3237_v30 = vmul.f32 %v3219_v18, %v3074_v60  ;;  %v3227_v42 = vmul.f32 %v3203_v31, %v22113_v59  ;;  %v3233_v13 = vmul.f32 %v3203_v31, %v22115_v2 }
 0x483   :  { %v3226_v0 = vmul.f32 %v3199_v19, %v22105_v61  ;;  %v3232_v22 = vmul.f32 %v3199_v19, %v22107_v62  ;;  %v3229_v34 = vmul.f32 %v3211_v12, %v22121_v26  ;;  %v3235_v35 = vmul.f32 %v3211_v12, %v22123_v10 }
 0x484   :  { %v22178_v43 = vadd.f32 %v3262_v9, %v3237_v30  ;;  %v3270_v3 = vadd.f32 %v3246_v24, %v3227_v42  ;;  %v3276_v32 = vadd.f32 %v3246_v24, %v3233_v13  ;;  %v3250_v60 = vrot.slane %v3014_v56, %v21890_v23 }
 0x485   :  { %v3269_v14 = vadd.f32 %v3242_v25, %v3226_v0  ;;  %v3275_v21 = vadd.f32 %v3242_v25, %v3232_v22  ;;  %v3272_v20 = vadd.f32 %v3254_v17, %v3229_v34  ;;  %v3278_v36 = vadd.f32 %v3254_v17, %v3235_v35 }
 0x486   :  { %v3304_v59 = vmul.f32 0.70710677, %v22178_v43  ;;  %v3294_v2 = vmul.f32 0.70710677, %v3270_v3  ;;  %v3228_v61 = vmul.f32 %v3207_v51, %v22109_v53  ;;  %v3300_v62 = vmul.f32 0.70710677, %v3276_v32 }
 0x487   :  { %v3293_v52 = vmul.f32 0.70710677, %v3269_v14  ;;  %v3215_v26 = vrot.slane %v3194_v16, %v21976_v47  ;;  %v3299_v10 = vmul.f32 0.70710677, %v3275_v21  ;;  %v3296_v33 = vmul.f32 0.70710677, %v3272_v20 }
 0x488   :  { %21198 = verf.f32 %v3304_v59  ;;  %v3234_v7 = vmul.f32 %v3207_v51, %v22111_v58  ;;  %v3302_v38 = vmul.f32 0.70710677, %v3278_v36  ;;  %v3271_v54 = vadd.f32 %v3250_v60, %v3228_v61 }
 0x489   :  { %21200 = verf.f32 %v3294_v2  ;;  %v22186_v55 = vadd.f32 %v3262_v9, %v3231_v48  ;;  %v3230_v53 = vmul.f32 %v3215_v26, %v22149_v57  ;;  %v3236_v24 = vmul.f32 %v3215_v26, %v22151_v8 }
 0x48a   :  { %21202 = verf.f32 %v3300_v62  ;;  %v3277_v15 = vadd.f32 %v3250_v60, %v3234_v7  ;;  %v3295_v16 = vmul.f32 0.70710677, %v3271_v54  ;;  %v3282_v25 = vmul.f32 0.5, %v3270_v3  ;;  %v19038_v3 = vld [vmem:[#allocation10 + $0xc00] ss:$24 sps:$4 sm:$0xff]  }
 0x48b   :  { %21204 = verf.f32 %v3293_v52  ;;  %v3298_v31 = vmul.f32 0.70710677, %v22186_v55  ;;  %v3273_v58 = vadd.f32 %v3258_v6, %v3230_v53  ;;  %v22191_v56 = vadd.f32 %v3258_v6, %v3236_v24  ;;  %v19041_v53 = vld [vmem:[#allocation10 + $0xc08] ss:$24 sps:$4 sm:$0xff]  }
 0x48c   :  { %21206 = verf.f32 %v3299_v10  ;;  %v3301_v18 = vmul.f32 0.70710677, %v3277_v15  ;;  %v3288_v48 = vmul.f32 0.5, %v3276_v32  ;;  %v3281_v0 = vmul.f32 0.5, %v3269_v14 }
 0x48d   :  { %21208 = verf.f32 %v3296_v33  ;;  %v3297_v9 = vmul.f32 0.70710677, %v3273_v58  ;;  %v3303_v19 = vmul.f32 0.70710677, %v22191_v56  ;;  %v3287_v60 = vmul.f32 0.5, %v3275_v21 }
 0x48e   :  { %21210 = verf.f32 %v3302_v38  ;;  %v3284_v62 = vmul.f32 0.5, %v3272_v20  ;;  %v3290_v32 = vmul.f32 0.5, %v3278_v36  ;;  %v3283_v24 = vmul.f32 0.5, %v3271_v54  ;;  %v19046_v36 = vld [vmem:[#allocation10 + $0xc34] ss:$24 sps:$4 sm:$0xff]  }
 0x48f   :  { %21212 = verf.f32 %v3295_v16  ;;  %v3292_v21 = vmul.f32 0.5, %v22178_v43 }
 0x490   :  { %21214 = verf.f32 %v3301_v18 }
 0x491   :  { %21216 = verf.f32 %v3298_v31 }
 0x492   :  { %v21199_v12 = vpop.eup %21198  ;;  %21218 = verf.f32 %v3297_v9  ;;  %v3289_v9 = vmul.f32 0.5, %v3277_v15  ;;  %v19044_v15 = vld [vmem:[#allocation10 + $0xc30] ss:$24 sps:$4 sm:$0xff]  }
 0x493   :  { %v21201_v57 = vpop.eup %21200  ;;  %21220 = verf.f32 %v3303_v19  ;;  %v3328_v26 = vadd.f32 1.0, %v21199_v12 }
 0x494   :  { %v21203_v8 = vpop.eup %21202  ;;  %v3318_v17 = vadd.f32 1.0, %v21201_v57  ;;  %v19049_v57 = vld [vmem:[#allocation10 + $0xc3c] ss:$24 sps:$4 sm:$0xff]  }
 0x495   :  { %v21205_v51 = vpop.eup %21204  ;;  %v3324_v30 = vadd.f32 1.0, %v21203_v8 }
 0x496   :  { %v21207_v42 = vpop.eup %21206  ;;  %v3330_v13 = vmul.f32 %v3318_v17, %v3282_v25  ;;  %v3317_v22 = vadd.f32 1.0, %v21205_v51  ;;  %v3286_v25 = vmul.f32 0.5, %v22186_v55  ;;  %v3340_v17 = vmul.f32 %v3328_v26, %v3292_v21  ;;  %v19061_v26 = vld [vmem:[#allocation10 + $0xc9c] ss:$24 sps:$4 sm:$0xff]  }
 0x497   :  { %v21209_v34 = vpop.eup %21208  ;;  %v3336_v35 = vmul.f32 %v3324_v30, %v3288_v48  ;;  %v3323_v59 = vadd.f32 1.0, %v21207_v42  ;;  %v3285_v30 = vmul.f32 0.5, %v3273_v58  ;;  %v19076_v21 = vld [vmem:[#allocation10 + $0xd24] ss:$24 sps:$4 sm:$0xff]  }
 0x498   :  { %v21211_v2 = vpop.eup %21210  ;;  %v3329_v61 = vmul.f32 %v3317_v22, %v3281_v0  ;;  %v3320_v52 = vadd.f32 1.0, %v21209_v34  ;;  %v3291_v22 = vmul.f32 0.5, %v22191_v56  ;;  %v19052_v34 = vld [vmem:[#allocation10 + $0xc64] ss:$24 sps:$4 sm:$0xff]  }
 0x499   :  { %v21213_v10 = vpop.eup %21212  ;;  %v22194_v33 = vpack.c.bf16 %v3336_v35, %v3330_v13  ;;  %v3335_v7 = vmul.f32 %v3323_v59, %v3287_v60  ;;  %v3326_v6 = vadd.f32 1.0, %v21211_v2  ;;  %v19047_v13 = vld [vmem:[#allocation10 + $0xc38] ss:$24 sps:$4 sm:$0xff]   ;;  %v19055_v35 = vld [vmem:[#allocation10 + $0xc6c] ss:$24 sps:$4 sm:$0xff]  }
 0x49a   :  { %v21215_v38 = vpop.eup %21214  ;;  %v3332_v14 = vmul.f32 %v3320_v52, %v3284_v62  ;;  %v3319_v16 = vadd.f32 1.0, %v21213_v10  ;;  %v19053_v62 = vld [vmem:[#allocation10 + $0xc68] ss:$24 sps:$4 sm:$0xff]   ;;  %v19058_v52 = vld [vmem:[#allocation10 + $0xc94] ss:$24 sps:$4 sm:$0xff]  }
 0x49b   :  { %v21217_v18 = vpop.eup %21216  ;;  %5141 = vmatprep.mubr.bf16.mxu0 %v22194_v33  ;;  %5270 = vmatprep.mubr.bf16.mxu1 %v22194_v33  ;;  %v22199_v20 = vpack.c.bf16 %v3335_v7, %v3329_v61  ;;  %v3338_v31 = vmul.f32 %v3326_v6, %v3290_v32  ;;  %v3325_v19 = vadd.f32 1.0, %v21215_v38  ;;  %v19050_v61 = vld [vmem:[#allocation10 + $0xc60] ss:$24 sps:$4 sm:$0xff]   ;;  %v19056_v10 = vld [vmem:[#allocation10 + $0xc90] ss:$24 sps:$4 sm:$0xff]  }
 0x49c   :  { %v21219_v12 = vpop.eup %21218  ;;  %v3331_v8 = vmul.f32 %v3319_v16, %v3283_v24  ;;  %v3322_v54 = vadd.f32 1.0, %v21217_v18  ;;  %v19064_v7 = vld [vmem:[#allocation10 + $0xcc4] ss:$24 sps:$4 sm:$0xff]   ;;  %v19062_v6 = vld [vmem:[#allocation10 + $0xcc0] ss:$24 sps:$4 sm:$0xff]  }
 0x49d   :  { %v21221_v51 = vpop.eup %21220  ;;  %5142 = vmatmul.mubr.bf16.vlgmr.msra.gmra.mrb[12].mxu0 %v22199_v20  ;;  %5271 = vmatmul.mubr.bf16.vlgmr.msra.gmra.mrb[12].mxu1 %v22199_v20  ;;  %v22204_v43 = vpack.c.bf16 %v3338_v31, %v3332_v14  ;;  %v3337_v48 = vmul.f32 %v3325_v19, %v3289_v9  ;;  %v3321_v42 = vadd.f32 1.0, %v21219_v12  ;;  %v19067_v32 = vld [vmem:[#allocation10 + $0xccc] ss:$24 sps:$4 sm:$0xff]   ;;  %v19065_v38 = vld [vmem:[#allocation10 + $0xcc8] ss:$24 sps:$4 sm:$0xff]  }
 0x49e   :  { %5153 = vmatpush1.bf16.msra.mxu0 %v19038_v3  ;;  %5282 = vmatpush1.bf16.msra.mxu1 %v19041_v53  ;;  %v3334_v0 = vmul.f32 %v3322_v54, %v3286_v25  ;;  %v3327_v55 = vadd.f32 1.0, %v21221_v51  ;;  %v19059_v3 = vld [vmem:[#allocation10 + $0xc98] ss:$24 sps:$4 sm:$0xff]   ;;  %v19070_v53 = vld [vmem:[#allocation10 + $0xcf4] ss:$24 sps:$4 sm:$0xff]  }
 0x49f   :  { %5184 = vmatprep.mubr.bf16.mxu0 %v22204_v43  ;;  %5313 = vmatprep.mubr.bf16.mxu1 %v22204_v43  ;;  %v22209_v60 = vpack.c.bf16 %v3337_v48, %v3331_v8  ;;  %v3333_v59 = vmul.f32 %v3321_v42, %v3285_v30  ;;  %v19073_v14 = vld [vmem:[#allocation10 + $0xcfc] ss:$24 sps:$4 sm:$0xff]   ;;  %v19068_v24 = vld [vmem:[#allocation10 + $0xcf0] ss:$24 sps:$4 sm:$0xff]   ;;  %v19079_v18 = vld [vmem:[#allocation10 + $0xd2c] ss:$24 sps:$4 sm:$0xff]  }
 0x4a0   :  { %5154 = vmatprep.subr.bf16.mxu0 %v19046_v36  ;;  %5283 = vmatprep.subr.bf16.mxu1 %v19049_v57  ;;  %v22211_v58 = vpack.c.bf16 %v3340_v17, %v3334_v0  ;;  %v3339_v2 = vmul.f32 %v3327_v55, %v3291_v22  ;;  %v19071_v16 = vld [vmem:[#allocation10 + $0xcf8] ss:$24 sps:$4 sm:$0xff]   ;;  %v19077_v9 = vld [vmem:[#allocation10 + $0xd28] ss:$24 sps:$4 sm:$0xff]   ;;  %v19082_v19 = vld [vmem:[#allocation10 + $0xd54] ss:$24 sps:$4 sm:$0xff]  }
 0x4a1   :  { %v19074_v31 = vld [vmem:[#allocation10 + $0xd20] ss:$24 sps:$4 sm:$0xff]   ;;  %v19085_v12 = vld [vmem:[#allocation10 + $0xd5c] ss:$24 sps:$4 sm:$0xff]   ;;  %v19080_v36 = vld [vmem:[#allocation10 + $0xd50] ss:$24 sps:$4 sm:$0xff]  }
 0x4a2   :  { %5155 = vmatpush1.bf16.msra.mxu0 %v19044_v15  ;;  %5284 = vmatpush1.bf16.msra.mxu1 %v19047_v13  ;;  %v22213_v56 = vpack.c.bf16 %v3339_v2, %v3333_v59  ;;  %v19083_v57 = vld [vmem:[#allocation10 + $0xd58] ss:$24 sps:$4 sm:$0xff]   ;;  %v19088_v8 = vld [vmem:[#allocation10 + $0xd84] ss:$24 sps:$4 sm:$0xff]   ;;  %v19089_v17 = vld [vmem:[#allocation10 + $0xd88] ss:$24 sps:$4 sm:$0xff]  }
 0x4a3   :  { %5156 = vmatprep.subr.bf16.mxu0 %v19052_v34  ;;  %5285 = vmatprep.subr.bf16.mxu1 %v19055_v35  ;;  %v19091_v25 = vld [vmem:[#allocation10 + $0xd8c] ss:$24 sps:$4 sm:$0xff]   ;;  %v19086_v54 = vld [vmem:[#allocation10 + $0xd80] ss:$24 sps:$4 sm:$0xff]   ;;  %v19097_v48 = vld [vmem:[#allocation10 + $0xdbc] ss:$24 sps:$4 sm:$0xff]  }
 0x4a4   :  { %v19094_v51 = vld [vmem:[#allocation10 + $0xdb4] ss:$24 sps:$4 sm:$0xff]   ;;  %v19092_v30 = vld [vmem:[#allocation10 + $0xdb0] ss:$24 sps:$4 sm:$0xff]   ;;  %v19100_v15 = vld [vmem:[#allocation10 + $0xde4] ss:$24 sps:$4 sm:$0xff]  }
 0x4a5   :  { %v19095_v42 = vld [vmem:[#allocation10 + $0xdb8] ss:$24 sps:$4 sm:$0xff]   ;;  %v19103_v13 = vld [vmem:[#allocation10 + $0xdec] ss:$24 sps:$4 sm:$0xff]   ;;  %v19101_v22 = vld [vmem:[#allocation10 + $0xde8] ss:$24 sps:$4 sm:$0xff]  }
 0x4a6   :  { %5157 = vmatpush1.bf16.msra.mxu0 %v19050_v61  ;;  %5286 = vmatpush1.bf16.msra.mxu1 %v19053_v62  ;;  %v19098_v0 = vld [vmem:[#allocation10 + $0xde0] ss:$24 sps:$4 sm:$0xff]   ;;  %v19106_v55 = vld [vmem:[#allocation10 + $0xe14] ss:$24 sps:$4 sm:$0xff]   ;;  %v19104_v35 = vld [vmem:[#allocation10 + $0xe10] ss:$24 sps:$4 sm:$0xff]  }
 0x4a7   :  { %5158 = vmatprep.subr.bf16.mxu0 %v19058_v52  ;;  %5287 = vmatprep.subr.bf16.mxu1 %v19061_v26  ;;  %v19109_v34 = vld [vmem:[#allocation10 + $0xe1c] ss:$24 sps:$4 sm:$0xff]   ;;  %v19107_v59 = vld [vmem:[#allocation10 + $0xe18] ss:$24 sps:$4 sm:$0xff]   ;;  %v19115_v61 = vld [vmem:[#allocation10 + $0xe4c] ss:$24 sps:$4 sm:$0xff]  }
 0x4a8   :  { %v19112_v2 = vld [vmem:[#allocation10 + $0xe44] ss:$24 sps:$4 sm:$0xff]   ;;  %v19110_v62 = vld [vmem:[#allocation10 + $0xe40] ss:$24 sps:$4 sm:$0xff]   ;;  %v19118_v26 = vld [vmem:[#allocation10 + $0xe74] ss:$24 sps:$4 sm:$0xff]  }
 0x4a9   :  { %v19113_v52 = vld [vmem:[#allocation10 + $0xe48] ss:$24 sps:$4 sm:$0xff]  }
 0x4aa   :  { %5159 = vmatpush1.bf16.msra.mxu0 %v19056_v10  ;;  %5288 = vmatpush1.bf16.msra.mxu1 %v19059_v3  ;;  %v19121_v10 = vld [vmem:[#allocation10 + $0xe7c] ss:$24 sps:$4 sm:$0xff]   ;;  %v19116_v3 = vld [vmem:[#allocation10 + $0xe70] ss:$24 sps:$4 sm:$0xff]  }
 0x4ab   :  { %5160 = vmatprep.subr.bf16.mxu0 %v19064_v7  ;;  %5289 = vmatprep.subr.bf16.mxu1 %v19067_v32  ;;  %v19119_v7 = vld [vmem:[#allocation10 + $0xe78] ss:$24 sps:$4 sm:$0xff]   ;;  %v19124_v32 = vld [vmem:[#allocation10 + $0xea4] ss:$24 sps:$4 sm:$0xff]  }
 0x4ae   :  { %5161 = vmatpush1.bf16.msra.mxu0 %v19062_v6  ;;  %5290 = vmatpush1.bf16.msra.mxu1 %v19065_v38  ;;  %v19127_v6 = vld [vmem:[#allocation10 + $0xeac] ss:$24 sps:$4 sm:$0xff]   ;;  %v19122_v38 = vld [vmem:[#allocation10 + $0xea0] ss:$24 sps:$4 sm:$0xff]  }
 0x4af   :  { %5162 = vmatprep.subr.bf16.mxu0 %v19070_v53  ;;  %5291 = vmatprep.subr.bf16.mxu1 %v19073_v14  ;;  %v19125_v53 = vld [vmem:[#allocation10 + $0xea8] ss:$24 sps:$4 sm:$0xff]   ;;  %v19130_v14 = vld [vmem:[#allocation10 + $0xed4] ss:$24 sps:$4 sm:$0xff]  }
 0x4b2   :  { %5163 = vmatpush1.bf16.msra.mxu0 %v19068_v24  ;;  %5292 = vmatpush1.bf16.msra.mxu1 %v19071_v16  ;;  %v19133_v24 = vld [vmem:[#allocation10 + $0xedc] ss:$24 sps:$4 sm:$0xff]   ;;  %v19128_v16 = vld [vmem:[#allocation10 + $0xed0] ss:$24 sps:$4 sm:$0xff]  }
 0x4b3   :  { %5164 = vmatprep.subr.bf16.mxu0 %v19076_v21  ;;  %5293 = vmatprep.subr.bf16.mxu1 %v19079_v18  ;;  %v19131_v21 = vld [vmem:[#allocation10 + $0xed8] ss:$24 sps:$4 sm:$0xff]   ;;  %v19136_v18 = vld [vmem:[#allocation10 + $0xf04] ss:$24 sps:$4 sm:$0xff]  }
 0x4b6   :  { %5165 = vmatpush1.bf16.msra.mxu0 %v19074_v31  ;;  %5294 = vmatpush1.bf16.msra.mxu1 %v19077_v9  ;;  %v19139_v31 = vld [vmem:[#allocation10 + $0xf0c] ss:$24 sps:$4 sm:$0xff]   ;;  %v19134_v9 = vld [vmem:[#allocation10 + $0xf00] ss:$24 sps:$4 sm:$0xff]  }
 0x4b7   :  { %5166 = vmatprep.subr.bf16.mxu0 %v19082_v19  ;;  %5295 = vmatprep.subr.bf16.mxu1 %v19085_v12  ;;  %v19137_v19 = vld [vmem:[#allocation10 + $0xf08] ss:$24 sps:$4 sm:$0xff]   ;;  %v19142_v12 = vld [vmem:[#allocation10 + $0xf34] ss:$24 sps:$4 sm:$0xff]  }
 0x4ba   :  { %5167 = vmatpush1.bf16.msra.mxu0 %v19080_v36  ;;  %5296 = vmatpush1.bf16.msra.mxu1 %v19083_v57  ;;  %v19145_v36 = vld [vmem:[#allocation10 + $0xf3c] ss:$24 sps:$4 sm:$0xff]   ;;  %v19140_v57 = vld [vmem:[#allocation10 + $0xf30] ss:$24 sps:$4 sm:$0xff]  }
 0x4bb   :  { %5168 = vmatprep.subr.bf16.mxu0 %v19088_v8  ;;  %5297 = vmatprep.subr.bf16.mxu1 %v19091_v25  ;;  %v19143_v8 = vld [vmem:[#allocation10 + $0xf38] ss:$24 sps:$4 sm:$0xff]   ;;  %v19148_v25 = vld [vmem:[#allocation10 + $0xf64] ss:$24 sps:$4 sm:$0xff]  }
 0x4be   :  { %5169 = vmatpush1.bf16.msra.mxu0 %v19086_v54  ;;  %5298 = vmatpush1.bf16.msra.mxu1 %v19089_v17  ;;  %v19151_v54 = vld [vmem:[#allocation10 + $0xf6c] ss:$24 sps:$4 sm:$0xff]   ;;  %v19146_v17 = vld [vmem:[#allocation10 + $0xf60] ss:$24 sps:$4 sm:$0xff]  }
 0x4bf   :  { %5170 = vmatprep.subr.bf16.mxu0 %v19094_v51  ;;  %5299 = vmatprep.subr.bf16.mxu1 %v19097_v48  ;;  %v19149_v51 = vld [vmem:[#allocation10 + $0xf68] ss:$24 sps:$4 sm:$0xff]   ;;  %v19154_v48 = vld [vmem:[#allocation10 + $0xf94] ss:$24 sps:$4 sm:$0xff]  }
 0x4c2   :  { %5171 = vmatpush1.bf16.msra.mxu0 %v19092_v30  ;;  %5300 = vmatpush1.bf16.msra.mxu1 %v19095_v42  ;;  %v19157_v30 = vld [vmem:[#allocation10 + $0xf9c] ss:$24 sps:$4 sm:$0xff]   ;;  %v19152_v42 = vld [vmem:[#allocation10 + $0xf90] ss:$24 sps:$4 sm:$0xff]  }
 0x4c3   :  { %5172 = vmatprep.subr.bf16.mxu0 %v19100_v15  ;;  %5301 = vmatprep.subr.bf16.mxu1 %v19103_v13  ;;  %v19155_v15 = vld [vmem:[#allocation10 + $0xf98] ss:$24 sps:$4 sm:$0xff]   ;;  %v19160_v13 = vld [vmem:[#allocation10 + $0xfc4] ss:$24 sps:$4 sm:$0xff]  }
 0x4c6   :  { %5173 = vmatpush1.bf16.msra.mxu0 %v19098_v0  ;;  %5302 = vmatpush1.bf16.msra.mxu1 %v19101_v22  ;;  %v19163_v0 = vld [vmem:[#allocation10 + $0xfcc] ss:$24 sps:$4 sm:$0xff]   ;;  %v19158_v22 = vld [vmem:[#allocation10 + $0xfc0] ss:$24 sps:$4 sm:$0xff]  }
 0x4c7   :  { %5174 = vmatprep.subr.bf16.mxu0 %v19106_v55  ;;  %5303 = vmatprep.subr.bf16.mxu1 %v19109_v34  ;;  %v19161_v55 = vld [vmem:[#allocation10 + $0xfc8] ss:$24 sps:$4 sm:$0xff]   ;;  %v19166_v34 = vld [vmem:[#allocation10 + $0xff4] ss:$24 sps:$4 sm:$0xff]  }
 0x4ca   :  { %5175 = vmatpush1.bf16.msra.mxu0 %v19104_v35  ;;  %5304 = vmatpush1.bf16.msra.mxu1 %v19107_v59  ;;  %v19169_v35 = vld [vmem:[#allocation10 + $0xffc] ss:$24 sps:$4 sm:$0xff]   ;;  %v19164_v59 = vld [vmem:[#allocation10 + $0xff0] ss:$24 sps:$4 sm:$0xff]  }
 0x4cb   :  { %5176 = vmatprep.subr.bf16.mxu0 %v19112_v2  ;;  %5305 = vmatprep.subr.bf16.mxu1 %v19115_v61  ;;  %v19167_v2 = vld [vmem:[#allocation10 + $0xff8] ss:$24 sps:$4 sm:$0xff]   ;;  %v19172_v61 = vld [vmem:[#allocation10 + $0x1024] ss:$24 sps:$4 sm:$0xff]  }
 0x4ce   :  { %5177 = vmatpush1.bf16.msra.mxu0 %v19110_v62  ;;  %5306 = vmatpush1.bf16.msra.mxu1 %v19113_v52  ;;  %v19175_v62 = vld [vmem:[#allocation10 + $0x102c] ss:$24 sps:$4 sm:$0xff]   ;;  %v19170_v52 = vld [vmem:[#allocation10 + $0x1020] ss:$24 sps:$4 sm:$0xff]  }
 0x4cf   :  { %5178 = vmatprep.subr.bf16.mxu0 %v19118_v26  ;;  %5307 = vmatprep.subr.bf16.mxu1 %v19121_v10  ;;  %v19173_v26 = vld [vmem:[#allocation10 + $0x1028] ss:$24 sps:$4 sm:$0xff]   ;;  %v19178_v10 = vld [vmem:[#allocation10 + $0x1054] ss:$24 sps:$4 sm:$0xff]  }
 0x4d2   :  { %5179 = vmatpush1.bf16.msra.mxu0 %v19116_v3  ;;  %5308 = vmatpush1.bf16.msra.mxu1 %v19119_v7  ;;  %v19181_v3 = vld [vmem:[#allocation10 + $0x105c] ss:$24 sps:$4 sm:$0xff]   ;;  %v19176_v7 = vld [vmem:[#allocation10 + $0x1050] ss:$24 sps:$4 sm:$0xff]  }
 0x4d3   :  { %5180 = vmatprep.subr.bf16.mxu0 %v19124_v32  ;;  %5309 = vmatprep.subr.bf16.mxu1 %v19127_v6  ;;  %v19179_v32 = vld [vmem:[#allocation10 + $0x1058] ss:$24 sps:$4 sm:$0xff]   ;;  %v19184_v6 = vld [vmem:[#allocation10 + $0x1084] ss:$24 sps:$4 sm:$0xff]  }
 0x4d6   :  { %5181 = vmatpush1.bf16.msra.mxu0 %v19122_v38  ;;  %5310 = vmatpush1.bf16.msra.mxu1 %v19125_v53  ;;  %v19187_v38 = vld [vmem:[#allocation10 + $0x108c] ss:$24 sps:$4 sm:$0xff]   ;;  %v19182_v53 = vld [vmem:[#allocation10 + $0x1080] ss:$24 sps:$4 sm:$0xff]  }
 0x4d7   :  { %5182 = vmatprep.subr.bf16.mxu0 %v19130_v14  ;;  %5311 = vmatprep.subr.bf16.mxu1 %v19133_v24  ;;  %v19185_v14 = vld [vmem:[#allocation10 + $0x1088] ss:$24 sps:$4 sm:$0xff]   ;;  %v19190_v24 = vld [vmem:[#allocation10 + $0x10b4] ss:$24 sps:$4 sm:$0xff]  }
 0x4da   :  { %5183 = vmatpush1.bf16.msra.mxu0 %v19128_v16  ;;  %5312 = vmatpush1.bf16.msra.mxu1 %v19131_v21  ;;  %v19193_v16 = vld [vmem:[#allocation10 + $0x10bc] ss:$24 sps:$4 sm:$0xff]   ;;  %v19188_v21 = vld [vmem:[#allocation10 + $0x10b0] ss:$24 sps:$4 sm:$0xff]  }
 0x4db   :  { %5195 = vmatprep.subr.bf16.mxu0 %v19136_v18  ;;  %5324 = vmatprep.subr.bf16.mxu1 %v19139_v31  ;;  %v19191_v18 = vld [vmem:[#allocation10 + $0x10b8] ss:$24 sps:$4 sm:$0xff]   ;;  %v19196_v31 = vld [vmem:[#allocation10 + $0x10e4] ss:$24 sps:$4 sm:$0xff]  }
 0x4dd   :  { %5185 = vmatmul.mubr.bf16.vlgmr.msra.gmra.mrb[12].mxu0 %v22209_v60  ;;  %5314 = vmatmul.mubr.bf16.vlgmr.msra.gmra.mrb[12].mxu1 %v22209_v60 }
 0x4de   :  { %5196 = vmatpush1.bf16.msra.mxu0 %v19134_v9  ;;  %5227 = vmatprep.mubr.bf16.mxu0 %v22211_v58  ;;  %v19199_v9 = vld [vmem:[#allocation10 + $0x10ec] ss:$24 sps:$4 sm:$0xff]  }
 0x4df   :  { %5325 = vmatpush1.bf16.msra.mxu1 %v19137_v19  ;;  %5356 = vmatprep.mubr.bf16.mxu1 %v22211_v58  ;;  %v19194_v19 = vld [vmem:[#allocation10 + $0x10e0] ss:$24 sps:$4 sm:$0xff]  }
 0x4e0   :  { %5197 = vmatprep.subr.bf16.mxu0 %v19142_v12  ;;  %5326 = vmatprep.subr.bf16.mxu1 %v19145_v36  ;;  %v19197_v12 = vld [vmem:[#allocation10 + $0x10e8] ss:$24 sps:$4 sm:$0xff]   ;;  %v19202_v36 = vld [vmem:[#allocation10 + $0x1114] ss:$24 sps:$4 sm:$0xff]  }
 0x4e2   :  { %5198 = vmatpush1.bf16.msra.mxu0 %v19140_v57  ;;  %v19205_v57 = vld [vmem:[#allocation10 + $0x111c] ss:$24 sps:$4 sm:$0xff]  }
 0x4e3   :  { %5327 = vmatpush1.bf16.msra.mxu1 %v19143_v8  ;;  %5199 = vmatprep.subr.bf16.mxu0 %v19148_v25  ;;  %v19200_v8 = vld [vmem:[#allocation10 + $0x1110] ss:$24 sps:$4 sm:$0xff]  }
 0x4e4   :  { %5328 = vmatprep.subr.bf16.mxu1 %v19151_v54  ;;  %v19203_v25 = vld [vmem:[#allocation10 + $0x1118] ss:$24 sps:$4 sm:$0xff]   ;;  %v19208_v54 = vld [vmem:[#allocation10 + $0x1144] ss:$24 sps:$4 sm:$0xff]  }
 0x4e6   :  { %5200 = vmatpush1.bf16.msra.mxu0 %v19146_v17  ;;  %v19211_v17 = vld [vmem:[#allocation10 + $0x114c] ss:$24 sps:$4 sm:$0xff]  }
 0x4e7   :  { %5329 = vmatpush1.bf16.msra.mxu1 %v19149_v51  ;;  %5201 = vmatprep.subr.bf16.mxu0 %v19154_v48  ;;  %v19206_v51 = vld [vmem:[#allocation10 + $0x1140] ss:$24 sps:$4 sm:$0xff]  }
 0x4e8   :  { %5330 = vmatprep.subr.bf16.mxu1 %v19157_v30  ;;  %v19209_v48 = vld [vmem:[#allocation10 + $0x1148] ss:$24 sps:$4 sm:$0xff]   ;;  %v19214_v30 = vld [vmem:[#allocation10 + $0x1174] ss:$24 sps:$4 sm:$0xff]  }
 0x4ea   :  { %5202 = vmatpush1.bf16.msra.mxu0 %v19152_v42  ;;  %v19217_v42 = vld [vmem:[#allocation10 + $0x117c] ss:$24 sps:$4 sm:$0xff]  }
 0x4eb   :  { %5331 = vmatpush1.bf16.msra.mxu1 %v19155_v15  ;;  %5203 = vmatprep.subr.bf16.mxu0 %v19160_v13  ;;  %v19212_v15 = vld [vmem:[#allocation10 + $0x1170] ss:$24 sps:$4 sm:$0xff]  }
 0x4ec   :  { %5332 = vmatprep.subr.bf16.mxu1 %v19163_v0  ;;  %v19215_v13 = vld [vmem:[#allocation10 + $0x1178] ss:$24 sps:$4 sm:$0xff]   ;;  %v19220_v0 = vld [vmem:[#allocation10 + $0x11a4] ss:$24 sps:$4 sm:$0xff]  }
 0x4ee   :  { %5204 = vmatpush1.bf16.msra.mxu0 %v19158_v22  ;;  %v19223_v22 = vld [vmem:[#allocation10 + $0x11ac] ss:$24 sps:$4 sm:$0xff]  }
 0x4ef   :  { %5333 = vmatpush1.bf16.msra.mxu1 %v19161_v55  ;;  %5205 = vmatprep.subr.bf16.mxu0 %v19166_v34  ;;  %v19218_v55 = vld [vmem:[#allocation10 + $0x11a0] ss:$24 sps:$4 sm:$0xff]  }
 0x4f0   :  { %5334 = vmatprep.subr.bf16.mxu1 %v19169_v35  ;;  %v19221_v34 = vld [vmem:[#allocation10 + $0x11a8] ss:$24 sps:$4 sm:$0xff]   ;;  %v19226_v35 = vld [vmem:[#allocation10 + $0x11d4] ss:$24 sps:$4 sm:$0xff]  }
 0x4f2   :  { %5206 = vmatpush1.bf16.msra.mxu0 %v19164_v59  ;;  %v19229_v59 = vld [vmem:[#allocation10 + $0x11dc] ss:$24 sps:$4 sm:$0xff]  }
 0x4f3   :  { %5335 = vmatpush1.bf16.msra.mxu1 %v19167_v2  ;;  %5207 = vmatprep.subr.bf16.mxu0 %v19172_v61  ;;  %v19224_v2 = vld [vmem:[#allocation10 + $0x11d0] ss:$24 sps:$4 sm:$0xff]  }
 0x4f4   :  { %5336 = vmatprep.subr.bf16.mxu1 %v19175_v62  ;;  %v19227_v61 = vld [vmem:[#allocation10 + $0x11d8] ss:$24 sps:$4 sm:$0xff]   ;;  %v19232_v62 = vld [vmem:[#allocation10 + $0x914] ss:$24 sps:$4 sm:$0xff]  }
 0x4f6   :  { %5208 = vmatpush1.bf16.msra.mxu0 %v19170_v52  ;;  %v19230_v52 = vld [vmem:[#allocation10 + $0x910] ss:$24 sps:$4 sm:$0xff]  }
 0x4f7   :  { %5337 = vmatpush1.bf16.msra.mxu1 %v19173_v26  ;;  %5209 = vmatprep.subr.bf16.mxu0 %v19178_v10  ;;  %v19235_v26 = vld [vmem:[#allocation10 + $0x944] ss:$24 sps:$4 sm:$0xff]   ;;  %v19233_v10 = vld [vmem:[#allocation10 + $0x940] ss:$24 sps:$4 sm:$0xff]  }
 0x4f8   :  { %5338 = vmatprep.subr.bf16.mxu1 %v19181_v3  ;;  %v19238_v3 = vld [vmem:[#allocation10 + $0x974] ss:$24 sps:$4 sm:$0xff]  }
 0x4fa   :  { %5210 = vmatpush1.bf16.msra.mxu0 %v19176_v7  ;;  %v19236_v7 = vld [vmem:[#allocation10 + $0x970] ss:$24 sps:$4 sm:$0xff]  }
 0x4fb   :  { %5339 = vmatpush1.bf16.msra.mxu1 %v19179_v32  ;;  %5211 = vmatprep.subr.bf16.mxu0 %v19184_v6  ;;  %v19241_v32 = vld [vmem:[#allocation10 + $0x9a4] ss:$24 sps:$4 sm:$0xff]   ;;  %v19239_v6 = vld [vmem:[#allocation10 + $0x9a0] ss:$24 sps:$4 sm:$0xff]  }
 0x4fc   :  { %5340 = vmatprep.subr.bf16.mxu1 %v19187_v38  ;;  %v19244_v38 = vld [vmem:[#allocation10 + $0x9d4] ss:$24 sps:$4 sm:$0xff]  }
 0x4fe   :  { %5212 = vmatpush1.bf16.msra.mxu0 %v19182_v53  ;;  %v19242_v53 = vld [vmem:[#allocation10 + $0x9d0] ss:$24 sps:$4 sm:$0xff]  }
 0x4ff   :  { %5341 = vmatpush1.bf16.msra.mxu1 %v19185_v14  ;;  %5213 = vmatprep.subr.bf16.mxu0 %v19190_v24  ;;  %v19247_v14 = vld [vmem:[#allocation10 + $0xa04] ss:$24 sps:$4 sm:$0xff]   ;;  %v19245_v24 = vld [vmem:[#allocation10 + $0xa00] ss:$24 sps:$4 sm:$0xff]  }
 0x500   :  { %5342 = vmatprep.subr.bf16.mxu1 %v19193_v16  ;;  %v19250_v16 = vld [vmem:[#allocation10 + $0xa34] ss:$24 sps:$4 sm:$0xff]  }
 0x502   :  { %5214 = vmatpush1.bf16.msra.mxu0 %v19188_v21  ;;  %v19253_v21 = vld [vmem:[#allocation10 + $0xa64] ss:$24 sps:$4 sm:$0xff]  }
 0x503   :  { %5343 = vmatpush1.bf16.msra.mxu1 %v19191_v18  ;;  %5215 = vmatprep.subr.bf16.mxu0 %v19196_v31  ;;  %v19251_v18 = vld [vmem:[#allocation10 + $0xa60] ss:$24 sps:$4 sm:$0xff]   ;;  %v19256_v31 = vld [vmem:[#allocation10 + $0xa94] ss:$24 sps:$4 sm:$0xff]  }
 0x504   :  { %5344 = vmatprep.subr.bf16.mxu1 %v19199_v9  ;;  %v19254_v9 = vld [vmem:[#allocation10 + $0xa90] ss:$24 sps:$4 sm:$0xff]  }
 0x506   :  { %5216 = vmatpush1.bf16.msra.mxu0 %v19194_v19  ;;  %v19259_v19 = vld [vmem:[#allocation10 + $0xac4] ss:$24 sps:$4 sm:$0xff]  }
 0x507   :  { %5345 = vmatpush1.bf16.msra.mxu1 %v19197_v12  ;;  %5217 = vmatprep.subr.bf16.mxu0 %v19202_v36  ;;  %v19257_v12 = vld [vmem:[#allocation10 + $0xac0] ss:$24 sps:$4 sm:$0xff]   ;;  %v19262_v36 = vld [vmem:[#allocation10 + $0xaf4] ss:$24 sps:$4 sm:$0xff]  }
 0x508   :  { %5346 = vmatprep.subr.bf16.mxu1 %v19205_v57  ;;  %v19260_v57 = vld [vmem:[#allocation10 + $0xaf0] ss:$24 sps:$4 sm:$0xff]  }
 0x50a   :  { %5218 = vmatpush1.bf16.msra.mxu0 %v19200_v8  ;;  %v19265_v8 = vld [vmem:[#allocation10 + $0xb24] ss:$24 sps:$4 sm:$0xff]  }
 0x50b   :  { %5347 = vmatpush1.bf16.msra.mxu1 %v19203_v25  ;;  %5219 = vmatprep.subr.bf16.mxu0 %v19208_v54  ;;  %v19263_v25 = vld [vmem:[#allocation10 + $0xb20] ss:$24 sps:$4 sm:$0xff]   ;;  %v19268_v54 = vld [vmem:[#allocation10 + $0xb54] ss:$24 sps:$4 sm:$0xff]  }
 0x50c   :  { %5348 = vmatprep.subr.bf16.mxu1 %v19211_v17  ;;  %v19266_v17 = vld [vmem:[#allocation10 + $0xb50] ss:$24 sps:$4 sm:$0xff]  }
 0x50e   :  { %5220 = vmatpush1.bf16.msra.mxu0 %v19206_v51  ;;  %v19271_v51 = vld [vmem:[#allocation10 + $0xb84] ss:$24 sps:$4 sm:$0xff]  }
 0x50f   :  { %5349 = vmatpush1.bf16.msra.mxu1 %v19209_v48  ;;  %5221 = vmatprep.subr.bf16.mxu0 %v19214_v30  ;;  %v19269_v48 = vld [vmem:[#allocation10 + $0xb80] ss:$24 sps:$4 sm:$0xff]   ;;  %v19274_v30 = vld [vmem:[#allocation10 + $0xbb4] ss:$24 sps:$4 sm:$0xff]  }
 0x510   :  { %5350 = vmatprep.subr.bf16.mxu1 %v19217_v42  ;;  %v19272_v42 = vld [vmem:[#allocation10 + $0xbb0] ss:$24 sps:$4 sm:$0xff]  }
 0x512   :  { %5222 = vmatpush1.bf16.msra.mxu0 %v19212_v15  ;;  %v19277_v15 = vld [vmem:[#allocation10 + $0xbe4] ss:$24 sps:$4 sm:$0xff]  }
 0x513   :  { %5351 = vmatpush1.bf16.msra.mxu1 %v19215_v13  ;;  %5223 = vmatprep.subr.bf16.mxu0 %v19220_v0  ;;  %v19275_v13 = vld [vmem:[#allocation10 + $0xbe0] ss:$24 sps:$4 sm:$0xff]   ;;  %v19280_v0 = vld [vmem:[#allocation10 + $0xc14] ss:$24 sps:$4 sm:$0xff]  }
 0x514   :  { %5352 = vmatprep.subr.bf16.mxu1 %v19223_v22  ;;  %v19278_v22 = vld [vmem:[#allocation10 + $0xc10] ss:$24 sps:$4 sm:$0xff]  }
 0x516   :  { %5224 = vmatpush1.bf16.msra.mxu0 %v19218_v55  ;;  %v19283_v55 = vld [vmem:[#allocation10 + $0xc44] ss:$24 sps:$4 sm:$0xff]  }
 0x517   :  { %5353 = vmatpush1.bf16.msra.mxu1 %v19221_v34  ;;  %5225 = vmatprep.subr.bf16.mxu0 %v19226_v35  ;;  %v19281_v34 = vld [vmem:[#allocation10 + $0xc40] ss:$24 sps:$4 sm:$0xff]   ;;  %v19286_v35 = vld [vmem:[#allocation10 + $0xc74] ss:$24 sps:$4 sm:$0xff]  }
 0x518   :  { %5354 = vmatprep.subr.bf16.mxu1 %v19229_v59  ;;  %v19284_v59 = vld [vmem:[#allocation10 + $0xc70] ss:$24 sps:$4 sm:$0xff]  }
 0x51a   :  { %5226 = vmatpush1.bf16.msra.mxu0 %v19224_v2  ;;  %v19289_v2 = vld [vmem:[#allocation10 + $0xca4] ss:$24 sps:$4 sm:$0xff]  }
 0x51b   :  { %5355 = vmatpush1.bf16.msra.mxu1 %v19227_v61  ;;  %5367 = vmatprep.subr.bf16.mxu0 %v19232_v62  ;;  %v19287_v61 = vld [vmem:[#allocation10 + $0xca0] ss:$24 sps:$4 sm:$0xff]   ;;  %v19292_v62 = vld [vmem:[#allocation10 + $0xcd4] ss:$24 sps:$4 sm:$0xff]  }
 0x51d   :  { %5228 = vmatmul.mubr.bf16.vlgmr.msra.gmra.mrb[12].mxu0 %v22213_v56 }
 0x51e   :  { %5357 = vmatmul.mubr.bf16.vlgmr.msra.gmra.mrb[12].mxu1 %v22213_v56  ;;  %5368 = vmatpush1.bf16.msra.mxu0 %v19230_v52  ;;  %v19290_v52 = vld [vmem:[#allocation10 + $0xcd0] ss:$24 sps:$4 sm:$0xff]  }
 0x51f   :  { %5399 = vmatprep.mubr.bf16.mxu0 %v22194_v33  ;;  %5369 = vmatprep.subr.bf16.mxu0 %v19235_v26  ;;  %v19248_v33 = vld [vmem:[#allocation10 + $0xa30] ss:$24 sps:$4 sm:$0xff]   ;;  %v19295_v26 = vld [vmem:[#allocation10 + $0xd04] ss:$24 sps:$4 sm:$0xff]  }
 0x522   :  { %5370 = vmatpush1.bf16.msra.mxu0 %v19233_v10  ;;  %v19298_v10 = vld [vmem:[#allocation10 + $0xd34] ss:$24 sps:$4 sm:$0xff]  }
 0x523   :  { %5371 = vmatprep.subr.bf16.mxu0 %v19238_v3  ;;  %v19301_v3 = vld [vmem:[#allocation10 + $0xd64] ss:$24 sps:$4 sm:$0xff]  }
 0x526   :  { %5372 = vmatpush1.bf16.msra.mxu0 %v19236_v7  ;;  %v19299_v7 = vld [vmem:[#allocation10 + $0xd60] ss:$24 sps:$4 sm:$0xff]  }
 0x527   :  { %5373 = vmatprep.subr.bf16.mxu0 %v19241_v32  ;;  %v19304_v32 = vld [vmem:[#allocation10 + $0xd94] ss:$24 sps:$4 sm:$0xff]  }
 0x52a   :  { %5374 = vmatpush1.bf16.msra.mxu0 %v19239_v6  ;;  %v19302_v6 = vld [vmem:[#allocation10 + $0xd90] ss:$24 sps:$4 sm:$0xff]  }
 0x52b   :  { %5375 = vmatprep.subr.bf16.mxu0 %v19244_v38  ;;  %v19307_v38 = vld [vmem:[#allocation10 + $0xdc4] ss:$24 sps:$4 sm:$0xff]  }
 0x52e   :  { %5376 = vmatpush1.bf16.msra.mxu0 %v19242_v53  ;;  %v19305_v53 = vld [vmem:[#allocation10 + $0xdc0] ss:$24 sps:$4 sm:$0xff]  }
 0x52f   :  { %5377 = vmatprep.subr.bf16.mxu0 %v19247_v14  ;;  %v19310_v14 = vld [vmem:[#allocation10 + $0xdf4] ss:$24 sps:$4 sm:$0xff]  }
 0x532   :  { %5378 = vmatpush1.bf16.msra.mxu0 %v19245_v24  ;;  %v19308_v24 = vld [vmem:[#allocation10 + $0xdf0] ss:$24 sps:$4 sm:$0xff]  }
 0x533   :  { %5379 = vmatprep.subr.bf16.mxu0 %v19250_v16  ;;  %v19313_v16 = vld [vmem:[#allocation10 + $0xe24] ss:$24 sps:$4 sm:$0xff]  }
 0x536   :  { %5380 = vmatpush1.bf16.msra.mxu0 %v19248_v33  ;;  %v19311_v33 = vld [vmem:[#allocation10 + $0xe20] ss:$24 sps:$4 sm:$0xff]  }
 0x537   :  { %5381 = vmatprep.subr.bf16.mxu0 %v19253_v21  ;;  %v19316_v21 = vld [vmem:[#allocation10 + $0xe54] ss:$24 sps:$4 sm:$0xff]  }
 0x53a   :  { %5382 = vmatpush1.bf16.msra.mxu0 %v19251_v18  ;;  %v19314_v18 = vld [vmem:[#allocation10 + $0xe50] ss:$24 sps:$4 sm:$0xff]  }
 0x53b   :  { %5383 = vmatprep.subr.bf16.mxu0 %v19256_v31  ;;  %v19319_v31 = vld [vmem:[#allocation10 + $0xe84] ss:$24 sps:$4 sm:$0xff]  }
 0x53e   :  { %5384 = vmatpush1.bf16.msra.mxu0 %v19254_v9  ;;  %v19317_v9 = vld [vmem:[#allocation10 + $0xe80] ss:$24 sps:$4 sm:$0xff]  }
 0x53f   :  { %5385 = vmatprep.subr.bf16.mxu0 %v19259_v19  ;;  %v19322_v19 = vld [vmem:[#allocation10 + $0xeb4] ss:$24 sps:$4 sm:$0xff]  }
 0x542   :  { %5386 = vmatpush1.bf16.msra.mxu0 %v19257_v12  ;;  %v19320_v12 = vld [vmem:[#allocation10 + $0xeb0] ss:$24 sps:$4 sm:$0xff]  }
 0x543   :  { %5387 = vmatprep.subr.bf16.mxu0 %v19262_v36  ;;  %v19325_v36 = vld [vmem:[#allocation10 + $0xee4] ss:$24 sps:$4 sm:$0xff]  }
 0x546   :  { %5388 = vmatpush1.bf16.msra.mxu0 %v19260_v57  ;;  %v19323_v57 = vld [vmem:[#allocation10 + $0xee0] ss:$24 sps:$4 sm:$0xff]  }
 0x547   :  { %5389 = vmatprep.subr.bf16.mxu0 %v19265_v8  ;;  %v19328_v8 = vld [vmem:[#allocation10 + $0xf14] ss:$24 sps:$4 sm:$0xff]  }
 0x54a   :  { %5390 = vmatpush1.bf16.msra.mxu0 %v19263_v25  ;;  %v19326_v25 = vld [vmem:[#allocation10 + $0xf10] ss:$24 sps:$4 sm:$0xff]  }
 0x54b   :  { %5391 = vmatprep.subr.bf16.mxu0 %v19268_v54  ;;  %v19331_v54 = vld [vmem:[#allocation10 + $0xf44] ss:$24 sps:$4 sm:$0xff]  }
 0x54e   :  { %5392 = vmatpush1.bf16.msra.mxu0 %v19266_v17  ;;  %v19329_v17 = vld [vmem:[#allocation10 + $0xf40] ss:$24 sps:$4 sm:$0xff]  }
 0x54f   :  { %5393 = vmatprep.subr.bf16.mxu0 %v19271_v51  ;;  %v19334_v51 = vld [vmem:[#allocation10 + $0xf74] ss:$24 sps:$4 sm:$0xff]  }
 0x552   :  { %5394 = vmatpush1.bf16.msra.mxu0 %v19269_v48  ;;  %v19332_v48 = vld [vmem:[#allocation10 + $0xf70] ss:$24 sps:$4 sm:$0xff]  }
 0x553   :  { %5395 = vmatprep.subr.bf16.mxu0 %v19274_v30  ;;  %v19337_v30 = vld [vmem:[#allocation10 + $0xfa4] ss:$24 sps:$4 sm:$0xff]  }
 0x556   :  { %5396 = vmatpush1.bf16.msra.mxu0 %v19272_v42  ;;  %v19335_v42 = vld [vmem:[#allocation10 + $0xfa0] ss:$24 sps:$4 sm:$0xff]  }
 0x557   :  { %5397 = vmatprep.subr.bf16.mxu0 %v19277_v15  ;;  %v19340_v15 = vld [vmem:[#allocation10 + $0xfd4] ss:$24 sps:$4 sm:$0xff]  }
 0x55a   :  { %5398 = vmatpush1.bf16.msra.mxu0 %v19275_v13  ;;  %v19338_v13 = vld [vmem:[#allocation10 + $0xfd0] ss:$24 sps:$4 sm:$0xff]  }
 0x55b   :  { %5410 = vmatprep.subr.bf16.mxu0 %v19280_v0  ;;  %v19343_v0 = vld [vmem:[#allocation10 + $0x1004] ss:$24 sps:$4 sm:$0xff]  }
 0x55d   :  { %5400 = vmatmul.mubr.bf16.vlgmr.msra.gmra.mrb[16].mxu0 %v22199_v20  ;;  %v19293_v20 = vld [vmem:[#allocation10 + $0xd00] ss:$24 sps:$4 sm:$0xff]  }
 0x55e   :  { %5411 = vmatpush1.bf16.msra.mxu0 %v19278_v22  ;;  %5442 = vmatprep.mubr.bf16.mxu0 %v22204_v43  ;;  %v19296_v43 = vld [vmem:[#allocation10 + $0xd30] ss:$24 sps:$4 sm:$0xff]   ;;  %v19346_v22 = vld [vmem:[#allocation10 + $0x1034] ss:$24 sps:$4 sm:$0xff]  }
 0x55f   :  { %5412 = vmatprep.subr.bf16.mxu0 %v19283_v55  ;;  %v19349_v55 = vld [vmem:[#allocation10 + $0x1064] ss:$24 sps:$4 sm:$0xff]  }
 0x562   :  { %5413 = vmatpush1.bf16.msra.mxu0 %v19281_v34  ;;  %v19347_v34 = vld [vmem:[#allocation10 + $0x1060] ss:$24 sps:$4 sm:$0xff]  }
 0x563   :  { %5414 = vmatprep.subr.bf16.mxu0 %v19286_v35  ;;  %v19352_v35 = vld [vmem:[#allocation10 + $0x1094] ss:$24 sps:$4 sm:$0xff]  }
 0x566   :  { %5415 = vmatpush1.bf16.msra.mxu0 %v19284_v59  ;;  %v19350_v59 = vld [vmem:[#allocation10 + $0x1090] ss:$24 sps:$4 sm:$0xff]  }
 0x567   :  { %5416 = vmatprep.subr.bf16.mxu0 %v19289_v2  ;;  %v19355_v2 = vld [vmem:[#allocation10 + $0x10c4] ss:$24 sps:$4 sm:$0xff]  }
 0x56a   :  { %5417 = vmatpush1.bf16.msra.mxu0 %v19287_v61  ;;  %v19353_v61 = vld [vmem:[#allocation10 + $0x10c0] ss:$24 sps:$4 sm:$0xff]  }
 0x56b   :  { %5418 = vmatprep.subr.bf16.mxu0 %v19292_v62  ;;  %v19358_v62 = vld [vmem:[#allocation10 + $0x10f4] ss:$24 sps:$4 sm:$0xff]  }
 0x56e   :  { %5419 = vmatpush1.bf16.msra.mxu0 %v19290_v52  ;;  %v19356_v52 = vld [vmem:[#allocation10 + $0x10f0] ss:$24 sps:$4 sm:$0xff]  }
 0x56f   :  { %5420 = vmatprep.subr.bf16.mxu0 %v19295_v26  ;;  %v19361_v26 = vld [vmem:[#allocation10 + $0x1124] ss:$24 sps:$4 sm:$0xff]  }
 0x572   :  { %5421 = vmatpush1.bf16.msra.mxu0 %v19293_v20  ;;  %v19359_v20 = vld [vmem:[#allocation10 + $0x1120] ss:$24 sps:$4 sm:$0xff]  }
 0x573   :  { %5422 = vmatprep.subr.bf16.mxu0 %v19298_v10  ;;  %v19364_v10 = vld [vmem:[#allocation10 + $0x1154] ss:$24 sps:$4 sm:$0xff]  }
 0x576   :  { %5423 = vmatpush1.bf16.msra.mxu0 %v19296_v43  ;;  %v19362_v43 = vld [vmem:[#allocation10 + $0x1150] ss:$24 sps:$4 sm:$0xff]  }
 0x577   :  { %5424 = vmatprep.subr.bf16.mxu0 %v19301_v3  ;;  %v19367_v3 = vld [vmem:[#allocation10 + $0x1184] ss:$24 sps:$4 sm:$0xff]  }
 0x57a   :  { %5425 = vmatpush1.bf16.msra.mxu0 %v19299_v7  ;;  %v19365_v7 = vld [vmem:[#allocation10 + $0x1180] ss:$24 sps:$4 sm:$0xff]  }
 0x57b   :  { %5426 = vmatprep.subr.bf16.mxu0 %v19304_v32  ;;  %v19370_v32 = vld [vmem:[#allocation10 + $0x11b4] ss:$24 sps:$4 sm:$0xff]  }
 0x57e   :  { %5427 = vmatpush1.bf16.msra.mxu0 %v19302_v6  ;;  %v19368_v6 = vld [vmem:[#allocation10 + $0x11b0] ss:$24 sps:$4 sm:$0xff]  }
 0x57f   :  { %5428 = vmatprep.subr.bf16.mxu0 %v19307_v38  ;;  %v19373_v38 = vld [vmem:[#allocation10 + $0x11e4] ss:$24 sps:$4 sm:$0xff]  }
 0x582   :  { %5429 = vmatpush1.bf16.msra.mxu0 %v19305_v53  ;;  %v19371_v53 = vld [vmem:[#allocation10 + $0x11e0] ss:$24 sps:$4 sm:$0xff]  }
 0x583   :  { %5430 = vmatprep.subr.bf16.mxu0 %v19310_v14  ;;  %v22227_v14 = vld [vmem:[#allocation11 + $0x6] sm:$0x3f] }
 0x586   :  { %5431 = vmatpush1.bf16.msra.mxu0 %v19308_v24  ;;  %v3642_v24 = vrot.slane %v22227_v14, %v21895_v27 }
 0x587   :  { %5432 = vmatprep.subr.bf16.mxu0 %v19313_v16 }
 0x58a   :  { %5433 = vmatpush1.bf16.msra.mxu0 %v19311_v33  ;;  %v3650_v33 = vrot.slane %v22227_v14, %v21890_v23 }
 0x58b   :  { %5434 = vmatprep.subr.bf16.mxu0 %v19316_v21  ;;  %v3646_v21 = vrot.slane %v22227_v14, %v21901_v29 }
 0x58e   :  { %5435 = vmatpush1.bf16.msra.mxu0 %v19314_v18 }
 0x58f   :  { %5436 = vmatprep.subr.bf16.mxu0 %v19319_v31 }
 0x592   :  { %5437 = vmatpush1.bf16.msra.mxu0 %v19317_v9  ;;  %v3654_v9 = vrot.slane %v22227_v14, %v21898_v28 }
 0x593   :  { %5438 = vmatprep.subr.bf16.mxu0 %v19322_v19 }
 0x596   :  { %5439 = vmatpush1.bf16.msra.mxu0 %v19320_v12 }
 0x597   :  { %5440 = vmatprep.subr.bf16.mxu0 %v19325_v36 }
 0x59a   :  { %5441 = vmatpush1.bf16.msra.mxu0 %v19323_v57 }
 0x59b   :  { %5453 = vmatprep.subr.bf16.mxu0 %v19328_v8 }
 0x59d   :  { %5443 = vmatmul.mubr.bf16.vlgmr.msra.gmra.mrb[16].mxu0 %v22209_v60  ;;  %v19341_v60 = vld [vmem:[#allocation10 + $0x1000] ss:$24 sps:$4 sm:$0xff]  }
 0x59e   :  { %5454 = vmatpush1.bf16.msra.mxu0 %v19326_v25  ;;  %5485 = vmatprep.mubr.bf16.mxu0 %v22211_v58  ;;  %v19344_v58 = vld [vmem:[#allocation10 + $0x1030] ss:$24 sps:$4 sm:$0xff]  }
 0x59f   :  { %5455 = vmatprep.subr.bf16.mxu0 %v19331_v54 }
 0x5a2   :  { %5456 = vmatpush1.bf16.msra.mxu0 %v19329_v17 }
 0x5a3   :  { %5457 = vmatprep.subr.bf16.mxu0 %v19334_v51 }
 0x5a6   :  { %5458 = vmatpush1.bf16.msra.mxu0 %v19332_v48 }
 0x5a7   :  { %5459 = vmatprep.subr.bf16.mxu0 %v19337_v30 }
 0x5aa   :  { %5460 = vmatpush1.bf16.msra.mxu0 %v19335_v42 }
 0x5ab   :  { %5461 = vmatprep.subr.bf16.mxu0 %v19340_v15 }
 0x5ae   :  { %5462 = vmatpush1.bf16.msra.mxu0 %v19338_v13 }
 0x5af   :  { %5463 = vmatprep.subr.bf16.mxu0 %v19343_v0 }
 0x5b2   :  { %5464 = vmatpush1.bf16.msra.mxu0 %v19341_v60 }
 0x5b3   :  { %5465 = vmatprep.subr.bf16.mxu0 %v19346_v22 }
 0x5b6   :  { %5466 = vmatpush1.bf16.msra.mxu0 %v19344_v58 }
 0x5b7   :  { %5467 = vmatprep.subr.bf16.mxu0 %v19349_v55 }
 0x5ba   :  { %5468 = vmatpush1.bf16.msra.mxu0 %v19347_v34 }
 0x5bb   :  { %5469 = vmatprep.subr.bf16.mxu0 %v19352_v35 }
 0x5be   :  { %5470 = vmatpush1.bf16.msra.mxu0 %v19350_v59 }
 0x5bf   :  { %5471 = vmatprep.subr.bf16.mxu0 %v19355_v2 }
 0x5c2   :  { %5472 = vmatpush1.bf16.msra.mxu0 %v19353_v61 }
 0x5c3   :  { %5473 = vmatprep.subr.bf16.mxu0 %v19358_v62 }
 0x5c6   :  { %5474 = vmatpush1.bf16.msra.mxu0 %v19356_v52 }
 0x5c7   :  { %5475 = vmatprep.subr.bf16.mxu0 %v19361_v26 }
 0x5ca   :  { %5476 = vmatpush1.bf16.msra.mxu0 %v19359_v20 }
 0x5cb   :  { %5477 = vmatprep.subr.bf16.mxu0 %v19364_v10 }
 0x5ce   :  { %5478 = vmatpush1.bf16.msra.mxu0 %v19362_v43 }
 0x5cf   :  { %5479 = vmatprep.subr.bf16.mxu0 %v19367_v3 }
 0x5d2   :  { %5480 = vmatpush1.bf16.msra.mxu0 %v19365_v7 }
 0x5d3   :  { %5481 = vmatprep.subr.bf16.mxu0 %v19370_v32 }
 0x5d6   :  { %5482 = vmatpush1.bf16.msra.mxu0 %v19368_v6 }
 0x5d7   :  { %5483 = vmatprep.subr.bf16.mxu0 %v19373_v38 }
 0x5da   :  { %5484 = vmatpush1.bf16.msra.mxu0 %v19371_v53 }
 0x5dd   :  { %5486 = vmatmul.mubr.bf16.vlgmr.msra.gmra.mrb[16].mxu0 %v22213_v56 }
 0x5f0   :  { %v5229_v16 = vpop.f32.mrb[12].mxu0 }
 0x5f1   :  { %v5358_v18 = vpop.f32.mrb[12].mxu1  ;;  %v5231_v31 = vpop.f32.mrb[13].mxu0  ;;  %v18283_v56 = vadd.f32 %v5229_v16, %v3642_v24 }
 0x5f2   :  { %v5360_v19 = vpop.f32.mrb[13].mxu1  ;;  %v5233_v12 = vpop.f32.mrb[14].mxu0  ;;  %v18287_v25 = vadd.f32 %v5358_v18, %v3650_v33  ;;  %v18284_v54 = vadd.f32 %v5231_v31, %v3646_v21 }
 0x5f3   :  { %v18285_v36 = vadd.f32 %v5233_v12, %v3642_v24  ;;  %v5362_v57 = vpop.f32.mrb[14].mxu1  ;;  %v5235_v8 = vpop.f32.mrb[15].mxu0  ;;  %v18288_v30 = vadd.f32 %v5360_v19, %v3654_v9 }
 0x5f4   :  { %v18289_v17 = vadd.f32 %v5362_v57, %v3650_v33  ;;  %v18286_v51 = vadd.f32 %v5235_v8, %v3646_v21  ;;  %v5364_v48 = vpop.f32.mrb[15].mxu1 }
 0x5f5   :  { %v5500_v42 = vadd.f32 %v18285_v36, %v18283_v56  ;;  %v18290_v15 = vadd.f32 %v5364_v48, %v3654_v9 }
 0x5f6   :  { %v5514_v13 = vadd.f32 %v18289_v17, %v18287_v25  ;;  %v5507_v0 = vadd.f32 %v18286_v51, %v18284_v54 }
 0x5f7   :  { %v5501_v60 = vrot.slane %v5500_v42, 4  ;;  %v5521_v22 = vadd.f32 %v18290_v15, %v18288_v30 }
 0x5f8   :  { %v5515_v58 = vrot.slane %v5514_v13, 4  ;;  %v5508_v55 = vrot.slane %v5507_v0, 4 }
 0x5f9   :  { %v5502_v34 = vadd.f32 %v5501_v60, %v5500_v42  ;;  %v5522_v35 = vrot.slane %v5521_v22, 4 }
 0x5fa   :  { %v5516_v59 = vadd.f32 %v5515_v58, %v5514_v13  ;;  %v5509_v2 = vadd.f32 %v5508_v55, %v5507_v0 }
 0x5fb   :  { %v5503_v61 = vrot.slane %v5502_v34, 2  ;;  %v5523_v62 = vadd.f32 %v5522_v35, %v5521_v22 }
 0x5fc   :  { %v5517_v52 = vrot.slane %v5516_v59, 2  ;;  %v5510_v26 = vrot.slane %v5509_v2, 2 }
 0x5fd   :  { %v5504_v20 = vadd.f32 %v5503_v61, %v5502_v34  ;;  %v5524_v10 = vrot.slane %v5523_v62, 2 }
 0x5fe   :  { %v5518_v43 = vadd.f32 %v5517_v52, %v5516_v59  ;;  %v5511_v3 = vadd.f32 %v5510_v26, %v5509_v2 }
 0x5ff   :  { %v5505_v7 = vrot.slane %v5504_v20, 1  ;;  %v5525_v32 = vadd.f32 %v5524_v10, %v5523_v62 }
 0x600   :  { %v5519_v6 = vrot.slane %v5518_v43, 1  ;;  %v5512_v38 = vrot.slane %v5511_v3, 1 }
 0x601   :  { %v5506_v53 = vadd.f32 %v5505_v7, %v5504_v20  ;;  %v5526_v24 = vrot.slane %v5525_v32, 1 }
 0x602   :  { %v5520_v16 = vadd.f32 %v5519_v6, %v5518_v43  ;;  %v5513_v33 = vadd.f32 %v5512_v38, %v5511_v3 }
 0x603   :  { %v5542_v21 = vmul.f32 0.0625, %v5506_v53  ;;  %v5527_v18 = vadd.f32 %v5526_v24, %v5525_v32 }
 0x604   :  { %v5544_v31 = vmul.f32 0.0625, %v5520_v16  ;;  %v5543_v9 = vmul.f32 0.0625, %v5513_v33 }
 0x605   :  { %v22237_v19 = vsub.f32 %v18283_v56, %v5542_v21  ;;  %v22239_v12 = vsub.f32 %v18285_v36, %v5542_v21  ;;  %v5545_v57 = vmul.f32 0.0625, %v5527_v18 }
 0x606   :  { %v22241_v8 = vsub.f32 %v18287_v25, %v5544_v31  ;;  %v22243_v48 = vsub.f32 %v18289_v17, %v5544_v31  ;;  %v22245_v42 = vsub.f32 %v18284_v54, %v5543_v9  ;;  %v22247_v13 = vsub.f32 %v18286_v51, %v5543_v9 }
 0x607   :  { %v5560_v0 = vmul.f32 %v22237_v19, %v22237_v19  ;;  %v5566_v60 = vmul.f32 %v22239_v12, %v22239_v12  ;;  %v22253_v22 = vsub.f32 %v18288_v30, %v5545_v57  ;;  %v22255_v56 = vsub.f32 %v18290_v15, %v5545_v57 }
 0x608   :  { %v5562_v36 = vmul.f32 %v22241_v8, %v22241_v8  ;;  %v5568_v25 = vmul.f32 %v22243_v48, %v22243_v48  ;;  %v5561_v54 = vmul.f32 %v22245_v42, %v22245_v42  ;;  %v5567_v17 = vmul.f32 %v22247_v13, %v22247_v13 }
 0x609   :  { %v5572_v51 = vadd.f32 %v5566_v60, %v5560_v0  ;;  %v5563_v58 = vmul.f32 %v22253_v22, %v22253_v22  ;;  %v5569_v30 = vmul.f32 %v22255_v56, %v22255_v56 }
 0x60a   :  { %v5586_v15 = vadd.f32 %v5568_v25, %v5562_v36  ;;  %v5579_v55 = vadd.f32 %v5567_v17, %v5561_v54 }
 0x60b   :  { %v5573_v34 = vrot.slane %v5572_v51, 4  ;;  %v5593_v35 = vadd.f32 %v5569_v30, %v5563_v58 }
 0x60c   :  { %v5587_v59 = vrot.slane %v5586_v15, 4  ;;  %v5580_v2 = vrot.slane %v5579_v55, 4 }
 0x60d   :  { %v5574_v61 = vadd.f32 %v5573_v34, %v5572_v51  ;;  %v5594_v62 = vrot.slane %v5593_v35, 4 }
 0x60e   :  { %v5588_v52 = vadd.f32 %v5587_v59, %v5586_v15  ;;  %v5581_v26 = vadd.f32 %v5580_v2, %v5579_v55 }
 0x60f   :  { %v5575_v20 = vrot.slane %v5574_v61, 2  ;;  %v5595_v10 = vadd.f32 %v5594_v62, %v5593_v35 }
 0x610   :  { %v5589_v43 = vrot.slane %v5588_v52, 2  ;;  %v5582_v3 = vrot.slane %v5581_v26, 2 }
 0x611   :  { %v5576_v7 = vadd.f32 %v5575_v20, %v5574_v61  ;;  %v5596_v32 = vrot.slane %v5595_v10, 2  ;;  %v19374_v20 = vld [vmem:[#allocation10 + $0x1200] ss:$24 sps:$4 sm:$0xff]  }
 0x612   :  { %v5590_v6 = vadd.f32 %v5589_v43, %v5588_v52  ;;  %v5583_v38 = vadd.f32 %v5582_v3, %v5581_v26  ;;  %v19376_v52 = vld [vmem:[#allocation10 + $0x1204] ss:$24 sps:$4 sm:$0xff]   ;;  %v19382_v43 = vld [vmem:[#allocation10 + $0x1234] ss:$24 sps:$4 sm:$0xff]  }
 0x613   :  { %v5577_v53 = vrot.slane %v5576_v7, 1  ;;  %v5597_v24 = vadd.f32 %v5596_v32, %v5595_v10  ;;  %v19379_v26 = vld [vmem:[#allocation10 + $0x120c] ss:$24 sps:$4 sm:$0xff]   ;;  %v19377_v10 = vld [vmem:[#allocation10 + $0x1208] ss:$24 sps:$4 sm:$0xff]   ;;  %7594 = vmatprep.subr.bf16.mxu1 %v19376_v52 }
 0x614   :  { %v5591_v16 = vrot.slane %v5590_v6, 1  ;;  %v5584_v33 = vrot.slane %v5583_v38, 1  ;;  %7723 = vmatprep.subr.bf16.mxu0 %v19379_v26  ;;  %7595 = vmatpush1.bf16.msra.mxu1 %v19374_v20  ;;  %v19385_v3 = vld [vmem:[#allocation10 + $0x123c] ss:$24 sps:$4 sm:$0xff]   ;;  %v19383_v32 = vld [vmem:[#allocation10 + $0x1238] ss:$24 sps:$4 sm:$0xff]  }
 0x615   :  { %v5578_v21 = vadd.f32 %v5577_v53, %v5576_v7  ;;  %v5598_v18 = vrot.slane %v5597_v24, 1  ;;  %7724 = vmatpush1.bf16.msra.mxu0 %v19377_v10  ;;  %v19380_v7 = vld [vmem:[#allocation10 + $0x1230] ss:$24 sps:$4 sm:$0xff]   ;;  %7596 = vmatprep.subr.bf16.mxu1 %v19382_v43  ;;  %v19386_v53 = vld [vmem:[#allocation10 + $0x1260] ss:$24 sps:$4 sm:$0xff]  }
 0x616   :  { %v5592_v31 = vadd.f32 %v5591_v16, %v5590_v6  ;;  %v5585_v9 = vadd.f32 %v5584_v33, %v5583_v38  ;;  %7725 = vmatprep.subr.bf16.mxu0 %v19385_v3  ;;  %v19388_v6 = vld [vmem:[#allocation10 + $0x1264] ss:$24 sps:$4 sm:$0xff]   ;;  %v19394_v16 = vld [vmem:[#allocation10 + $0x1294] ss:$24 sps:$4 sm:$0xff]   ;;  %v19392_v33 = vld [vmem:[#allocation10 + $0x1290] ss:$24 sps:$4 sm:$0xff]  }
 0x617   :  { %v5614_v57 = vmul.f32 0.0625, %v5578_v21  ;;  %v5599_v0 = vadd.f32 %v5598_v18, %v5597_v24  ;;  %v19391_v38 = vld [vmem:[#allocation10 + $0x126c] ss:$24 sps:$4 sm:$0xff]   ;;  %v19389_v24 = vld [vmem:[#allocation10 + $0x1268] ss:$24 sps:$4 sm:$0xff]  }
 0x618   :  { %v5616_v60 = vmul.f32 0.0625, %v5592_v31  ;;  %v5615_v36 = vmul.f32 0.0625, %v5585_v9  ;;  %7597 = vmatpush1.bf16.msra.mxu1 %v19380_v7  ;;  %v19395_v21 = vld [vmem:[#allocation10 + $0x1298] ss:$24 sps:$4 sm:$0xff]   ;;  %v19397_v18 = vld [vmem:[#allocation10 + $0x129c] ss:$24 sps:$4 sm:$0xff]  }
 0x619   :  { %v5620_v25 = vadd.f32 1e-05, %v5614_v57  ;;  %v5617_v54 = vmul.f32 0.0625, %v5599_v0  ;;  %7726 = vmatpush1.bf16.msra.mxu0 %v19383_v32  ;;  %7598 = vmatprep.subr.bf16.mxu1 %v19388_v6  ;;  %v19400_v31 = vld [vmem:[#allocation10 + $0x12c4] ss:$24 sps:$4 sm:$0xff]  }
 0x61a   :  { %v5622_v17 = vadd.f32 1e-05, %v5616_v60  ;;  %v5621_v51 = vadd.f32 1e-05, %v5615_v36  ;;  %7727 = vmatprep.subr.bf16.mxu0 %v19391_v38  ;;  %v19403_v9 = vld [vmem:[#allocation10 + $0x12cc] ss:$24 sps:$4 sm:$0xff]  }
 0x61b   :  { %21222 = vrsqrt.f32 %v5620_v25  ;;  %v5623_v58 = vadd.f32 1e-05, %v5617_v54  ;;  %v19398_v57 = vld [vmem:[#allocation10 + $0x12c0] ss:$24 sps:$4 sm:$0xff]   ;;  %v19406_v60 = vld [vmem:[#allocation10 + $0x12f4] ss:$24 sps:$4 sm:$0xff]  }
 0x61c   :  { %21224 = vrsqrt.f32 %v5622_v17  ;;  %7599 = vmatpush1.bf16.msra.mxu1 %v19386_v53  ;;  %v19401_v0 = vld [vmem:[#allocation10 + $0x12c8] ss:$24 sps:$4 sm:$0xff]   ;;  %v19409_v36 = vld [vmem:[#allocation10 + $0x12fc] ss:$24 sps:$4 sm:$0xff]   ;;  %v19407_v54 = vld [vmem:[#allocation10 + $0x12f8] ss:$24 sps:$4 sm:$0xff]  }
 0x61d   :  { %21226 = vrsqrt.f32 %v5621_v51  ;;  %7728 = vmatpush1.bf16.msra.mxu0 %v19389_v24  ;;  %7600 = vmatprep.subr.bf16.mxu1 %v19394_v16  ;;  %v19404_v25 = vld [vmem:[#allocation10 + $0x12f0] ss:$24 sps:$4 sm:$0xff]   ;;  %v19412_v17 = vld [vmem:[#allocation10 + $0x1324] ss:$24 sps:$4 sm:$0xff]   ;;  %v19422_v26 = vld [vmem:[#allocation10 + $0x1380] ss:$24 sps:$4 sm:$0xff]  }
 0x61e   :  { %21228 = vrsqrt.f32 %v5623_v58  ;;  %7729 = vmatprep.subr.bf16.mxu0 %v19397_v18  ;;  %v19415_v51 = vld [vmem:[#allocation10 + $0x132c] ss:$24 sps:$4 sm:$0xff]   ;;  %v19410_v58 = vld [vmem:[#allocation10 + $0x1320] ss:$24 sps:$4 sm:$0xff]   ;;  %v19433_v43 = vld [vmem:[#allocation10 + $0x13bc] ss:$24 sps:$4 sm:$0xff]  }
 0x61f   :  { %v19427_v52 = vld [vmem:[#allocation10 + $0x138c] ss:$24 sps:$4 sm:$0xff]   ;;  %v19425_v20 = vld [vmem:[#allocation10 + $0x1388] ss:$24 sps:$4 sm:$0xff]   ;;  %v19431_v7 = vld [vmem:[#allocation10 + $0x13b8] ss:$24 sps:$4 sm:$0xff]  }
 0x620   :  { %7601 = vmatpush1.bf16.msra.mxu1 %v19392_v33  ;;  %v19430_v10 = vld [vmem:[#allocation10 + $0x13b4] ss:$24 sps:$4 sm:$0xff]   ;;  %v19428_v3 = vld [vmem:[#allocation10 + $0x13b0] ss:$24 sps:$4 sm:$0xff]   ;;  %v19436_v32 = vld [vmem:[#allocation10 + $0x13e4] ss:$24 sps:$4 sm:$0xff]  }
 0x621   :  { %7730 = vmatpush1.bf16.msra.mxu0 %v19395_v21  ;;  %7602 = vmatprep.subr.bf16.mxu1 %v19400_v31  ;;  %v19439_v6 = vld [vmem:[#allocation10 + $0x13ec] ss:$24 sps:$4 sm:$0xff]   ;;  %v19434_v38 = vld [vmem:[#allocation10 + $0x13e0] ss:$24 sps:$4 sm:$0xff]   ;;  %v19440_v16 = vld [vmem:[#allocation10 + $0x1410] ss:$24 sps:$4 sm:$0xff]  }
 0x622   :  { %7731 = vmatprep.subr.bf16.mxu0 %v19403_v9  ;;  %v19437_v53 = vld [vmem:[#allocation10 + $0x13e8] ss:$24 sps:$4 sm:$0xff]   ;;  %v19442_v24 = vld [vmem:[#allocation10 + $0x1414] ss:$24 sps:$4 sm:$0xff]   ;;  %v19443_v21 = vld [vmem:[#allocation10 + $0x1418] ss:$24 sps:$4 sm:$0xff]  }
 0x623   :  { %v19445_v33 = vld [vmem:[#allocation10 + $0x141c] ss:$24 sps:$4 sm:$0xff]   ;;  %v19451_v31 = vld [vmem:[#allocation10 + $0x144c] ss:$24 sps:$4 sm:$0xff]   ;;  %v19446_v9 = vld [vmem:[#allocation10 + $0x1440] ss:$24 sps:$4 sm:$0xff]  }
 0x624   :  { %7603 = vmatpush1.bf16.msra.mxu1 %v19398_v57  ;;  %v19448_v18 = vld [vmem:[#allocation10 + $0x1444] ss:$24 sps:$4 sm:$0xff]   ;;  %v19449_v57 = vld [vmem:[#allocation10 + $0x1448] ss:$24 sps:$4 sm:$0xff]  }
 0x625   :  { %v21223_v30 = vpop.eup %21222  ;;  %7732 = vmatpush1.bf16.msra.mxu0 %v19401_v0  ;;  %7604 = vmatprep.subr.bf16.mxu1 %v19406_v60  ;;  %v19454_v0 = vld [vmem:[#allocation10 + $0x1474] ss:$24 sps:$4 sm:$0xff]  }
 0x626   :  { %v21225_v15 = vpop.eup %21224  ;;  %7733 = vmatprep.subr.bf16.mxu0 %v19409_v36  ;;  %v19457_v60 = vld [vmem:[#allocation10 + $0x147c] ss:$24 sps:$4 sm:$0xff]   ;;  %v19452_v36 = vld [vmem:[#allocation10 + $0x1470] ss:$24 sps:$4 sm:$0xff]  }
 0x627   :  { %v21227_v55 = vpop.eup %21226 }
 0x628   :  { %v21229_v34 = vpop.eup %21228  ;;  %v5638_v35 = vcombine.low %v21223_v30, %v21227_v55  ;;  %7605 = vmatpush1.bf16.msra.mxu1 %v19404_v25  ;;  %v19413_v30 = vld [vmem:[#allocation10 + $0x1328] ss:$24 sps:$4 sm:$0xff]   ;;  %v19421_v55 = vld [vmem:[#allocation10 + $0x135c] ss:$24 sps:$4 sm:$0xff]   ;;  %v19455_v25 = vld [vmem:[#allocation10 + $0x1478] ss:$24 sps:$4 sm:$0xff]  }
 0x629   :  { %v5639_v59 = vcombine.low %v21225_v15, %v21229_v34  ;;  %7734 = vmatpush1.bf16.msra.mxu0 %v19407_v54  ;;  %7606 = vmatprep.subr.bf16.mxu1 %v19412_v17  ;;  %v19418_v15 = vld [vmem:[#allocation10 + $0x1354] ss:$24 sps:$4 sm:$0xff]   ;;  %v19416_v34 = vld [vmem:[#allocation10 + $0x1350] ss:$24 sps:$4 sm:$0xff]   ;;  %v19460_v54 = vld [vmem:[#allocation10 + $0x14a4] ss:$24 sps:$4 sm:$0xff]  }
 0x62a   :  { %v22270_v2 = vrot.slane %v5638_v35, %v22018_v11  ;;  %7735 = vmatprep.subr.bf16.mxu0 %v19415_v51  ;;  %v19419_v35 = vld [vmem:[#allocation10 + $0x1358] ss:$24 sps:$4 sm:$0xff]   ;;  %v19463_v17 = vld [vmem:[#allocation10 + $0x14ac] ss:$24 sps:$4 sm:$0xff]  }
 0x62b   :  { %v22273_v61 = vrot.slane %v5639_v59, %v22018_v11  ;;  %v19424_v59 = vld [vmem:[#allocation10 + $0x1384] ss:$24 sps:$4 sm:$0xff]   ;;  %v19458_v51 = vld [vmem:[#allocation10 + $0x14a0] ss:$24 sps:$4 sm:$0xff]  }
 0x62c   :  { %7607 = vmatpush1.bf16.msra.mxu1 %v19410_v58  ;;  %v19461_v58 = vld [vmem:[#allocation10 + $0x14a8] ss:$24 sps:$4 sm:$0xff]  }
 0x62d   :  { %v5662_v62 = vcombine.low %v22270_v2, %v22273_v61  ;;  %7736 = vmatpush1.bf16.msra.mxu0 %v19413_v30  ;;  %7608 = vmatprep.subr.bf16.mxu1 %v19418_v15  ;;  %v19466_v30 = vld [vmem:[#allocation10 + $0x14d4] ss:$24 sps:$4 sm:$0xff]  }
 0x62e   :  { %7737 = vmatprep.subr.bf16.mxu0 %v19421_v55  ;;  %v19469_v15 = vld [vmem:[#allocation10 + $0x14dc] ss:$24 sps:$4 sm:$0xff]   ;;  %v19464_v55 = vld [vmem:[#allocation10 + $0x14d0] ss:$24 sps:$4 sm:$0xff]  }
 0x630   :  { %7609 = vmatpush1.bf16.msra.mxu1 %v19416_v34  ;;  %v19467_v34 = vld [vmem:[#allocation10 + $0x14d8] ss:$24 sps:$4 sm:$0xff]  }
 0x631   :  { %7738 = vmatpush1.bf16.msra.mxu0 %v19419_v35  ;;  %7610 = vmatprep.subr.bf16.mxu1 %v19424_v59  ;;  %v19472_v35 = vld [vmem:[#allocation10 + $0x1504] ss:$24 sps:$4 sm:$0xff]  }
 0x632   :  { %7739 = vmatprep.subr.bf16.mxu0 %v19427_v52  ;;  %v19475_v59 = vld [vmem:[#allocation10 + $0x150c] ss:$24 sps:$4 sm:$0xff]   ;;  %v3658_v52 = vrot.slane %v22227_v14, %v21976_v47 }
 0x634   :  { %7611 = vmatpush1.bf16.msra.mxu1 %v19422_v26 }
 0x635   :  { %7740 = vmatpush1.bf16.msra.mxu0 %v19425_v20  ;;  %7612 = vmatprep.subr.bf16.mxu1 %v19430_v10  ;;  %v3662_v20 = vrot.slane %v22227_v14, %v21979_v50 }
 0x636   :  { %7741 = vmatprep.subr.bf16.mxu0 %v19433_v43 }
 0x638   :  { %7613 = vmatpush1.bf16.msra.mxu1 %v19428_v3 }
 0x639   :  { %7742 = vmatpush1.bf16.msra.mxu0 %v19431_v7  ;;  %7614 = vmatprep.subr.bf16.mxu1 %v19436_v32 }
 0x63a   :  { %7743 = vmatprep.subr.bf16.mxu0 %v19439_v6 }
 0x63c   :  { %7615 = vmatpush1.bf16.msra.mxu1 %v19434_v38 }
 0x63d   :  { %7744 = vmatpush1.bf16.msra.mxu0 %v19437_v53  ;;  %7616 = vmatprep.subr.bf16.mxu1 %v19442_v24 }
 0x63e   :  { %7745 = vmatprep.subr.bf16.mxu0 %v19445_v33 }
 0x640   :  { %7617 = vmatpush1.bf16.msra.mxu1 %v19440_v16 }
 0x641   :  { %7746 = vmatpush1.bf16.msra.mxu0 %v19443_v21  ;;  %7618 = vmatprep.subr.bf16.mxu1 %v19448_v18 }
 0x642   :  { %7747 = vmatprep.subr.bf16.mxu0 %v19451_v31 }
 0x644   :  { %7619 = vmatpush1.bf16.msra.mxu1 %v19446_v9 }
 0x645   :  { %7748 = vmatpush1.bf16.msra.mxu0 %v19449_v57  ;;  %7620 = vmatprep.subr.bf16.mxu1 %v19454_v0 }
 0x646   :  { %7749 = vmatprep.subr.bf16.mxu0 %v19457_v60 }
 0x648   :  { %7621 = vmatpush1.bf16.msra.mxu1 %v19452_v36 }
 0x649   :  { %7750 = vmatpush1.bf16.msra.mxu0 %v19455_v25  ;;  %7622 = vmatprep.subr.bf16.mxu1 %v19460_v54 }
 0x64a   :  { %7751 = vmatprep.subr.bf16.mxu0 %v19463_v17 }
 0x64c   :  { %7623 = vmatpush1.bf16.msra.mxu1 %v19458_v51 }
 0x64d   :  { %7752 = vmatpush1.bf16.msra.mxu0 %v19461_v58  ;;  %7624 = vmatprep.subr.bf16.mxu1 %v19466_v30 }
 0x64e   :  { %7753 = vmatprep.subr.bf16.mxu0 %v19469_v15 }
 0x650   :  { %7625 = vmatpush1.bf16.msra.mxu1 %v19464_v55 }
 0x651   :  { %7754 = vmatpush1.bf16.msra.mxu0 %v19467_v34  ;;  %7637 = vmatprep.subr.bf16.mxu1 %v19472_v35 }
 0x652   :  { %7766 = vmatprep.subr.bf16.mxu0 %v19475_v59 }
 0x6b0   :  { %v5487_v26 = vpop.f32.mrb[16].mxu0 }
 0x6b1   :  { %v5489_v10 = vpop.f32.mrb[17].mxu0  ;;  %v18291_v3 = vadd.f32 %v5487_v26, %v3658_v52 }
 0x6b2   :  { %v5491_v43 = vpop.f32.mrb[18].mxu0  ;;  %v18292_v6 = vadd.f32 %v5489_v10, %v3662_v20 }
 0x6b3   :  { %v18293_v7 = vadd.f32 %v5491_v43, %v3658_v52  ;;  %v5493_v32 = vpop.f32.mrb[19].mxu0 }
 0x6b4   :  { %v18294_v38 = vadd.f32 %v5493_v32, %v3662_v20 }
 0x6b5   :  { %v5528_v53 = vadd.f32 %v18293_v7, %v18291_v3 }
 0x6b6   :  { %v5535_v24 = vadd.f32 %v18294_v38, %v18292_v6 }
 0x6b7   :  { %v5529_v16 = vrot.slane %v5528_v53, 4 }
 0x6b8   :  { %v5536_v33 = vrot.slane %v5535_v24, 4 }
 0x6b9   :  { %v5530_v21 = vadd.f32 %v5529_v16, %v5528_v53 }
 0x6ba   :  { %v5537_v18 = vadd.f32 %v5536_v33, %v5535_v24 }
 0x6bb   :  { %v5531_v31 = vrot.slane %v5530_v21, 2 }
 0x6bc   :  { %v5538_v9 = vrot.slane %v5537_v18, 2 }
 0x6bd   :  { %v5532_v57 = vadd.f32 %v5531_v31, %v5530_v21 }
 0x6be   :  { %v5539_v0 = vadd.f32 %v5538_v9, %v5537_v18 }
 0x6bf   :  { %v5533_v60 = vrot.slane %v5532_v57, 1 }
 0x6c0   :  { %v5540_v36 = vrot.slane %v5539_v0, 1 }
 0x6c1   :  { %v5534_v14 = vadd.f32 %v5533_v60, %v5532_v57 }
 0x6c2   :  { %v5541_v25 = vadd.f32 %v5540_v36, %v5539_v0 }
 0x6c3   :  { %v5546_v54 = vmul.f32 0.0625, %v5534_v14  ;;  %v5669_v14 = vrot.slane %v5662_v62, %v22018_v11 }
 0x6c4   :  { %v5547_v17 = vmul.f32 0.0625, %v5541_v25 }
 0x6c5   :  { %v22281_v51 = vsub.f32 %v18291_v3, %v5546_v54  ;;  %v22283_v58 = vsub.f32 %v18293_v7, %v5546_v54  ;;  %v5497_v54 = vld [vmem:[#allocation7 + $0xc] sm:$0x3f] }
 0x6c6   :  { %v5553_v30 = vsub.f32 %v18292_v6, %v5547_v17  ;;  %v5559_v15 = vsub.f32 %v18294_v38, %v5547_v17  ;;  %v5499_v17 = vld [vmem:[#allocation8 + $0xc] sm:$0x3f] }
 0x6c7   :  { %v5564_v55 = vmul.f32 %v22281_v51, %v22281_v51  ;;  %v5570_v34 = vmul.f32 %v22283_v58, %v22283_v58  ;;  %v5727_v2 = vrot.slane %v5499_v17, %v21895_v27  ;;  %v5739_v61 = vrot.slane %v5499_v17, %v21898_v28 }
 0x6c8   :  { %v5565_v35 = vmul.f32 %v5553_v30, %v5553_v30  ;;  %v5571_v59 = vmul.f32 %v5559_v15, %v5559_v15 }
 0x6c9   :  { %v5600_v52 = vadd.f32 %v5570_v34, %v5564_v55 }
 0x6ca   :  { %v5607_v26 = vadd.f32 %v5571_v59, %v5565_v35  ;;  %v5747_v35 = vrot.slane %v5499_v17, %v21979_v50  ;;  %v5731_v59 = vrot.slane %v5499_v17, %v21901_v29 }
 0x6cb   :  { %v5601_v20 = vrot.slane %v5600_v52, 4 }
 0x6cc   :  { %v5608_v10 = vrot.slane %v5607_v26, 4 }
 0x6cd   :  { %v5602_v43 = vadd.f32 %v5601_v20, %v5600_v52 }
 0x6ce   :  { %v5609_v32 = vadd.f32 %v5608_v10, %v5607_v26 }
 0x6cf   :  { %v5603_v3 = vrot.slane %v5602_v43, 2 }
 0x6d0   :  { %v5610_v53 = vrot.slane %v5609_v32, 2 }
 0x6d1   :  { %v5604_v7 = vadd.f32 %v5603_v3, %v5602_v43 }
 0x6d2   :  { %v5611_v24 = vadd.f32 %v5610_v53, %v5609_v32 }
 0x6d3   :  { %v5605_v6 = vrot.slane %v5604_v7, 1 }
 0x6d4   :  { %v5612_v38 = vrot.slane %v5611_v24, 1 }
 0x6d5   :  { %v5606_v16 = vadd.f32 %v5605_v6, %v5604_v7 }
 0x6d6   :  { %v5613_v33 = vadd.f32 %v5612_v38, %v5611_v24 }
 0x6d7   :  { %v5618_v21 = vmul.f32 0.0625, %v5606_v16 }
 0x6d8   :  { %v5619_v18 = vmul.f32 0.0625, %v5613_v33 }
 0x6d9   :  { %v5624_v31 = vadd.f32 1e-05, %v5618_v21 }
 0x6da   :  { %v5625_v9 = vadd.f32 1e-05, %v5619_v18 }
 0x6db   :  { %21230 = vrsqrt.f32 %v5624_v31 }
 0x6dc   :  { %21232 = vrsqrt.f32 %v5625_v9 }
 0x6e5   :  { %v21231_v57 = vpop.eup %21230 }
 0x6e6   :  { %v21233_v0 = vpop.eup %21232 }
 0x6e7   :  { %v5640_v60 = vcombine.low %v21231_v57, %v21233_v0 }
 0x6e9   :  { %v5661_v36 = vrot.slane %v5640_v60, %v22018_v11 }
 0x6eb   :  { %v5676_v25 = vrot.slane %v5661_v36, %v22018_v11  ;;  %v5743_v36 = vrot.slane %v5499_v17, %v21976_v47 }
 0x6ed   :  { %v5677_v55 = vcombine.low %v5669_v14, %v5676_v25 }
 0x6ef   :  { %v5679_v34 = vmul.f32 %v5677_v55, %v5497_v54 }
 0x6f1   :  { %v5704_v52 = vrot.slane %v5679_v34, %v21979_v50  ;;  %v5688_v26 = vrot.slane %v5679_v34, %v21901_v29  ;;  %v5684_v20 = vrot.slane %v5679_v34, %v21895_v27  ;;  %v5696_v10 = vrot.slane %v5679_v34, %v21898_v28 }
 0x6f2   :  { %v5692_v62 = vrot.slane %v5679_v34, %v21890_v23 }
 0x6f3   :  { %v5716_v43 = vmul.f32 %v5704_v52, %v5553_v30  ;;  %v5722_v32 = vmul.f32 %v5704_v52, %v5559_v15  ;;  %v5712_v3 = vmul.f32 %v5688_v26, %v22245_v42  ;;  %v5718_v53 = vmul.f32 %v5688_v26, %v22247_v13 }
 0x6f4   :  { %v5711_v7 = vmul.f32 %v5684_v20, %v22237_v19  ;;  %v5717_v24 = vmul.f32 %v5684_v20, %v22239_v12  ;;  %v5714_v6 = vmul.f32 %v5696_v10, %v22253_v22  ;;  %v5720_v38 = vmul.f32 %v5696_v10, %v22255_v56 }
 0x6f5   :  { %v22310_v16 = vadd.f32 %v5747_v35, %v5722_v32  ;;  %v5755_v33 = vadd.f32 %v5731_v59, %v5712_v3  ;;  %v5761_v21 = vadd.f32 %v5731_v59, %v5718_v53  ;;  %v5735_v15 = vrot.slane %v5499_v17, %v21890_v23 }
 0x6f6   :  { %v5754_v18 = vadd.f32 %v5727_v2, %v5711_v7  ;;  %v5760_v31 = vadd.f32 %v5727_v2, %v5717_v24  ;;  %v5757_v30 = vadd.f32 %v5739_v61, %v5714_v6  ;;  %v5763_v9 = vadd.f32 %v5739_v61, %v5720_v38 }
 0x6f7   :  { %v5789_v42 = vmul.f32 0.70710677, %v22310_v16  ;;  %v5779_v13 = vmul.f32 0.70710677, %v5755_v33  ;;  %v5713_v19 = vmul.f32 %v5692_v62, %v22241_v8  ;;  %v5785_v12 = vmul.f32 0.70710677, %v5761_v21 }
 0x6f8   :  { %v5778_v57 = vmul.f32 0.70710677, %v5754_v18  ;;  %v5700_v22 = vrot.slane %v5679_v34, %v21976_v47  ;;  %v5784_v56 = vmul.f32 0.70710677, %v5760_v31  ;;  %v5781_v0 = vmul.f32 0.70710677, %v5757_v30 }
 0x6f9   :  { %21234 = verf.f32 %v5789_v42  ;;  %v5719_v60 = vmul.f32 %v5692_v62, %v22243_v48  ;;  %v5787_v14 = vmul.f32 0.70710677, %v5763_v9  ;;  %v5756_v25 = vadd.f32 %v5735_v15, %v5713_v19 }
 0x6fa   :  { %21236 = verf.f32 %v5779_v13  ;;  %v22318_v54 = vadd.f32 %v5747_v35, %v5716_v43  ;;  %v5715_v8 = vmul.f32 %v5700_v22, %v22281_v51  ;;  %v5721_v59 = vmul.f32 %v5700_v22, %v22283_v58 }
 0x6fb   :  { %21238 = verf.f32 %v5785_v12  ;;  %v5762_v55 = vadd.f32 %v5735_v15, %v5719_v60  ;;  %v5780_v34 = vmul.f32 0.70710677, %v5756_v25  ;;  %v5767_v2 = vmul.f32 0.5, %v5755_v33  ;;  %v19470_v33 = vld [vmem:[#allocation10 + $0x1500] ss:$24 sps:$4 sm:$0xff]  }
 0x6fc   :  { %21240 = verf.f32 %v5778_v57  ;;  %v5783_v26 = vmul.f32 0.70710677, %v22318_v54  ;;  %v5758_v48 = vadd.f32 %v5743_v36, %v5715_v8  ;;  %v22323_v17 = vadd.f32 %v5743_v36, %v5721_v59  ;;  %v19473_v8 = vld [vmem:[#allocation10 + $0x1508] ss:$24 sps:$4 sm:$0xff]  }
 0x6fd   :  { %21242 = verf.f32 %v5784_v56  ;;  %v5786_v52 = vmul.f32 0.70710677, %v5762_v55  ;;  %v5773_v43 = vmul.f32 0.5, %v5761_v21  ;;  %v5766_v7 = vmul.f32 0.5, %v5754_v18 }
 0x6fe   :  { %21244 = verf.f32 %v5781_v0  ;;  %v5782_v35 = vmul.f32 0.70710677, %v5758_v48  ;;  %v5788_v20 = vmul.f32 0.70710677, %v22323_v17  ;;  %v5772_v15 = vmul.f32 0.5, %v5760_v31 }
 0x6ff   :  { %21246 = verf.f32 %v5787_v14  ;;  %v5769_v12 = vmul.f32 0.5, %v5757_v30  ;;  %v5775_v21 = vmul.f32 0.5, %v5763_v9  ;;  %v5768_v59 = vmul.f32 0.5, %v5756_v25  ;;  %v19478_v9 = vld [vmem:[#allocation10 + $0x1534] ss:$24 sps:$4 sm:$0xff]  }
 0x700   :  { %21248 = verf.f32 %v5780_v34  ;;  %v5777_v31 = vmul.f32 0.5, %v22310_v16 }
 0x701   :  { %21250 = verf.f32 %v5786_v52 }
 0x702   :  { %21252 = verf.f32 %v5783_v26 }
 0x703   :  { %v21235_v10 = vpop.eup %21234  ;;  %21254 = verf.f32 %v5782_v35  ;;  %v5774_v35 = vmul.f32 0.5, %v5762_v55  ;;  %v19476_v55 = vld [vmem:[#allocation10 + $0x1530] ss:$24 sps:$4 sm:$0xff]  }
 0x704   :  { %v21237_v51 = vpop.eup %21236  ;;  %21256 = verf.f32 %v5788_v20  ;;  %v5813_v22 = vadd.f32 1.0, %v21235_v10 }
 0x705   :  { %v21239_v58 = vpop.eup %21238  ;;  %v5803_v61 = vadd.f32 1.0, %v21237_v51  ;;  %v19481_v51 = vld [vmem:[#allocation10 + $0x153c] ss:$24 sps:$4 sm:$0xff]  }
 0x706   :  { %v21241_v62 = vpop.eup %21240  ;;  %v5809_v32 = vadd.f32 1.0, %v21239_v58 }
 0x707   :  { %v21243_v3 = vpop.eup %21242  ;;  %v5815_v53 = vmul.f32 %v5803_v61, %v5767_v2  ;;  %v5802_v24 = vadd.f32 1.0, %v21241_v62  ;;  %v5771_v2 = vmul.f32 0.5, %v22318_v54  ;;  %v5825_v61 = vmul.f32 %v5813_v22, %v5777_v31  ;;  %v19493_v22 = vld [vmem:[#allocation10 + $0x159c] ss:$24 sps:$4 sm:$0xff]  }
 0x708   :  { %v21245_v6 = vpop.eup %21244  ;;  %v5821_v38 = vmul.f32 %v5809_v32, %v5773_v43  ;;  %v5808_v42 = vadd.f32 1.0, %v21243_v3  ;;  %v5770_v32 = vmul.f32 0.5, %v5758_v48  ;;  %v19508_v31 = vld [vmem:[#allocation10 + $0x1624] ss:$24 sps:$4 sm:$0xff]  }
 0x709   :  { %v21247_v13 = vpop.eup %21246  ;;  %v5814_v19 = vmul.f32 %v5802_v24, %v5766_v7  ;;  %v5805_v57 = vadd.f32 1.0, %v21245_v6  ;;  %v5776_v24 = vmul.f32 0.5, %v22323_v17  ;;  %v19484_v6 = vld [vmem:[#allocation10 + $0x1564] ss:$24 sps:$4 sm:$0xff]  }
 0x70a   :  { %v21249_v56 = vpop.eup %21248  ;;  %v22326_v0 = vpack.c.bf16 %v5821_v38, %v5815_v53  ;;  %v5820_v60 = vmul.f32 %v5808_v42, %v5772_v15  ;;  %v5811_v36 = vadd.f32 1.0, %v21247_v13  ;;  %v19479_v53 = vld [vmem:[#allocation10 + $0x1538] ss:$24 sps:$4 sm:$0xff]   ;;  %v19487_v38 = vld [vmem:[#allocation10 + $0x156c] ss:$24 sps:$4 sm:$0xff]  }
 0x70b   :  { %v21251_v14 = vpop.eup %21250  ;;  %v5817_v18 = vmul.f32 %v5805_v57, %v5769_v12  ;;  %v5804_v34 = vadd.f32 1.0, %v21249_v56  ;;  %v19485_v12 = vld [vmem:[#allocation10 + $0x1568] ss:$24 sps:$4 sm:$0xff]   ;;  %v19490_v57 = vld [vmem:[#allocation10 + $0x1594] ss:$24 sps:$4 sm:$0xff]  }
 0x70c   :  { %v21253_v52 = vpop.eup %21252  ;;  %7626 = vmatprep.mubr.bf16.mxu1 %v22326_v0  ;;  %7755 = vmatprep.mubr.bf16.mxu0 %v22326_v0  ;;  %v22331_v30 = vpack.c.bf16 %v5820_v60, %v5814_v19  ;;  %v5823_v26 = vmul.f32 %v5811_v36, %v5775_v21  ;;  %v5810_v20 = vadd.f32 1.0, %v21251_v14  ;;  %v19482_v19 = vld [vmem:[#allocation10 + $0x1560] ss:$24 sps:$4 sm:$0xff]   ;;  %v19488_v56 = vld [vmem:[#allocation10 + $0x1590] ss:$24 sps:$4 sm:$0xff]  }
 0x70d   :  { %v21255_v10 = vpop.eup %21254  ;;  %v5816_v58 = vmul.f32 %v5804_v34, %v5768_v59  ;;  %v5807_v25 = vadd.f32 1.0, %v21253_v52  ;;  %v19496_v60 = vld [vmem:[#allocation10 + $0x15c4] ss:$24 sps:$4 sm:$0xff]   ;;  %v19494_v36 = vld [vmem:[#allocation10 + $0x15c0] ss:$24 sps:$4 sm:$0xff]  }
 0x70e   :  { %v21257_v62 = vpop.eup %21256  ;;  %7627 = vmatmul.mubr.bf16.vlgmr.msra.gmra.mrb[16].mxu1 %v22331_v30  ;;  %7756 = vmatmul.mubr.bf16.vlgmr.msra.gmra.mrb[20].mxu0 %v22331_v30  ;;  %v22336_v16 = vpack.c.bf16 %v5823_v26, %v5817_v18  ;;  %v5822_v43 = vmul.f32 %v5810_v20, %v5774_v35  ;;  %v5806_v3 = vadd.f32 1.0, %v21255_v10  ;;  %v19499_v21 = vld [vmem:[#allocation10 + $0x15cc] ss:$24 sps:$4 sm:$0xff]   ;;  %v19497_v14 = vld [vmem:[#allocation10 + $0x15c8] ss:$24 sps:$4 sm:$0xff]  }
 0x70f   :  { %7638 = vmatpush1.bf16.msra.mxu1 %v19470_v33  ;;  %7767 = vmatpush1.bf16.msra.mxu0 %v19473_v8  ;;  %v5819_v7 = vmul.f32 %v5807_v25, %v5771_v2  ;;  %v5812_v54 = vadd.f32 1.0, %v21257_v62  ;;  %v19491_v33 = vld [vmem:[#allocation10 + $0x1598] ss:$24 sps:$4 sm:$0xff]   ;;  %v19502_v8 = vld [vmem:[#allocation10 + $0x15f4] ss:$24 sps:$4 sm:$0xff]  }
 0x710   :  { %7669 = vmatprep.mubr.bf16.mxu1 %v22336_v16  ;;  %7798 = vmatprep.mubr.bf16.mxu0 %v22336_v16  ;;  %v22341_v15 = vpack.c.bf16 %v5822_v43, %v5816_v58  ;;  %v5818_v42 = vmul.f32 %v5806_v3, %v5770_v32  ;;  %v19505_v18 = vld [vmem:[#allocation10 + $0x15fc] ss:$24 sps:$4 sm:$0xff]   ;;  %v19500_v59 = vld [vmem:[#allocation10 + $0x15f0] ss:$24 sps:$4 sm:$0xff]   ;;  %v19511_v52 = vld [vmem:[#allocation10 + $0x162c] ss:$24 sps:$4 sm:$0xff]  }
 0x711   :  { %7639 = vmatprep.subr.bf16.mxu1 %v19478_v9  ;;  %7768 = vmatprep.subr.bf16.mxu0 %v19481_v51  ;;  %v22343_v48 = vpack.c.bf16 %v5825_v61, %v5819_v7  ;;  %v5824_v13 = vmul.f32 %v5812_v54, %v5776_v24  ;;  %v19503_v34 = vld [vmem:[#allocation10 + $0x15f8] ss:$24 sps:$4 sm:$0xff]   ;;  %v19509_v35 = vld [vmem:[#allocation10 + $0x1628] ss:$24 sps:$4 sm:$0xff]   ;;  %v19514_v20 = vld [vmem:[#allocation10 + $0x1654] ss:$24 sps:$4 sm:$0xff]  }
 0x712   :  { %v19506_v26 = vld [vmem:[#allocation10 + $0x1620] ss:$24 sps:$4 sm:$0xff]   ;;  %v19517_v10 = vld [vmem:[#allocation10 + $0x165c] ss:$24 sps:$4 sm:$0xff]   ;;  %v19512_v9 = vld [vmem:[#allocation10 + $0x1650] ss:$24 sps:$4 sm:$0xff]  }
 0x713   :  { %7640 = vmatpush1.bf16.msra.mxu1 %v19476_v55  ;;  %7769 = vmatpush1.bf16.msra.mxu0 %v19479_v53  ;;  %v22345_v17 = vpack.c.bf16 %v5824_v13, %v5818_v42  ;;  %v19515_v51 = vld [vmem:[#allocation10 + $0x1658] ss:$24 sps:$4 sm:$0xff]   ;;  %v19520_v58 = vld [vmem:[#allocation10 + $0x1684] ss:$24 sps:$4 sm:$0xff]   ;;  %v19521_v61 = vld [vmem:[#allocation10 + $0x1688] ss:$24 sps:$4 sm:$0xff]  }
 0x714   :  { %7641 = vmatprep.subr.bf16.mxu1 %v19484_v6  ;;  %7770 = vmatprep.subr.bf16.mxu0 %v19487_v38  ;;  %v19523_v2 = vld [vmem:[#allocation10 + $0x168c] ss:$24 sps:$4 sm:$0xff]   ;;  %v19518_v25 = vld [vmem:[#allocation10 + $0x1680] ss:$24 sps:$4 sm:$0xff]   ;;  %v19529_v43 = vld [vmem:[#allocation10 + $0x16bc] ss:$24 sps:$4 sm:$0xff]  }
 0x715   :  { %v19526_v62 = vld [vmem:[#allocation10 + $0x16b4] ss:$24 sps:$4 sm:$0xff]   ;;  %v19524_v32 = vld [vmem:[#allocation10 + $0x16b0] ss:$24 sps:$4 sm:$0xff]   ;;  %v19532_v55 = vld [vmem:[#allocation10 + $0x16e4] ss:$24 sps:$4 sm:$0xff]  }
 0x716   :  { %v19527_v3 = vld [vmem:[#allocation10 + $0x16b8] ss:$24 sps:$4 sm:$0xff]   ;;  %v19535_v53 = vld [vmem:[#allocation10 + $0x16ec] ss:$24 sps:$4 sm:$0xff]   ;;  %v19533_v24 = vld [vmem:[#allocation10 + $0x16e8] ss:$24 sps:$4 sm:$0xff]  }
 0x717   :  { %7642 = vmatpush1.bf16.msra.mxu1 %v19482_v19  ;;  %7771 = vmatpush1.bf16.msra.mxu0 %v19485_v12  ;;  %v19530_v7 = vld [vmem:[#allocation10 + $0x16e0] ss:$24 sps:$4 sm:$0xff]   ;;  %v19538_v54 = vld [vmem:[#allocation10 + $0x1714] ss:$24 sps:$4 sm:$0xff]   ;;  %v19536_v38 = vld [vmem:[#allocation10 + $0x1710] ss:$24 sps:$4 sm:$0xff]  }
 0x718   :  { %7643 = vmatprep.subr.bf16.mxu1 %v19490_v57  ;;  %7772 = vmatprep.subr.bf16.mxu0 %v19493_v22  ;;  %v19541_v6 = vld [vmem:[#allocation10 + $0x171c] ss:$24 sps:$4 sm:$0xff]   ;;  %v19539_v42 = vld [vmem:[#allocation10 + $0x1718] ss:$24 sps:$4 sm:$0xff]   ;;  %v19547_v19 = vld [vmem:[#allocation10 + $0x174c] ss:$24 sps:$4 sm:$0xff]  }
 0x719   :  { %v19544_v13 = vld [vmem:[#allocation10 + $0x1744] ss:$24 sps:$4 sm:$0xff]   ;;  %v19542_v12 = vld [vmem:[#allocation10 + $0x1740] ss:$24 sps:$4 sm:$0xff]   ;;  %v19550_v22 = vld [vmem:[#allocation10 + $0x1774] ss:$24 sps:$4 sm:$0xff]  }
 0x71a   :  { %v19545_v57 = vld [vmem:[#allocation10 + $0x1748] ss:$24 sps:$4 sm:$0xff]  }
 0x71b   :  { %7644 = vmatpush1.bf16.msra.mxu1 %v19488_v56  ;;  %7773 = vmatpush1.bf16.msra.mxu0 %v19491_v33  ;;  %v19553_v56 = vld [vmem:[#allocation10 + $0x177c] ss:$24 sps:$4 sm:$0xff]   ;;  %v19548_v33 = vld [vmem:[#allocation10 + $0x1770] ss:$24 sps:$4 sm:$0xff]  }
 0x71c   :  { %7645 = vmatprep.subr.bf16.mxu1 %v19496_v60  ;;  %7774 = vmatprep.subr.bf16.mxu0 %v19499_v21  ;;  %v19551_v60 = vld [vmem:[#allocation10 + $0x1778] ss:$24 sps:$4 sm:$0xff]   ;;  %v19556_v21 = vld [vmem:[#allocation10 + $0x17a4] ss:$24 sps:$4 sm:$0xff]  }
 0x71f   :  { %7646 = vmatpush1.bf16.msra.mxu1 %v19494_v36  ;;  %7775 = vmatpush1.bf16.msra.mxu0 %v19497_v14  ;;  %v19559_v36 = vld [vmem:[#allocation10 + $0x17ac] ss:$24 sps:$4 sm:$0xff]   ;;  %v19554_v14 = vld [vmem:[#allocation10 + $0x17a0] ss:$24 sps:$4 sm:$0xff]  }
 0x720   :  { %7647 = vmatprep.subr.bf16.mxu1 %v19502_v8  ;;  %7776 = vmatprep.subr.bf16.mxu0 %v19505_v18  ;;  %v19557_v8 = vld [vmem:[#allocation10 + $0x17a8] ss:$24 sps:$4 sm:$0xff]   ;;  %v19562_v18 = vld [vmem:[#allocation10 + $0x17d4] ss:$24 sps:$4 sm:$0xff]  }
 0x723   :  { %7648 = vmatpush1.bf16.msra.mxu1 %v19500_v59  ;;  %7777 = vmatpush1.bf16.msra.mxu0 %v19503_v34  ;;  %v19565_v59 = vld [vmem:[#allocation10 + $0x17dc] ss:$24 sps:$4 sm:$0xff]   ;;  %v19560_v34 = vld [vmem:[#allocation10 + $0x17d0] ss:$24 sps:$4 sm:$0xff]  }
 0x724   :  { %7649 = vmatprep.subr.bf16.mxu1 %v19508_v31  ;;  %7778 = vmatprep.subr.bf16.mxu0 %v19511_v52  ;;  %v19563_v31 = vld [vmem:[#allocation10 + $0x17d8] ss:$24 sps:$4 sm:$0xff]   ;;  %v19568_v52 = vld [vmem:[#allocation10 + $0x1804] ss:$24 sps:$4 sm:$0xff]  }
 0x727   :  { %7650 = vmatpush1.bf16.msra.mxu1 %v19506_v26  ;;  %7779 = vmatpush1.bf16.msra.mxu0 %v19509_v35  ;;  %v19571_v26 = vld [vmem:[#allocation10 + $0x180c] ss:$24 sps:$4 sm:$0xff]   ;;  %v19566_v35 = vld [vmem:[#allocation10 + $0x1800] ss:$24 sps:$4 sm:$0xff]  }
 0x728   :  { %7651 = vmatprep.subr.bf16.mxu1 %v19514_v20  ;;  %7780 = vmatprep.subr.bf16.mxu0 %v19517_v10  ;;  %v19569_v20 = vld [vmem:[#allocation10 + $0x1808] ss:$24 sps:$4 sm:$0xff]   ;;  %v19574_v10 = vld [vmem:[#allocation10 + $0x1834] ss:$24 sps:$4 sm:$0xff]  }
 0x72b   :  { %7652 = vmatpush1.bf16.msra.mxu1 %v19512_v9  ;;  %7781 = vmatpush1.bf16.msra.mxu0 %v19515_v51  ;;  %v19577_v9 = vld [vmem:[#allocation10 + $0x183c] ss:$24 sps:$4 sm:$0xff]   ;;  %v19572_v51 = vld [vmem:[#allocation10 + $0x1830] ss:$24 sps:$4 sm:$0xff]  }
 0x72c   :  { %7653 = vmatprep.subr.bf16.mxu1 %v19520_v58  ;;  %7782 = vmatprep.subr.bf16.mxu0 %v19523_v2  ;;  %v19575_v58 = vld [vmem:[#allocation10 + $0x1838] ss:$24 sps:$4 sm:$0xff]   ;;  %v19580_v2 = vld [vmem:[#allocation10 + $0x1864] ss:$24 sps:$4 sm:$0xff]  }
 0x72f   :  { %7654 = vmatpush1.bf16.msra.mxu1 %v19518_v25  ;;  %7783 = vmatpush1.bf16.msra.mxu0 %v19521_v61  ;;  %v19583_v25 = vld [vmem:[#allocation10 + $0x186c] ss:$24 sps:$4 sm:$0xff]   ;;  %v19578_v61 = vld [vmem:[#allocation10 + $0x1860] ss:$24 sps:$4 sm:$0xff]  }
 0x730   :  { %7655 = vmatprep.subr.bf16.mxu1 %v19526_v62  ;;  %7784 = vmatprep.subr.bf16.mxu0 %v19529_v43  ;;  %v19581_v62 = vld [vmem:[#allocation10 + $0x1868] ss:$24 sps:$4 sm:$0xff]   ;;  %v19586_v43 = vld [vmem:[#allocation10 + $0x1894] ss:$24 sps:$4 sm:$0xff]  }
 0x733   :  { %7656 = vmatpush1.bf16.msra.mxu1 %v19524_v32  ;;  %7785 = vmatpush1.bf16.msra.mxu0 %v19527_v3  ;;  %v19589_v32 = vld [vmem:[#allocation10 + $0x189c] ss:$24 sps:$4 sm:$0xff]   ;;  %v19584_v3 = vld [vmem:[#allocation10 + $0x1890] ss:$24 sps:$4 sm:$0xff]  }
 0x734   :  { %7657 = vmatprep.subr.bf16.mxu1 %v19532_v55  ;;  %7786 = vmatprep.subr.bf16.mxu0 %v19535_v53  ;;  %v19587_v55 = vld [vmem:[#allocation10 + $0x1898] ss:$24 sps:$4 sm:$0xff]   ;;  %v19592_v53 = vld [vmem:[#allocation10 + $0x18c4] ss:$24 sps:$4 sm:$0xff]  }
 0x737   :  { %7658 = vmatpush1.bf16.msra.mxu1 %v19530_v7  ;;  %7787 = vmatpush1.bf16.msra.mxu0 %v19533_v24  ;;  %v19595_v7 = vld [vmem:[#allocation10 + $0x18cc] ss:$24 sps:$4 sm:$0xff]   ;;  %v19590_v24 = vld [vmem:[#allocation10 + $0x18c0] ss:$24 sps:$4 sm:$0xff]  }
 0x738   :  { %7659 = vmatprep.subr.bf16.mxu1 %v19538_v54  ;;  %7788 = vmatprep.subr.bf16.mxu0 %v19541_v6  ;;  %v19593_v54 = vld [vmem:[#allocation10 + $0x18c8] ss:$24 sps:$4 sm:$0xff]   ;;  %v19598_v6 = vld [vmem:[#allocation10 + $0x18f4] ss:$24 sps:$4 sm:$0xff]  }
 0x73b   :  { %7660 = vmatpush1.bf16.msra.mxu1 %v19536_v38  ;;  %7789 = vmatpush1.bf16.msra.mxu0 %v19539_v42  ;;  %v19601_v38 = vld [vmem:[#allocation10 + $0x18fc] ss:$24 sps:$4 sm:$0xff]   ;;  %v19596_v42 = vld [vmem:[#allocation10 + $0x18f0] ss:$24 sps:$4 sm:$0xff]  }
 0x73c   :  { %7661 = vmatprep.subr.bf16.mxu1 %v19544_v13  ;;  %7790 = vmatprep.subr.bf16.mxu0 %v19547_v19  ;;  %v19599_v13 = vld [vmem:[#allocation10 + $0x18f8] ss:$24 sps:$4 sm:$0xff]   ;;  %v19604_v19 = vld [vmem:[#allocation10 + $0x1924] ss:$24 sps:$4 sm:$0xff]  }
 0x73f   :  { %7662 = vmatpush1.bf16.msra.mxu1 %v19542_v12  ;;  %7791 = vmatpush1.bf16.msra.mxu0 %v19545_v57  ;;  %v19607_v12 = vld [vmem:[#allocation10 + $0x192c] ss:$24 sps:$4 sm:$0xff]   ;;  %v19602_v57 = vld [vmem:[#allocation10 + $0x1920] ss:$24 sps:$4 sm:$0xff]  }
 0x740   :  { %7663 = vmatprep.subr.bf16.mxu1 %v19550_v22  ;;  %7792 = vmatprep.subr.bf16.mxu0 %v19553_v56  ;;  %v19605_v22 = vld [vmem:[#allocation10 + $0x1928] ss:$24 sps:$4 sm:$0xff]   ;;  %v19610_v56 = vld [vmem:[#allocation10 + $0x1954] ss:$24 sps:$4 sm:$0xff]  }
 0x743   :  { %7664 = vmatpush1.bf16.msra.mxu1 %v19548_v33  ;;  %7793 = vmatpush1.bf16.msra.mxu0 %v19551_v60  ;;  %v19613_v33 = vld [vmem:[#allocation10 + $0x195c] ss:$24 sps:$4 sm:$0xff]   ;;  %v19608_v60 = vld [vmem:[#allocation10 + $0x1950] ss:$24 sps:$4 sm:$0xff]  }
 0x744   :  { %7665 = vmatprep.subr.bf16.mxu1 %v19556_v21  ;;  %7794 = vmatprep.subr.bf16.mxu0 %v19559_v36  ;;  %v19611_v21 = vld [vmem:[#allocation10 + $0x1958] ss:$24 sps:$4 sm:$0xff]   ;;  %v19616_v36 = vld [vmem:[#allocation10 + $0x1984] ss:$24 sps:$4 sm:$0xff]  }
 0x747   :  { %7666 = vmatpush1.bf16.msra.mxu1 %v19554_v14  ;;  %7795 = vmatpush1.bf16.msra.mxu0 %v19557_v8  ;;  %v19619_v14 = vld [vmem:[#allocation10 + $0x198c] ss:$24 sps:$4 sm:$0xff]   ;;  %v19614_v8 = vld [vmem:[#allocation10 + $0x1980] ss:$24 sps:$4 sm:$0xff]  }
 0x748   :  { %7667 = vmatprep.subr.bf16.mxu1 %v19562_v18  ;;  %7796 = vmatprep.subr.bf16.mxu0 %v19565_v59  ;;  %v19617_v18 = vld [vmem:[#allocation10 + $0x1988] ss:$24 sps:$4 sm:$0xff]   ;;  %v19622_v59 = vld [vmem:[#allocation10 + $0x19b4] ss:$24 sps:$4 sm:$0xff]  }
 0x74b   :  { %7668 = vmatpush1.bf16.msra.mxu1 %v19560_v34  ;;  %7797 = vmatpush1.bf16.msra.mxu0 %v19563_v31  ;;  %v19625_v34 = vld [vmem:[#allocation10 + $0x19bc] ss:$24 sps:$4 sm:$0xff]   ;;  %v19620_v31 = vld [vmem:[#allocation10 + $0x19b0] ss:$24 sps:$4 sm:$0xff]  }
 0x74c   :  { %7680 = vmatprep.subr.bf16.mxu1 %v19568_v52  ;;  %7809 = vmatprep.subr.bf16.mxu0 %v19571_v26  ;;  %v19623_v52 = vld [vmem:[#allocation10 + $0x19b8] ss:$24 sps:$4 sm:$0xff]   ;;  %v19628_v26 = vld [vmem:[#allocation10 + $0x19e4] ss:$24 sps:$4 sm:$0xff]  }
 0x74e   :  { %7670 = vmatmul.mubr.bf16.vlgmr.msra.gmra.mrb[16].mxu1 %v22341_v15  ;;  %7799 = vmatmul.mubr.bf16.vlgmr.msra.gmra.mrb[20].mxu0 %v22341_v15 }
 0x74f   :  { %7681 = vmatpush1.bf16.msra.mxu1 %v19566_v35  ;;  %7712 = vmatprep.mubr.bf16.mxu1 %v22343_v48  ;;  %v19631_v35 = vld [vmem:[#allocation10 + $0x19ec] ss:$24 sps:$4 sm:$0xff]  }
 0x750   :  { %7810 = vmatpush1.bf16.msra.mxu0 %v19569_v20  ;;  %7841 = vmatprep.mubr.bf16.mxu0 %v22343_v48  ;;  %v19626_v20 = vld [vmem:[#allocation10 + $0x19e0] ss:$24 sps:$4 sm:$0xff]  }
 0x751   :  { %7682 = vmatprep.subr.bf16.mxu1 %v19574_v10  ;;  %7811 = vmatprep.subr.bf16.mxu0 %v19577_v9  ;;  %v19629_v10 = vld [vmem:[#allocation10 + $0x19e8] ss:$24 sps:$4 sm:$0xff]   ;;  %v19634_v9 = vld [vmem:[#allocation10 + $0x1a14] ss:$24 sps:$4 sm:$0xff]  }
 0x753   :  { %7683 = vmatpush1.bf16.msra.mxu1 %v19572_v51  ;;  %v19637_v51 = vld [vmem:[#allocation10 + $0x1a1c] ss:$24 sps:$4 sm:$0xff]  }
 0x754   :  { %7812 = vmatpush1.bf16.msra.mxu0 %v19575_v58  ;;  %7684 = vmatprep.subr.bf16.mxu1 %v19580_v2  ;;  %v19632_v58 = vld [vmem:[#allocation10 + $0x1a10] ss:$24 sps:$4 sm:$0xff]  }
 0x755   :  { %7813 = vmatprep.subr.bf16.mxu0 %v19583_v25  ;;  %v19635_v2 = vld [vmem:[#allocation10 + $0x1a18] ss:$24 sps:$4 sm:$0xff]   ;;  %v19640_v25 = vld [vmem:[#allocation10 + $0x1a44] ss:$24 sps:$4 sm:$0xff]  }
 0x757   :  { %7685 = vmatpush1.bf16.msra.mxu1 %v19578_v61  ;;  %v19643_v61 = vld [vmem:[#allocation10 + $0x1a4c] ss:$24 sps:$4 sm:$0xff]  }
 0x758   :  { %7814 = vmatpush1.bf16.msra.mxu0 %v19581_v62  ;;  %7686 = vmatprep.subr.bf16.mxu1 %v19586_v43  ;;  %v19638_v62 = vld [vmem:[#allocation10 + $0x1a40] ss:$24 sps:$4 sm:$0xff]  }
 0x759   :  { %7815 = vmatprep.subr.bf16.mxu0 %v19589_v32  ;;  %v19641_v43 = vld [vmem:[#allocation10 + $0x1a48] ss:$24 sps:$4 sm:$0xff]   ;;  %v19646_v32 = vld [vmem:[#allocation10 + $0x1a74] ss:$24 sps:$4 sm:$0xff]  }
 0x75b   :  { %7687 = vmatpush1.bf16.msra.mxu1 %v19584_v3  ;;  %v19649_v3 = vld [vmem:[#allocation10 + $0x1a7c] ss:$24 sps:$4 sm:$0xff]  }
 0x75c   :  { %7816 = vmatpush1.bf16.msra.mxu0 %v19587_v55  ;;  %7688 = vmatprep.subr.bf16.mxu1 %v19592_v53  ;;  %v19644_v55 = vld [vmem:[#allocation10 + $0x1a70] ss:$24 sps:$4 sm:$0xff]  }
 0x75d   :  { %7817 = vmatprep.subr.bf16.mxu0 %v19595_v7  ;;  %v19647_v53 = vld [vmem:[#allocation10 + $0x1a78] ss:$24 sps:$4 sm:$0xff]   ;;  %v19652_v7 = vld [vmem:[#allocation10 + $0x1aa4] ss:$24 sps:$4 sm:$0xff]  }
 0x75f   :  { %7689 = vmatpush1.bf16.msra.mxu1 %v19590_v24  ;;  %v19655_v24 = vld [vmem:[#allocation10 + $0x1aac] ss:$24 sps:$4 sm:$0xff]  }
 0x760   :  { %7818 = vmatpush1.bf16.msra.mxu0 %v19593_v54  ;;  %7690 = vmatprep.subr.bf16.mxu1 %v19598_v6  ;;  %v19650_v54 = vld [vmem:[#allocation10 + $0x1aa0] ss:$24 sps:$4 sm:$0xff]  }
 0x761   :  { %7819 = vmatprep.subr.bf16.mxu0 %v19601_v38  ;;  %v19653_v6 = vld [vmem:[#allocation10 + $0x1aa8] ss:$24 sps:$4 sm:$0xff]   ;;  %v19658_v38 = vld [vmem:[#allocation10 + $0x1ad4] ss:$24 sps:$4 sm:$0xff]  }
 0x763   :  { %7691 = vmatpush1.bf16.msra.mxu1 %v19596_v42  ;;  %v19661_v42 = vld [vmem:[#allocation10 + $0x1adc] ss:$24 sps:$4 sm:$0xff]  }
 0x764   :  { %7820 = vmatpush1.bf16.msra.mxu0 %v19599_v13  ;;  %7692 = vmatprep.subr.bf16.mxu1 %v19604_v19  ;;  %v19656_v13 = vld [vmem:[#allocation10 + $0x1ad0] ss:$24 sps:$4 sm:$0xff]  }
 0x765   :  { %7821 = vmatprep.subr.bf16.mxu0 %v19607_v12  ;;  %v19659_v19 = vld [vmem:[#allocation10 + $0x1ad8] ss:$24 sps:$4 sm:$0xff]   ;;  %v19664_v12 = vld [vmem:[#allocation10 + $0x1214] ss:$24 sps:$4 sm:$0xff]  }
 0x767   :  { %7693 = vmatpush1.bf16.msra.mxu1 %v19602_v57  ;;  %v19662_v57 = vld [vmem:[#allocation10 + $0x1210] ss:$24 sps:$4 sm:$0xff]  }
 0x768   :  { %7822 = vmatpush1.bf16.msra.mxu0 %v19605_v22  ;;  %7694 = vmatprep.subr.bf16.mxu1 %v19610_v56  ;;  %v19667_v22 = vld [vmem:[#allocation10 + $0x1244] ss:$24 sps:$4 sm:$0xff]   ;;  %v19665_v56 = vld [vmem:[#allocation10 + $0x1240] ss:$24 sps:$4 sm:$0xff]  }
 0x769   :  { %7823 = vmatprep.subr.bf16.mxu0 %v19613_v33  ;;  %v19670_v33 = vld [vmem:[#allocation10 + $0x1274] ss:$24 sps:$4 sm:$0xff]  }
 0x76b   :  { %7695 = vmatpush1.bf16.msra.mxu1 %v19608_v60  ;;  %v19668_v60 = vld [vmem:[#allocation10 + $0x1270] ss:$24 sps:$4 sm:$0xff]  }
 0x76c   :  { %7824 = vmatpush1.bf16.msra.mxu0 %v19611_v21  ;;  %7696 = vmatprep.subr.bf16.mxu1 %v19616_v36  ;;  %v19673_v21 = vld [vmem:[#allocation10 + $0x12a4] ss:$24 sps:$4 sm:$0xff]   ;;  %v19671_v36 = vld [vmem:[#allocation10 + $0x12a0] ss:$24 sps:$4 sm:$0xff]  }
 0x76d   :  { %7825 = vmatprep.subr.bf16.mxu0 %v19619_v14  ;;  %v19676_v14 = vld [vmem:[#allocation10 + $0x12d4] ss:$24 sps:$4 sm:$0xff]  }
 0x76f   :  { %7697 = vmatpush1.bf16.msra.mxu1 %v19614_v8  ;;  %v19674_v8 = vld [vmem:[#allocation10 + $0x12d0] ss:$24 sps:$4 sm:$0xff]  }
 0x770   :  { %7826 = vmatpush1.bf16.msra.mxu0 %v19617_v18  ;;  %7698 = vmatprep.subr.bf16.mxu1 %v19622_v59  ;;  %v19679_v18 = vld [vmem:[#allocation10 + $0x1304] ss:$24 sps:$4 sm:$0xff]   ;;  %v19677_v59 = vld [vmem:[#allocation10 + $0x1300] ss:$24 sps:$4 sm:$0xff]  }
 0x771   :  { %7827 = vmatprep.subr.bf16.mxu0 %v19625_v34  ;;  %v19682_v34 = vld [vmem:[#allocation10 + $0x1334] ss:$24 sps:$4 sm:$0xff]  }
 0x773   :  { %7699 = vmatpush1.bf16.msra.mxu1 %v19620_v31  ;;  %v19685_v31 = vld [vmem:[#allocation10 + $0x1364] ss:$24 sps:$4 sm:$0xff]  }
 0x774   :  { %7828 = vmatpush1.bf16.msra.mxu0 %v19623_v52  ;;  %7700 = vmatprep.subr.bf16.mxu1 %v19628_v26  ;;  %v19683_v52 = vld [vmem:[#allocation10 + $0x1360] ss:$24 sps:$4 sm:$0xff]   ;;  %v19688_v26 = vld [vmem:[#allocation10 + $0x1394] ss:$24 sps:$4 sm:$0xff]  }
 0x775   :  { %7829 = vmatprep.subr.bf16.mxu0 %v19631_v35  ;;  %v19686_v35 = vld [vmem:[#allocation10 + $0x1390] ss:$24 sps:$4 sm:$0xff]  }
 0x777   :  { %7701 = vmatpush1.bf16.msra.mxu1 %v19626_v20  ;;  %v19691_v20 = vld [vmem:[#allocation10 + $0x13c4] ss:$24 sps:$4 sm:$0xff]  }
 0x778   :  { %7830 = vmatpush1.bf16.msra.mxu0 %v19629_v10  ;;  %7702 = vmatprep.subr.bf16.mxu1 %v19634_v9  ;;  %v19689_v10 = vld [vmem:[#allocation10 + $0x13c0] ss:$24 sps:$4 sm:$0xff]   ;;  %v19694_v9 = vld [vmem:[#allocation10 + $0x13f4] ss:$24 sps:$4 sm:$0xff]  }
 0x779   :  { %7831 = vmatprep.subr.bf16.mxu0 %v19637_v51  ;;  %v19692_v51 = vld [vmem:[#allocation10 + $0x13f0] ss:$24 sps:$4 sm:$0xff]  }
 0x77b   :  { %7703 = vmatpush1.bf16.msra.mxu1 %v19632_v58  ;;  %v19697_v58 = vld [vmem:[#allocation10 + $0x1424] ss:$24 sps:$4 sm:$0xff]  }
 0x77c   :  { %7832 = vmatpush1.bf16.msra.mxu0 %v19635_v2  ;;  %7704 = vmatprep.subr.bf16.mxu1 %v19640_v25  ;;  %v19695_v2 = vld [vmem:[#allocation10 + $0x1420] ss:$24 sps:$4 sm:$0xff]   ;;  %v19700_v25 = vld [vmem:[#allocation10 + $0x1454] ss:$24 sps:$4 sm:$0xff]  }
 0x77d   :  { %7833 = vmatprep.subr.bf16.mxu0 %v19643_v61  ;;  %v19698_v61 = vld [vmem:[#allocation10 + $0x1450] ss:$24 sps:$4 sm:$0xff]  }
 0x77f   :  { %7705 = vmatpush1.bf16.msra.mxu1 %v19638_v62  ;;  %v19703_v62 = vld [vmem:[#allocation10 + $0x1484] ss:$24 sps:$4 sm:$0xff]  }
 0x780   :  { %7834 = vmatpush1.bf16.msra.mxu0 %v19641_v43  ;;  %7706 = vmatprep.subr.bf16.mxu1 %v19646_v32  ;;  %v19701_v43 = vld [vmem:[#allocation10 + $0x1480] ss:$24 sps:$4 sm:$0xff]   ;;  %v19706_v32 = vld [vmem:[#allocation10 + $0x14b4] ss:$24 sps:$4 sm:$0xff]  }
 0x781   :  { %7835 = vmatprep.subr.bf16.mxu0 %v19649_v3  ;;  %v19704_v3 = vld [vmem:[#allocation10 + $0x14b0] ss:$24 sps:$4 sm:$0xff]  }
 0x783   :  { %7707 = vmatpush1.bf16.msra.mxu1 %v19644_v55  ;;  %v19709_v55 = vld [vmem:[#allocation10 + $0x14e4] ss:$24 sps:$4 sm:$0xff]  }
 0x784   :  { %7836 = vmatpush1.bf16.msra.mxu0 %v19647_v53  ;;  %7708 = vmatprep.subr.bf16.mxu1 %v19652_v7  ;;  %v19707_v53 = vld [vmem:[#allocation10 + $0x14e0] ss:$24 sps:$4 sm:$0xff]   ;;  %v19712_v7 = vld [vmem:[#allocation10 + $0x1514] ss:$24 sps:$4 sm:$0xff]  }
 0x785   :  { %7837 = vmatprep.subr.bf16.mxu0 %v19655_v24  ;;  %v19710_v24 = vld [vmem:[#allocation10 + $0x1510] ss:$24 sps:$4 sm:$0xff]  }
 0x787   :  { %7709 = vmatpush1.bf16.msra.mxu1 %v19650_v54  ;;  %v19715_v54 = vld [vmem:[#allocation10 + $0x1544] ss:$24 sps:$4 sm:$0xff]  }
 0x788   :  { %7838 = vmatpush1.bf16.msra.mxu0 %v19653_v6  ;;  %7710 = vmatprep.subr.bf16.mxu1 %v19658_v38  ;;  %v19713_v6 = vld [vmem:[#allocation10 + $0x1540] ss:$24 sps:$4 sm:$0xff]   ;;  %v19718_v38 = vld [vmem:[#allocation10 + $0x1574] ss:$24 sps:$4 sm:$0xff]  }
 0x789   :  { %7839 = vmatprep.subr.bf16.mxu0 %v19661_v42  ;;  %v19716_v42 = vld [vmem:[#allocation10 + $0x1570] ss:$24 sps:$4 sm:$0xff]  }
 0x78b   :  { %7711 = vmatpush1.bf16.msra.mxu1 %v19656_v13  ;;  %v19721_v13 = vld [vmem:[#allocation10 + $0x15a4] ss:$24 sps:$4 sm:$0xff]  }
 0x78c   :  { %7840 = vmatpush1.bf16.msra.mxu0 %v19659_v19  ;;  %7852 = vmatprep.subr.bf16.mxu1 %v19664_v12  ;;  %v19719_v19 = vld [vmem:[#allocation10 + $0x15a0] ss:$24 sps:$4 sm:$0xff]   ;;  %v19724_v12 = vld [vmem:[#allocation10 + $0x15d4] ss:$24 sps:$4 sm:$0xff]  }
 0x78e   :  { %7713 = vmatmul.mubr.bf16.vlgmr.msra.gmra.mrb[16].mxu1 %v22345_v17 }
 0x78f   :  { %7842 = vmatmul.mubr.bf16.vlgmr.msra.gmra.mrb[20].mxu0 %v22345_v17  ;;  %7853 = vmatpush1.bf16.msra.mxu1 %v19662_v57  ;;  %v19722_v57 = vld [vmem:[#allocation10 + $0x15d0] ss:$24 sps:$4 sm:$0xff]  }
 0x790   :  { %7884 = vmatprep.mubr.bf16.mxu1 %v22326_v0  ;;  %7854 = vmatprep.subr.bf16.mxu1 %v19667_v22  ;;  %v19680_v0 = vld [vmem:[#allocation10 + $0x1330] ss:$24 sps:$4 sm:$0xff]   ;;  %v19727_v22 = vld [vmem:[#allocation10 + $0x1604] ss:$24 sps:$4 sm:$0xff]  }
 0x793   :  { %7855 = vmatpush1.bf16.msra.mxu1 %v19665_v56  ;;  %v19730_v56 = vld [vmem:[#allocation10 + $0x1634] ss:$24 sps:$4 sm:$0xff]  }
 0x794   :  { %7856 = vmatprep.subr.bf16.mxu1 %v19670_v33  ;;  %v19733_v33 = vld [vmem:[#allocation10 + $0x1664] ss:$24 sps:$4 sm:$0xff]  }
 0x797   :  { %7857 = vmatpush1.bf16.msra.mxu1 %v19668_v60  ;;  %v19731_v60 = vld [vmem:[#allocation10 + $0x1660] ss:$24 sps:$4 sm:$0xff]  }
 0x798   :  { %7858 = vmatprep.subr.bf16.mxu1 %v19673_v21  ;;  %v19736_v21 = vld [vmem:[#allocation10 + $0x1694] ss:$24 sps:$4 sm:$0xff]  }
 0x79b   :  { %7859 = vmatpush1.bf16.msra.mxu1 %v19671_v36  ;;  %v19734_v36 = vld [vmem:[#allocation10 + $0x1690] ss:$24 sps:$4 sm:$0xff]  }
 0x79c   :  { %7860 = vmatprep.subr.bf16.mxu1 %v19676_v14  ;;  %v19739_v14 = vld [vmem:[#allocation10 + $0x16c4] ss:$24 sps:$4 sm:$0xff]  }
 0x79f   :  { %7861 = vmatpush1.bf16.msra.mxu1 %v19674_v8  ;;  %v19737_v8 = vld [vmem:[#allocation10 + $0x16c0] ss:$24 sps:$4 sm:$0xff]  }
 0x7a0   :  { %7862 = vmatprep.subr.bf16.mxu1 %v19679_v18  ;;  %v19742_v18 = vld [vmem:[#allocation10 + $0x16f4] ss:$24 sps:$4 sm:$0xff]  }
 0x7a3   :  { %7863 = vmatpush1.bf16.msra.mxu1 %v19677_v59  ;;  %v19740_v59 = vld [vmem:[#allocation10 + $0x16f0] ss:$24 sps:$4 sm:$0xff]  }
 0x7a4   :  { %7864 = vmatprep.subr.bf16.mxu1 %v19682_v34  ;;  %v19745_v34 = vld [vmem:[#allocation10 + $0x1724] ss:$24 sps:$4 sm:$0xff]  }
 0x7a7   :  { %7865 = vmatpush1.bf16.msra.mxu1 %v19680_v0  ;;  %v19743_v0 = vld [vmem:[#allocation10 + $0x1720] ss:$24 sps:$4 sm:$0xff]  }
 0x7a8   :  { %7866 = vmatprep.subr.bf16.mxu1 %v19685_v31  ;;  %v19748_v31 = vld [vmem:[#allocation10 + $0x1754] ss:$24 sps:$4 sm:$0xff]  }
 0x7ab   :  { %7867 = vmatpush1.bf16.msra.mxu1 %v19683_v52  ;;  %v19746_v52 = vld [vmem:[#allocation10 + $0x1750] ss:$24 sps:$4 sm:$0xff]  }
 0x7ac   :  { %7868 = vmatprep.subr.bf16.mxu1 %v19688_v26  ;;  %v19751_v26 = vld [vmem:[#allocation10 + $0x1784] ss:$24 sps:$4 sm:$0xff]  }
 0x7af   :  { %7869 = vmatpush1.bf16.msra.mxu1 %v19686_v35  ;;  %v19749_v35 = vld [vmem:[#allocation10 + $0x1780] ss:$24 sps:$4 sm:$0xff]  }
 0x7b0   :  { %7870 = vmatprep.subr.bf16.mxu1 %v19691_v20  ;;  %v19754_v20 = vld [vmem:[#allocation10 + $0x17b4] ss:$24 sps:$4 sm:$0xff]  }
 0x7b3   :  { %7871 = vmatpush1.bf16.msra.mxu1 %v19689_v10  ;;  %v19752_v10 = vld [vmem:[#allocation10 + $0x17b0] ss:$24 sps:$4 sm:$0xff]  }
 0x7b4   :  { %7872 = vmatprep.subr.bf16.mxu1 %v19694_v9  ;;  %v19757_v9 = vld [vmem:[#allocation10 + $0x17e4] ss:$24 sps:$4 sm:$0xff]  }
 0x7b7   :  { %7873 = vmatpush1.bf16.msra.mxu1 %v19692_v51  ;;  %v19755_v51 = vld [vmem:[#allocation10 + $0x17e0] ss:$24 sps:$4 sm:$0xff]  }
 0x7b8   :  { %7874 = vmatprep.subr.bf16.mxu1 %v19697_v58  ;;  %v19760_v58 = vld [vmem:[#allocation10 + $0x1814] ss:$24 sps:$4 sm:$0xff]  }
 0x7bb   :  { %7875 = vmatpush1.bf16.msra.mxu1 %v19695_v2  ;;  %v19758_v2 = vld [vmem:[#allocation10 + $0x1810] ss:$24 sps:$4 sm:$0xff]  }
 0x7bc   :  { %7876 = vmatprep.subr.bf16.mxu1 %v19700_v25  ;;  %v19763_v25 = vld [vmem:[#allocation10 + $0x1844] ss:$24 sps:$4 sm:$0xff]  }
 0x7bf   :  { %7877 = vmatpush1.bf16.msra.mxu1 %v19698_v61  ;;  %v19761_v61 = vld [vmem:[#allocation10 + $0x1840] ss:$24 sps:$4 sm:$0xff]  }
 0x7c0   :  { %7878 = vmatprep.subr.bf16.mxu1 %v19703_v62  ;;  %v19766_v62 = vld [vmem:[#allocation10 + $0x1874] ss:$24 sps:$4 sm:$0xff]  }
 0x7c3   :  { %7879 = vmatpush1.bf16.msra.mxu1 %v19701_v43  ;;  %v19764_v43 = vld [vmem:[#allocation10 + $0x1870] ss:$24 sps:$4 sm:$0xff]  }
 0x7c4   :  { %7880 = vmatprep.subr.bf16.mxu1 %v19706_v32  ;;  %v19769_v32 = vld [vmem:[#allocation10 + $0x18a4] ss:$24 sps:$4 sm:$0xff]  }
 0x7c7   :  { %7881 = vmatpush1.bf16.msra.mxu1 %v19704_v3  ;;  %v19767_v3 = vld [vmem:[#allocation10 + $0x18a0] ss:$24 sps:$4 sm:$0xff]  }
 0x7c8   :  { %7882 = vmatprep.subr.bf16.mxu1 %v19709_v55  ;;  %v19772_v55 = vld [vmem:[#allocation10 + $0x18d4] ss:$24 sps:$4 sm:$0xff]  }
 0x7cb   :  { %7883 = vmatpush1.bf16.msra.mxu1 %v19707_v53  ;;  %v19770_v53 = vld [vmem:[#allocation10 + $0x18d0] ss:$24 sps:$4 sm:$0xff]  }
 0x7cc   :  { %7895 = vmatprep.subr.bf16.mxu1 %v19712_v7  ;;  %v19775_v7 = vld [vmem:[#allocation10 + $0x1904] ss:$24 sps:$4 sm:$0xff]  }
 0x7ce   :  { %7885 = vmatmul.mubr.bf16.vlgmr.msra.gmra.mrb[20].mxu1 %v22331_v30  ;;  %v19725_v30 = vld [vmem:[#allocation10 + $0x1600] ss:$24 sps:$4 sm:$0xff]  }
 0x7cf   :  { %7896 = vmatpush1.bf16.msra.mxu1 %v19710_v24  ;;  %7927 = vmatprep.mubr.bf16.mxu1 %v22336_v16  ;;  %v19728_v16 = vld [vmem:[#allocation10 + $0x1630] ss:$24 sps:$4 sm:$0xff]   ;;  %v19778_v24 = vld [vmem:[#allocation10 + $0x1934] ss:$24 sps:$4 sm:$0xff]  }
 0x7d0   :  { %7897 = vmatprep.subr.bf16.mxu1 %v19715_v54  ;;  %v19781_v54 = vld [vmem:[#allocation10 + $0x1964] ss:$24 sps:$4 sm:$0xff]  }
 0x7d3   :  { %7898 = vmatpush1.bf16.msra.mxu1 %v19713_v6  ;;  %v19779_v6 = vld [vmem:[#allocation10 + $0x1960] ss:$24 sps:$4 sm:$0xff]  }
 0x7d4   :  { %7899 = vmatprep.subr.bf16.mxu1 %v19718_v38  ;;  %v19784_v38 = vld [vmem:[#allocation10 + $0x1994] ss:$24 sps:$4 sm:$0xff]  }
 0x7d7   :  { %7900 = vmatpush1.bf16.msra.mxu1 %v19716_v42  ;;  %v19782_v42 = vld [vmem:[#allocation10 + $0x1990] ss:$24 sps:$4 sm:$0xff]  }
 0x7d8   :  { %7901 = vmatprep.subr.bf16.mxu1 %v19721_v13  ;;  %v19787_v13 = vld [vmem:[#allocation10 + $0x19c4] ss:$24 sps:$4 sm:$0xff]  }
 0x7db   :  { %7902 = vmatpush1.bf16.msra.mxu1 %v19719_v19  ;;  %v19785_v19 = vld [vmem:[#allocation10 + $0x19c0] ss:$24 sps:$4 sm:$0xff]  }
 0x7dc   :  { %7903 = vmatprep.subr.bf16.mxu1 %v19724_v12  ;;  %v19790_v12 = vld [vmem:[#allocation10 + $0x19f4] ss:$24 sps:$4 sm:$0xff]  }
 0x7df   :  { %7904 = vmatpush1.bf16.msra.mxu1 %v19722_v57  ;;  %v19788_v57 = vld [vmem:[#allocation10 + $0x19f0] ss:$24 sps:$4 sm:$0xff]  }
 0x7e0   :  { %7905 = vmatprep.subr.bf16.mxu1 %v19727_v22  ;;  %v19793_v22 = vld [vmem:[#allocation10 + $0x1a24] ss:$24 sps:$4 sm:$0xff]  }
 0x7e3   :  { %7906 = vmatpush1.bf16.msra.mxu1 %v19725_v30  ;;  %v19791_v30 = vld [vmem:[#allocation10 + $0x1a20] ss:$24 sps:$4 sm:$0xff]  }
 0x7e4   :  { %7907 = vmatprep.subr.bf16.mxu1 %v19730_v56  ;;  %v19796_v56 = vld [vmem:[#allocation10 + $0x1a54] ss:$24 sps:$4 sm:$0xff]  }
 0x7e7   :  { %7908 = vmatpush1.bf16.msra.mxu1 %v19728_v16  ;;  %v19794_v16 = vld [vmem:[#allocation10 + $0x1a50] ss:$24 sps:$4 sm:$0xff]  }
 0x7e8   :  { %7909 = vmatprep.subr.bf16.mxu1 %v19733_v33  ;;  %v19799_v33 = vld [vmem:[#allocation10 + $0x1a84] ss:$24 sps:$4 sm:$0xff]  }
 0x7eb   :  { %7910 = vmatpush1.bf16.msra.mxu1 %v19731_v60  ;;  %v19797_v60 = vld [vmem:[#allocation10 + $0x1a80] ss:$24 sps:$4 sm:$0xff]  }
 0x7ec   :  { %7911 = vmatprep.subr.bf16.mxu1 %v19736_v21  ;;  %v19802_v21 = vld [vmem:[#allocation10 + $0x1ab4] ss:$24 sps:$4 sm:$0xff]  }
 0x7ef   :  { %7912 = vmatpush1.bf16.msra.mxu1 %v19734_v36  ;;  %v19800_v36 = vld [vmem:[#allocation10 + $0x1ab0] ss:$24 sps:$4 sm:$0xff]  }
 0x7f0   :  { %7913 = vmatprep.subr.bf16.mxu1 %v19739_v14  ;;  %v19805_v14 = vld [vmem:[#allocation10 + $0x1ae4] ss:$24 sps:$4 sm:$0xff]  }
 0x7f3   :  { %7914 = vmatpush1.bf16.msra.mxu1 %v19737_v8  ;;  %v19803_v8 = vld [vmem:[#allocation10 + $0x1ae0] ss:$24 sps:$4 sm:$0xff]  }
 0x7f4   :  { %7915 = vmatprep.subr.bf16.mxu1 %v19742_v18 }
 0x7f7   :  { %7916 = vmatpush1.bf16.msra.mxu1 %v19740_v59 }
 0x7f8   :  { %7917 = vmatprep.subr.bf16.mxu1 %v19745_v34 }
 0x7fb   :  { %7918 = vmatpush1.bf16.msra.mxu1 %v19743_v0 }
 0x7fc   :  { %7919 = vmatprep.subr.bf16.mxu1 %v19748_v31 }
 0x7ff   :  { %7920 = vmatpush1.bf16.msra.mxu1 %v19746_v52 }
 0x800   :  { %7921 = vmatprep.subr.bf16.mxu1 %v19751_v26 }
 0x803   :  { %7922 = vmatpush1.bf16.msra.mxu1 %v19749_v35 }
 0x804   :  { %7923 = vmatprep.subr.bf16.mxu1 %v19754_v20  ;;  %v19808_v20 = vld [vmem:[#allocation10 + $0x1b04] ss:$24 sps:$4 sm:$0xff]  }
 0x805   :  { %10091 = vmatprep.subr.bf16.mxu0 %v19808_v20  ;;  %v19862_v20 = vld [vmem:[#allocation10 + $0x1cb4] ss:$24 sps:$4 sm:$0xff]  }
 0x807   :  { %7924 = vmatpush1.bf16.msra.mxu1 %v19752_v10  ;;  %v19811_v10 = vld [vmem:[#allocation10 + $0x1b0c] ss:$24 sps:$4 sm:$0xff]  }
 0x808   :  { %7925 = vmatprep.subr.bf16.mxu1 %v19757_v9  ;;  %v19806_v9 = vld [vmem:[#allocation10 + $0x1b00] ss:$24 sps:$4 sm:$0xff]  }
 0x809   :  { %10092 = vmatpush1.bf16.msra.mxu0 %v19806_v9  ;;  %v19865_v9 = vld [vmem:[#allocation10 + $0x1cbc] ss:$24 sps:$4 sm:$0xff]  }
 0x80b   :  { %7926 = vmatpush1.bf16.msra.mxu1 %v19755_v51  ;;  %v19814_v51 = vld [vmem:[#allocation10 + $0x1b34] ss:$24 sps:$4 sm:$0xff]  }
 0x80c   :  { %7938 = vmatprep.subr.bf16.mxu1 %v19760_v58  ;;  %v19817_v58 = vld [vmem:[#allocation10 + $0x1b3c] ss:$24 sps:$4 sm:$0xff]   ;;  %10093 = vmatprep.subr.bf16.mxu0 %v19814_v51  ;;  %v19871_v51 = vld [vmem:[#allocation10 + $0x1cec] ss:$24 sps:$4 sm:$0xff]  }
 0x80e   :  { %7928 = vmatmul.mubr.bf16.vlgmr.msra.gmra.mrb[20].mxu1 %v22341_v15  ;;  %v19773_v15 = vld [vmem:[#allocation10 + $0x1900] ss:$24 sps:$4 sm:$0xff]  }
 0x80f   :  { %7939 = vmatpush1.bf16.msra.mxu1 %v19758_v2  ;;  %7970 = vmatprep.mubr.bf16.mxu1 %v22343_v48  ;;  %v19776_v48 = vld [vmem:[#allocation10 + $0x1930] ss:$24 sps:$4 sm:$0xff]  }
 0x810   :  { %7940 = vmatprep.subr.bf16.mxu1 %v19763_v25  ;;  %v19812_v2 = vld [vmem:[#allocation10 + $0x1b30] ss:$24 sps:$4 sm:$0xff]  }
 0x811   :  { %v19815_v25 = vld [vmem:[#allocation10 + $0x1b38] ss:$24 sps:$4 sm:$0xff]   ;;  %10094 = vmatpush1.bf16.msra.mxu0 %v19812_v2 }
 0x812   :  { %v19866_v2 = vld [vmem:[#allocation10 + $0x1ce0] ss:$24 sps:$4 sm:$0xff]  }
 0x813   :  { %7941 = vmatpush1.bf16.msra.mxu1 %v19761_v61  ;;  %v19820_v61 = vld [vmem:[#allocation10 + $0x1b64] ss:$24 sps:$4 sm:$0xff]  }
 0x814   :  { %7942 = vmatprep.subr.bf16.mxu1 %v19766_v62  ;;  %v19823_v62 = vld [vmem:[#allocation10 + $0x1b6c] ss:$24 sps:$4 sm:$0xff]   ;;  %10095 = vmatprep.subr.bf16.mxu0 %v19820_v61 }
 0x815   :  { %v19874_v61 = vld [vmem:[#allocation10 + $0x1d14] ss:$24 sps:$4 sm:$0xff]  }
 0x817   :  { %7943 = vmatpush1.bf16.msra.mxu1 %v19764_v43  ;;  %v19818_v43 = vld [vmem:[#allocation10 + $0x1b60] ss:$24 sps:$4 sm:$0xff]  }
 0x818   :  { %7944 = vmatprep.subr.bf16.mxu1 %v19769_v32  ;;  %v19821_v32 = vld [vmem:[#allocation10 + $0x1b68] ss:$24 sps:$4 sm:$0xff]   ;;  %10096 = vmatpush1.bf16.msra.mxu0 %v19818_v43 }
 0x81b   :  { %7945 = vmatpush1.bf16.msra.mxu1 %v19767_v3  ;;  %v19826_v3 = vld [vmem:[#allocation10 + $0x1b94] ss:$24 sps:$4 sm:$0xff]  }
 0x81c   :  { %7946 = vmatprep.subr.bf16.mxu1 %v19772_v55  ;;  %v19829_v55 = vld [vmem:[#allocation10 + $0x1b9c] ss:$24 sps:$4 sm:$0xff]   ;;  %10097 = vmatprep.subr.bf16.mxu0 %v19826_v3  ;;  %v19872_v3 = vld [vmem:[#allocation10 + $0x1d10] ss:$24 sps:$4 sm:$0xff]  }
 0x81f   :  { %7947 = vmatpush1.bf16.msra.mxu1 %v19770_v53  ;;  %v19824_v53 = vld [vmem:[#allocation10 + $0x1b90] ss:$24 sps:$4 sm:$0xff]  }
 0x820   :  { %7948 = vmatprep.subr.bf16.mxu1 %v19775_v7  ;;  %v19827_v7 = vld [vmem:[#allocation10 + $0x1b98] ss:$24 sps:$4 sm:$0xff]   ;;  %10098 = vmatpush1.bf16.msra.mxu0 %v19824_v53 }
 0x823   :  { %7949 = vmatpush1.bf16.msra.mxu1 %v19773_v15  ;;  %v19832_v15 = vld [vmem:[#allocation10 + $0x1bc4] ss:$24 sps:$4 sm:$0xff]  }
 0x824   :  { %7950 = vmatprep.subr.bf16.mxu1 %v19778_v24  ;;  %v19835_v24 = vld [vmem:[#allocation10 + $0x1bcc] ss:$24 sps:$4 sm:$0xff]   ;;  %10099 = vmatprep.subr.bf16.mxu0 %v19832_v15 }
 0x825   :  { %v19880_v15 = vld [vmem:[#allocation10 + $0x1d44] ss:$24 sps:$4 sm:$0xff]  }
 0x827   :  { %7951 = vmatpush1.bf16.msra.mxu1 %v19776_v48  ;;  %v19830_v48 = vld [vmem:[#allocation10 + $0x1bc0] ss:$24 sps:$4 sm:$0xff]  }
 0x828   :  { %7952 = vmatprep.subr.bf16.mxu1 %v19781_v54  ;;  %v19833_v54 = vld [vmem:[#allocation10 + $0x1bc8] ss:$24 sps:$4 sm:$0xff]   ;;  %10100 = vmatpush1.bf16.msra.mxu0 %v19830_v48 }
 0x82b   :  { %7953 = vmatpush1.bf16.msra.mxu1 %v19779_v6  ;;  %v19838_v6 = vld [vmem:[#allocation10 + $0x1bf4] ss:$24 sps:$4 sm:$0xff]  }
 0x82c   :  { %7954 = vmatprep.subr.bf16.mxu1 %v19784_v38  ;;  %v19841_v38 = vld [vmem:[#allocation10 + $0x1bfc] ss:$24 sps:$4 sm:$0xff]   ;;  %10101 = vmatprep.subr.bf16.mxu0 %v19838_v6 }
 0x82f   :  { %7955 = vmatpush1.bf16.msra.mxu1 %v19782_v42  ;;  %v19836_v42 = vld [vmem:[#allocation10 + $0x1bf0] ss:$24 sps:$4 sm:$0xff]  }
 0x830   :  { %7956 = vmatprep.subr.bf16.mxu1 %v19787_v13  ;;  %v19839_v13 = vld [vmem:[#allocation10 + $0x1bf8] ss:$24 sps:$4 sm:$0xff]   ;;  %10102 = vmatpush1.bf16.msra.mxu0 %v19836_v42 }
 0x833   :  { %7957 = vmatpush1.bf16.msra.mxu1 %v19785_v19  ;;  %v19844_v19 = vld [vmem:[#allocation10 + $0x1c24] ss:$24 sps:$4 sm:$0xff]  }
 0x834   :  { %7958 = vmatprep.subr.bf16.mxu1 %v19790_v12  ;;  %v19847_v12 = vld [vmem:[#allocation10 + $0x1c2c] ss:$24 sps:$4 sm:$0xff]   ;;  %10103 = vmatprep.subr.bf16.mxu0 %v19844_v19 }
 0x837   :  { %7959 = vmatpush1.bf16.msra.mxu1 %v19788_v57  ;;  %v19842_v57 = vld [vmem:[#allocation10 + $0x1c20] ss:$24 sps:$4 sm:$0xff]  }
 0x838   :  { %7960 = vmatprep.subr.bf16.mxu1 %v19793_v22  ;;  %v19845_v22 = vld [vmem:[#allocation10 + $0x1c28] ss:$24 sps:$4 sm:$0xff]   ;;  %10104 = vmatpush1.bf16.msra.mxu0 %v19842_v57  ;;  %v19886_v57 = vld [vmem:[#allocation10 + $0x1d74] ss:$24 sps:$4 sm:$0xff]  }
 0x83b   :  { %7961 = vmatpush1.bf16.msra.mxu1 %v19791_v30  ;;  %v19850_v30 = vld [vmem:[#allocation10 + $0x1c54] ss:$24 sps:$4 sm:$0xff]  }
 0x83c   :  { %7962 = vmatprep.subr.bf16.mxu1 %v19796_v56  ;;  %v19853_v56 = vld [vmem:[#allocation10 + $0x1c5c] ss:$24 sps:$4 sm:$0xff]   ;;  %10105 = vmatprep.subr.bf16.mxu0 %v19850_v30  ;;  %v19884_v30 = vld [vmem:[#allocation10 + $0x1d70] ss:$24 sps:$4 sm:$0xff]  }
 0x83f   :  { %7963 = vmatpush1.bf16.msra.mxu1 %v19794_v16  ;;  %v19848_v16 = vld [vmem:[#allocation10 + $0x1c50] ss:$24 sps:$4 sm:$0xff]  }
 0x840   :  { %7964 = vmatprep.subr.bf16.mxu1 %v19799_v33  ;;  %v19851_v33 = vld [vmem:[#allocation10 + $0x1c58] ss:$24 sps:$4 sm:$0xff]   ;;  %10106 = vmatpush1.bf16.msra.mxu0 %v19848_v16 }
 0x843   :  { %7965 = vmatpush1.bf16.msra.mxu1 %v19797_v60  ;;  %v19856_v60 = vld [vmem:[#allocation10 + $0x1c84] ss:$24 sps:$4 sm:$0xff]  }
 0x844   :  { %7966 = vmatprep.subr.bf16.mxu1 %v19802_v21  ;;  %v19859_v21 = vld [vmem:[#allocation10 + $0x1c8c] ss:$24 sps:$4 sm:$0xff]   ;;  %10107 = vmatprep.subr.bf16.mxu0 %v19856_v60 }
 0x847   :  { %7967 = vmatpush1.bf16.msra.mxu1 %v19800_v36  ;;  %v19854_v36 = vld [vmem:[#allocation10 + $0x1c80] ss:$24 sps:$4 sm:$0xff]  }
 0x848   :  { %7968 = vmatprep.subr.bf16.mxu1 %v19805_v14  ;;  %v19857_v14 = vld [vmem:[#allocation10 + $0x1c88] ss:$24 sps:$4 sm:$0xff]   ;;  %10108 = vmatpush1.bf16.msra.mxu0 %v19854_v36  ;;  %v19898_v36 = vld [vmem:[#allocation10 + $0x1dd4] ss:$24 sps:$4 sm:$0xff]  }
 0x849   :  { %10109 = vmatprep.subr.bf16.mxu0 %v19862_v20 }
 0x84b   :  { %7969 = vmatpush1.bf16.msra.mxu1 %v19803_v8  ;;  %v19860_v8 = vld [vmem:[#allocation10 + $0x1cb0] ss:$24 sps:$4 sm:$0xff]  }
 0x84c   :  { %10220 = vmatprep.subr.bf16.mxu1 %v19811_v10  ;;  %v19863_v10 = vld [vmem:[#allocation10 + $0x1cb8] ss:$24 sps:$4 sm:$0xff]   ;;  %10110 = vmatpush1.bf16.msra.mxu0 %v19860_v8 }
 0x84e   :  { %7971 = vmatmul.mubr.bf16.vlgmr.msra.gmra.mrb[20].mxu1 %v22345_v17  ;;  %v19809_v17 = vld [vmem:[#allocation10 + $0x1b08] ss:$24 sps:$4 sm:$0xff]  }
 0x84f   :  { %10221 = vmatpush1.bf16.msra.mxu1 %v19809_v17  ;;  %v19868_v17 = vld [vmem:[#allocation10 + $0x1ce4] ss:$24 sps:$4 sm:$0xff]  }
 0x850   :  { %10222 = vmatprep.subr.bf16.mxu1 %v19817_v58  ;;  %v22375_v58 = vld [vmem:[#allocation11 + $0xc] sm:$0x3f]  ;;  %10111 = vmatprep.subr.bf16.mxu0 %v19868_v17 }
 0x851   :  { %v6127_v43 = vrot.slane %v22375_v58, %v21895_v27  ;;  %10112 = vmatpush1.bf16.msra.mxu0 %v19866_v2  ;;  %v19899_v17 = vld [vmem:[#allocation10 + $0x1dd8] ss:$24 sps:$4 sm:$0xff]  }
 0x852   :  { %10113 = vmatprep.subr.bf16.mxu0 %v19874_v61 }
 0x853   :  { %10223 = vmatpush1.bf16.msra.mxu1 %v19815_v25  ;;  %v19869_v25 = vld [vmem:[#allocation10 + $0x1ce8] ss:$24 sps:$4 sm:$0xff]  }
 0x854   :  { %10224 = vmatprep.subr.bf16.mxu1 %v19823_v62  ;;  %v19877_v62 = vld [vmem:[#allocation10 + $0x1d1c] ss:$24 sps:$4 sm:$0xff]  }
 0x855   :  { %10114 = vmatpush1.bf16.msra.mxu0 %v19872_v3 }
 0x856   :  { %10115 = vmatprep.subr.bf16.mxu0 %v19880_v15 }
 0x857   :  { %10225 = vmatpush1.bf16.msra.mxu1 %v19821_v32  ;;  %v6135_v32 = vrot.slane %v22375_v58, %v21890_v23 }
 0x858   :  { %10226 = vmatprep.subr.bf16.mxu1 %v19829_v55  ;;  %v6131_v55 = vrot.slane %v22375_v58, %v21901_v29 }
 0x85b   :  { %10227 = vmatpush1.bf16.msra.mxu1 %v19827_v7  ;;  %v19875_v7 = vld [vmem:[#allocation10 + $0x1d18] ss:$24 sps:$4 sm:$0xff]  }
 0x85c   :  { %10228 = vmatprep.subr.bf16.mxu1 %v19835_v24  ;;  %v6139_v24 = vrot.slane %v22375_v58, %v21898_v28 }
 0x85f   :  { %10229 = vmatpush1.bf16.msra.mxu1 %v19833_v54  ;;  %v19883_v54 = vld [vmem:[#allocation10 + $0x1d4c] ss:$24 sps:$4 sm:$0xff]  }
 0x860   :  { %10230 = vmatprep.subr.bf16.mxu1 %v19841_v38 }
 0x861   :  { %v22359_v18 = vpop.f32.mrb[16].mxu1 }
 0x862   :  { %v22361_v59 = vpop.f32.mrb[20].mxu0  ;;  %v22363_v34 = vpop.f32.mrb[17].mxu1  ;;  %v18295_v6 = vadd.f32 %v22359_v18, %v6127_v43 }
 0x863   :  { %v22365_v0 = vpop.f32.mrb[21].mxu0  ;;  %v22367_v31 = vpop.f32.mrb[18].mxu1  ;;  %10231 = vmatpush1.bf16.msra.mxu1 %v19839_v13  ;;  %v18299_v42 = vadd.f32 %v22361_v59, %v6135_v32  ;;  %v18296_v19 = vadd.f32 %v22363_v34, %v6131_v55  ;;  %v19889_v59 = vld [vmem:[#allocation10 + $0x1d7c] ss:$24 sps:$4 sm:$0xff]  }
 0x864   :  { %v22369_v52 = vpop.f32.mrb[22].mxu0  ;;  %v22371_v26 = vpop.f32.mrb[19].mxu1  ;;  %10232 = vmatprep.subr.bf16.mxu1 %v19847_v12  ;;  %v18297_v53 = vadd.f32 %v22367_v31, %v6127_v43  ;;  %v19878_v31 = vld [vmem:[#allocation10 + $0x1d40] ss:$24 sps:$4 sm:$0xff]  }
 0x865   :  { %v22373_v35 = vpop.f32.mrb[23].mxu0  ;;  %v18301_v48 = vadd.f32 %v22369_v52, %v6135_v32  ;;  %v18298_v38 = vadd.f32 %v22371_v26, %v6131_v55  ;;  %v19881_v52 = vld [vmem:[#allocation10 + $0x1d48] ss:$24 sps:$4 sm:$0xff]   ;;  %v22400_v26 = vadd.f32 %v18295_v6, %v21913_v39  ;;  %10116 = vmatpush1.bf16.msra.mxu0 %v19878_v31  ;;  %v19887_v39 = vld [vmem:[#allocation10 + $0x1d78] ss:$24 sps:$4 sm:$0xff]  }
 0x866   :  { %v18302_v13 = vadd.f32 %v22373_v35, %v6139_v24  ;;  %v22393_v12 = vadd.f32 %v18297_v53, %v21917_v41  ;;  %v22406_v41 = vadd.f32 %v18299_v42, %v21911_v37  ;;  %10117 = vmatprep.subr.bf16.mxu0 %v19886_v57 }
 0x867   :  { %10233 = vmatpush1.bf16.msra.mxu1 %v19845_v22  ;;  %v18300_v22 = vadd.f32 %v22365_v0, %v6139_v24  ;;  %v22397_v18 = vadd.f32 %v18301_v48, %v21921_v45  ;;  %v22403_v35 = vadd.f32 %v18298_v38, %v21923_v46  ;;  %v22412_v0 = vadd.f32 %v18296_v19, %v21919_v44 }
 0x868   :  { %10234 = vmatprep.subr.bf16.mxu1 %v19853_v56  ;;  %v22409_v34 = vadd.f32 %v18302_v13, %v21927_v49  ;;  %v7997_v45 = vadd.f32 %v22393_v12, %v22400_v26  ;;  %v19892_v56 = vld [vmem:[#allocation10 + $0x1da4] ss:$24 sps:$4 sm:$0xff]  }
 0x869   :  { %v22417_v46 = vadd.f32 %v18300_v22, %v21915_v40  ;;  %v8011_v37 = vadd.f32 %v22397_v18, %v22406_v41  ;;  %v19895_v49 = vld [vmem:[#allocation10 + $0x1dac] ss:$24 sps:$4 sm:$0xff]   ;;  %v8004_v16 = vadd.f32 %v22403_v35, %v22412_v0  ;;  %10118 = vmatpush1.bf16.msra.mxu0 %v19884_v30 }
 0x86a   :  { %v7998_v60 = vrot.slane %v7997_v45, 4  ;;  %10119 = vmatprep.subr.bf16.mxu0 %v19892_v56 }
 0x86b   :  { %10235 = vmatpush1.bf16.msra.mxu1 %v19851_v33  ;;  %v8018_v44 = vadd.f32 %v22409_v34, %v22417_v46  ;;  %v19890_v33 = vld [vmem:[#allocation10 + $0x1da0] ss:$24 sps:$4 sm:$0xff]   ;;  %v8012_v40 = vrot.slane %v8011_v37, 4  ;;  %v8005_v8 = vrot.slane %v8004_v16, 4 }
 0x86c   :  { %10236 = vmatprep.subr.bf16.mxu1 %v19859_v21  ;;  %v19893_v21 = vld [vmem:[#allocation10 + $0x1da8] ss:$24 sps:$4 sm:$0xff]  }
 0x86d   :  { %v8019_v20 = vrot.slane %v8018_v44, 4  ;;  %10120 = vmatpush1.bf16.msra.mxu0 %v19890_v33  ;;  %v8013_v2 = vadd.f32 %v8012_v40, %v8011_v37  ;;  %v8006_v61 = vadd.f32 %v8005_v8, %v8004_v16 }
 0x86e   :  { %10121 = vmatprep.subr.bf16.mxu0 %v19898_v36 }
 0x86f   :  { %10237 = vmatpush1.bf16.msra.mxu1 %v19857_v14  ;;  %v19901_v14 = vld [vmem:[#allocation10 + $0x1ddc] ss:$24 sps:$4 sm:$0xff]   ;;  %v8014_v32 = vrot.slane %v8013_v2, 2  ;;  %v8007_v3 = vrot.slane %v8006_v61, 2 }
 0x870   :  { %10238 = vmatprep.subr.bf16.mxu1 %v19865_v9  ;;  %v7999_v9 = vadd.f32 %v7998_v60, %v7997_v45 }
 0x871   :  { %v8008_v15 = vadd.f32 %v8007_v3, %v8006_v61 }
 0x872   :  { %v8000_v43 = vrot.slane %v7999_v9, 2 }
 0x873   :  { %10239 = vmatpush1.bf16.msra.mxu1 %v19863_v10  ;;  %v19896_v10 = vld [vmem:[#allocation10 + $0x1dd0] ss:$24 sps:$4 sm:$0xff]   ;;  %v8009_v6 = vrot.slane %v8008_v15, 1 }
 0x874   :  { %10240 = vmatprep.subr.bf16.mxu1 %v19871_v51  ;;  %v19904_v51 = vld [vmem:[#allocation10 + $0x1e04] ss:$24 sps:$4 sm:$0xff]   ;;  %10122 = vmatpush1.bf16.msra.mxu0 %v19896_v10  ;;  %v8001_v53 = vadd.f32 %v8000_v43, %v7999_v9  ;;  %v6143_v9 = vrot.slane %v22375_v58, %v21976_v47 }
 0x875   :  { %10134 = vmatprep.subr.bf16.mxu0 %v19904_v51  ;;  %v8010_v31 = vadd.f32 %v8009_v6, %v8008_v15  ;;  %v6147_v51 = vrot.slane %v22375_v58, %v21979_v50 }
 0x876   :  { %v8002_v48 = vrot.slane %v8001_v53, 1 }
 0x877   :  { %10241 = vmatpush1.bf16.msra.mxu1 %v19869_v25  ;;  %v19907_v25 = vld [vmem:[#allocation10 + $0x1e0c] ss:$24 sps:$4 sm:$0xff]   ;;  %v8040_v22 = vmul.f32 0.0625, %v8010_v31 }
 0x878   :  { %10242 = vmatprep.subr.bf16.mxu1 %v19877_v62  ;;  %v8020_v62 = vadd.f32 %v8019_v20, %v8018_v44  ;;  %v8003_v42 = vadd.f32 %v8002_v48, %v8001_v53 }
 0x879   :  { %v22438_v37 = vsub.f32 %v22412_v0, %v8040_v22 }
 0x87a   :  { %v8021_v55 = vrot.slane %v8020_v62, 2 }
 0x87b   :  { %10243 = vmatpush1.bf16.msra.mxu1 %v19875_v7  ;;  %v8015_v7 = vadd.f32 %v8014_v32, %v8013_v2  ;;  %v8058_v40 = vmul.f32 %v22438_v37, %v22438_v37 }
 0x87c   :  { %10244 = vmatprep.subr.bf16.mxu1 %v19883_v54  ;;  %v8022_v24 = vadd.f32 %v8021_v55, %v8020_v62 }
 0x87d   :  { %v8016_v54 = vrot.slane %v8015_v7, 1 }
 0x87e   :  { %v8023_v38 = vrot.slane %v8022_v24, 1 }
 0x87f   :  { %10245 = vmatpush1.bf16.msra.mxu1 %v19881_v52  ;;  %v8017_v13 = vadd.f32 %v8016_v54, %v8015_v7  ;;  %v8039_v52 = vmul.f32 0.0625, %v8003_v42 }
 0x880   :  { %10246 = vmatprep.subr.bf16.mxu1 %v19889_v59  ;;  %v8024_v19 = vadd.f32 %v8023_v38, %v8022_v24 }
 0x881   :  { %v8041_v57 = vmul.f32 0.0625, %v8017_v13  ;;  %v22426_v30 = vsub.f32 %v22400_v26, %v8039_v52  ;;  %v22429_v45 = vsub.f32 %v22393_v12, %v8039_v52 }
 0x882   :  { %v8042_v59 = vmul.f32 0.0625, %v8024_v19 }
 0x883   :  { %10247 = vmatpush1.bf16.msra.mxu1 %v19887_v39  ;;  %v22432_v39 = vsub.f32 %v22406_v41, %v8041_v57  ;;  %v22435_v56 = vsub.f32 %v22397_v18, %v8041_v57  ;;  %v8057_v33 = vmul.f32 %v22426_v30, %v22426_v30  ;;  %v8063_v60 = vmul.f32 %v22429_v45, %v22429_v45 }
 0x884   :  { %10248 = vmatprep.subr.bf16.mxu1 %v19895_v49  ;;  %v22441_v49 = vsub.f32 %v22403_v35, %v8040_v22  ;;  %v22444_v16 = vsub.f32 %v22417_v46, %v8042_v59  ;;  %v22447_v44 = vsub.f32 %v22409_v34, %v8042_v59 }
 0x885   :  { %v8065_v36 = vmul.f32 %v22435_v56, %v22435_v56  ;;  %v8069_v10 = vadd.f32 %v8063_v60, %v8057_v33 }
 0x886   :  { %v8060_v8 = vmul.f32 %v22444_v16, %v22444_v16  ;;  %v8066_v20 = vmul.f32 %v22447_v44, %v22447_v44 }
 0x887   :  { %10249 = vmatpush1.bf16.msra.mxu1 %v19893_v21  ;;  %v8059_v21 = vmul.f32 %v22432_v39, %v22432_v39  ;;  %v8070_v62 = vrot.slane %v8069_v10, 4 }
 0x888   :  { %10250 = vmatprep.subr.bf16.mxu1 %v19901_v14  ;;  %v8064_v14 = vmul.f32 %v22441_v49, %v22441_v49 }
 0x889   :  { %v8071_v6 = vadd.f32 %v8070_v62, %v8069_v10 }
 0x88a   :  { %v8076_v2 = vadd.f32 %v8064_v14, %v8058_v40 }
 0x88b   :  { %10251 = vmatpush1.bf16.msra.mxu1 %v19899_v17  ;;  %v8083_v17 = vadd.f32 %v8065_v36, %v8059_v21 }
 0x88c   :  { %10263 = vmatprep.subr.bf16.mxu1 %v19907_v25  ;;  %v8090_v25 = vadd.f32 %v8066_v20, %v8060_v8  ;;  %v8077_v7 = vrot.slane %v8076_v2, 4 }
 0x88d   :  { %v8084_v3 = vrot.slane %v8083_v17, 4 }
 0x88e   :  { %v8091_v48 = vrot.slane %v8090_v25, 4  ;;  %v8078_v19 = vadd.f32 %v8077_v7, %v8076_v2 }
 0x88f   :  { %v8085_v42 = vadd.f32 %v8084_v3, %v8083_v17 }
 0x890   :  { %v8092_v57 = vadd.f32 %v8091_v48, %v8090_v25  ;;  %v8079_v60 = vrot.slane %v8078_v19, 2 }
 0x891   :  { %v8086_v33 = vrot.slane %v8085_v42, 2 }
 0x892   :  { %v8093_v36 = vrot.slane %v8092_v57, 2  ;;  %v8080_v20 = vadd.f32 %v8079_v60, %v8078_v19 }
 0x894   :  { %v8081_v62 = vrot.slane %v8080_v20, 1 }
 0x921   :  { %v7972_v61 = vpop.f32.mrb[20].mxu1 }
 0x922   :  { %v18303_v43 = vadd.f32 %v7972_v61, %v6143_v9  ;;  %v7974_v32 = vpop.f32.mrb[21].mxu1 }
 0x923   :  { %v18304_v55 = vadd.f32 %v7974_v32, %v6147_v51  ;;  %v7976_v53 = vpop.f32.mrb[22].mxu1 }
 0x924   :  { %v18305_v15 = vadd.f32 %v7976_v53, %v6143_v9  ;;  %v7978_v24 = vpop.f32.mrb[23].mxu1  ;;  %v22470_v38 = vadd.f32 %v18303_v43, %v21985_v63  ;;  %v8072_v63 = vrot.slane %v8071_v6, 2  ;;  %v8094_v9 = vadd.f32 %v8093_v36, %v8092_v57 }
 0x925   :  { %v18306_v54 = vadd.f32 %v7978_v24, %v6147_v51  ;;  %v22476_v13 = vadd.f32 %v18304_v55, %v21989_v4  ;;  %v8082_v24 = vadd.f32 %v8081_v62, %v8080_v20 }
 0x926   :  { %v22473_v58 = vadd.f32 %v18305_v15, %v21987_v1  ;;  %v8073_v40 = vadd.f32 %v8072_v63, %v8071_v6  ;;  %v8095_v32 = vrot.slane %v8094_v9, 1 }
 0x927   :  { %v22479_v31 = vadd.f32 %v18306_v54, %v21991_v5  ;;  %v8087_v5 = vadd.f32 %v8086_v33, %v8085_v42 }
 0x928   :  { %v8025_v52 = vadd.f32 %v22473_v58, %v22470_v38  ;;  %v8074_v51 = vrot.slane %v8073_v40, 1  ;;  %v8096_v6 = vadd.f32 %v8095_v32, %v8094_v9 }
 0x929   :  { %v8032_v22 = vadd.f32 %v22479_v31, %v22476_v13  ;;  %v8088_v25 = vrot.slane %v8087_v5, 1 }
 0x92a   :  { %v8026_v59 = vrot.slane %v8025_v52, 4  ;;  %v8075_v55 = vadd.f32 %v8074_v51, %v8073_v40 }
 0x92b   :  { %v8033_v1 = vrot.slane %v8032_v22, 4  ;;  %v8089_v7 = vadd.f32 %v8088_v25, %v8087_v5 }
 0x92c   :  { %v8027_v21 = vadd.f32 %v8026_v59, %v8025_v52  ;;  %v8111_v52 = vmul.f32 0.0625, %v8075_v55 }
 0x92d   :  { %v8034_v4 = vadd.f32 %v8033_v1, %v8032_v22  ;;  %v8113_v63 = vmul.f32 0.0625, %v8089_v7  ;;  %v8112_v1 = vmul.f32 0.0625, %v8082_v24 }
 0x92e   :  { %v8028_v14 = vrot.slane %v8027_v21, 2 }
 0x92f   :  { %v8035_v8 = vrot.slane %v8034_v4, 2 }
 0x930   :  { %v8029_v10 = vadd.f32 %v8028_v14, %v8027_v21  ;;  %v8114_v21 = vmul.f32 0.0625, %v8096_v6  ;;  %v8119_v14 = vadd.f32 1e-05, %v8113_v63 }
 0x931   :  { %v8036_v17 = vadd.f32 %v8035_v8, %v8034_v4  ;;  %v8117_v4 = vadd.f32 1e-05, %v8111_v52  ;;  %v8118_v8 = vadd.f32 1e-05, %v8112_v1 }
 0x932   :  { %v8030_v2 = vrot.slane %v8029_v10, 1 }
 0x933   :  { %v8037_v61 = vrot.slane %v8036_v17, 1  ;;  %21258 = vrsqrt.f32 %v8117_v4 }
 0x934   :  { %v8031_v43 = vadd.f32 %v8030_v2, %v8029_v10  ;;  %v8120_v10 = vadd.f32 1e-05, %v8114_v21  ;;  %21260 = vrsqrt.f32 %v8119_v14  ;;  %v7994_v14 = vld [vmem:[#allocation7 + $0x12] sm:$0x3f] }
 0x935   :  { %v8038_v3 = vadd.f32 %v8037_v61, %v8036_v17  ;;  %21262 = vrsqrt.f32 %v8118_v8  ;;  %v7996_v8 = vld [vmem:[#allocation8 + $0x12] sm:$0x3f] }
 0x936   :  { %v8043_v53 = vmul.f32 0.0625, %v8031_v43  ;;  %21264 = vrsqrt.f32 %v8120_v10  ;;  %v8228_v10 = vrot.slane %v7996_v8, %v21901_v29 }
 0x937   :  { %v8044_v15 = vmul.f32 0.0625, %v8038_v3 }
 0x938   :  { %v22486_v48 = vsub.f32 %v22470_v38, %v8043_v53  ;;  %v22489_v54 = vsub.f32 %v22473_v58, %v8043_v53 }
 0x939   :  { %v22492_v42 = vsub.f32 %v22476_v13, %v8044_v15  ;;  %v22495_v19 = vsub.f32 %v22479_v31, %v8044_v15 }
 0x93a   :  { %v8061_v57 = vmul.f32 %v22486_v48, %v22486_v48  ;;  %v8067_v22 = vmul.f32 %v22489_v54, %v22489_v54 }
 0x93b   :  { %v8062_v59 = vmul.f32 %v22492_v42, %v22492_v42  ;;  %v8068_v33 = vmul.f32 %v22495_v19, %v22495_v19 }
 0x93c   :  { %v8097_v60 = vadd.f32 %v8067_v22, %v8061_v57 }
 0x93d   :  { %v8104_v36 = vadd.f32 %v8068_v33, %v8062_v59  ;;  %v21259_v53 = vpop.eup %21258 }
 0x93e   :  { %v8098_v40 = vrot.slane %v8097_v60, 4  ;;  %v21261_v15 = vpop.eup %21260 }
 0x93f   :  { %v8105_v5 = vrot.slane %v8104_v36, 4  ;;  %v21263_v6 = vpop.eup %21262 }
 0x940   :  { %v8099_v20 = vadd.f32 %v8098_v40, %v8097_v60  ;;  %v21265_v52 = vpop.eup %21264  ;;  %v8135_v57 = vcombine.low %v21259_v53, %v21263_v6 }
 0x941   :  { %v8106_v9 = vadd.f32 %v8105_v5, %v8104_v36  ;;  %v8136_v22 = vcombine.low %v21261_v15, %v21265_v52 }
 0x942   :  { %v8100_v17 = vrot.slane %v8099_v20, 2  ;;  %v8144_v63 = vrot.slane %v8135_v57, %v22018_v11 }
 0x943   :  { %v8107_v51 = vrot.slane %v8106_v9, 2  ;;  %v8151_v59 = vrot.slane %v8136_v22, %v22018_v11 }
 0x944   :  { %v8101_v2 = vadd.f32 %v8100_v17, %v8099_v20 }
 0x945   :  { %v8108_v25 = vadd.f32 %v8107_v51, %v8106_v9  ;;  %v8159_v60 = vcombine.low %v8144_v63, %v8151_v59  ;;  %v8224_v9 = vrot.slane %v7996_v8, %v21895_v27 }
 0x946   :  { %v8102_v61 = vrot.slane %v8101_v2, 1 }
 0x947   :  { %v8109_v62 = vrot.slane %v8108_v25, 1  ;;  %v8166_v4 = vrot.slane %v8159_v60, %v22018_v11 }
 0x948   :  { %v8103_v43 = vadd.f32 %v8102_v61, %v8101_v2  ;;  %v8236_v61 = vrot.slane %v7996_v8, %v21898_v28 }
 0x949   :  { %v8110_v32 = vadd.f32 %v8109_v62, %v8108_v25 }
 0x94a   :  { %v8115_v3 = vmul.f32 0.0625, %v8103_v43  ;;  %v8232_v43 = vrot.slane %v7996_v8, %v21890_v23 }
 0x94b   :  { %v8116_v55 = vmul.f32 0.0625, %v8110_v32 }
 0x94c   :  { %v8121_v7 = vadd.f32 1e-05, %v8115_v3 }
 0x94d   :  { %v8122_v24 = vadd.f32 1e-05, %v8116_v55 }
 0x94e   :  { %21266 = vrsqrt.f32 %v8121_v7 }
 0x94f   :  { %21268 = vrsqrt.f32 %v8122_v24 }
 0x958   :  { %v21267_v33 = vpop.eup %21266 }
 0x959   :  { %v21269_v1 = vpop.eup %21268 }
 0x95a   :  { %v8137_v21 = vcombine.low %v21267_v33, %v21269_v1 }
 0x95c   :  { %v8158_v36 = vrot.slane %v8137_v21, %v22018_v11 }
 0x95e   :  { %v8173_v40 = vrot.slane %v8158_v36, %v22018_v11 }
 0x960   :  { %v8174_v5 = vcombine.low %v8166_v4, %v8173_v40 }
 0x962   :  { %v8176_v20 = vmul.f32 %v8174_v5, %v7994_v14 }
 0x964   :  { %v8201_v17 = vrot.slane %v8176_v20, %v21979_v50  ;;  %v8185_v51 = vrot.slane %v8176_v20, %v21901_v29  ;;  %v8181_v2 = vrot.slane %v8176_v20, %v21895_v27  ;;  %v8193_v25 = vrot.slane %v8176_v20, %v21898_v28 }
 0x965   :  { %v8189_v62 = vrot.slane %v8176_v20, %v21890_v23 }
 0x966   :  { %v8219_v32 = vmul.f32 %v8201_v17, %v22495_v19  ;;  %v8209_v3 = vmul.f32 %v8185_v51, %v22438_v37  ;;  %v8215_v55 = vmul.f32 %v8185_v51, %v22441_v49  ;;  %v8208_v53 = vmul.f32 %v8181_v2, %v22426_v30 }
 0x967   :  { %v8214_v7 = vmul.f32 %v8181_v2, %v22429_v45  ;;  %v8211_v15 = vmul.f32 %v8193_v25, %v22444_v16  ;;  %v8217_v24 = vmul.f32 %v8193_v25, %v22447_v44  ;;  %v8210_v6 = vmul.f32 %v8189_v62, %v22432_v39 }
 0x968   :  { %v8252_v52 = vadd.f32 %v8228_v10, %v8209_v3  ;;  %v8258_v57 = vadd.f32 %v8228_v10, %v8215_v55  ;;  %v8251_v22 = vadd.f32 %v8224_v9, %v8208_v53  ;;  %v8216_v63 = vmul.f32 %v8189_v62, %v22435_v56 }
 0x969   :  { %v8257_v19 = vadd.f32 %v8224_v9, %v8214_v7  ;;  %v8254_v59 = vadd.f32 %v8236_v61, %v8211_v15  ;;  %v8260_v37 = vadd.f32 %v8236_v61, %v8217_v24  ;;  %v22528_v33 = vadd.f32 %v8232_v43, %v8210_v6 }
 0x96a   :  { %v8276_v49 = vmul.f32 0.70710677, %v8252_v52  ;;  %v8282_v30 = vmul.f32 0.70710677, %v8258_v57  ;;  %v8244_v45 = vrot.slane %v7996_v8, %v21979_v50  ;;  %v8275_v1 = vmul.f32 0.70710677, %v8251_v22 }
 0x96b   :  { %v8281_v16 = vmul.f32 0.70710677, %v8257_v19  ;;  %v8197_v44 = vrot.slane %v8176_v20, %v21976_v47  ;;  %v8278_v39 = vmul.f32 0.70710677, %v8254_v59  ;;  %v8284_v60 = vmul.f32 0.70710677, %v8260_v37 }
 0x96c   :  { %21270 = verf.f32 %v8276_v49  ;;  %v8259_v21 = vadd.f32 %v8232_v43, %v8216_v63  ;;  %v8240_v56 = vrot.slane %v7996_v8, %v21976_v47  ;;  %v8277_v36 = vmul.f32 0.70710677, %v22528_v33 }
 0x96d   :  { %21272 = verf.f32 %v8282_v30  ;;  %v8213_v4 = vmul.f32 %v8201_v17, %v22492_v42  ;;  %v22535_v40 = vadd.f32 %v8244_v45, %v8219_v32  ;;  %v8212_v5 = vmul.f32 %v8197_v44, %v22486_v48 }
 0x96e   :  { %21274 = verf.f32 %v8275_v1  ;;  %v8283_v14 = vmul.f32 0.70710677, %v8259_v21  ;;  %v8218_v9 = vmul.f32 %v8197_v44, %v22489_v54  ;;  %v8264_v61 = vmul.f32 0.5, %v8252_v52 }
 0x96f   :  { %21276 = verf.f32 %v8281_v16  ;;  %v8256_v20 = vadd.f32 %v8244_v45, %v8213_v4  ;;  %v8286_v10 = vmul.f32 0.70710677, %v22535_v40  ;;  %v22540_v51 = vadd.f32 %v8240_v56, %v8212_v5 }
 0x970   :  { %21278 = verf.f32 %v8278_v39  ;;  %v22542_v2 = vadd.f32 %v8240_v56, %v8218_v9  ;;  %v8270_v43 = vmul.f32 0.5, %v8258_v57  ;;  %v8263_v53 = vmul.f32 0.5, %v8251_v22  ;;  %v19902_v56 = vld [vmem:[#allocation10 + $0x1e00] ss:$24 sps:$4 sm:$0xff]  }
 0x971   :  { %21280 = verf.f32 %v8284_v60  ;;  %v8280_v8 = vmul.f32 0.70710677, %v8256_v20  ;;  %v8279_v42 = vmul.f32 0.70710677, %v22540_v51  ;;  %v8269_v6 = vmul.f32 0.5, %v8257_v19 }
 0x972   :  { %21282 = verf.f32 %v8277_v36  ;;  %v8285_v48 = vmul.f32 0.70710677, %v22542_v2  ;;  %v8266_v45 = vmul.f32 0.5, %v8254_v59  ;;  %v8272_v39 = vmul.f32 0.5, %v8260_v37  ;;  %v19905_v36 = vld [vmem:[#allocation10 + $0x1e08] ss:$24 sps:$4 sm:$0xff]  }
 0x973   :  { %21284 = verf.f32 %v8283_v14  ;;  %v8265_v22 = vmul.f32 0.5, %v22528_v33  ;;  %v19910_v37 = vld [vmem:[#allocation10 + $0x1e34] ss:$24 sps:$4 sm:$0xff]  }
 0x974   :  { %21286 = verf.f32 %v8280_v8 }
 0x975   :  { %21288 = verf.f32 %v8286_v10  ;;  %v8271_v10 = vmul.f32 0.5, %v8259_v21  ;;  %v19908_v21 = vld [vmem:[#allocation10 + $0x1e30] ss:$24 sps:$4 sm:$0xff]  }
 0x976   :  { %v21271_v17 = vpop.eup %21270  ;;  %21290 = verf.f32 %v8279_v42  ;;  %v19913_v42 = vld [vmem:[#allocation10 + $0x1e3c] ss:$24 sps:$4 sm:$0xff]  }
 0x977   :  { %v21273_v25 = vpop.eup %21272  ;;  %v8300_v62 = vadd.f32 1.0, %v21271_v17  ;;  %21292 = verf.f32 %v8285_v48  ;;  %v8268_v17 = vmul.f32 0.5, %v8256_v20  ;;  %v8267_v20 = vmul.f32 0.5, %v22540_v51  ;;  %v19914_v51 = vld [vmem:[#allocation10 + $0x1e60] ss:$24 sps:$4 sm:$0xff]  }
 0x978   :  { %v21275_v54 = vpop.eup %21274  ;;  %v8306_v32 = vadd.f32 1.0, %v21273_v25 }
 0x979   :  { %v21277_v3 = vpop.eup %21276  ;;  %v8312_v55 = vmul.f32 %v8300_v62, %v8264_v61  ;;  %v8299_v7 = vadd.f32 1.0, %v21275_v54  ;;  %v8274_v54 = vmul.f32 0.5, %v22535_v40  ;;  %v8273_v40 = vmul.f32 0.5, %v22542_v2  ;;  %v19920_v2 = vld [vmem:[#allocation10 + $0x1e90] ss:$24 sps:$4 sm:$0xff]  }
 0x97a   :  { %v21279_v15 = vpop.eup %21278  ;;  %v8318_v24 = vmul.f32 %v8306_v32, %v8270_v43  ;;  %v8305_v63 = vadd.f32 1.0, %v21277_v3  ;;  %v19911_v3 = vld [vmem:[#allocation10 + $0x1e38] ss:$24 sps:$4 sm:$0xff]  }
 0x97b   :  { %v21281_v49 = vpop.eup %21280  ;;  %v8311_v30 = vmul.f32 %v8299_v7, %v8263_v53  ;;  %v8302_v1 = vadd.f32 1.0, %v21279_v15  ;;  %v19916_v7 = vld [vmem:[#allocation10 + $0x1e64] ss:$24 sps:$4 sm:$0xff]  }
 0x97c   :  { %v21283_v16 = vpop.eup %21282  ;;  %v22546_v44 = vpack.c.bf16 %v8318_v24, %v8312_v55  ;;  %v8317_v52 = vmul.f32 %v8305_v63, %v8269_v6  ;;  %v8308_v60 = vadd.f32 1.0, %v21281_v49  ;;  %v19919_v15 = vld [vmem:[#allocation10 + $0x1e6c] ss:$24 sps:$4 sm:$0xff]  }
 0x97d   :  { %v21285_v57 = vpop.eup %21284  ;;  %v8314_v4 = vmul.f32 %v8302_v1, %v8266_v45  ;;  %v8301_v14 = vadd.f32 1.0, %v21283_v16  ;;  %v19917_v1 = vld [vmem:[#allocation10 + $0x1e68] ss:$24 sps:$4 sm:$0xff]   ;;  %v19922_v16 = vld [vmem:[#allocation10 + $0x1e94] ss:$24 sps:$4 sm:$0xff]  }
 0x97e   :  { %v21287_v5 = vpop.eup %21286  ;;  %10123 = vmatprep.mubr.bf16.mxu0 %v22546_v44  ;;  %10252 = vmatprep.mubr.bf16.mxu1 %v22546_v44  ;;  %v22551_v19 = vpack.c.bf16 %v8317_v52, %v8311_v30  ;;  %v8320_v59 = vmul.f32 %v8308_v60, %v8272_v39  ;;  %v8307_v9 = vadd.f32 1.0, %v21285_v57  ;;  %v19925_v52 = vld [vmem:[#allocation10 + $0x1e9c] ss:$24 sps:$4 sm:$0xff]   ;;  %v19923_v60 = vld [vmem:[#allocation10 + $0x1e98] ss:$24 sps:$4 sm:$0xff]  }
 0x97f   :  { %v21289_v8 = vpop.eup %21288  ;;  %v8313_v48 = vmul.f32 %v8301_v14, %v8265_v22  ;;  %v8304_v25 = vadd.f32 1.0, %v21287_v5  ;;  %v19928_v57 = vld [vmem:[#allocation10 + $0x1ec4] ss:$24 sps:$4 sm:$0xff]   ;;  %v19934_v22 = vld [vmem:[#allocation10 + $0x1ef4] ss:$24 sps:$4 sm:$0xff]  }
 0x980   :  { %v21291_v61 = vpop.eup %21290  ;;  %10124 = vmatmul.mubr.bf16.vlgmr.msra.gmra.mrb[24].mxu0 %v22551_v19  ;;  %10253 = vmatmul.mubr.bf16.vlgmr.msra.gmra.mrb[24].mxu1 %v22551_v19  ;;  %v22555_v33 = vpack.c.bf16 %v8320_v59, %v8314_v4  ;;  %v8319_v62 = vmul.f32 %v8307_v9, %v8271_v10  ;;  %v8310_v43 = vadd.f32 1.0, %v21289_v8  ;;  %v19929_v4 = vld [vmem:[#allocation10 + $0x1ec8] ss:$24 sps:$4 sm:$0xff]   ;;  %v19937_v14 = vld [vmem:[#allocation10 + $0x1efc] ss:$24 sps:$4 sm:$0xff]  }
 0x981   :  { %v21293_v32 = vpop.eup %21292  ;;  %10135 = vmatpush1.bf16.msra.mxu0 %v19902_v56  ;;  %10264 = vmatpush1.bf16.msra.mxu1 %v19905_v36  ;;  %v8316_v55 = vmul.f32 %v8304_v25, %v8268_v17  ;;  %v8303_v53 = vadd.f32 1.0, %v21291_v61  ;;  %v19931_v56 = vld [vmem:[#allocation10 + $0x1ecc] ss:$24 sps:$4 sm:$0xff]   ;;  %v19926_v36 = vld [vmem:[#allocation10 + $0x1ec0] ss:$24 sps:$4 sm:$0xff]  }
 0x982   :  { %10166 = vmatprep.mubr.bf16.mxu0 %v22555_v33  ;;  %10295 = vmatprep.mubr.bf16.mxu1 %v22555_v33  ;;  %v22561_v24 = vpack.c.bf16 %v8319_v62, %v8313_v48  ;;  %v8322_v6 = vmul.f32 %v8310_v43, %v8274_v54  ;;  %v8309_v63 = vadd.f32 1.0, %v21293_v32  ;;  %v19932_v5 = vld [vmem:[#allocation10 + $0x1ef0] ss:$24 sps:$4 sm:$0xff]   ;;  %v19940_v10 = vld [vmem:[#allocation10 + $0x1f24] ss:$24 sps:$4 sm:$0xff]  }
 0x983   :  { %10136 = vmatprep.subr.bf16.mxu0 %v19910_v37  ;;  %10265 = vmatprep.subr.bf16.mxu1 %v19913_v42  ;;  %v8315_v49 = vmul.f32 %v8303_v53, %v8267_v20  ;;  %v19935_v59 = vld [vmem:[#allocation10 + $0x1ef8] ss:$24 sps:$4 sm:$0xff]   ;;  %v19943_v9 = vld [vmem:[#allocation10 + $0x1f2c] ss:$24 sps:$4 sm:$0xff]   ;;  %v19941_v37 = vld [vmem:[#allocation10 + $0x1f28] ss:$24 sps:$4 sm:$0xff]  }
 0x984   :  { %v22564_v30 = vpack.c.bf16 %v8322_v6, %v8316_v55  ;;  %v8321_v45 = vmul.f32 %v8309_v63, %v8273_v40  ;;  %v19938_v8 = vld [vmem:[#allocation10 + $0x1f20] ss:$24 sps:$4 sm:$0xff]   ;;  %v19946_v42 = vld [vmem:[#allocation10 + $0x1f54] ss:$24 sps:$4 sm:$0xff]   ;;  %v19944_v17 = vld [vmem:[#allocation10 + $0x1f50] ss:$24 sps:$4 sm:$0xff]  }
 0x985   :  { %10137 = vmatpush1.bf16.msra.mxu0 %v19908_v21  ;;  %10266 = vmatpush1.bf16.msra.mxu1 %v19911_v3  ;;  %v19949_v48 = vld [vmem:[#allocation10 + $0x1f5c] ss:$24 sps:$4 sm:$0xff]   ;;  %v19947_v25 = vld [vmem:[#allocation10 + $0x1f58] ss:$24 sps:$4 sm:$0xff]   ;;  %v19955_v62 = vld [vmem:[#allocation10 + $0x1f8c] ss:$24 sps:$4 sm:$0xff]  }
 0x986   :  { %10138 = vmatprep.subr.bf16.mxu0 %v19916_v7  ;;  %10267 = vmatprep.subr.bf16.mxu1 %v19919_v15  ;;  %v22566_v39 = vpack.c.bf16 %v8321_v45, %v8315_v49  ;;  %v19952_v61 = vld [vmem:[#allocation10 + $0x1f84] ss:$24 sps:$4 sm:$0xff]   ;;  %v19950_v54 = vld [vmem:[#allocation10 + $0x1f80] ss:$24 sps:$4 sm:$0xff]   ;;  %v19958_v32 = vld [vmem:[#allocation10 + $0x1fb4] ss:$24 sps:$4 sm:$0xff]  }
 0x987   :  { %v19953_v43 = vld [vmem:[#allocation10 + $0x1f88] ss:$24 sps:$4 sm:$0xff]   ;;  %v19961_v21 = vld [vmem:[#allocation10 + $0x1fbc] ss:$24 sps:$4 sm:$0xff]   ;;  %v19959_v55 = vld [vmem:[#allocation10 + $0x1fb8] ss:$24 sps:$4 sm:$0xff]  }
 0x988   :  { %v19956_v3 = vld [vmem:[#allocation10 + $0x1fb0] ss:$24 sps:$4 sm:$0xff]   ;;  %v19964_v20 = vld [vmem:[#allocation10 + $0x1fe4] ss:$24 sps:$4 sm:$0xff]   ;;  %v19962_v7 = vld [vmem:[#allocation10 + $0x1fe0] ss:$24 sps:$4 sm:$0xff]  }
 0x989   :  { %10139 = vmatpush1.bf16.msra.mxu0 %v19914_v51  ;;  %10268 = vmatpush1.bf16.msra.mxu1 %v19917_v1  ;;  %v19967_v53 = vld [vmem:[#allocation10 + $0x1fec] ss:$24 sps:$4 sm:$0xff]   ;;  %v19965_v15 = vld [vmem:[#allocation10 + $0x1fe8] ss:$24 sps:$4 sm:$0xff]   ;;  %v19973_v40 = vld [vmem:[#allocation10 + $0x201c] ss:$24 sps:$4 sm:$0xff]  }
 0x98a   :  { %10140 = vmatprep.subr.bf16.mxu0 %v19922_v16  ;;  %10269 = vmatprep.subr.bf16.mxu1 %v19925_v52  ;;  %v19970_v6 = vld [vmem:[#allocation10 + $0x2014] ss:$24 sps:$4 sm:$0xff]   ;;  %v19968_v63 = vld [vmem:[#allocation10 + $0x2010] ss:$24 sps:$4 sm:$0xff]   ;;  %v19976_v45 = vld [vmem:[#allocation10 + $0x2044] ss:$24 sps:$4 sm:$0xff]  }
 0x98b   :  { %v19971_v49 = vld [vmem:[#allocation10 + $0x2018] ss:$24 sps:$4 sm:$0xff]   ;;  %v19979_v51 = vld [vmem:[#allocation10 + $0x204c] ss:$24 sps:$4 sm:$0xff]   ;;  %v19977_v16 = vld [vmem:[#allocation10 + $0x2048] ss:$24 sps:$4 sm:$0xff]  }
 0x98c   :  { %v19974_v1 = vld [vmem:[#allocation10 + $0x2040] ss:$24 sps:$4 sm:$0xff]   ;;  %v19982_v52 = vld [vmem:[#allocation10 + $0x2074] ss:$24 sps:$4 sm:$0xff]  }
 0x98d   :  { %10141 = vmatpush1.bf16.msra.mxu0 %v19920_v2  ;;  %10270 = vmatpush1.bf16.msra.mxu1 %v19923_v60  ;;  %v19985_v2 = vld [vmem:[#allocation10 + $0x207c] ss:$24 sps:$4 sm:$0xff]   ;;  %v19980_v60 = vld [vmem:[#allocation10 + $0x2070] ss:$24 sps:$4 sm:$0xff]  }
 0x98e   :  { %10142 = vmatprep.subr.bf16.mxu0 %v19928_v57  ;;  %10271 = vmatprep.subr.bf16.mxu1 %v19931_v56  ;;  %v19983_v57 = vld [vmem:[#allocation10 + $0x2078] ss:$24 sps:$4 sm:$0xff]   ;;  %v19988_v56 = vld [vmem:[#allocation10 + $0x20a4] ss:$24 sps:$4 sm:$0xff]  }
 0x991   :  { %10143 = vmatpush1.bf16.msra.mxu0 %v19926_v36  ;;  %10272 = vmatpush1.bf16.msra.mxu1 %v19929_v4  ;;  %v19991_v36 = vld [vmem:[#allocation10 + $0x20ac] ss:$24 sps:$4 sm:$0xff]   ;;  %v19986_v4 = vld [vmem:[#allocation10 + $0x20a0] ss:$24 sps:$4 sm:$0xff]  }
 0x992   :  { %10144 = vmatprep.subr.bf16.mxu0 %v19934_v22  ;;  %10273 = vmatprep.subr.bf16.mxu1 %v19937_v14  ;;  %v19989_v22 = vld [vmem:[#allocation10 + $0x20a8] ss:$24 sps:$4 sm:$0xff]   ;;  %v19994_v14 = vld [vmem:[#allocation10 + $0x20d4] ss:$24 sps:$4 sm:$0xff]  }
 0x995   :  { %10145 = vmatpush1.bf16.msra.mxu0 %v19932_v5  ;;  %10274 = vmatpush1.bf16.msra.mxu1 %v19935_v59  ;;  %v19997_v5 = vld [vmem:[#allocation10 + $0x20dc] ss:$24 sps:$4 sm:$0xff]   ;;  %v19992_v59 = vld [vmem:[#allocation10 + $0x20d0] ss:$24 sps:$4 sm:$0xff]  }
 0x996   :  { %10146 = vmatprep.subr.bf16.mxu0 %v19940_v10  ;;  %10275 = vmatprep.subr.bf16.mxu1 %v19943_v9  ;;  %v19995_v10 = vld [vmem:[#allocation10 + $0x20d8] ss:$24 sps:$4 sm:$0xff]   ;;  %v20000_v9 = vld [vmem:[#allocation10 + $0x2104] ss:$24 sps:$4 sm:$0xff]  }
 0x999   :  { %10147 = vmatpush1.bf16.msra.mxu0 %v19938_v8  ;;  %10276 = vmatpush1.bf16.msra.mxu1 %v19941_v37  ;;  %v20003_v8 = vld [vmem:[#allocation10 + $0x210c] ss:$24 sps:$4 sm:$0xff]   ;;  %v19998_v37 = vld [vmem:[#allocation10 + $0x2100] ss:$24 sps:$4 sm:$0xff]  }
 0x99a   :  { %10148 = vmatprep.subr.bf16.mxu0 %v19946_v42  ;;  %10277 = vmatprep.subr.bf16.mxu1 %v19949_v48  ;;  %v20001_v42 = vld [vmem:[#allocation10 + $0x2108] ss:$24 sps:$4 sm:$0xff]   ;;  %v20006_v48 = vld [vmem:[#allocation10 + $0x2134] ss:$24 sps:$4 sm:$0xff]  }
 0x99d   :  { %10149 = vmatpush1.bf16.msra.mxu0 %v19944_v17  ;;  %10278 = vmatpush1.bf16.msra.mxu1 %v19947_v25  ;;  %v20009_v17 = vld [vmem:[#allocation10 + $0x213c] ss:$24 sps:$4 sm:$0xff]   ;;  %v20004_v25 = vld [vmem:[#allocation10 + $0x2130] ss:$24 sps:$4 sm:$0xff]  }
 0x99e   :  { %10150 = vmatprep.subr.bf16.mxu0 %v19952_v61  ;;  %10279 = vmatprep.subr.bf16.mxu1 %v19955_v62  ;;  %v20007_v61 = vld [vmem:[#allocation10 + $0x2138] ss:$24 sps:$4 sm:$0xff]   ;;  %v20012_v62 = vld [vmem:[#allocation10 + $0x2164] ss:$24 sps:$4 sm:$0xff]  }
 0x9a1   :  { %10151 = vmatpush1.bf16.msra.mxu0 %v19950_v54  ;;  %10280 = vmatpush1.bf16.msra.mxu1 %v19953_v43  ;;  %v20015_v54 = vld [vmem:[#allocation10 + $0x216c] ss:$24 sps:$4 sm:$0xff]   ;;  %v20010_v43 = vld [vmem:[#allocation10 + $0x2160] ss:$24 sps:$4 sm:$0xff]  }
 0x9a2   :  { %10152 = vmatprep.subr.bf16.mxu0 %v19958_v32  ;;  %10281 = vmatprep.subr.bf16.mxu1 %v19961_v21  ;;  %v20013_v32 = vld [vmem:[#allocation10 + $0x2168] ss:$24 sps:$4 sm:$0xff]   ;;  %v20018_v21 = vld [vmem:[#allocation10 + $0x2194] ss:$24 sps:$4 sm:$0xff]  }
 0x9a5   :  { %10153 = vmatpush1.bf16.msra.mxu0 %v19956_v3  ;;  %10282 = vmatpush1.bf16.msra.mxu1 %v19959_v55  ;;  %v20021_v3 = vld [vmem:[#allocation10 + $0x219c] ss:$24 sps:$4 sm:$0xff]   ;;  %v20016_v55 = vld [vmem:[#allocation10 + $0x2190] ss:$24 sps:$4 sm:$0xff]  }
 0x9a6   :  { %10154 = vmatprep.subr.bf16.mxu0 %v19964_v20  ;;  %10283 = vmatprep.subr.bf16.mxu1 %v19967_v53  ;;  %v20019_v20 = vld [vmem:[#allocation10 + $0x2198] ss:$24 sps:$4 sm:$0xff]   ;;  %v20024_v53 = vld [vmem:[#allocation10 + $0x21c4] ss:$24 sps:$4 sm:$0xff]  }
 0x9a9   :  { %10155 = vmatpush1.bf16.msra.mxu0 %v19962_v7  ;;  %10284 = vmatpush1.bf16.msra.mxu1 %v19965_v15  ;;  %v20027_v7 = vld [vmem:[#allocation10 + $0x21cc] ss:$24 sps:$4 sm:$0xff]   ;;  %v20022_v15 = vld [vmem:[#allocation10 + $0x21c0] ss:$24 sps:$4 sm:$0xff]  }
 0x9aa   :  { %10156 = vmatprep.subr.bf16.mxu0 %v19970_v6  ;;  %10285 = vmatprep.subr.bf16.mxu1 %v19973_v40  ;;  %v20025_v6 = vld [vmem:[#allocation10 + $0x21c8] ss:$24 sps:$4 sm:$0xff]   ;;  %v20030_v40 = vld [vmem:[#allocation10 + $0x21f4] ss:$24 sps:$4 sm:$0xff]  }
 0x9ad   :  { %10157 = vmatpush1.bf16.msra.mxu0 %v19968_v63  ;;  %10286 = vmatpush1.bf16.msra.mxu1 %v19971_v49  ;;  %v20033_v63 = vld [vmem:[#allocation10 + $0x21fc] ss:$24 sps:$4 sm:$0xff]   ;;  %v20028_v49 = vld [vmem:[#allocation10 + $0x21f0] ss:$24 sps:$4 sm:$0xff]  }
 0x9ae   :  { %10158 = vmatprep.subr.bf16.mxu0 %v19976_v45  ;;  %10287 = vmatprep.subr.bf16.mxu1 %v19979_v51  ;;  %v20031_v45 = vld [vmem:[#allocation10 + $0x21f8] ss:$24 sps:$4 sm:$0xff]   ;;  %v20036_v51 = vld [vmem:[#allocation10 + $0x2224] ss:$24 sps:$4 sm:$0xff]  }
 0x9b1   :  { %10159 = vmatpush1.bf16.msra.mxu0 %v19974_v1  ;;  %10288 = vmatpush1.bf16.msra.mxu1 %v19977_v16  ;;  %v20039_v1 = vld [vmem:[#allocation10 + $0x222c] ss:$24 sps:$4 sm:$0xff]   ;;  %v20034_v16 = vld [vmem:[#allocation10 + $0x2220] ss:$24 sps:$4 sm:$0xff]  }
 0x9b2   :  { %10160 = vmatprep.subr.bf16.mxu0 %v19982_v52  ;;  %10289 = vmatprep.subr.bf16.mxu1 %v19985_v2  ;;  %v20037_v52 = vld [vmem:[#allocation10 + $0x2228] ss:$24 sps:$4 sm:$0xff]   ;;  %v20042_v2 = vld [vmem:[#allocation10 + $0x2254] ss:$24 sps:$4 sm:$0xff]  }
 0x9b5   :  { %10161 = vmatpush1.bf16.msra.mxu0 %v19980_v60  ;;  %10290 = vmatpush1.bf16.msra.mxu1 %v19983_v57  ;;  %v20045_v60 = vld [vmem:[#allocation10 + $0x225c] ss:$24 sps:$4 sm:$0xff]   ;;  %v20040_v57 = vld [vmem:[#allocation10 + $0x2250] ss:$24 sps:$4 sm:$0xff]  }
 0x9b6   :  { %10162 = vmatprep.subr.bf16.mxu0 %v19988_v56  ;;  %10291 = vmatprep.subr.bf16.mxu1 %v19991_v36  ;;  %v20043_v56 = vld [vmem:[#allocation10 + $0x2258] ss:$24 sps:$4 sm:$0xff]   ;;  %v20048_v36 = vld [vmem:[#allocation10 + $0x2284] ss:$24 sps:$4 sm:$0xff]  }
 0x9b9   :  { %10163 = vmatpush1.bf16.msra.mxu0 %v19986_v4  ;;  %10292 = vmatpush1.bf16.msra.mxu1 %v19989_v22  ;;  %v20051_v4 = vld [vmem:[#allocation10 + $0x228c] ss:$24 sps:$4 sm:$0xff]   ;;  %v20046_v22 = vld [vmem:[#allocation10 + $0x2280] ss:$24 sps:$4 sm:$0xff]  }
 0x9ba   :  { %10164 = vmatprep.subr.bf16.mxu0 %v19994_v14  ;;  %10293 = vmatprep.subr.bf16.mxu1 %v19997_v5  ;;  %v20049_v14 = vld [vmem:[#allocation10 + $0x2288] ss:$24 sps:$4 sm:$0xff]   ;;  %v20054_v5 = vld [vmem:[#allocation10 + $0x22b4] ss:$24 sps:$4 sm:$0xff]  }
 0x9bd   :  { %10165 = vmatpush1.bf16.msra.mxu0 %v19992_v59  ;;  %10294 = vmatpush1.bf16.msra.mxu1 %v19995_v10  ;;  %v20057_v59 = vld [vmem:[#allocation10 + $0x22bc] ss:$24 sps:$4 sm:$0xff]   ;;  %v20052_v10 = vld [vmem:[#allocation10 + $0x22b0] ss:$24 sps:$4 sm:$0xff]  }
 0x9be   :  { %10177 = vmatprep.subr.bf16.mxu0 %v20000_v9  ;;  %10306 = vmatprep.subr.bf16.mxu1 %v20003_v8  ;;  %v20055_v9 = vld [vmem:[#allocation10 + $0x22b8] ss:$24 sps:$4 sm:$0xff]   ;;  %v20060_v8 = vld [vmem:[#allocation10 + $0x22e4] ss:$24 sps:$4 sm:$0xff]  }
 0x9c0   :  { %10167 = vmatmul.mubr.bf16.vlgmr.msra.gmra.mrb[24].mxu0 %v22561_v24  ;;  %10296 = vmatmul.mubr.bf16.vlgmr.msra.gmra.mrb[24].mxu1 %v22561_v24 }
 0x9c1   :  { %10178 = vmatpush1.bf16.msra.mxu0 %v19998_v37  ;;  %10209 = vmatprep.mubr.bf16.mxu0 %v22564_v30  ;;  %v20063_v37 = vld [vmem:[#allocation10 + $0x22ec] ss:$24 sps:$4 sm:$0xff]  }
 0x9c2   :  { %10307 = vmatpush1.bf16.msra.mxu1 %v20001_v42  ;;  %10338 = vmatprep.mubr.bf16.mxu1 %v22564_v30  ;;  %v20058_v42 = vld [vmem:[#allocation10 + $0x22e0] ss:$24 sps:$4 sm:$0xff]  }
 0x9c3   :  { %10179 = vmatprep.subr.bf16.mxu0 %v20006_v48  ;;  %10308 = vmatprep.subr.bf16.mxu1 %v20009_v17  ;;  %v20061_v48 = vld [vmem:[#allocation10 + $0x22e8] ss:$24 sps:$4 sm:$0xff]   ;;  %v20066_v17 = vld [vmem:[#allocation10 + $0x2314] ss:$24 sps:$4 sm:$0xff]  }
 0x9c5   :  { %10180 = vmatpush1.bf16.msra.mxu0 %v20004_v25  ;;  %v20069_v25 = vld [vmem:[#allocation10 + $0x231c] ss:$24 sps:$4 sm:$0xff]  }
 0x9c6   :  { %10309 = vmatpush1.bf16.msra.mxu1 %v20007_v61  ;;  %10181 = vmatprep.subr.bf16.mxu0 %v20012_v62  ;;  %v20064_v61 = vld [vmem:[#allocation10 + $0x2310] ss:$24 sps:$4 sm:$0xff]  }
 0x9c7   :  { %10310 = vmatprep.subr.bf16.mxu1 %v20015_v54  ;;  %v20067_v62 = vld [vmem:[#allocation10 + $0x2318] ss:$24 sps:$4 sm:$0xff]   ;;  %v20072_v54 = vld [vmem:[#allocation10 + $0x2344] ss:$24 sps:$4 sm:$0xff]  }
 0x9c9   :  { %10182 = vmatpush1.bf16.msra.mxu0 %v20010_v43  ;;  %v20075_v43 = vld [vmem:[#allocation10 + $0x234c] ss:$24 sps:$4 sm:$0xff]  }
 0x9ca   :  { %10311 = vmatpush1.bf16.msra.mxu1 %v20013_v32  ;;  %10183 = vmatprep.subr.bf16.mxu0 %v20018_v21  ;;  %v20070_v32 = vld [vmem:[#allocation10 + $0x2340] ss:$24 sps:$4 sm:$0xff]  }
 0x9cb   :  { %10312 = vmatprep.subr.bf16.mxu1 %v20021_v3  ;;  %v20073_v21 = vld [vmem:[#allocation10 + $0x2348] ss:$24 sps:$4 sm:$0xff]   ;;  %v20078_v3 = vld [vmem:[#allocation10 + $0x2374] ss:$24 sps:$4 sm:$0xff]  }
 0x9cd   :  { %10184 = vmatpush1.bf16.msra.mxu0 %v20016_v55  ;;  %v20081_v55 = vld [vmem:[#allocation10 + $0x237c] ss:$24 sps:$4 sm:$0xff]  }
 0x9ce   :  { %10313 = vmatpush1.bf16.msra.mxu1 %v20019_v20  ;;  %10185 = vmatprep.subr.bf16.mxu0 %v20024_v53  ;;  %v20076_v20 = vld [vmem:[#allocation10 + $0x2370] ss:$24 sps:$4 sm:$0xff]  }
 0x9cf   :  { %10314 = vmatprep.subr.bf16.mxu1 %v20027_v7  ;;  %v20079_v53 = vld [vmem:[#allocation10 + $0x2378] ss:$24 sps:$4 sm:$0xff]   ;;  %v20084_v7 = vld [vmem:[#allocation10 + $0x23a4] ss:$24 sps:$4 sm:$0xff]  }
 0x9d1   :  { %10186 = vmatpush1.bf16.msra.mxu0 %v20022_v15  ;;  %v20087_v15 = vld [vmem:[#allocation10 + $0x23ac] ss:$24 sps:$4 sm:$0xff]  }
 0x9d2   :  { %10315 = vmatpush1.bf16.msra.mxu1 %v20025_v6  ;;  %10187 = vmatprep.subr.bf16.mxu0 %v20030_v40  ;;  %v20082_v6 = vld [vmem:[#allocation10 + $0x23a0] ss:$24 sps:$4 sm:$0xff]  }
 0x9d3   :  { %10316 = vmatprep.subr.bf16.mxu1 %v20033_v63  ;;  %v20085_v40 = vld [vmem:[#allocation10 + $0x23a8] ss:$24 sps:$4 sm:$0xff]   ;;  %v20090_v63 = vld [vmem:[#allocation10 + $0x23d4] ss:$24 sps:$4 sm:$0xff]  }
 0x9d5   :  { %10188 = vmatpush1.bf16.msra.mxu0 %v20028_v49  ;;  %v20093_v49 = vld [vmem:[#allocation10 + $0x23dc] ss:$24 sps:$4 sm:$0xff]  }
 0x9d6   :  { %10317 = vmatpush1.bf16.msra.mxu1 %v20031_v45  ;;  %10189 = vmatprep.subr.bf16.mxu0 %v20036_v51  ;;  %v20088_v45 = vld [vmem:[#allocation10 + $0x23d0] ss:$24 sps:$4 sm:$0xff]  }
 0x9d7   :  { %10318 = vmatprep.subr.bf16.mxu1 %v20039_v1  ;;  %v20091_v51 = vld [vmem:[#allocation10 + $0x23d8] ss:$24 sps:$4 sm:$0xff]   ;;  %v20096_v1 = vld [vmem:[#allocation10 + $0x1b14] ss:$24 sps:$4 sm:$0xff]  }
 0x9d9   :  { %10190 = vmatpush1.bf16.msra.mxu0 %v20034_v16  ;;  %v20094_v16 = vld [vmem:[#allocation10 + $0x1b10] ss:$24 sps:$4 sm:$0xff]  }
 0x9da   :  { %10319 = vmatpush1.bf16.msra.mxu1 %v20037_v52  ;;  %10191 = vmatprep.subr.bf16.mxu0 %v20042_v2  ;;  %v20099_v52 = vld [vmem:[#allocation10 + $0x1b44] ss:$24 sps:$4 sm:$0xff]   ;;  %v20097_v2 = vld [vmem:[#allocation10 + $0x1b40] ss:$24 sps:$4 sm:$0xff]  }
 0x9db   :  { %10320 = vmatprep.subr.bf16.mxu1 %v20045_v60  ;;  %v20102_v60 = vld [vmem:[#allocation10 + $0x1b74] ss:$24 sps:$4 sm:$0xff]  }
 0x9dd   :  { %10192 = vmatpush1.bf16.msra.mxu0 %v20040_v57  ;;  %v20100_v57 = vld [vmem:[#allocation10 + $0x1b70] ss:$24 sps:$4 sm:$0xff]  }
 0x9de   :  { %10321 = vmatpush1.bf16.msra.mxu1 %v20043_v56  ;;  %10193 = vmatprep.subr.bf16.mxu0 %v20048_v36  ;;  %v20105_v56 = vld [vmem:[#allocation10 + $0x1ba4] ss:$24 sps:$4 sm:$0xff]   ;;  %v20103_v36 = vld [vmem:[#allocation10 + $0x1ba0] ss:$24 sps:$4 sm:$0xff]  }
 0x9df   :  { %10322 = vmatprep.subr.bf16.mxu1 %v20051_v4  ;;  %v20108_v4 = vld [vmem:[#allocation10 + $0x1bd4] ss:$24 sps:$4 sm:$0xff]  }
 0x9e1   :  { %10194 = vmatpush1.bf16.msra.mxu0 %v20046_v22  ;;  %v20106_v22 = vld [vmem:[#allocation10 + $0x1bd0] ss:$24 sps:$4 sm:$0xff]  }
 0x9e2   :  { %10323 = vmatpush1.bf16.msra.mxu1 %v20049_v14  ;;  %10195 = vmatprep.subr.bf16.mxu0 %v20054_v5  ;;  %v20111_v14 = vld [vmem:[#allocation10 + $0x1c04] ss:$24 sps:$4 sm:$0xff]   ;;  %v20109_v5 = vld [vmem:[#allocation10 + $0x1c00] ss:$24 sps:$4 sm:$0xff]  }
 0x9e3   :  { %10324 = vmatprep.subr.bf16.mxu1 %v20057_v59  ;;  %v20114_v59 = vld [vmem:[#allocation10 + $0x1c34] ss:$24 sps:$4 sm:$0xff]  }
 0x9e5   :  { %10196 = vmatpush1.bf16.msra.mxu0 %v20052_v10  ;;  %v20117_v10 = vld [vmem:[#allocation10 + $0x1c64] ss:$24 sps:$4 sm:$0xff]  }
 0x9e6   :  { %10325 = vmatpush1.bf16.msra.mxu1 %v20055_v9  ;;  %10197 = vmatprep.subr.bf16.mxu0 %v20060_v8  ;;  %v20115_v9 = vld [vmem:[#allocation10 + $0x1c60] ss:$24 sps:$4 sm:$0xff]   ;;  %v20120_v8 = vld [vmem:[#allocation10 + $0x1c94] ss:$24 sps:$4 sm:$0xff]  }
 0x9e7   :  { %10326 = vmatprep.subr.bf16.mxu1 %v20063_v37  ;;  %v20118_v37 = vld [vmem:[#allocation10 + $0x1c90] ss:$24 sps:$4 sm:$0xff]  }
 0x9e9   :  { %10198 = vmatpush1.bf16.msra.mxu0 %v20058_v42  ;;  %v20123_v42 = vld [vmem:[#allocation10 + $0x1cc4] ss:$24 sps:$4 sm:$0xff]  }
 0x9ea   :  { %10327 = vmatpush1.bf16.msra.mxu1 %v20061_v48  ;;  %10199 = vmatprep.subr.bf16.mxu0 %v20066_v17  ;;  %v20121_v48 = vld [vmem:[#allocation10 + $0x1cc0] ss:$24 sps:$4 sm:$0xff]   ;;  %v20126_v17 = vld [vmem:[#allocation10 + $0x1cf4] ss:$24 sps:$4 sm:$0xff]  }
 0x9eb   :  { %10328 = vmatprep.subr.bf16.mxu1 %v20069_v25  ;;  %v20124_v25 = vld [vmem:[#allocation10 + $0x1cf0] ss:$24 sps:$4 sm:$0xff]  }
 0x9ed   :  { %10200 = vmatpush1.bf16.msra.mxu0 %v20064_v61  ;;  %v20129_v61 = vld [vmem:[#allocation10 + $0x1d24] ss:$24 sps:$4 sm:$0xff]  }
 0x9ee   :  { %10329 = vmatpush1.bf16.msra.mxu1 %v20067_v62  ;;  %10201 = vmatprep.subr.bf16.mxu0 %v20072_v54  ;;  %v20127_v62 = vld [vmem:[#allocation10 + $0x1d20] ss:$24 sps:$4 sm:$0xff]   ;;  %v20132_v54 = vld [vmem:[#allocation10 + $0x1d54] ss:$24 sps:$4 sm:$0xff]  }
 0x9ef   :  { %10330 = vmatprep.subr.bf16.mxu1 %v20075_v43  ;;  %v20130_v43 = vld [vmem:[#allocation10 + $0x1d50] ss:$24 sps:$4 sm:$0xff]  }
 0x9f1   :  { %10202 = vmatpush1.bf16.msra.mxu0 %v20070_v32  ;;  %v20135_v32 = vld [vmem:[#allocation10 + $0x1d84] ss:$24 sps:$4 sm:$0xff]  }
 0x9f2   :  { %10331 = vmatpush1.bf16.msra.mxu1 %v20073_v21  ;;  %10203 = vmatprep.subr.bf16.mxu0 %v20078_v3  ;;  %v20133_v21 = vld [vmem:[#allocation10 + $0x1d80] ss:$24 sps:$4 sm:$0xff]   ;;  %v20138_v3 = vld [vmem:[#allocation10 + $0x1db4] ss:$24 sps:$4 sm:$0xff]  }
 0x9f3   :  { %10332 = vmatprep.subr.bf16.mxu1 %v20081_v55  ;;  %v20136_v55 = vld [vmem:[#allocation10 + $0x1db0] ss:$24 sps:$4 sm:$0xff]  }
 0x9f5   :  { %10204 = vmatpush1.bf16.msra.mxu0 %v20076_v20  ;;  %v20141_v20 = vld [vmem:[#allocation10 + $0x1de4] ss:$24 sps:$4 sm:$0xff]  }
 0x9f6   :  { %10333 = vmatpush1.bf16.msra.mxu1 %v20079_v53  ;;  %10205 = vmatprep.subr.bf16.mxu0 %v20084_v7  ;;  %v20139_v53 = vld [vmem:[#allocation10 + $0x1de0] ss:$24 sps:$4 sm:$0xff]   ;;  %v20144_v7 = vld [vmem:[#allocation10 + $0x1e14] ss:$24 sps:$4 sm:$0xff]  }
 0x9f7   :  { %10334 = vmatprep.subr.bf16.mxu1 %v20087_v15  ;;  %v20142_v15 = vld [vmem:[#allocation10 + $0x1e10] ss:$24 sps:$4 sm:$0xff]  }
 0x9f9   :  { %10206 = vmatpush1.bf16.msra.mxu0 %v20082_v6  ;;  %v20147_v6 = vld [vmem:[#allocation10 + $0x1e44] ss:$24 sps:$4 sm:$0xff]  }
 0x9fa   :  { %10335 = vmatpush1.bf16.msra.mxu1 %v20085_v40  ;;  %10207 = vmatprep.subr.bf16.mxu0 %v20090_v63  ;;  %v20145_v40 = vld [vmem:[#allocation10 + $0x1e40] ss:$24 sps:$4 sm:$0xff]   ;;  %v20150_v63 = vld [vmem:[#allocation10 + $0x1e74] ss:$24 sps:$4 sm:$0xff]  }
 0x9fb   :  { %10336 = vmatprep.subr.bf16.mxu1 %v20093_v49  ;;  %v20148_v49 = vld [vmem:[#allocation10 + $0x1e70] ss:$24 sps:$4 sm:$0xff]  }
 0x9fd   :  { %10208 = vmatpush1.bf16.msra.mxu0 %v20088_v45  ;;  %v20153_v45 = vld [vmem:[#allocation10 + $0x1ea4] ss:$24 sps:$4 sm:$0xff]  }
 0x9fe   :  { %10337 = vmatpush1.bf16.msra.mxu1 %v20091_v51  ;;  %10349 = vmatprep.subr.bf16.mxu0 %v20096_v1  ;;  %v20151_v51 = vld [vmem:[#allocation10 + $0x1ea0] ss:$24 sps:$4 sm:$0xff]   ;;  %v20156_v1 = vld [vmem:[#allocation10 + $0x1ed4] ss:$24 sps:$4 sm:$0xff]  }
 0xa00   :  { %10210 = vmatmul.mubr.bf16.vlgmr.msra.gmra.mrb[24].mxu0 %v22566_v39 }
 0xa01   :  { %10339 = vmatmul.mubr.bf16.vlgmr.msra.gmra.mrb[24].mxu1 %v22566_v39  ;;  %10350 = vmatpush1.bf16.msra.mxu0 %v20094_v16  ;;  %v20154_v16 = vld [vmem:[#allocation10 + $0x1ed0] ss:$24 sps:$4 sm:$0xff]  }
 0xa02   :  { %10381 = vmatprep.mubr.bf16.mxu0 %v22546_v44  ;;  %10351 = vmatprep.subr.bf16.mxu0 %v20099_v52  ;;  %v20112_v44 = vld [vmem:[#allocation10 + $0x1c30] ss:$24 sps:$4 sm:$0xff]   ;;  %v20159_v52 = vld [vmem:[#allocation10 + $0x1f04] ss:$24 sps:$4 sm:$0xff]  }
 0xa05   :  { %10352 = vmatpush1.bf16.msra.mxu0 %v20097_v2  ;;  %v20162_v2 = vld [vmem:[#allocation10 + $0x1f34] ss:$24 sps:$4 sm:$0xff]  }
 0xa06   :  { %10353 = vmatprep.subr.bf16.mxu0 %v20102_v60  ;;  %v20165_v60 = vld [vmem:[#allocation10 + $0x1f64] ss:$24 sps:$4 sm:$0xff]  }
 0xa09   :  { %10354 = vmatpush1.bf16.msra.mxu0 %v20100_v57  ;;  %v20163_v57 = vld [vmem:[#allocation10 + $0x1f60] ss:$24 sps:$4 sm:$0xff]  }
 0xa0a   :  { %10355 = vmatprep.subr.bf16.mxu0 %v20105_v56  ;;  %v20168_v56 = vld [vmem:[#allocation10 + $0x1f94] ss:$24 sps:$4 sm:$0xff]  }
 0xa0d   :  { %10356 = vmatpush1.bf16.msra.mxu0 %v20103_v36  ;;  %v20166_v36 = vld [vmem:[#allocation10 + $0x1f90] ss:$24 sps:$4 sm:$0xff]  }
 0xa0e   :  { %10357 = vmatprep.subr.bf16.mxu0 %v20108_v4  ;;  %v20171_v4 = vld [vmem:[#allocation10 + $0x1fc4] ss:$24 sps:$4 sm:$0xff]  }
 0xa11   :  { %10358 = vmatpush1.bf16.msra.mxu0 %v20106_v22  ;;  %v20169_v22 = vld [vmem:[#allocation10 + $0x1fc0] ss:$24 sps:$4 sm:$0xff]  }
 0xa12   :  { %10359 = vmatprep.subr.bf16.mxu0 %v20111_v14  ;;  %v20174_v14 = vld [vmem:[#allocation10 + $0x1ff4] ss:$24 sps:$4 sm:$0xff]  }
 0xa15   :  { %10360 = vmatpush1.bf16.msra.mxu0 %v20109_v5  ;;  %v20172_v5 = vld [vmem:[#allocation10 + $0x1ff0] ss:$24 sps:$4 sm:$0xff]  }
 0xa16   :  { %10361 = vmatprep.subr.bf16.mxu0 %v20114_v59  ;;  %v20177_v59 = vld [vmem:[#allocation10 + $0x2024] ss:$24 sps:$4 sm:$0xff]  }
 0xa19   :  { %10362 = vmatpush1.bf16.msra.mxu0 %v20112_v44  ;;  %v20175_v44 = vld [vmem:[#allocation10 + $0x2020] ss:$24 sps:$4 sm:$0xff]  }
 0xa1a   :  { %10363 = vmatprep.subr.bf16.mxu0 %v20117_v10  ;;  %v20180_v10 = vld [vmem:[#allocation10 + $0x2054] ss:$24 sps:$4 sm:$0xff]  }
 0xa1d   :  { %10364 = vmatpush1.bf16.msra.mxu0 %v20115_v9  ;;  %v20178_v9 = vld [vmem:[#allocation10 + $0x2050] ss:$24 sps:$4 sm:$0xff]  }
 0xa1e   :  { %10365 = vmatprep.subr.bf16.mxu0 %v20120_v8  ;;  %v20183_v8 = vld [vmem:[#allocation10 + $0x2084] ss:$24 sps:$4 sm:$0xff]  }
 0xa21   :  { %10366 = vmatpush1.bf16.msra.mxu0 %v20118_v37  ;;  %v20181_v37 = vld [vmem:[#allocation10 + $0x2080] ss:$24 sps:$4 sm:$0xff]  }
 0xa22   :  { %10367 = vmatprep.subr.bf16.mxu0 %v20123_v42  ;;  %v20186_v42 = vld [vmem:[#allocation10 + $0x20b4] ss:$24 sps:$4 sm:$0xff]  }
 0xa25   :  { %10368 = vmatpush1.bf16.msra.mxu0 %v20121_v48  ;;  %v20184_v48 = vld [vmem:[#allocation10 + $0x20b0] ss:$24 sps:$4 sm:$0xff]  }
 0xa26   :  { %10369 = vmatprep.subr.bf16.mxu0 %v20126_v17  ;;  %v20189_v17 = vld [vmem:[#allocation10 + $0x20e4] ss:$24 sps:$4 sm:$0xff]  }
 0xa29   :  { %10370 = vmatpush1.bf16.msra.mxu0 %v20124_v25  ;;  %v20187_v25 = vld [vmem:[#allocation10 + $0x20e0] ss:$24 sps:$4 sm:$0xff]  }
 0xa2a   :  { %10371 = vmatprep.subr.bf16.mxu0 %v20129_v61  ;;  %v20192_v61 = vld [vmem:[#allocation10 + $0x2114] ss:$24 sps:$4 sm:$0xff]  }
 0xa2d   :  { %10372 = vmatpush1.bf16.msra.mxu0 %v20127_v62  ;;  %v20190_v62 = vld [vmem:[#allocation10 + $0x2110] ss:$24 sps:$4 sm:$0xff]  }
 0xa2e   :  { %10373 = vmatprep.subr.bf16.mxu0 %v20132_v54  ;;  %v20195_v54 = vld [vmem:[#allocation10 + $0x2144] ss:$24 sps:$4 sm:$0xff]  }
 0xa31   :  { %10374 = vmatpush1.bf16.msra.mxu0 %v20130_v43  ;;  %v20193_v43 = vld [vmem:[#allocation10 + $0x2140] ss:$24 sps:$4 sm:$0xff]  }
 0xa32   :  { %10375 = vmatprep.subr.bf16.mxu0 %v20135_v32  ;;  %v20198_v32 = vld [vmem:[#allocation10 + $0x2174] ss:$24 sps:$4 sm:$0xff]  }
 0xa35   :  { %10376 = vmatpush1.bf16.msra.mxu0 %v20133_v21  ;;  %v20196_v21 = vld [vmem:[#allocation10 + $0x2170] ss:$24 sps:$4 sm:$0xff]  }
 0xa36   :  { %10377 = vmatprep.subr.bf16.mxu0 %v20138_v3  ;;  %v20201_v3 = vld [vmem:[#allocation10 + $0x21a4] ss:$24 sps:$4 sm:$0xff]  }
 0xa39   :  { %10378 = vmatpush1.bf16.msra.mxu0 %v20136_v55  ;;  %v20199_v55 = vld [vmem:[#allocation10 + $0x21a0] ss:$24 sps:$4 sm:$0xff]  }
 0xa3a   :  { %10379 = vmatprep.subr.bf16.mxu0 %v20141_v20  ;;  %v20204_v20 = vld [vmem:[#allocation10 + $0x21d4] ss:$24 sps:$4 sm:$0xff]  }
 0xa3d   :  { %10380 = vmatpush1.bf16.msra.mxu0 %v20139_v53  ;;  %v20202_v53 = vld [vmem:[#allocation10 + $0x21d0] ss:$24 sps:$4 sm:$0xff]  }
 0xa3e   :  { %10392 = vmatprep.subr.bf16.mxu0 %v20144_v7  ;;  %v20207_v7 = vld [vmem:[#allocation10 + $0x2204] ss:$24 sps:$4 sm:$0xff]  }
 0xa40   :  { %10382 = vmatmul.mubr.bf16.vlgmr.msra.gmra.mrb[28].mxu0 %v22551_v19  ;;  %v20157_v19 = vld [vmem:[#allocation10 + $0x1f00] ss:$24 sps:$4 sm:$0xff]  }
 0xa41   :  { %10393 = vmatpush1.bf16.msra.mxu0 %v20142_v15  ;;  %10424 = vmatprep.mubr.bf16.mxu0 %v22555_v33  ;;  %v20160_v33 = vld [vmem:[#allocation10 + $0x1f30] ss:$24 sps:$4 sm:$0xff]   ;;  %v20210_v15 = vld [vmem:[#allocation10 + $0x2234] ss:$24 sps:$4 sm:$0xff]  }
 0xa42   :  { %10394 = vmatprep.subr.bf16.mxu0 %v20147_v6  ;;  %v20213_v6 = vld [vmem:[#allocation10 + $0x2264] ss:$24 sps:$4 sm:$0xff]  }
 0xa45   :  { %10395 = vmatpush1.bf16.msra.mxu0 %v20145_v40  ;;  %v20211_v40 = vld [vmem:[#allocation10 + $0x2260] ss:$24 sps:$4 sm:$0xff]  }
 0xa46   :  { %10396 = vmatprep.subr.bf16.mxu0 %v20150_v63  ;;  %v20216_v63 = vld [vmem:[#allocation10 + $0x2294] ss:$24 sps:$4 sm:$0xff]  }
 0xa49   :  { %10397 = vmatpush1.bf16.msra.mxu0 %v20148_v49  ;;  %v20214_v49 = vld [vmem:[#allocation10 + $0x2290] ss:$24 sps:$4 sm:$0xff]  }
 0xa4a   :  { %10398 = vmatprep.subr.bf16.mxu0 %v20153_v45  ;;  %v20219_v45 = vld [vmem:[#allocation10 + $0x22c4] ss:$24 sps:$4 sm:$0xff]  }
 0xa4d   :  { %10399 = vmatpush1.bf16.msra.mxu0 %v20151_v51  ;;  %v20217_v51 = vld [vmem:[#allocation10 + $0x22c0] ss:$24 sps:$4 sm:$0xff]  }
 0xa4e   :  { %10400 = vmatprep.subr.bf16.mxu0 %v20156_v1  ;;  %v20222_v1 = vld [vmem:[#allocation10 + $0x22f4] ss:$24 sps:$4 sm:$0xff]  }
 0xa51   :  { %10401 = vmatpush1.bf16.msra.mxu0 %v20154_v16  ;;  %v20220_v16 = vld [vmem:[#allocation10 + $0x22f0] ss:$24 sps:$4 sm:$0xff]  }
 0xa52   :  { %10402 = vmatprep.subr.bf16.mxu0 %v20159_v52  ;;  %v20225_v52 = vld [vmem:[#allocation10 + $0x2324] ss:$24 sps:$4 sm:$0xff]  }
 0xa55   :  { %10403 = vmatpush1.bf16.msra.mxu0 %v20157_v19  ;;  %v20223_v19 = vld [vmem:[#allocation10 + $0x2320] ss:$24 sps:$4 sm:$0xff]  }
 0xa56   :  { %10404 = vmatprep.subr.bf16.mxu0 %v20162_v2  ;;  %v20228_v2 = vld [vmem:[#allocation10 + $0x2354] ss:$24 sps:$4 sm:$0xff]  }
 0xa59   :  { %10405 = vmatpush1.bf16.msra.mxu0 %v20160_v33  ;;  %v20226_v33 = vld [vmem:[#allocation10 + $0x2350] ss:$24 sps:$4 sm:$0xff]  }
 0xa5a   :  { %10406 = vmatprep.subr.bf16.mxu0 %v20165_v60  ;;  %v20231_v60 = vld [vmem:[#allocation10 + $0x2384] ss:$24 sps:$4 sm:$0xff]  }
 0xa5d   :  { %10407 = vmatpush1.bf16.msra.mxu0 %v20163_v57  ;;  %v20229_v57 = vld [vmem:[#allocation10 + $0x2380] ss:$24 sps:$4 sm:$0xff]  }
 0xa5e   :  { %10408 = vmatprep.subr.bf16.mxu0 %v20168_v56  ;;  %v20234_v56 = vld [vmem:[#allocation10 + $0x23b4] ss:$24 sps:$4 sm:$0xff]  }
 0xa61   :  { %10409 = vmatpush1.bf16.msra.mxu0 %v20166_v36  ;;  %v20232_v36 = vld [vmem:[#allocation10 + $0x23b0] ss:$24 sps:$4 sm:$0xff]  }
 0xa62   :  { %10410 = vmatprep.subr.bf16.mxu0 %v20171_v4  ;;  %v20237_v4 = vld [vmem:[#allocation10 + $0x23e4] ss:$24 sps:$4 sm:$0xff]  }
 0xa65   :  { %10411 = vmatpush1.bf16.msra.mxu0 %v20169_v22  ;;  %v20235_v22 = vld [vmem:[#allocation10 + $0x23e0] ss:$24 sps:$4 sm:$0xff]  }
 0xa66   :  { %10412 = vmatprep.subr.bf16.mxu0 %v20174_v14  ;;  %v22580_v14 = vld [vmem:[#allocation11 + $0x12] sm:$0x3f] }
 0xa69   :  { %10413 = vmatpush1.bf16.msra.mxu0 %v20172_v5  ;;  %v8624_v5 = vrot.slane %v22580_v14, %v21895_v27 }
 0xa6a   :  { %10414 = vmatprep.subr.bf16.mxu0 %v20177_v59 }
 0xa6d   :  { %10415 = vmatpush1.bf16.msra.mxu0 %v20175_v44  ;;  %v8632_v44 = vrot.slane %v22580_v14, %v21890_v23 }
 0xa6e   :  { %10416 = vmatprep.subr.bf16.mxu0 %v20180_v10  ;;  %v8628_v10 = vrot.slane %v22580_v14, %v21901_v29 }
 0xa71   :  { %10417 = vmatpush1.bf16.msra.mxu0 %v20178_v9 }
 0xa72   :  { %10418 = vmatprep.subr.bf16.mxu0 %v20183_v8 }
 0xa75   :  { %10419 = vmatpush1.bf16.msra.mxu0 %v20181_v37  ;;  %v8636_v37 = vrot.slane %v22580_v14, %v21898_v28 }
 0xa76   :  { %10420 = vmatprep.subr.bf16.mxu0 %v20186_v42 }
 0xa79   :  { %10421 = vmatpush1.bf16.msra.mxu0 %v20184_v48 }
 0xa7a   :  { %10422 = vmatprep.subr.bf16.mxu0 %v20189_v17 }
 0xa7d   :  { %10423 = vmatpush1.bf16.msra.mxu0 %v20187_v25 }
 0xa7e   :  { %10435 = vmatprep.subr.bf16.mxu0 %v20192_v61 }
 0xa80   :  { %10425 = vmatmul.mubr.bf16.vlgmr.msra.gmra.mrb[28].mxu0 %v22561_v24  ;;  %v20205_v24 = vld [vmem:[#allocation10 + $0x2200] ss:$24 sps:$4 sm:$0xff]  }
 0xa81   :  { %10436 = vmatpush1.bf16.msra.mxu0 %v20190_v62  ;;  %10467 = vmatprep.mubr.bf16.mxu0 %v22564_v30  ;;  %v20208_v30 = vld [vmem:[#allocation10 + $0x2230] ss:$24 sps:$4 sm:$0xff]  }
 0xa82   :  { %10437 = vmatprep.subr.bf16.mxu0 %v20195_v54 }
 0xa85   :  { %10438 = vmatpush1.bf16.msra.mxu0 %v20193_v43 }
 0xa86   :  { %10439 = vmatprep.subr.bf16.mxu0 %v20198_v32 }
 0xa89   :  { %10440 = vmatpush1.bf16.msra.mxu0 %v20196_v21 }
 0xa8a   :  { %10441 = vmatprep.subr.bf16.mxu0 %v20201_v3 }
 0xa8d   :  { %10442 = vmatpush1.bf16.msra.mxu0 %v20199_v55 }
 0xa8e   :  { %10443 = vmatprep.subr.bf16.mxu0 %v20204_v20 }
 0xa91   :  { %10444 = vmatpush1.bf16.msra.mxu0 %v20202_v53 }
 0xa92   :  { %10445 = vmatprep.subr.bf16.mxu0 %v20207_v7 }
 0xa95   :  { %10446 = vmatpush1.bf16.msra.mxu0 %v20205_v24 }
 0xa96   :  { %10447 = vmatprep.subr.bf16.mxu0 %v20210_v15 }
 0xa99   :  { %10448 = vmatpush1.bf16.msra.mxu0 %v20208_v30 }
 0xa9a   :  { %10449 = vmatprep.subr.bf16.mxu0 %v20213_v6 }
 0xa9d   :  { %10450 = vmatpush1.bf16.msra.mxu0 %v20211_v40 }
 0xa9e   :  { %10451 = vmatprep.subr.bf16.mxu0 %v20216_v63 }
 0xaa1   :  { %10452 = vmatpush1.bf16.msra.mxu0 %v20214_v49 }
 0xaa2   :  { %10453 = vmatprep.subr.bf16.mxu0 %v20219_v45 }
 0xaa5   :  { %10454 = vmatpush1.bf16.msra.mxu0 %v20217_v51 }
 0xaa6   :  { %10455 = vmatprep.subr.bf16.mxu0 %v20222_v1 }
 0xaa9   :  { %10456 = vmatpush1.bf16.msra.mxu0 %v20220_v16 }
 0xaaa   :  { %10457 = vmatprep.subr.bf16.mxu0 %v20225_v52 }
 0xaad   :  { %10458 = vmatpush1.bf16.msra.mxu0 %v20223_v19 }
 0xaae   :  { %10459 = vmatprep.subr.bf16.mxu0 %v20228_v2 }
 0xab1   :  { %10460 = vmatpush1.bf16.msra.mxu0 %v20226_v33 }
 0xab2   :  { %10461 = vmatprep.subr.bf16.mxu0 %v20231_v60 }
 0xab5   :  { %10462 = vmatpush1.bf16.msra.mxu0 %v20229_v57 }
 0xab6   :  { %10463 = vmatprep.subr.bf16.mxu0 %v20234_v56 }
 0xab9   :  { %10464 = vmatpush1.bf16.msra.mxu0 %v20232_v36 }
 0xaba   :  { %10465 = vmatprep.subr.bf16.mxu0 %v20237_v4 }
 0xabd   :  { %10466 = vmatpush1.bf16.msra.mxu0 %v20235_v22 }
 0xac0   :  { %10468 = vmatmul.mubr.bf16.vlgmr.msra.gmra.mrb[28].mxu0 %v22566_v39 }
 0xad3   :  { %v10211_v59 = vpop.f32.mrb[24].mxu0 }
 0xad4   :  { %v10340_v9 = vpop.f32.mrb[24].mxu1  ;;  %v10213_v8 = vpop.f32.mrb[25].mxu0  ;;  %v18307_v39 = vadd.f32 %v10211_v59, %v8624_v5 }
 0xad5   :  { %v10342_v42 = vpop.f32.mrb[25].mxu1  ;;  %v10215_v48 = vpop.f32.mrb[26].mxu0  ;;  %v18311_v62 = vadd.f32 %v10340_v9, %v8632_v44  ;;  %v18308_v54 = vadd.f32 %v10213_v8, %v8628_v10 }
 0xad6   :  { %v18309_v17 = vadd.f32 %v10215_v48, %v8624_v5  ;;  %v10344_v25 = vpop.f32.mrb[26].mxu1  ;;  %v10217_v61 = vpop.f32.mrb[27].mxu0  ;;  %v18312_v3 = vadd.f32 %v10342_v42, %v8636_v37 }
 0xad7   :  { %v18313_v43 = vadd.f32 %v10344_v25, %v8632_v44  ;;  %v18310_v32 = vadd.f32 %v10217_v61, %v8628_v10  ;;  %v10346_v21 = vpop.f32.mrb[27].mxu1 }
 0xad8   :  { %v10482_v55 = vadd.f32 %v18309_v17, %v18307_v39  ;;  %v18314_v20 = vadd.f32 %v10346_v21, %v8636_v37 }
 0xad9   :  { %v10496_v53 = vadd.f32 %v18313_v43, %v18311_v62  ;;  %v10489_v7 = vadd.f32 %v18310_v32, %v18308_v54 }
 0xada   :  { %v10483_v24 = vrot.slane %v10482_v55, 4  ;;  %v10503_v15 = vadd.f32 %v18314_v20, %v18312_v3 }
 0xadb   :  { %v10497_v30 = vrot.slane %v10496_v53, 4  ;;  %v10490_v6 = vrot.slane %v10489_v7, 4 }
 0xadc   :  { %v10484_v40 = vadd.f32 %v10483_v24, %v10482_v55  ;;  %v10504_v63 = vrot.slane %v10503_v15, 4 }
 0xadd   :  { %v10498_v49 = vadd.f32 %v10497_v30, %v10496_v53  ;;  %v10491_v45 = vadd.f32 %v10490_v6, %v10489_v7 }
 0xade   :  { %v10485_v51 = vrot.slane %v10484_v40, 2  ;;  %v10505_v1 = vadd.f32 %v10504_v63, %v10503_v15 }
 0xadf   :  { %v10499_v16 = vrot.slane %v10498_v49, 2  ;;  %v10492_v52 = vrot.slane %v10491_v45, 2 }
 0xae0   :  { %v10486_v19 = vadd.f32 %v10485_v51, %v10484_v40  ;;  %v10506_v2 = vrot.slane %v10505_v1, 2 }
 0xae1   :  { %v10500_v33 = vadd.f32 %v10499_v16, %v10498_v49  ;;  %v10493_v60 = vadd.f32 %v10492_v52, %v10491_v45 }
 0xae2   :  { %v10487_v57 = vrot.slane %v10486_v19, 1  ;;  %v10507_v56 = vadd.f32 %v10506_v2, %v10505_v1 }
 0xae3   :  { %v10501_v36 = vrot.slane %v10500_v33, 1  ;;  %v10494_v4 = vrot.slane %v10493_v60, 1 }
 0xae4   :  { %v10488_v22 = vadd.f32 %v10487_v57, %v10486_v19  ;;  %v10508_v5 = vrot.slane %v10507_v56, 1 }
 0xae5   :  { %v10502_v59 = vadd.f32 %v10501_v36, %v10500_v33  ;;  %v10495_v44 = vadd.f32 %v10494_v4, %v10493_v60 }
 0xae6   :  { %v10524_v10 = vmul.f32 0.0625, %v10488_v22  ;;  %v10509_v9 = vadd.f32 %v10508_v5, %v10507_v56 }
 0xae7   :  { %v10526_v8 = vmul.f32 0.0625, %v10502_v59  ;;  %v10525_v37 = vmul.f32 0.0625, %v10495_v44 }
 0xae8   :  { %v22590_v42 = vsub.f32 %v18307_v39, %v10524_v10  ;;  %v22592_v48 = vsub.f32 %v18309_v17, %v10524_v10  ;;  %v10527_v25 = vmul.f32 0.0625, %v10509_v9 }
 0xae9   :  { %v22594_v61 = vsub.f32 %v18311_v62, %v10526_v8  ;;  %v22596_v21 = vsub.f32 %v18313_v43, %v10526_v8  ;;  %v22598_v55 = vsub.f32 %v18308_v54, %v10525_v37  ;;  %v22600_v53 = vsub.f32 %v18310_v32, %v10525_v37 }
 0xaea   :  { %v10542_v7 = vmul.f32 %v22590_v42, %v22590_v42  ;;  %v10548_v24 = vmul.f32 %v22592_v48, %v22592_v48  ;;  %v22606_v15 = vsub.f32 %v18312_v3, %v10527_v25  ;;  %v22608_v39 = vsub.f32 %v18314_v20, %v10527_v25 }
 0xaeb   :  { %v10544_v17 = vmul.f32 %v22594_v61, %v22594_v61  ;;  %v10550_v62 = vmul.f32 %v22596_v21, %v22596_v21  ;;  %v10543_v54 = vmul.f32 %v22598_v55, %v22598_v55  ;;  %v10549_v43 = vmul.f32 %v22600_v53, %v22600_v53 }
 0xaec   :  { %v10554_v32 = vadd.f32 %v10548_v24, %v10542_v7  ;;  %v10545_v30 = vmul.f32 %v22606_v15, %v22606_v15  ;;  %v10551_v3 = vmul.f32 %v22608_v39, %v22608_v39 }
 0xaed   :  { %v10568_v20 = vadd.f32 %v10550_v62, %v10544_v17  ;;  %v10561_v6 = vadd.f32 %v10549_v43, %v10543_v54 }
 0xaee   :  { %v10555_v40 = vrot.slane %v10554_v32, 4  ;;  %v10575_v63 = vadd.f32 %v10551_v3, %v10545_v30 }
 0xaef   :  { %v10569_v49 = vrot.slane %v10568_v20, 4  ;;  %v10562_v45 = vrot.slane %v10561_v6, 4 }
 0xaf0   :  { %v10556_v51 = vadd.f32 %v10555_v40, %v10554_v32  ;;  %v10576_v1 = vrot.slane %v10575_v63, 4 }
 0xaf1   :  { %v10570_v16 = vadd.f32 %v10569_v49, %v10568_v20  ;;  %v10563_v52 = vadd.f32 %v10562_v45, %v10561_v6 }
 0xaf2   :  { %v10557_v19 = vrot.slane %v10556_v51, 2  ;;  %v10577_v2 = vadd.f32 %v10576_v1, %v10575_v63 }
 0xaf3   :  { %v10571_v33 = vrot.slane %v10570_v16, 2  ;;  %v10564_v60 = vrot.slane %v10563_v52, 2 }
 0xaf4   :  { %v10558_v57 = vadd.f32 %v10557_v19, %v10556_v51  ;;  %v10578_v56 = vrot.slane %v10577_v2, 2  ;;  %v20238_v19 = vld [vmem:[#allocation10 + $0x2400] ss:$24 sps:$4 sm:$0xff]  }
 0xaf5   :  { %v10572_v36 = vadd.f32 %v10571_v33, %v10570_v16  ;;  %v10565_v4 = vadd.f32 %v10564_v60, %v10563_v52  ;;  %v20240_v16 = vld [vmem:[#allocation10 + $0x2404] ss:$24 sps:$4 sm:$0xff]   ;;  %v20246_v33 = vld [vmem:[#allocation10 + $0x2434] ss:$24 sps:$4 sm:$0xff]  }
 0xaf6   :  { %v10559_v22 = vrot.slane %v10558_v57, 1  ;;  %v10579_v5 = vadd.f32 %v10578_v56, %v10577_v2  ;;  %v20243_v52 = vld [vmem:[#allocation10 + $0x240c] ss:$24 sps:$4 sm:$0xff]   ;;  %v20241_v2 = vld [vmem:[#allocation10 + $0x2408] ss:$24 sps:$4 sm:$0xff]   ;;  %12576 = vmatprep.subr.bf16.mxu1 %v20240_v16 }
 0xaf7   :  { %v10573_v59 = vrot.slane %v10572_v36, 1  ;;  %v10566_v44 = vrot.slane %v10565_v4, 1  ;;  %12705 = vmatprep.subr.bf16.mxu0 %v20243_v52  ;;  %12577 = vmatpush1.bf16.msra.mxu1 %v20238_v19  ;;  %v20249_v60 = vld [vmem:[#allocation10 + $0x243c] ss:$24 sps:$4 sm:$0xff]   ;;  %v20247_v56 = vld [vmem:[#allocation10 + $0x2438] ss:$24 sps:$4 sm:$0xff]  }
 0xaf8   :  { %v10560_v10 = vadd.f32 %v10559_v22, %v10558_v57  ;;  %v10580_v9 = vrot.slane %v10579_v5, 1  ;;  %12706 = vmatpush1.bf16.msra.mxu0 %v20241_v2  ;;  %v20244_v57 = vld [vmem:[#allocation10 + $0x2430] ss:$24 sps:$4 sm:$0xff]   ;;  %12578 = vmatprep.subr.bf16.mxu1 %v20246_v33  ;;  %v20250_v22 = vld [vmem:[#allocation10 + $0x2460] ss:$24 sps:$4 sm:$0xff]  }
 0xaf9   :  { %v10574_v8 = vadd.f32 %v10573_v59, %v10572_v36  ;;  %v10567_v37 = vadd.f32 %v10566_v44, %v10565_v4  ;;  %12707 = vmatprep.subr.bf16.mxu0 %v20249_v60  ;;  %v20252_v36 = vld [vmem:[#allocation10 + $0x2464] ss:$24 sps:$4 sm:$0xff]   ;;  %v20258_v59 = vld [vmem:[#allocation10 + $0x2494] ss:$24 sps:$4 sm:$0xff]   ;;  %v20286_v52 = vld [vmem:[#allocation10 + $0x2580] ss:$24 sps:$4 sm:$0xff]  }
 0xafa   :  { %v10596_v25 = vmul.f32 0.0625, %v10560_v10  ;;  %v10581_v7 = vadd.f32 %v10580_v9, %v10579_v5  ;;  %v20255_v4 = vld [vmem:[#allocation10 + $0x246c] ss:$24 sps:$4 sm:$0xff]   ;;  %v20253_v5 = vld [vmem:[#allocation10 + $0x2468] ss:$24 sps:$4 sm:$0xff]  }
 0xafb   :  { %v10598_v24 = vmul.f32 0.0625, %v10574_v8  ;;  %v10597_v17 = vmul.f32 0.0625, %v10567_v37  ;;  %12579 = vmatpush1.bf16.msra.mxu1 %v20244_v57  ;;  %v20261_v44 = vld [vmem:[#allocation10 + $0x249c] ss:$24 sps:$4 sm:$0xff]   ;;  %v20256_v10 = vld [vmem:[#allocation10 + $0x2490] ss:$24 sps:$4 sm:$0xff]  }
 0xafc   :  { %v10602_v62 = vadd.f32 1e-05, %v10596_v25  ;;  %v10599_v54 = vmul.f32 0.0625, %v10581_v7  ;;  %12708 = vmatpush1.bf16.msra.mxu0 %v20247_v56  ;;  %12580 = vmatprep.subr.bf16.mxu1 %v20252_v36  ;;  %v20259_v9 = vld [vmem:[#allocation10 + $0x2498] ss:$24 sps:$4 sm:$0xff]  }
 0xafd   :  { %v10604_v43 = vadd.f32 1e-05, %v10598_v24  ;;  %v10603_v32 = vadd.f32 1e-05, %v10597_v17  ;;  %12709 = vmatprep.subr.bf16.mxu0 %v20255_v4  ;;  %v20264_v8 = vld [vmem:[#allocation10 + $0x24c4] ss:$24 sps:$4 sm:$0xff]  }
 0xafe   :  { %21294 = vrsqrt.f32 %v10602_v62  ;;  %v10605_v30 = vadd.f32 1e-05, %v10599_v54  ;;  %v20267_v37 = vld [vmem:[#allocation10 + $0x24cc] ss:$24 sps:$4 sm:$0xff]   ;;  %v20262_v25 = vld [vmem:[#allocation10 + $0x24c0] ss:$24 sps:$4 sm:$0xff]  }
 0xaff   :  { %21296 = vrsqrt.f32 %v10604_v43  ;;  %12581 = vmatpush1.bf16.msra.mxu1 %v20250_v22  ;;  %v20265_v7 = vld [vmem:[#allocation10 + $0x24c8] ss:$24 sps:$4 sm:$0xff]   ;;  %v20270_v24 = vld [vmem:[#allocation10 + $0x24f4] ss:$24 sps:$4 sm:$0xff]   ;;  %v20271_v54 = vld [vmem:[#allocation10 + $0x24f8] ss:$24 sps:$4 sm:$0xff]  }
 0xb00   :  { %21298 = vrsqrt.f32 %v10603_v32  ;;  %12710 = vmatpush1.bf16.msra.mxu0 %v20253_v5  ;;  %12582 = vmatprep.subr.bf16.mxu1 %v20258_v59  ;;  %v20273_v17 = vld [vmem:[#allocation10 + $0x24fc] ss:$24 sps:$4 sm:$0xff]   ;;  %v20268_v62 = vld [vmem:[#allocation10 + $0x24f0] ss:$24 sps:$4 sm:$0xff]   ;;  %v20279_v32 = vld [vmem:[#allocation10 + $0x252c] ss:$24 sps:$4 sm:$0xff]  }
 0xb01   :  { %21300 = vrsqrt.f32 %v10605_v30  ;;  %12711 = vmatprep.subr.bf16.mxu0 %v20261_v44  ;;  %v20276_v43 = vld [vmem:[#allocation10 + $0x2524] ss:$24 sps:$4 sm:$0xff]   ;;  %v20274_v30 = vld [vmem:[#allocation10 + $0x2520] ss:$24 sps:$4 sm:$0xff]   ;;  %v20294_v2 = vld [vmem:[#allocation10 + $0x25b4] ss:$24 sps:$4 sm:$0xff]  }
 0xb02   :  { %v20291_v16 = vld [vmem:[#allocation10 + $0x258c] ss:$24 sps:$4 sm:$0xff]   ;;  %v20289_v19 = vld [vmem:[#allocation10 + $0x2588] ss:$24 sps:$4 sm:$0xff]   ;;  %v20297_v33 = vld [vmem:[#allocation10 + $0x25bc] ss:$24 sps:$4 sm:$0xff]  }
 0xb03   :  { %12583 = vmatpush1.bf16.msra.mxu1 %v20256_v10  ;;  %v20292_v60 = vld [vmem:[#allocation10 + $0x25b0] ss:$24 sps:$4 sm:$0xff]   ;;  %v20300_v56 = vld [vmem:[#allocation10 + $0x25e4] ss:$24 sps:$4 sm:$0xff]   ;;  %v20298_v4 = vld [vmem:[#allocation10 + $0x25e0] ss:$24 sps:$4 sm:$0xff]  }
 0xb04   :  { %12712 = vmatpush1.bf16.msra.mxu0 %v20259_v9  ;;  %12584 = vmatprep.subr.bf16.mxu1 %v20264_v8  ;;  %v20295_v57 = vld [vmem:[#allocation10 + $0x25b8] ss:$24 sps:$4 sm:$0xff]   ;;  %v20303_v36 = vld [vmem:[#allocation10 + $0x25ec] ss:$24 sps:$4 sm:$0xff]   ;;  %v20301_v22 = vld [vmem:[#allocation10 + $0x25e8] ss:$24 sps:$4 sm:$0xff]  }
 0xb05   :  { %12713 = vmatprep.subr.bf16.mxu0 %v20267_v37  ;;  %v20306_v5 = vld [vmem:[#allocation10 + $0x2614] ss:$24 sps:$4 sm:$0xff]   ;;  %v20304_v44 = vld [vmem:[#allocation10 + $0x2610] ss:$24 sps:$4 sm:$0xff]   ;;  %v20312_v9 = vld [vmem:[#allocation10 + $0x2644] ss:$24 sps:$4 sm:$0xff]  }
 0xb06   :  { %v20309_v59 = vld [vmem:[#allocation10 + $0x261c] ss:$24 sps:$4 sm:$0xff]   ;;  %v20307_v10 = vld [vmem:[#allocation10 + $0x2618] ss:$24 sps:$4 sm:$0xff]   ;;  %v20315_v8 = vld [vmem:[#allocation10 + $0x264c] ss:$24 sps:$4 sm:$0xff]  }
 0xb07   :  { %12585 = vmatpush1.bf16.msra.mxu1 %v20262_v25  ;;  %v20310_v37 = vld [vmem:[#allocation10 + $0x2640] ss:$24 sps:$4 sm:$0xff]  }
 0xb08   :  { %v21295_v3 = vpop.eup %21294  ;;  %12714 = vmatpush1.bf16.msra.mxu0 %v20265_v7  ;;  %12586 = vmatprep.subr.bf16.mxu1 %v20270_v24  ;;  %v20313_v25 = vld [vmem:[#allocation10 + $0x2648] ss:$24 sps:$4 sm:$0xff]   ;;  %v20318_v7 = vld [vmem:[#allocation10 + $0x2674] ss:$24 sps:$4 sm:$0xff]  }
 0xb09   :  { %v21297_v20 = vpop.eup %21296  ;;  %12715 = vmatprep.subr.bf16.mxu0 %v20273_v17  ;;  %v20321_v24 = vld [vmem:[#allocation10 + $0x267c] ss:$24 sps:$4 sm:$0xff]   ;;  %v20316_v17 = vld [vmem:[#allocation10 + $0x2670] ss:$24 sps:$4 sm:$0xff]  }
 0xb0a   :  { %v21299_v6 = vpop.eup %21298 }
 0xb0b   :  { %v21301_v40 = vpop.eup %21300  ;;  %v10620_v63 = vcombine.low %v21295_v3, %v21299_v6  ;;  %12587 = vmatpush1.bf16.msra.mxu1 %v20268_v62  ;;  %v20277_v3 = vld [vmem:[#allocation10 + $0x2528] ss:$24 sps:$4 sm:$0xff]   ;;  %v20285_v6 = vld [vmem:[#allocation10 + $0x255c] ss:$24 sps:$4 sm:$0xff]   ;;  %v20319_v62 = vld [vmem:[#allocation10 + $0x2678] ss:$24 sps:$4 sm:$0xff]  }
 0xb0c   :  { %v10621_v49 = vcombine.low %v21297_v20, %v21301_v40  ;;  %12716 = vmatpush1.bf16.msra.mxu0 %v20271_v54  ;;  %12588 = vmatprep.subr.bf16.mxu1 %v20276_v43  ;;  %v20282_v20 = vld [vmem:[#allocation10 + $0x2554] ss:$24 sps:$4 sm:$0xff]   ;;  %v20280_v40 = vld [vmem:[#allocation10 + $0x2550] ss:$24 sps:$4 sm:$0xff]   ;;  %v20324_v54 = vld [vmem:[#allocation10 + $0x26a4] ss:$24 sps:$4 sm:$0xff]  }
 0xb0d   :  { %v22623_v45 = vrot.slane %v10620_v63, %v22018_v11  ;;  %12717 = vmatprep.subr.bf16.mxu0 %v20279_v32  ;;  %v20283_v63 = vld [vmem:[#allocation10 + $0x2558] ss:$24 sps:$4 sm:$0xff]   ;;  %v20327_v43 = vld [vmem:[#allocation10 + $0x26ac] ss:$24 sps:$4 sm:$0xff]  }
 0xb0e   :  { %v22626_v51 = vrot.slane %v10621_v49, %v22018_v11  ;;  %v20288_v49 = vld [vmem:[#allocation10 + $0x2584] ss:$24 sps:$4 sm:$0xff]   ;;  %v20322_v32 = vld [vmem:[#allocation10 + $0x26a0] ss:$24 sps:$4 sm:$0xff]  }
 0xb0f   :  { %12589 = vmatpush1.bf16.msra.mxu1 %v20274_v30  ;;  %v20325_v30 = vld [vmem:[#allocation10 + $0x26a8] ss:$24 sps:$4 sm:$0xff]  }
 0xb10   :  { %v10644_v1 = vcombine.low %v22623_v45, %v22626_v51  ;;  %12718 = vmatpush1.bf16.msra.mxu0 %v20277_v3  ;;  %12590 = vmatprep.subr.bf16.mxu1 %v20282_v20  ;;  %v20330_v3 = vld [vmem:[#allocation10 + $0x26d4] ss:$24 sps:$4 sm:$0xff]  }
 0xb11   :  { %12719 = vmatprep.subr.bf16.mxu0 %v20285_v6  ;;  %v20333_v20 = vld [vmem:[#allocation10 + $0x26dc] ss:$24 sps:$4 sm:$0xff]   ;;  %v20328_v6 = vld [vmem:[#allocation10 + $0x26d0] ss:$24 sps:$4 sm:$0xff]  }
 0xb13   :  { %12591 = vmatpush1.bf16.msra.mxu1 %v20280_v40  ;;  %v20331_v40 = vld [vmem:[#allocation10 + $0x26d8] ss:$24 sps:$4 sm:$0xff]  }
 0xb14   :  { %12720 = vmatpush1.bf16.msra.mxu0 %v20283_v63  ;;  %12592 = vmatprep.subr.bf16.mxu1 %v20288_v49  ;;  %v20336_v63 = vld [vmem:[#allocation10 + $0x2704] ss:$24 sps:$4 sm:$0xff]  }
 0xb15   :  { %12721 = vmatprep.subr.bf16.mxu0 %v20291_v16  ;;  %v20339_v49 = vld [vmem:[#allocation10 + $0x270c] ss:$24 sps:$4 sm:$0xff]   ;;  %v8640_v16 = vrot.slane %v22580_v14, %v21976_v47 }
 0xb17   :  { %12593 = vmatpush1.bf16.msra.mxu1 %v20286_v52 }
 0xb18   :  { %12722 = vmatpush1.bf16.msra.mxu0 %v20289_v19  ;;  %12594 = vmatprep.subr.bf16.mxu1 %v20294_v2  ;;  %v8644_v19 = vrot.slane %v22580_v14, %v21979_v50 }
 0xb19   :  { %12723 = vmatprep.subr.bf16.mxu0 %v20297_v33 }
 0xb1b   :  { %12595 = vmatpush1.bf16.msra.mxu1 %v20292_v60 }
 0xb1c   :  { %12724 = vmatpush1.bf16.msra.mxu0 %v20295_v57  ;;  %12596 = vmatprep.subr.bf16.mxu1 %v20300_v56 }
 0xb1d   :  { %12725 = vmatprep.subr.bf16.mxu0 %v20303_v36 }
 0xb1f   :  { %12597 = vmatpush1.bf16.msra.mxu1 %v20298_v4 }
 0xb20   :  { %12726 = vmatpush1.bf16.msra.mxu0 %v20301_v22  ;;  %12598 = vmatprep.subr.bf16.mxu1 %v20306_v5 }
 0xb21   :  { %12727 = vmatprep.subr.bf16.mxu0 %v20309_v59 }
 0xb23   :  { %12599 = vmatpush1.bf16.msra.mxu1 %v20304_v44 }
 0xb24   :  { %12728 = vmatpush1.bf16.msra.mxu0 %v20307_v10  ;;  %12600 = vmatprep.subr.bf16.mxu1 %v20312_v9 }
 0xb25   :  { %12729 = vmatprep.subr.bf16.mxu0 %v20315_v8 }
 0xb27   :  { %12601 = vmatpush1.bf16.msra.mxu1 %v20310_v37 }
 0xb28   :  { %12730 = vmatpush1.bf16.msra.mxu0 %v20313_v25  ;;  %12602 = vmatprep.subr.bf16.mxu1 %v20318_v7 }
 0xb29   :  { %12731 = vmatprep.subr.bf16.mxu0 %v20321_v24 }
 0xb2b   :  { %12603 = vmatpush1.bf16.msra.mxu1 %v20316_v17 }
 0xb2c   :  { %12732 = vmatpush1.bf16.msra.mxu0 %v20319_v62  ;;  %12604 = vmatprep.subr.bf16.mxu1 %v20324_v54 }
 0xb2d   :  { %12733 = vmatprep.subr.bf16.mxu0 %v20327_v43 }
 0xb2f   :  { %12605 = vmatpush1.bf16.msra.mxu1 %v20322_v32 }
 0xb30   :  { %12734 = vmatpush1.bf16.msra.mxu0 %v20325_v30  ;;  %12606 = vmatprep.subr.bf16.mxu1 %v20330_v3 }
 0xb31   :  { %12735 = vmatprep.subr.bf16.mxu0 %v20333_v20 }
 0xb33   :  { %12607 = vmatpush1.bf16.msra.mxu1 %v20328_v6 }
 0xb34   :  { %12736 = vmatpush1.bf16.msra.mxu0 %v20331_v40  ;;  %12619 = vmatprep.subr.bf16.mxu1 %v20336_v63 }
 0xb35   :  { %12748 = vmatprep.subr.bf16.mxu0 %v20339_v49 }
 0xb93   :  { %v10469_v52 = vpop.f32.mrb[28].mxu0 }
 0xb94   :  { %v10471_v2 = vpop.f32.mrb[29].mxu0  ;;  %v18315_v60 = vadd.f32 %v10469_v52, %v8640_v16 }
 0xb95   :  { %v10473_v33 = vpop.f32.mrb[30].mxu0  ;;  %v18316_v36 = vadd.f32 %v10471_v2, %v8644_v19 }
 0xb96   :  { %v18317_v57 = vadd.f32 %v10473_v33, %v8640_v16  ;;  %v10475_v56 = vpop.f32.mrb[31].mxu0 }
 0xb97   :  { %v18318_v4 = vadd.f32 %v10475_v56, %v8644_v19 }
 0xb98   :  { %v10510_v22 = vadd.f32 %v18317_v57, %v18315_v60 }
 0xb99   :  { %v10517_v5 = vadd.f32 %v18318_v4, %v18316_v36 }
 0xb9a   :  { %v10511_v59 = vrot.slane %v10510_v22, 4 }
 0xb9b   :  { %v10518_v44 = vrot.slane %v10517_v5, 4 }
 0xb9c   :  { %v10512_v10 = vadd.f32 %v10511_v59, %v10510_v22 }
 0xb9d   :  { %v10519_v9 = vadd.f32 %v10518_v44, %v10517_v5 }
 0xb9e   :  { %v10513_v8 = vrot.slane %v10512_v10, 2 }
 0xb9f   :  { %v10520_v37 = vrot.slane %v10519_v9, 2 }
 0xba0   :  { %v10514_v25 = vadd.f32 %v10513_v8, %v10512_v10 }
 0xba1   :  { %v10521_v7 = vadd.f32 %v10520_v37, %v10519_v9 }
 0xba2   :  { %v10515_v24 = vrot.slane %v10514_v25, 1 }
 0xba3   :  { %v10522_v17 = vrot.slane %v10521_v7, 1 }
 0xba4   :  { %v10516_v14 = vadd.f32 %v10515_v24, %v10514_v25 }
 0xba5   :  { %v10523_v62 = vadd.f32 %v10522_v17, %v10521_v7 }
 0xba6   :  { %v10528_v54 = vmul.f32 0.0625, %v10516_v14  ;;  %v10651_v14 = vrot.slane %v10644_v1, %v22018_v11 }
 0xba7   :  { %v10529_v43 = vmul.f32 0.0625, %v10523_v62 }
 0xba8   :  { %v22634_v32 = vsub.f32 %v18315_v60, %v10528_v54  ;;  %v22636_v30 = vsub.f32 %v18317_v57, %v10528_v54  ;;  %v10479_v54 = vld [vmem:[#allocation7 + $0x18] sm:$0x3f] }
 0xba9   :  { %v10535_v3 = vsub.f32 %v18316_v36, %v10529_v43  ;;  %v10541_v20 = vsub.f32 %v18318_v4, %v10529_v43  ;;  %v10481_v43 = vld [vmem:[#allocation8 + $0x18] sm:$0x3f] }
 0xbaa   :  { %v10546_v6 = vmul.f32 %v22634_v32, %v22634_v32  ;;  %v10552_v40 = vmul.f32 %v22636_v30, %v22636_v30  ;;  %v10709_v45 = vrot.slane %v10481_v43, %v21895_v27  ;;  %v10721_v51 = vrot.slane %v10481_v43, %v21898_v28 }
 0xbab   :  { %v10547_v63 = vmul.f32 %v10535_v3, %v10535_v3  ;;  %v10553_v49 = vmul.f32 %v10541_v20, %v10541_v20 }
 0xbac   :  { %v10582_v16 = vadd.f32 %v10552_v40, %v10546_v6 }
 0xbad   :  { %v10589_v52 = vadd.f32 %v10553_v49, %v10547_v63  ;;  %v10729_v63 = vrot.slane %v10481_v43, %v21979_v50  ;;  %v10713_v49 = vrot.slane %v10481_v43, %v21901_v29 }
 0xbae   :  { %v10583_v19 = vrot.slane %v10582_v16, 4 }
 0xbaf   :  { %v10590_v2 = vrot.slane %v10589_v52, 4 }
 0xbb0   :  { %v10584_v33 = vadd.f32 %v10583_v19, %v10582_v16 }
 0xbb1   :  { %v10591_v56 = vadd.f32 %v10590_v2, %v10589_v52 }
 0xbb2   :  { %v10585_v60 = vrot.slane %v10584_v33, 2 }
 0xbb3   :  { %v10592_v22 = vrot.slane %v10591_v56, 2 }
 0xbb4   :  { %v10586_v57 = vadd.f32 %v10585_v60, %v10584_v33 }
 0xbb5   :  { %v10593_v5 = vadd.f32 %v10592_v22, %v10591_v56 }
 0xbb6   :  { %v10587_v36 = vrot.slane %v10586_v57, 1 }
 0xbb7   :  { %v10594_v4 = vrot.slane %v10593_v5, 1 }
 0xbb8   :  { %v10588_v59 = vadd.f32 %v10587_v36, %v10586_v57 }
 0xbb9   :  { %v10595_v44 = vadd.f32 %v10594_v4, %v10593_v5 }
 0xbba   :  { %v10600_v10 = vmul.f32 0.0625, %v10588_v59 }
 0xbbb   :  { %v10601_v9 = vmul.f32 0.0625, %v10595_v44 }
 0xbbc   :  { %v10606_v8 = vadd.f32 1e-05, %v10600_v10 }
 0xbbd   :  { %v10607_v37 = vadd.f32 1e-05, %v10601_v9 }
 0xbbe   :  { %21302 = vrsqrt.f32 %v10606_v8 }
 0xbbf   :  { %21304 = vrsqrt.f32 %v10607_v37 }
 0xbc8   :  { %v21303_v25 = vpop.eup %21302 }
 0xbc9   :  { %v21305_v7 = vpop.eup %21304 }
 0xbca   :  { %v10622_v24 = vcombine.low %v21303_v25, %v21305_v7 }
 0xbcc   :  { %v10643_v17 = vrot.slane %v10622_v24, %v22018_v11 }
 0xbce   :  { %v10658_v62 = vrot.slane %v10643_v17, %v22018_v11  ;;  %v10725_v17 = vrot.slane %v10481_v43, %v21976_v47 }
 0xbd0   :  { %v10659_v6 = vcombine.low %v10651_v14, %v10658_v62 }
 0xbd2   :  { %v10661_v40 = vmul.f32 %v10659_v6, %v10479_v54 }
 0xbd4   :  { %v10686_v16 = vrot.slane %v10661_v40, %v21979_v50  ;;  %v10670_v52 = vrot.slane %v10661_v40, %v21901_v29  ;;  %v10666_v19 = vrot.slane %v10661_v40, %v21895_v27  ;;  %v10678_v2 = vrot.slane %v10661_v40, %v21898_v28 }
 0xbd5   :  { %v10674_v1 = vrot.slane %v10661_v40, %v21890_v23 }
 0xbd6   :  { %v10698_v33 = vmul.f32 %v10686_v16, %v10535_v3  ;;  %v10704_v56 = vmul.f32 %v10686_v16, %v10541_v20  ;;  %v10694_v60 = vmul.f32 %v10670_v52, %v22598_v55  ;;  %v10700_v22 = vmul.f32 %v10670_v52, %v22600_v53 }
 0xbd7   :  { %v10693_v57 = vmul.f32 %v10666_v19, %v22590_v42  ;;  %v10699_v5 = vmul.f32 %v10666_v19, %v22592_v48  ;;  %v10696_v36 = vmul.f32 %v10678_v2, %v22606_v15  ;;  %v10702_v4 = vmul.f32 %v10678_v2, %v22608_v39 }
 0xbd8   :  { %v22663_v59 = vadd.f32 %v10729_v63, %v10704_v56  ;;  %v10737_v44 = vadd.f32 %v10713_v49, %v10694_v60  ;;  %v10743_v10 = vadd.f32 %v10713_v49, %v10700_v22  ;;  %v10717_v20 = vrot.slane %v10481_v43, %v21890_v23 }
 0xbd9   :  { %v10736_v9 = vadd.f32 %v10709_v45, %v10693_v57  ;;  %v10742_v8 = vadd.f32 %v10709_v45, %v10699_v5  ;;  %v10739_v3 = vadd.f32 %v10721_v51, %v10696_v36  ;;  %v10745_v37 = vadd.f32 %v10721_v51, %v10702_v4 }
 0xbda   :  { %v10771_v55 = vmul.f32 0.70710677, %v22663_v59  ;;  %v10761_v53 = vmul.f32 0.70710677, %v10737_v44  ;;  %v10695_v42 = vmul.f32 %v10674_v1, %v22594_v61  ;;  %v10767_v48 = vmul.f32 0.70710677, %v10743_v10 }
 0xbdb   :  { %v10760_v25 = vmul.f32 0.70710677, %v10736_v9  ;;  %v10682_v15 = vrot.slane %v10661_v40, %v21976_v47  ;;  %v10766_v39 = vmul.f32 0.70710677, %v10742_v8  ;;  %v10763_v7 = vmul.f32 0.70710677, %v10739_v3 }
 0xbdc   :  { %21306 = verf.f32 %v10771_v55  ;;  %v10701_v24 = vmul.f32 %v10674_v1, %v22596_v21  ;;  %v10769_v14 = vmul.f32 0.70710677, %v10745_v37  ;;  %v10738_v62 = vadd.f32 %v10717_v20, %v10695_v42 }
 0xbdd   :  { %21308 = verf.f32 %v10761_v53  ;;  %v22671_v54 = vadd.f32 %v10729_v63, %v10698_v33  ;;  %v10697_v61 = vmul.f32 %v10682_v15, %v22634_v32  ;;  %v10703_v49 = vmul.f32 %v10682_v15, %v22636_v30 }
 0xbde   :  { %21310 = verf.f32 %v10767_v48  ;;  %v10744_v6 = vadd.f32 %v10717_v20, %v10701_v24  ;;  %v10762_v40 = vmul.f32 0.70710677, %v10738_v62  ;;  %v10749_v45 = vmul.f32 0.5, %v10737_v44  ;;  %v20334_v44 = vld [vmem:[#allocation10 + $0x2700] ss:$24 sps:$4 sm:$0xff]  }
 0xbdf   :  { %21312 = verf.f32 %v10760_v25  ;;  %v10765_v52 = vmul.f32 0.70710677, %v22671_v54  ;;  %v10740_v21 = vadd.f32 %v10725_v17, %v10697_v61  ;;  %v22676_v43 = vadd.f32 %v10725_v17, %v10703_v49  ;;  %v20337_v61 = vld [vmem:[#allocation10 + $0x2708] ss:$24 sps:$4 sm:$0xff]  }
 0xbe0   :  { %21314 = verf.f32 %v10766_v39  ;;  %v10768_v16 = vmul.f32 0.70710677, %v10744_v6  ;;  %v10755_v33 = vmul.f32 0.5, %v10743_v10  ;;  %v10748_v57 = vmul.f32 0.5, %v10736_v9 }
 0xbe1   :  { %21316 = verf.f32 %v10763_v7  ;;  %v10764_v63 = vmul.f32 0.70710677, %v10740_v21  ;;  %v10770_v19 = vmul.f32 0.70710677, %v22676_v43  ;;  %v10754_v20 = vmul.f32 0.5, %v10742_v8 }
 0xbe2   :  { %21318 = verf.f32 %v10769_v14  ;;  %v10751_v48 = vmul.f32 0.5, %v10739_v3  ;;  %v10757_v10 = vmul.f32 0.5, %v10745_v37  ;;  %v10750_v49 = vmul.f32 0.5, %v10738_v62  ;;  %v20342_v37 = vld [vmem:[#allocation10 + $0x2734] ss:$24 sps:$4 sm:$0xff]  }
 0xbe3   :  { %21320 = verf.f32 %v10762_v40  ;;  %v10759_v8 = vmul.f32 0.5, %v22663_v59 }
 0xbe4   :  { %21322 = verf.f32 %v10768_v16 }
 0xbe5   :  { %21324 = verf.f32 %v10765_v52 }
 0xbe6   :  { %v21307_v2 = vpop.eup %21306  ;;  %21326 = verf.f32 %v10764_v63  ;;  %v10756_v63 = vmul.f32 0.5, %v10744_v6  ;;  %v20340_v6 = vld [vmem:[#allocation10 + $0x2730] ss:$24 sps:$4 sm:$0xff]  }
 0xbe7   :  { %v21309_v32 = vpop.eup %21308  ;;  %21328 = verf.f32 %v10770_v19  ;;  %v10795_v15 = vadd.f32 1.0, %v21307_v2 }
 0xbe8   :  { %v21311_v30 = vpop.eup %21310  ;;  %v10785_v51 = vadd.f32 1.0, %v21309_v32  ;;  %v20345_v32 = vld [vmem:[#allocation10 + $0x273c] ss:$24 sps:$4 sm:$0xff]  }
 0xbe9   :  { %v21313_v1 = vpop.eup %21312  ;;  %v10791_v56 = vadd.f32 1.0, %v21311_v30 }
 0xbea   :  { %v21315_v60 = vpop.eup %21314  ;;  %v10797_v22 = vmul.f32 %v10785_v51, %v10749_v45  ;;  %v10784_v5 = vadd.f32 1.0, %v21313_v1  ;;  %v10753_v45 = vmul.f32 0.5, %v22671_v54  ;;  %v10807_v51 = vmul.f32 %v10795_v15, %v10759_v8  ;;  %v20357_v15 = vld [vmem:[#allocation10 + $0x279c] ss:$24 sps:$4 sm:$0xff]  }
 0xbeb   :  { %v21317_v36 = vpop.eup %21316  ;;  %v10803_v4 = vmul.f32 %v10791_v56, %v10755_v33  ;;  %v10790_v55 = vadd.f32 1.0, %v21315_v60  ;;  %v10752_v56 = vmul.f32 0.5, %v10740_v21  ;;  %v20372_v8 = vld [vmem:[#allocation10 + $0x2824] ss:$24 sps:$4 sm:$0xff]  }
 0xbec   :  { %v21319_v53 = vpop.eup %21318  ;;  %v10796_v42 = vmul.f32 %v10784_v5, %v10748_v57  ;;  %v10787_v25 = vadd.f32 1.0, %v21317_v36  ;;  %v10758_v5 = vmul.f32 0.5, %v22676_v43  ;;  %v20348_v36 = vld [vmem:[#allocation10 + $0x2764] ss:$24 sps:$4 sm:$0xff]  }
 0xbed   :  { %v21321_v39 = vpop.eup %21320  ;;  %v22679_v7 = vpack.c.bf16 %v10803_v4, %v10797_v22  ;;  %v10802_v24 = vmul.f32 %v10790_v55, %v10754_v20  ;;  %v10793_v17 = vadd.f32 1.0, %v21319_v53  ;;  %v20343_v22 = vld [vmem:[#allocation10 + $0x2738] ss:$24 sps:$4 sm:$0xff]   ;;  %v20351_v4 = vld [vmem:[#allocation10 + $0x276c] ss:$24 sps:$4 sm:$0xff]  }
 0xbee   :  { %v21323_v14 = vpop.eup %21322  ;;  %v10799_v9 = vmul.f32 %v10787_v25, %v10751_v48  ;;  %v10786_v40 = vadd.f32 1.0, %v21321_v39  ;;  %v20349_v48 = vld [vmem:[#allocation10 + $0x2768] ss:$24 sps:$4 sm:$0xff]   ;;  %v20354_v25 = vld [vmem:[#allocation10 + $0x2794] ss:$24 sps:$4 sm:$0xff]  }
 0xbef   :  { %v21325_v16 = vpop.eup %21324  ;;  %12608 = vmatprep.mubr.bf16.mxu1 %v22679_v7  ;;  %12737 = vmatprep.mubr.bf16.mxu0 %v22679_v7  ;;  %v22684_v3 = vpack.c.bf16 %v10802_v24, %v10796_v42  ;;  %v10805_v52 = vmul.f32 %v10793_v17, %v10757_v10  ;;  %v10792_v19 = vadd.f32 1.0, %v21323_v14  ;;  %v20346_v42 = vld [vmem:[#allocation10 + $0x2760] ss:$24 sps:$4 sm:$0xff]   ;;  %v20352_v39 = vld [vmem:[#allocation10 + $0x2790] ss:$24 sps:$4 sm:$0xff]  }
 0xbf0   :  { %v21327_v2 = vpop.eup %21326  ;;  %v10798_v30 = vmul.f32 %v10786_v40, %v10750_v49  ;;  %v10789_v62 = vadd.f32 1.0, %v21325_v16  ;;  %v20360_v24 = vld [vmem:[#allocation10 + $0x27c4] ss:$24 sps:$4 sm:$0xff]   ;;  %v20358_v17 = vld [vmem:[#allocation10 + $0x27c0] ss:$24 sps:$4 sm:$0xff]  }
 0xbf1   :  { %v21329_v1 = vpop.eup %21328  ;;  %12609 = vmatmul.mubr.bf16.vlgmr.msra.gmra.mrb[28].mxu1 %v22684_v3  ;;  %12738 = vmatmul.mubr.bf16.vlgmr.msra.gmra.mrb[32].mxu0 %v22684_v3  ;;  %v22689_v59 = vpack.c.bf16 %v10805_v52, %v10799_v9  ;;  %v10804_v33 = vmul.f32 %v10792_v19, %v10756_v63  ;;  %v10788_v60 = vadd.f32 1.0, %v21327_v2  ;;  %v20363_v10 = vld [vmem:[#allocation10 + $0x27cc] ss:$24 sps:$4 sm:$0xff]   ;;  %v20361_v14 = vld [vmem:[#allocation10 + $0x27c8] ss:$24 sps:$4 sm:$0xff]  }
 0xbf2   :  { %12620 = vmatpush1.bf16.msra.mxu1 %v20334_v44  ;;  %12749 = vmatpush1.bf16.msra.mxu0 %v20337_v61  ;;  %v10801_v57 = vmul.f32 %v10789_v62, %v10753_v45  ;;  %v10794_v54 = vadd.f32 1.0, %v21329_v1  ;;  %v20355_v44 = vld [vmem:[#allocation10 + $0x2798] ss:$24 sps:$4 sm:$0xff]   ;;  %v20366_v61 = vld [vmem:[#allocation10 + $0x27f4] ss:$24 sps:$4 sm:$0xff]  }
 0xbf3   :  { %12651 = vmatprep.mubr.bf16.mxu1 %v22689_v59  ;;  %12780 = vmatprep.mubr.bf16.mxu0 %v22689_v59  ;;  %v22694_v20 = vpack.c.bf16 %v10804_v33, %v10798_v30  ;;  %v10800_v55 = vmul.f32 %v10788_v60, %v10752_v56  ;;  %v20369_v9 = vld [vmem:[#allocation10 + $0x27fc] ss:$24 sps:$4 sm:$0xff]   ;;  %v20364_v49 = vld [vmem:[#allocation10 + $0x27f0] ss:$24 sps:$4 sm:$0xff]   ;;  %v20375_v16 = vld [vmem:[#allocation10 + $0x282c] ss:$24 sps:$4 sm:$0xff]  }
 0xbf4   :  { %12621 = vmatprep.subr.bf16.mxu1 %v20342_v37  ;;  %12750 = vmatprep.subr.bf16.mxu0 %v20345_v32  ;;  %v22696_v21 = vpack.c.bf16 %v10807_v51, %v10801_v57  ;;  %v10806_v53 = vmul.f32 %v10794_v54, %v10758_v5  ;;  %v20367_v40 = vld [vmem:[#allocation10 + $0x27f8] ss:$24 sps:$4 sm:$0xff]   ;;  %v20373_v63 = vld [vmem:[#allocation10 + $0x2828] ss:$24 sps:$4 sm:$0xff]   ;;  %v20378_v19 = vld [vmem:[#allocation10 + $0x2854] ss:$24 sps:$4 sm:$0xff]  }
 0xbf5   :  { %v20370_v52 = vld [vmem:[#allocation10 + $0x2820] ss:$24 sps:$4 sm:$0xff]   ;;  %v20381_v2 = vld [vmem:[#allocation10 + $0x285c] ss:$24 sps:$4 sm:$0xff]   ;;  %v20376_v37 = vld [vmem:[#allocation10 + $0x2850] ss:$24 sps:$4 sm:$0xff]  }
 0xbf6   :  { %12622 = vmatpush1.bf16.msra.mxu1 %v20340_v6  ;;  %12751 = vmatpush1.bf16.msra.mxu0 %v20343_v22  ;;  %v22698_v43 = vpack.c.bf16 %v10806_v53, %v10800_v55  ;;  %v20379_v32 = vld [vmem:[#allocation10 + $0x2858] ss:$24 sps:$4 sm:$0xff]   ;;  %v20384_v30 = vld [vmem:[#allocation10 + $0x2884] ss:$24 sps:$4 sm:$0xff]   ;;  %v20385_v51 = vld [vmem:[#allocation10 + $0x2888] ss:$24 sps:$4 sm:$0xff]  }
 0xbf7   :  { %12623 = vmatprep.subr.bf16.mxu1 %v20348_v36  ;;  %12752 = vmatprep.subr.bf16.mxu0 %v20351_v4  ;;  %v20387_v45 = vld [vmem:[#allocation10 + $0x288c] ss:$24 sps:$4 sm:$0xff]   ;;  %v20382_v62 = vld [vmem:[#allocation10 + $0x2880] ss:$24 sps:$4 sm:$0xff]   ;;  %v20393_v33 = vld [vmem:[#allocation10 + $0x28bc] ss:$24 sps:$4 sm:$0xff]  }
 0xbf8   :  { %v20390_v1 = vld [vmem:[#allocation10 + $0x28b4] ss:$24 sps:$4 sm:$0xff]   ;;  %v20388_v56 = vld [vmem:[#allocation10 + $0x28b0] ss:$24 sps:$4 sm:$0xff]   ;;  %v20396_v6 = vld [vmem:[#allocation10 + $0x28e4] ss:$24 sps:$4 sm:$0xff]  }
 0xbf9   :  { %v20391_v60 = vld [vmem:[#allocation10 + $0x28b8] ss:$24 sps:$4 sm:$0xff]   ;;  %v20399_v22 = vld [vmem:[#allocation10 + $0x28ec] ss:$24 sps:$4 sm:$0xff]   ;;  %v20397_v5 = vld [vmem:[#allocation10 + $0x28e8] ss:$24 sps:$4 sm:$0xff]  }
 0xbfa   :  { %12624 = vmatpush1.bf16.msra.mxu1 %v20346_v42  ;;  %12753 = vmatpush1.bf16.msra.mxu0 %v20349_v48  ;;  %v20394_v57 = vld [vmem:[#allocation10 + $0x28e0] ss:$24 sps:$4 sm:$0xff]   ;;  %v20402_v54 = vld [vmem:[#allocation10 + $0x2914] ss:$24 sps:$4 sm:$0xff]   ;;  %v20400_v4 = vld [vmem:[#allocation10 + $0x2910] ss:$24 sps:$4 sm:$0xff]  }
 0xbfb   :  { %12625 = vmatprep.subr.bf16.mxu1 %v20354_v25  ;;  %12754 = vmatprep.subr.bf16.mxu0 %v20357_v15  ;;  %v20405_v36 = vld [vmem:[#allocation10 + $0x291c] ss:$24 sps:$4 sm:$0xff]   ;;  %v20403_v55 = vld [vmem:[#allocation10 + $0x2918] ss:$24 sps:$4 sm:$0xff]   ;;  %v20411_v42 = vld [vmem:[#allocation10 + $0x294c] ss:$24 sps:$4 sm:$0xff]  }
 0xbfc   :  { %v20408_v53 = vld [vmem:[#allocation10 + $0x2944] ss:$24 sps:$4 sm:$0xff]   ;;  %v20406_v48 = vld [vmem:[#allocation10 + $0x2940] ss:$24 sps:$4 sm:$0xff]   ;;  %v20414_v15 = vld [vmem:[#allocation10 + $0x2974] ss:$24 sps:$4 sm:$0xff]  }
 0xbfd   :  { %v20409_v25 = vld [vmem:[#allocation10 + $0x2948] ss:$24 sps:$4 sm:$0xff]  }
 0xbfe   :  { %12626 = vmatpush1.bf16.msra.mxu1 %v20352_v39  ;;  %12755 = vmatpush1.bf16.msra.mxu0 %v20355_v44  ;;  %v20417_v39 = vld [vmem:[#allocation10 + $0x297c] ss:$24 sps:$4 sm:$0xff]   ;;  %v20412_v44 = vld [vmem:[#allocation10 + $0x2970] ss:$24 sps:$4 sm:$0xff]  }
 0xbff   :  { %12627 = vmatprep.subr.bf16.mxu1 %v20360_v24  ;;  %12756 = vmatprep.subr.bf16.mxu0 %v20363_v10  ;;  %v20415_v24 = vld [vmem:[#allocation10 + $0x2978] ss:$24 sps:$4 sm:$0xff]   ;;  %v20420_v10 = vld [vmem:[#allocation10 + $0x29a4] ss:$24 sps:$4 sm:$0xff]  }
 0xc02   :  { %12628 = vmatpush1.bf16.msra.mxu1 %v20358_v17  ;;  %12757 = vmatpush1.bf16.msra.mxu0 %v20361_v14  ;;  %v20423_v17 = vld [vmem:[#allocation10 + $0x29ac] ss:$24 sps:$4 sm:$0xff]   ;;  %v20418_v14 = vld [vmem:[#allocation10 + $0x29a0] ss:$24 sps:$4 sm:$0xff]  }
 0xc03   :  { %12629 = vmatprep.subr.bf16.mxu1 %v20366_v61  ;;  %12758 = vmatprep.subr.bf16.mxu0 %v20369_v9  ;;  %v20421_v61 = vld [vmem:[#allocation10 + $0x29a8] ss:$24 sps:$4 sm:$0xff]   ;;  %v20426_v9 = vld [vmem:[#allocation10 + $0x29d4] ss:$24 sps:$4 sm:$0xff]  }
 0xc06   :  { %12630 = vmatpush1.bf16.msra.mxu1 %v20364_v49  ;;  %12759 = vmatpush1.bf16.msra.mxu0 %v20367_v40  ;;  %v20429_v49 = vld [vmem:[#allocation10 + $0x29dc] ss:$24 sps:$4 sm:$0xff]   ;;  %v20424_v40 = vld [vmem:[#allocation10 + $0x29d0] ss:$24 sps:$4 sm:$0xff]  }
 0xc07   :  { %12631 = vmatprep.subr.bf16.mxu1 %v20372_v8  ;;  %12760 = vmatprep.subr.bf16.mxu0 %v20375_v16  ;;  %v20427_v8 = vld [vmem:[#allocation10 + $0x29d8] ss:$24 sps:$4 sm:$0xff]   ;;  %v20432_v16 = vld [vmem:[#allocation10 + $0x2a04] ss:$24 sps:$4 sm:$0xff]  }
 0xc0a   :  { %12632 = vmatpush1.bf16.msra.mxu1 %v20370_v52  ;;  %12761 = vmatpush1.bf16.msra.mxu0 %v20373_v63  ;;  %v20435_v52 = vld [vmem:[#allocation10 + $0x2a0c] ss:$24 sps:$4 sm:$0xff]   ;;  %v20430_v63 = vld [vmem:[#allocation10 + $0x2a00] ss:$24 sps:$4 sm:$0xff]  }
 0xc0b   :  { %12633 = vmatprep.subr.bf16.mxu1 %v20378_v19  ;;  %12762 = vmatprep.subr.bf16.mxu0 %v20381_v2  ;;  %v20433_v19 = vld [vmem:[#allocation10 + $0x2a08] ss:$24 sps:$4 sm:$0xff]   ;;  %v20438_v2 = vld [vmem:[#allocation10 + $0x2a34] ss:$24 sps:$4 sm:$0xff]  }
 0xc0e   :  { %12634 = vmatpush1.bf16.msra.mxu1 %v20376_v37  ;;  %12763 = vmatpush1.bf16.msra.mxu0 %v20379_v32  ;;  %v20441_v37 = vld [vmem:[#allocation10 + $0x2a3c] ss:$24 sps:$4 sm:$0xff]   ;;  %v20436_v32 = vld [vmem:[#allocation10 + $0x2a30] ss:$24 sps:$4 sm:$0xff]  }
 0xc0f   :  { %12635 = vmatprep.subr.bf16.mxu1 %v20384_v30  ;;  %12764 = vmatprep.subr.bf16.mxu0 %v20387_v45  ;;  %v20439_v30 = vld [vmem:[#allocation10 + $0x2a38] ss:$24 sps:$4 sm:$0xff]   ;;  %v20444_v45 = vld [vmem:[#allocation10 + $0x2a64] ss:$24 sps:$4 sm:$0xff]  }
 0xc12   :  { %12636 = vmatpush1.bf16.msra.mxu1 %v20382_v62  ;;  %12765 = vmatpush1.bf16.msra.mxu0 %v20385_v51  ;;  %v20447_v62 = vld [vmem:[#allocation10 + $0x2a6c] ss:$24 sps:$4 sm:$0xff]   ;;  %v20442_v51 = vld [vmem:[#allocation10 + $0x2a60] ss:$24 sps:$4 sm:$0xff]  }
 0xc13   :  { %12637 = vmatprep.subr.bf16.mxu1 %v20390_v1  ;;  %12766 = vmatprep.subr.bf16.mxu0 %v20393_v33  ;;  %v20445_v1 = vld [vmem:[#allocation10 + $0x2a68] ss:$24 sps:$4 sm:$0xff]   ;;  %v20450_v33 = vld [vmem:[#allocation10 + $0x2a94] ss:$24 sps:$4 sm:$0xff]  }
 0xc16   :  { %12638 = vmatpush1.bf16.msra.mxu1 %v20388_v56  ;;  %12767 = vmatpush1.bf16.msra.mxu0 %v20391_v60  ;;  %v20453_v56 = vld [vmem:[#allocation10 + $0x2a9c] ss:$24 sps:$4 sm:$0xff]   ;;  %v20448_v60 = vld [vmem:[#allocation10 + $0x2a90] ss:$24 sps:$4 sm:$0xff]  }
 0xc17   :  { %12639 = vmatprep.subr.bf16.mxu1 %v20396_v6  ;;  %12768 = vmatprep.subr.bf16.mxu0 %v20399_v22  ;;  %v20451_v6 = vld [vmem:[#allocation10 + $0x2a98] ss:$24 sps:$4 sm:$0xff]   ;;  %v20456_v22 = vld [vmem:[#allocation10 + $0x2ac4] ss:$24 sps:$4 sm:$0xff]  }
 0xc1a   :  { %12640 = vmatpush1.bf16.msra.mxu1 %v20394_v57  ;;  %12769 = vmatpush1.bf16.msra.mxu0 %v20397_v5  ;;  %v20459_v57 = vld [vmem:[#allocation10 + $0x2acc] ss:$24 sps:$4 sm:$0xff]   ;;  %v20454_v5 = vld [vmem:[#allocation10 + $0x2ac0] ss:$24 sps:$4 sm:$0xff]  }
 0xc1b   :  { %12641 = vmatprep.subr.bf16.mxu1 %v20402_v54  ;;  %12770 = vmatprep.subr.bf16.mxu0 %v20405_v36  ;;  %v20457_v54 = vld [vmem:[#allocation10 + $0x2ac8] ss:$24 sps:$4 sm:$0xff]   ;;  %v20462_v36 = vld [vmem:[#allocation10 + $0x2af4] ss:$24 sps:$4 sm:$0xff]  }
 0xc1e   :  { %12642 = vmatpush1.bf16.msra.mxu1 %v20400_v4  ;;  %12771 = vmatpush1.bf16.msra.mxu0 %v20403_v55  ;;  %v20465_v4 = vld [vmem:[#allocation10 + $0x2afc] ss:$24 sps:$4 sm:$0xff]   ;;  %v20460_v55 = vld [vmem:[#allocation10 + $0x2af0] ss:$24 sps:$4 sm:$0xff]  }
 0xc1f   :  { %12643 = vmatprep.subr.bf16.mxu1 %v20408_v53  ;;  %12772 = vmatprep.subr.bf16.mxu0 %v20411_v42  ;;  %v20463_v53 = vld [vmem:[#allocation10 + $0x2af8] ss:$24 sps:$4 sm:$0xff]   ;;  %v20468_v42 = vld [vmem:[#allocation10 + $0x2b24] ss:$24 sps:$4 sm:$0xff]  }
 0xc22   :  { %12644 = vmatpush1.bf16.msra.mxu1 %v20406_v48  ;;  %12773 = vmatpush1.bf16.msra.mxu0 %v20409_v25  ;;  %v20471_v48 = vld [vmem:[#allocation10 + $0x2b2c] ss:$24 sps:$4 sm:$0xff]   ;;  %v20466_v25 = vld [vmem:[#allocation10 + $0x2b20] ss:$24 sps:$4 sm:$0xff]  }
 0xc23   :  { %12645 = vmatprep.subr.bf16.mxu1 %v20414_v15  ;;  %12774 = vmatprep.subr.bf16.mxu0 %v20417_v39  ;;  %v20469_v15 = vld [vmem:[#allocation10 + $0x2b28] ss:$24 sps:$4 sm:$0xff]   ;;  %v20474_v39 = vld [vmem:[#allocation10 + $0x2b54] ss:$24 sps:$4 sm:$0xff]  }
 0xc26   :  { %12646 = vmatpush1.bf16.msra.mxu1 %v20412_v44  ;;  %12775 = vmatpush1.bf16.msra.mxu0 %v20415_v24  ;;  %v20477_v44 = vld [vmem:[#allocation10 + $0x2b5c] ss:$24 sps:$4 sm:$0xff]   ;;  %v20472_v24 = vld [vmem:[#allocation10 + $0x2b50] ss:$24 sps:$4 sm:$0xff]  }
 0xc27   :  { %12647 = vmatprep.subr.bf16.mxu1 %v20420_v10  ;;  %12776 = vmatprep.subr.bf16.mxu0 %v20423_v17  ;;  %v20475_v10 = vld [vmem:[#allocation10 + $0x2b58] ss:$24 sps:$4 sm:$0xff]   ;;  %v20480_v17 = vld [vmem:[#allocation10 + $0x2b84] ss:$24 sps:$4 sm:$0xff]  }
 0xc2a   :  { %12648 = vmatpush1.bf16.msra.mxu1 %v20418_v14  ;;  %12777 = vmatpush1.bf16.msra.mxu0 %v20421_v61  ;;  %v20483_v14 = vld [vmem:[#allocation10 + $0x2b8c] ss:$24 sps:$4 sm:$0xff]   ;;  %v20478_v61 = vld [vmem:[#allocation10 + $0x2b80] ss:$24 sps:$4 sm:$0xff]  }
 0xc2b   :  { %12649 = vmatprep.subr.bf16.mxu1 %v20426_v9  ;;  %12778 = vmatprep.subr.bf16.mxu0 %v20429_v49  ;;  %v20481_v9 = vld [vmem:[#allocation10 + $0x2b88] ss:$24 sps:$4 sm:$0xff]   ;;  %v20486_v49 = vld [vmem:[#allocation10 + $0x2bb4] ss:$24 sps:$4 sm:$0xff]  }
 0xc2e   :  { %12650 = vmatpush1.bf16.msra.mxu1 %v20424_v40  ;;  %12779 = vmatpush1.bf16.msra.mxu0 %v20427_v8  ;;  %v20489_v40 = vld [vmem:[#allocation10 + $0x2bbc] ss:$24 sps:$4 sm:$0xff]   ;;  %v20484_v8 = vld [vmem:[#allocation10 + $0x2bb0] ss:$24 sps:$4 sm:$0xff]  }
 0xc2f   :  { %12662 = vmatprep.subr.bf16.mxu1 %v20432_v16  ;;  %12791 = vmatprep.subr.bf16.mxu0 %v20435_v52  ;;  %v20487_v16 = vld [vmem:[#allocation10 + $0x2bb8] ss:$24 sps:$4 sm:$0xff]   ;;  %v20492_v52 = vld [vmem:[#allocation10 + $0x2be4] ss:$24 sps:$4 sm:$0xff]  }
 0xc31   :  { %12652 = vmatmul.mubr.bf16.vlgmr.msra.gmra.mrb[28].mxu1 %v22694_v20  ;;  %12781 = vmatmul.mubr.bf16.vlgmr.msra.gmra.mrb[32].mxu0 %v22694_v20 }
 0xc32   :  { %12663 = vmatpush1.bf16.msra.mxu1 %v20430_v63  ;;  %12694 = vmatprep.mubr.bf16.mxu1 %v22696_v21  ;;  %v20495_v63 = vld [vmem:[#allocation10 + $0x2bec] ss:$24 sps:$4 sm:$0xff]  }
 0xc33   :  { %12792 = vmatpush1.bf16.msra.mxu0 %v20433_v19  ;;  %12823 = vmatprep.mubr.bf16.mxu0 %v22696_v21  ;;  %v20490_v19 = vld [vmem:[#allocation10 + $0x2be0] ss:$24 sps:$4 sm:$0xff]  }
 0xc34   :  { %12664 = vmatprep.subr.bf16.mxu1 %v20438_v2  ;;  %12793 = vmatprep.subr.bf16.mxu0 %v20441_v37  ;;  %v20493_v2 = vld [vmem:[#allocation10 + $0x2be8] ss:$24 sps:$4 sm:$0xff]   ;;  %v20498_v37 = vld [vmem:[#allocation10 + $0x2c14] ss:$24 sps:$4 sm:$0xff]  }
 0xc36   :  { %12665 = vmatpush1.bf16.msra.mxu1 %v20436_v32  ;;  %v20501_v32 = vld [vmem:[#allocation10 + $0x2c1c] ss:$24 sps:$4 sm:$0xff]  }
 0xc37   :  { %12794 = vmatpush1.bf16.msra.mxu0 %v20439_v30  ;;  %12666 = vmatprep.subr.bf16.mxu1 %v20444_v45  ;;  %v20496_v30 = vld [vmem:[#allocation10 + $0x2c10] ss:$24 sps:$4 sm:$0xff]  }
 0xc38   :  { %12795 = vmatprep.subr.bf16.mxu0 %v20447_v62  ;;  %v20499_v45 = vld [vmem:[#allocation10 + $0x2c18] ss:$24 sps:$4 sm:$0xff]   ;;  %v20504_v62 = vld [vmem:[#allocation10 + $0x2c44] ss:$24 sps:$4 sm:$0xff]  }
 0xc3a   :  { %12667 = vmatpush1.bf16.msra.mxu1 %v20442_v51  ;;  %v20507_v51 = vld [vmem:[#allocation10 + $0x2c4c] ss:$24 sps:$4 sm:$0xff]  }
 0xc3b   :  { %12796 = vmatpush1.bf16.msra.mxu0 %v20445_v1  ;;  %12668 = vmatprep.subr.bf16.mxu1 %v20450_v33  ;;  %v20502_v1 = vld [vmem:[#allocation10 + $0x2c40] ss:$24 sps:$4 sm:$0xff]  }
 0xc3c   :  { %12797 = vmatprep.subr.bf16.mxu0 %v20453_v56  ;;  %v20505_v33 = vld [vmem:[#allocation10 + $0x2c48] ss:$24 sps:$4 sm:$0xff]   ;;  %v20510_v56 = vld [vmem:[#allocation10 + $0x2c74] ss:$24 sps:$4 sm:$0xff]  }
 0xc3e   :  { %12669 = vmatpush1.bf16.msra.mxu1 %v20448_v60  ;;  %v20513_v60 = vld [vmem:[#allocation10 + $0x2c7c] ss:$24 sps:$4 sm:$0xff]  }
 0xc3f   :  { %12798 = vmatpush1.bf16.msra.mxu0 %v20451_v6  ;;  %12670 = vmatprep.subr.bf16.mxu1 %v20456_v22  ;;  %v20508_v6 = vld [vmem:[#allocation10 + $0x2c70] ss:$24 sps:$4 sm:$0xff]  }
 0xc40   :  { %12799 = vmatprep.subr.bf16.mxu0 %v20459_v57  ;;  %v20511_v22 = vld [vmem:[#allocation10 + $0x2c78] ss:$24 sps:$4 sm:$0xff]   ;;  %v20516_v57 = vld [vmem:[#allocation10 + $0x2ca4] ss:$24 sps:$4 sm:$0xff]  }
 0xc42   :  { %12671 = vmatpush1.bf16.msra.mxu1 %v20454_v5  ;;  %v20519_v5 = vld [vmem:[#allocation10 + $0x2cac] ss:$24 sps:$4 sm:$0xff]  }
 0xc43   :  { %12800 = vmatpush1.bf16.msra.mxu0 %v20457_v54  ;;  %12672 = vmatprep.subr.bf16.mxu1 %v20462_v36  ;;  %v20514_v54 = vld [vmem:[#allocation10 + $0x2ca0] ss:$24 sps:$4 sm:$0xff]  }
 0xc44   :  { %12801 = vmatprep.subr.bf16.mxu0 %v20465_v4  ;;  %v20517_v36 = vld [vmem:[#allocation10 + $0x2ca8] ss:$24 sps:$4 sm:$0xff]   ;;  %v20522_v4 = vld [vmem:[#allocation10 + $0x2cd4] ss:$24 sps:$4 sm:$0xff]  }
 0xc46   :  { %12673 = vmatpush1.bf16.msra.mxu1 %v20460_v55  ;;  %v20525_v55 = vld [vmem:[#allocation10 + $0x2cdc] ss:$24 sps:$4 sm:$0xff]  }
 0xc47   :  { %12802 = vmatpush1.bf16.msra.mxu0 %v20463_v53  ;;  %12674 = vmatprep.subr.bf16.mxu1 %v20468_v42  ;;  %v20520_v53 = vld [vmem:[#allocation10 + $0x2cd0] ss:$24 sps:$4 sm:$0xff]  }
 0xc48   :  { %12803 = vmatprep.subr.bf16.mxu0 %v20471_v48  ;;  %v20523_v42 = vld [vmem:[#allocation10 + $0x2cd8] ss:$24 sps:$4 sm:$0xff]   ;;  %v20528_v48 = vld [vmem:[#allocation10 + $0x2414] ss:$24 sps:$4 sm:$0xff]  }
 0xc4a   :  { %12675 = vmatpush1.bf16.msra.mxu1 %v20466_v25  ;;  %v20526_v25 = vld [vmem:[#allocation10 + $0x2410] ss:$24 sps:$4 sm:$0xff]  }
 0xc4b   :  { %12804 = vmatpush1.bf16.msra.mxu0 %v20469_v15  ;;  %12676 = vmatprep.subr.bf16.mxu1 %v20474_v39  ;;  %v20531_v15 = vld [vmem:[#allocation10 + $0x2444] ss:$24 sps:$4 sm:$0xff]   ;;  %v20529_v39 = vld [vmem:[#allocation10 + $0x2440] ss:$24 sps:$4 sm:$0xff]  }
 0xc4c   :  { %12805 = vmatprep.subr.bf16.mxu0 %v20477_v44  ;;  %v20534_v44 = vld [vmem:[#allocation10 + $0x2474] ss:$24 sps:$4 sm:$0xff]  }
 0xc4e   :  { %12677 = vmatpush1.bf16.msra.mxu1 %v20472_v24  ;;  %v20532_v24 = vld [vmem:[#allocation10 + $0x2470] ss:$24 sps:$4 sm:$0xff]  }
 0xc4f   :  { %12806 = vmatpush1.bf16.msra.mxu0 %v20475_v10  ;;  %12678 = vmatprep.subr.bf16.mxu1 %v20480_v17  ;;  %v20537_v10 = vld [vmem:[#allocation10 + $0x24a4] ss:$24 sps:$4 sm:$0xff]   ;;  %v20535_v17 = vld [vmem:[#allocation10 + $0x24a0] ss:$24 sps:$4 sm:$0xff]  }
 0xc50   :  { %12807 = vmatprep.subr.bf16.mxu0 %v20483_v14  ;;  %v20540_v14 = vld [vmem:[#allocation10 + $0x24d4] ss:$24 sps:$4 sm:$0xff]  }
 0xc52   :  { %12679 = vmatpush1.bf16.msra.mxu1 %v20478_v61  ;;  %v20538_v61 = vld [vmem:[#allocation10 + $0x24d0] ss:$24 sps:$4 sm:$0xff]  }
 0xc53   :  { %12808 = vmatpush1.bf16.msra.mxu0 %v20481_v9  ;;  %12680 = vmatprep.subr.bf16.mxu1 %v20486_v49  ;;  %v20543_v9 = vld [vmem:[#allocation10 + $0x2504] ss:$24 sps:$4 sm:$0xff]   ;;  %v20541_v49 = vld [vmem:[#allocation10 + $0x2500] ss:$24 sps:$4 sm:$0xff]  }
 0xc54   :  { %12809 = vmatprep.subr.bf16.mxu0 %v20489_v40  ;;  %v20546_v40 = vld [vmem:[#allocation10 + $0x2534] ss:$24 sps:$4 sm:$0xff]  }
 0xc56   :  { %12681 = vmatpush1.bf16.msra.mxu1 %v20484_v8  ;;  %v20549_v8 = vld [vmem:[#allocation10 + $0x2564] ss:$24 sps:$4 sm:$0xff]  }
 0xc57   :  { %12810 = vmatpush1.bf16.msra.mxu0 %v20487_v16  ;;  %12682 = vmatprep.subr.bf16.mxu1 %v20492_v52  ;;  %v20547_v16 = vld [vmem:[#allocation10 + $0x2560] ss:$24 sps:$4 sm:$0xff]   ;;  %v20552_v52 = vld [vmem:[#allocation10 + $0x2594] ss:$24 sps:$4 sm:$0xff]  }
 0xc58   :  { %12811 = vmatprep.subr.bf16.mxu0 %v20495_v63  ;;  %v20550_v63 = vld [vmem:[#allocation10 + $0x2590] ss:$24 sps:$4 sm:$0xff]  }
 0xc5a   :  { %12683 = vmatpush1.bf16.msra.mxu1 %v20490_v19  ;;  %v20555_v19 = vld [vmem:[#allocation10 + $0x25c4] ss:$24 sps:$4 sm:$0xff]  }
 0xc5b   :  { %12812 = vmatpush1.bf16.msra.mxu0 %v20493_v2  ;;  %12684 = vmatprep.subr.bf16.mxu1 %v20498_v37  ;;  %v20553_v2 = vld [vmem:[#allocation10 + $0x25c0] ss:$24 sps:$4 sm:$0xff]   ;;  %v20558_v37 = vld [vmem:[#allocation10 + $0x25f4] ss:$24 sps:$4 sm:$0xff]  }
 0xc5c   :  { %12813 = vmatprep.subr.bf16.mxu0 %v20501_v32  ;;  %v20556_v32 = vld [vmem:[#allocation10 + $0x25f0] ss:$24 sps:$4 sm:$0xff]  }
 0xc5e   :  { %12685 = vmatpush1.bf16.msra.mxu1 %v20496_v30  ;;  %v20561_v30 = vld [vmem:[#allocation10 + $0x2624] ss:$24 sps:$4 sm:$0xff]  }
 0xc5f   :  { %12814 = vmatpush1.bf16.msra.mxu0 %v20499_v45  ;;  %12686 = vmatprep.subr.bf16.mxu1 %v20504_v62  ;;  %v20559_v45 = vld [vmem:[#allocation10 + $0x2620] ss:$24 sps:$4 sm:$0xff]   ;;  %v20564_v62 = vld [vmem:[#allocation10 + $0x2654] ss:$24 sps:$4 sm:$0xff]  }
 0xc60   :  { %12815 = vmatprep.subr.bf16.mxu0 %v20507_v51  ;;  %v20562_v51 = vld [vmem:[#allocation10 + $0x2650] ss:$24 sps:$4 sm:$0xff]  }
 0xc62   :  { %12687 = vmatpush1.bf16.msra.mxu1 %v20502_v1  ;;  %v20567_v1 = vld [vmem:[#allocation10 + $0x2684] ss:$24 sps:$4 sm:$0xff]  }
 0xc63   :  { %12816 = vmatpush1.bf16.msra.mxu0 %v20505_v33  ;;  %12688 = vmatprep.subr.bf16.mxu1 %v20510_v56  ;;  %v20565_v33 = vld [vmem:[#allocation10 + $0x2680] ss:$24 sps:$4 sm:$0xff]   ;;  %v20570_v56 = vld [vmem:[#allocation10 + $0x26b4] ss:$24 sps:$4 sm:$0xff]  }
 0xc64   :  { %12817 = vmatprep.subr.bf16.mxu0 %v20513_v60  ;;  %v20568_v60 = vld [vmem:[#allocation10 + $0x26b0] ss:$24 sps:$4 sm:$0xff]  }
 0xc66   :  { %12689 = vmatpush1.bf16.msra.mxu1 %v20508_v6  ;;  %v20573_v6 = vld [vmem:[#allocation10 + $0x26e4] ss:$24 sps:$4 sm:$0xff]  }
 0xc67   :  { %12818 = vmatpush1.bf16.msra.mxu0 %v20511_v22  ;;  %12690 = vmatprep.subr.bf16.mxu1 %v20516_v57  ;;  %v20571_v22 = vld [vmem:[#allocation10 + $0x26e0] ss:$24 sps:$4 sm:$0xff]   ;;  %v20576_v57 = vld [vmem:[#allocation10 + $0x2714] ss:$24 sps:$4 sm:$0xff]  }
 0xc68   :  { %12819 = vmatprep.subr.bf16.mxu0 %v20519_v5  ;;  %v20574_v5 = vld [vmem:[#allocation10 + $0x2710] ss:$24 sps:$4 sm:$0xff]  }
 0xc6a   :  { %12691 = vmatpush1.bf16.msra.mxu1 %v20514_v54  ;;  %v20579_v54 = vld [vmem:[#allocation10 + $0x2744] ss:$24 sps:$4 sm:$0xff]  }
 0xc6b   :  { %12820 = vmatpush1.bf16.msra.mxu0 %v20517_v36  ;;  %12692 = vmatprep.subr.bf16.mxu1 %v20522_v4  ;;  %v20577_v36 = vld [vmem:[#allocation10 + $0x2740] ss:$24 sps:$4 sm:$0xff]   ;;  %v20582_v4 = vld [vmem:[#allocation10 + $0x2774] ss:$24 sps:$4 sm:$0xff]  }
 0xc6c   :  { %12821 = vmatprep.subr.bf16.mxu0 %v20525_v55  ;;  %v20580_v55 = vld [vmem:[#allocation10 + $0x2770] ss:$24 sps:$4 sm:$0xff]  }
 0xc6e   :  { %12693 = vmatpush1.bf16.msra.mxu1 %v20520_v53  ;;  %v20585_v53 = vld [vmem:[#allocation10 + $0x27a4] ss:$24 sps:$4 sm:$0xff]  }
 0xc6f   :  { %12822 = vmatpush1.bf16.msra.mxu0 %v20523_v42  ;;  %12834 = vmatprep.subr.bf16.mxu1 %v20528_v48  ;;  %v20583_v42 = vld [vmem:[#allocation10 + $0x27a0] ss:$24 sps:$4 sm:$0xff]   ;;  %v20588_v48 = vld [vmem:[#allocation10 + $0x27d4] ss:$24 sps:$4 sm:$0xff]  }
 0xc71   :  { %12695 = vmatmul.mubr.bf16.vlgmr.msra.gmra.mrb[28].mxu1 %v22698_v43 }
 0xc72   :  { %12824 = vmatmul.mubr.bf16.vlgmr.msra.gmra.mrb[32].mxu0 %v22698_v43  ;;  %12835 = vmatpush1.bf16.msra.mxu1 %v20526_v25  ;;  %v20586_v25 = vld [vmem:[#allocation10 + $0x27d0] ss:$24 sps:$4 sm:$0xff]  }
 0xc73   :  { %12866 = vmatprep.mubr.bf16.mxu1 %v22679_v7  ;;  %12836 = vmatprep.subr.bf16.mxu1 %v20531_v15  ;;  %v20544_v7 = vld [vmem:[#allocation10 + $0x2530] ss:$24 sps:$4 sm:$0xff]   ;;  %v20591_v15 = vld [vmem:[#allocation10 + $0x2804] ss:$24 sps:$4 sm:$0xff]  }
 0xc76   :  { %12837 = vmatpush1.bf16.msra.mxu1 %v20529_v39  ;;  %v20594_v39 = vld [vmem:[#allocation10 + $0x2834] ss:$24 sps:$4 sm:$0xff]  }
 0xc77   :  { %12838 = vmatprep.subr.bf16.mxu1 %v20534_v44  ;;  %v20597_v44 = vld [vmem:[#allocation10 + $0x2864] ss:$24 sps:$4 sm:$0xff]  }
 0xc7a   :  { %12839 = vmatpush1.bf16.msra.mxu1 %v20532_v24  ;;  %v20595_v24 = vld [vmem:[#allocation10 + $0x2860] ss:$24 sps:$4 sm:$0xff]  }
 0xc7b   :  { %12840 = vmatprep.subr.bf16.mxu1 %v20537_v10  ;;  %v20600_v10 = vld [vmem:[#allocation10 + $0x2894] ss:$24 sps:$4 sm:$0xff]  }
 0xc7e   :  { %12841 = vmatpush1.bf16.msra.mxu1 %v20535_v17  ;;  %v20598_v17 = vld [vmem:[#allocation10 + $0x2890] ss:$24 sps:$4 sm:$0xff]  }
 0xc7f   :  { %12842 = vmatprep.subr.bf16.mxu1 %v20540_v14  ;;  %v20603_v14 = vld [vmem:[#allocation10 + $0x28c4] ss:$24 sps:$4 sm:$0xff]  }
 0xc82   :  { %12843 = vmatpush1.bf16.msra.mxu1 %v20538_v61  ;;  %v20601_v61 = vld [vmem:[#allocation10 + $0x28c0] ss:$24 sps:$4 sm:$0xff]  }
 0xc83   :  { %12844 = vmatprep.subr.bf16.mxu1 %v20543_v9  ;;  %v20606_v9 = vld [vmem:[#allocation10 + $0x28f4] ss:$24 sps:$4 sm:$0xff]  }
 0xc86   :  { %12845 = vmatpush1.bf16.msra.mxu1 %v20541_v49  ;;  %v20604_v49 = vld [vmem:[#allocation10 + $0x28f0] ss:$24 sps:$4 sm:$0xff]  }
 0xc87   :  { %12846 = vmatprep.subr.bf16.mxu1 %v20546_v40  ;;  %v20609_v40 = vld [vmem:[#allocation10 + $0x2924] ss:$24 sps:$4 sm:$0xff]  }
 0xc8a   :  { %12847 = vmatpush1.bf16.msra.mxu1 %v20544_v7  ;;  %v20607_v7 = vld [vmem:[#allocation10 + $0x2920] ss:$24 sps:$4 sm:$0xff]  }
 0xc8b   :  { %12848 = vmatprep.subr.bf16.mxu1 %v20549_v8  ;;  %v20612_v8 = vld [vmem:[#allocation10 + $0x2954] ss:$24 sps:$4 sm:$0xff]  }
 0xc8e   :  { %12849 = vmatpush1.bf16.msra.mxu1 %v20547_v16  ;;  %v20610_v16 = vld [vmem:[#allocation10 + $0x2950] ss:$24 sps:$4 sm:$0xff]  }
 0xc8f   :  { %12850 = vmatprep.subr.bf16.mxu1 %v20552_v52  ;;  %v20615_v52 = vld [vmem:[#allocation10 + $0x2984] ss:$24 sps:$4 sm:$0xff]  }
 0xc92   :  { %12851 = vmatpush1.bf16.msra.mxu1 %v20550_v63  ;;  %v20613_v63 = vld [vmem:[#allocation10 + $0x2980] ss:$24 sps:$4 sm:$0xff]  }
 0xc93   :  { %12852 = vmatprep.subr.bf16.mxu1 %v20555_v19  ;;  %v20618_v19 = vld [vmem:[#allocation10 + $0x29b4] ss:$24 sps:$4 sm:$0xff]  }
 0xc96   :  { %12853 = vmatpush1.bf16.msra.mxu1 %v20553_v2  ;;  %v20616_v2 = vld [vmem:[#allocation10 + $0x29b0] ss:$24 sps:$4 sm:$0xff]  }
 0xc97   :  { %12854 = vmatprep.subr.bf16.mxu1 %v20558_v37  ;;  %v20621_v37 = vld [vmem:[#allocation10 + $0x29e4] ss:$24 sps:$4 sm:$0xff]  }
 0xc9a   :  { %12855 = vmatpush1.bf16.msra.mxu1 %v20556_v32  ;;  %v20619_v32 = vld [vmem:[#allocation10 + $0x29e0] ss:$24 sps:$4 sm:$0xff]  }
 0xc9b   :  { %12856 = vmatprep.subr.bf16.mxu1 %v20561_v30  ;;  %v20624_v30 = vld [vmem:[#allocation10 + $0x2a14] ss:$24 sps:$4 sm:$0xff]  }
 0xc9e   :  { %12857 = vmatpush1.bf16.msra.mxu1 %v20559_v45  ;;  %v20622_v45 = vld [vmem:[#allocation10 + $0x2a10] ss:$24 sps:$4 sm:$0xff]  }
 0xc9f   :  { %12858 = vmatprep.subr.bf16.mxu1 %v20564_v62  ;;  %v20627_v62 = vld [vmem:[#allocation10 + $0x2a44] ss:$24 sps:$4 sm:$0xff]  }
 0xca2   :  { %12859 = vmatpush1.bf16.msra.mxu1 %v20562_v51  ;;  %v20625_v51 = vld [vmem:[#allocation10 + $0x2a40] ss:$24 sps:$4 sm:$0xff]  }
 0xca3   :  { %12860 = vmatprep.subr.bf16.mxu1 %v20567_v1  ;;  %v20630_v1 = vld [vmem:[#allocation10 + $0x2a74] ss:$24 sps:$4 sm:$0xff]  }
 0xca6   :  { %12861 = vmatpush1.bf16.msra.mxu1 %v20565_v33  ;;  %v20628_v33 = vld [vmem:[#allocation10 + $0x2a70] ss:$24 sps:$4 sm:$0xff]  }
 0xca7   :  { %12862 = vmatprep.subr.bf16.mxu1 %v20570_v56  ;;  %v20633_v56 = vld [vmem:[#allocation10 + $0x2aa4] ss:$24 sps:$4 sm:$0xff]  }
 0xcaa   :  { %12863 = vmatpush1.bf16.msra.mxu1 %v20568_v60  ;;  %v20631_v60 = vld [vmem:[#allocation10 + $0x2aa0] ss:$24 sps:$4 sm:$0xff]  }
 0xcab   :  { %12864 = vmatprep.subr.bf16.mxu1 %v20573_v6  ;;  %v20636_v6 = vld [vmem:[#allocation10 + $0x2ad4] ss:$24 sps:$4 sm:$0xff]  }
 0xcae   :  { %12865 = vmatpush1.bf16.msra.mxu1 %v20571_v22  ;;  %v20634_v22 = vld [vmem:[#allocation10 + $0x2ad0] ss:$24 sps:$4 sm:$0xff]  }
 0xcaf   :  { %12877 = vmatprep.subr.bf16.mxu1 %v20576_v57  ;;  %v20639_v57 = vld [vmem:[#allocation10 + $0x2b04] ss:$24 sps:$4 sm:$0xff]  }
 0xcb1   :  { %12867 = vmatmul.mubr.bf16.vlgmr.msra.gmra.mrb[32].mxu1 %v22684_v3  ;;  %v20589_v3 = vld [vmem:[#allocation10 + $0x2800] ss:$24 sps:$4 sm:$0xff]  }
 0xcb2   :  { %12878 = vmatpush1.bf16.msra.mxu1 %v20574_v5  ;;  %12909 = vmatprep.mubr.bf16.mxu1 %v22689_v59  ;;  %v20592_v59 = vld [vmem:[#allocation10 + $0x2830] ss:$24 sps:$4 sm:$0xff]   ;;  %v20642_v5 = vld [vmem:[#allocation10 + $0x2b34] ss:$24 sps:$4 sm:$0xff]  }
 0xcb3   :  { %12879 = vmatprep.subr.bf16.mxu1 %v20579_v54  ;;  %v20645_v54 = vld [vmem:[#allocation10 + $0x2b64] ss:$24 sps:$4 sm:$0xff]  }
 0xcb6   :  { %12880 = vmatpush1.bf16.msra.mxu1 %v20577_v36  ;;  %v20643_v36 = vld [vmem:[#allocation10 + $0x2b60] ss:$24 sps:$4 sm:$0xff]  }
 0xcb7   :  { %12881 = vmatprep.subr.bf16.mxu1 %v20582_v4  ;;  %v20648_v4 = vld [vmem:[#allocation10 + $0x2b94] ss:$24 sps:$4 sm:$0xff]  }
 0xcba   :  { %12882 = vmatpush1.bf16.msra.mxu1 %v20580_v55  ;;  %v20646_v55 = vld [vmem:[#allocation10 + $0x2b90] ss:$24 sps:$4 sm:$0xff]  }
 0xcbb   :  { %12883 = vmatprep.subr.bf16.mxu1 %v20585_v53  ;;  %v20651_v53 = vld [vmem:[#allocation10 + $0x2bc4] ss:$24 sps:$4 sm:$0xff]  }
 0xcbe   :  { %12884 = vmatpush1.bf16.msra.mxu1 %v20583_v42  ;;  %v20649_v42 = vld [vmem:[#allocation10 + $0x2bc0] ss:$24 sps:$4 sm:$0xff]  }
 0xcbf   :  { %12885 = vmatprep.subr.bf16.mxu1 %v20588_v48  ;;  %v20654_v48 = vld [vmem:[#allocation10 + $0x2bf4] ss:$24 sps:$4 sm:$0xff]  }
 0xcc2   :  { %12886 = vmatpush1.bf16.msra.mxu1 %v20586_v25  ;;  %v20652_v25 = vld [vmem:[#allocation10 + $0x2bf0] ss:$24 sps:$4 sm:$0xff]  }
 0xcc3   :  { %12887 = vmatprep.subr.bf16.mxu1 %v20591_v15  ;;  %v20657_v15 = vld [vmem:[#allocation10 + $0x2c24] ss:$24 sps:$4 sm:$0xff]  }
 0xcc6   :  { %12888 = vmatpush1.bf16.msra.mxu1 %v20589_v3  ;;  %v20655_v3 = vld [vmem:[#allocation10 + $0x2c20] ss:$24 sps:$4 sm:$0xff]  }
 0xcc7   :  { %12889 = vmatprep.subr.bf16.mxu1 %v20594_v39  ;;  %v20660_v39 = vld [vmem:[#allocation10 + $0x2c54] ss:$24 sps:$4 sm:$0xff]  }
 0xcca   :  { %12890 = vmatpush1.bf16.msra.mxu1 %v20592_v59  ;;  %v20658_v59 = vld [vmem:[#allocation10 + $0x2c50] ss:$24 sps:$4 sm:$0xff]  }
 0xccb   :  { %12891 = vmatprep.subr.bf16.mxu1 %v20597_v44  ;;  %v20663_v44 = vld [vmem:[#allocation10 + $0x2c84] ss:$24 sps:$4 sm:$0xff]  }
 0xcce   :  { %12892 = vmatpush1.bf16.msra.mxu1 %v20595_v24  ;;  %v20661_v24 = vld [vmem:[#allocation10 + $0x2c80] ss:$24 sps:$4 sm:$0xff]  }
 0xccf   :  { %12893 = vmatprep.subr.bf16.mxu1 %v20600_v10  ;;  %v20666_v10 = vld [vmem:[#allocation10 + $0x2cb4] ss:$24 sps:$4 sm:$0xff]  }
 0xcd2   :  { %12894 = vmatpush1.bf16.msra.mxu1 %v20598_v17  ;;  %v20664_v17 = vld [vmem:[#allocation10 + $0x2cb0] ss:$24 sps:$4 sm:$0xff]  }
 0xcd3   :  { %12895 = vmatprep.subr.bf16.mxu1 %v20603_v14  ;;  %v20669_v14 = vld [vmem:[#allocation10 + $0x2ce4] ss:$24 sps:$4 sm:$0xff]  }
 0xcd6   :  { %12896 = vmatpush1.bf16.msra.mxu1 %v20601_v61  ;;  %v20667_v61 = vld [vmem:[#allocation10 + $0x2ce0] ss:$24 sps:$4 sm:$0xff]  }
 0xcd7   :  { %12897 = vmatprep.subr.bf16.mxu1 %v20606_v9  ;;  %v22712_v9 = vld [vmem:[#allocation11 + $0x18] sm:$0x3f] }
 0xcda   :  { %12898 = vmatpush1.bf16.msra.mxu1 %v20604_v49  ;;  %v11109_v49 = vrot.slane %v22712_v9, %v21895_v27 }
 0xcdb   :  { %12899 = vmatprep.subr.bf16.mxu1 %v20609_v40 }
 0xcde   :  { %12900 = vmatpush1.bf16.msra.mxu1 %v20607_v7  ;;  %v11117_v7 = vrot.slane %v22712_v9, %v21890_v23 }
 0xcdf   :  { %12901 = vmatprep.subr.bf16.mxu1 %v20612_v8  ;;  %v11113_v8 = vrot.slane %v22712_v9, %v21901_v29 }
 0xce2   :  { %12902 = vmatpush1.bf16.msra.mxu1 %v20610_v16 }
 0xce3   :  { %12903 = vmatprep.subr.bf16.mxu1 %v20615_v52 }
 0xce6   :  { %12904 = vmatpush1.bf16.msra.mxu1 %v20613_v63  ;;  %v11121_v63 = vrot.slane %v22712_v9, %v21898_v28 }
 0xce7   :  { %12905 = vmatprep.subr.bf16.mxu1 %v20618_v19 }
 0xcea   :  { %12906 = vmatpush1.bf16.msra.mxu1 %v20616_v2 }
 0xceb   :  { %12907 = vmatprep.subr.bf16.mxu1 %v20621_v37 }
 0xcee   :  { %12908 = vmatpush1.bf16.msra.mxu1 %v20619_v32 }
 0xcef   :  { %12920 = vmatprep.subr.bf16.mxu1 %v20624_v30 }
 0xcf1   :  { %12910 = vmatmul.mubr.bf16.vlgmr.msra.gmra.mrb[32].mxu1 %v22694_v20  ;;  %v20637_v20 = vld [vmem:[#allocation10 + $0x2b00] ss:$24 sps:$4 sm:$0xff]  }
 0xcf2   :  { %12921 = vmatpush1.bf16.msra.mxu1 %v20622_v45  ;;  %12952 = vmatprep.mubr.bf16.mxu1 %v22696_v21  ;;  %v20640_v21 = vld [vmem:[#allocation10 + $0x2b30] ss:$24 sps:$4 sm:$0xff]  }
 0xcf3   :  { %12922 = vmatprep.subr.bf16.mxu1 %v20627_v62 }
 0xcf6   :  { %12923 = vmatpush1.bf16.msra.mxu1 %v20625_v51 }
 0xcf7   :  { %12924 = vmatprep.subr.bf16.mxu1 %v20630_v1 }
 0xcfa   :  { %12925 = vmatpush1.bf16.msra.mxu1 %v20628_v33 }
 0xcfb   :  { %12926 = vmatprep.subr.bf16.mxu1 %v20633_v56 }
 0xcfe   :  { %12927 = vmatpush1.bf16.msra.mxu1 %v20631_v60 }
 0xcff   :  { %12928 = vmatprep.subr.bf16.mxu1 %v20636_v6 }
 0xd02   :  { %12929 = vmatpush1.bf16.msra.mxu1 %v20634_v22 }
 0xd03   :  { %12930 = vmatprep.subr.bf16.mxu1 %v20639_v57 }
 0xd06   :  { %12931 = vmatpush1.bf16.msra.mxu1 %v20637_v20 }
 0xd07   :  { %12932 = vmatprep.subr.bf16.mxu1 %v20642_v5 }
 0xd0a   :  { %12933 = vmatpush1.bf16.msra.mxu1 %v20640_v21 }
 0xd0b   :  { %12934 = vmatprep.subr.bf16.mxu1 %v20645_v54 }
 0xd0e   :  { %12935 = vmatpush1.bf16.msra.mxu1 %v20643_v36 }
 0xd0f   :  { %12936 = vmatprep.subr.bf16.mxu1 %v20648_v4 }
 0xd12   :  { %12937 = vmatpush1.bf16.msra.mxu1 %v20646_v55 }
 0xd13   :  { %12938 = vmatprep.subr.bf16.mxu1 %v20651_v53 }
 0xd16   :  { %12939 = vmatpush1.bf16.msra.mxu1 %v20649_v42 }
 0xd17   :  { %12940 = vmatprep.subr.bf16.mxu1 %v20654_v48 }
 0xd1a   :  { %12941 = vmatpush1.bf16.msra.mxu1 %v20652_v25 }
 0xd1b   :  { %12942 = vmatprep.subr.bf16.mxu1 %v20657_v15 }
 0xd1e   :  { %12943 = vmatpush1.bf16.msra.mxu1 %v20655_v3 }
 0xd1f   :  { %12944 = vmatprep.subr.bf16.mxu1 %v20660_v39 }
 0xd22   :  { %12945 = vmatpush1.bf16.msra.mxu1 %v20658_v59 }
 0xd23   :  { %12946 = vmatprep.subr.bf16.mxu1 %v20663_v44 }
 0xd26   :  { %12947 = vmatpush1.bf16.msra.mxu1 %v20661_v24 }
 0xd27   :  { %12948 = vmatprep.subr.bf16.mxu1 %v20666_v10 }
 0xd2a   :  { %12949 = vmatpush1.bf16.msra.mxu1 %v20664_v17 }
 0xd2b   :  { %12950 = vmatprep.subr.bf16.mxu1 %v20669_v14 }
 0xd2e   :  { %12951 = vmatpush1.bf16.msra.mxu1 %v20667_v61 }
 0xd31   :  { %12953 = vmatmul.mubr.bf16.vlgmr.msra.gmra.mrb[32].mxu1 %v22698_v43 }
 0xd44   :  { %v12696_v40 = vpop.f32.mrb[28].mxu1 }
 0xd45   :  { %v12825_v16 = vpop.f32.mrb[32].mxu0  ;;  %v12698_v52 = vpop.f32.mrb[29].mxu1  ;;  %v18319_v43 = vadd.f32 %v12696_v40, %v11109_v49 }
 0xd46   :  { %v12827_v19 = vpop.f32.mrb[33].mxu0  ;;  %v12700_v2 = vpop.f32.mrb[30].mxu1  ;;  %v18323_v45 = vadd.f32 %v12825_v16, %v11117_v7  ;;  %v18320_v62 = vadd.f32 %v12698_v52, %v11113_v8 }
 0xd47   :  { %v18321_v37 = vadd.f32 %v12700_v2, %v11109_v49  ;;  %v12829_v32 = vpop.f32.mrb[34].mxu0  ;;  %v12702_v30 = vpop.f32.mrb[31].mxu1  ;;  %v18324_v56 = vadd.f32 %v12827_v19, %v11121_v63 }
 0xd48   :  { %v18325_v51 = vadd.f32 %v12829_v32, %v11117_v7  ;;  %v18322_v1 = vadd.f32 %v12702_v30, %v11113_v8  ;;  %v12831_v33 = vpop.f32.mrb[35].mxu0 }
 0xd49   :  { %v12967_v60 = vadd.f32 %v18321_v37, %v18319_v43  ;;  %v18326_v6 = vadd.f32 %v12831_v33, %v11121_v63 }
 0xd4a   :  { %v12981_v22 = vadd.f32 %v18325_v51, %v18323_v45  ;;  %v12974_v57 = vadd.f32 %v18322_v1, %v18320_v62 }
 0xd4b   :  { %v12968_v20 = vrot.slane %v12967_v60, 4  ;;  %v12988_v5 = vadd.f32 %v18326_v6, %v18324_v56 }
 0xd4c   :  { %v12982_v21 = vrot.slane %v12981_v22, 4  ;;  %v12975_v54 = vrot.slane %v12974_v57, 4 }
 0xd4d   :  { %v12969_v36 = vadd.f32 %v12968_v20, %v12967_v60  ;;  %v12989_v4 = vrot.slane %v12988_v5, 4 }
 0xd4e   :  { %v12983_v55 = vadd.f32 %v12982_v21, %v12981_v22  ;;  %v12976_v53 = vadd.f32 %v12975_v54, %v12974_v57 }
 0xd4f   :  { %v12970_v42 = vrot.slane %v12969_v36, 2  ;;  %v12990_v48 = vadd.f32 %v12989_v4, %v12988_v5 }
 0xd50   :  { %v12984_v25 = vrot.slane %v12983_v55, 2  ;;  %v12977_v15 = vrot.slane %v12976_v53, 2 }
 0xd51   :  { %v12971_v3 = vadd.f32 %v12970_v42, %v12969_v36  ;;  %v12991_v39 = vrot.slane %v12990_v48, 2 }
 0xd52   :  { %v12985_v59 = vadd.f32 %v12984_v25, %v12983_v55  ;;  %v12978_v44 = vadd.f32 %v12977_v15, %v12976_v53 }
 0xd53   :  { %v12972_v24 = vrot.slane %v12971_v3, 1  ;;  %v12992_v10 = vadd.f32 %v12991_v39, %v12990_v48 }
 0xd54   :  { %v12986_v17 = vrot.slane %v12985_v59, 1  ;;  %v12979_v14 = vrot.slane %v12978_v44, 1 }
 0xd55   :  { %v12973_v61 = vadd.f32 %v12972_v24, %v12971_v3  ;;  %v12993_v49 = vrot.slane %v12992_v10, 1 }
 0xd56   :  { %v12987_v40 = vadd.f32 %v12986_v17, %v12985_v59  ;;  %v12980_v7 = vadd.f32 %v12979_v14, %v12978_v44 }
 0xd57   :  { %v13009_v8 = vmul.f32 0.0625, %v12973_v61  ;;  %v12994_v16 = vadd.f32 %v12993_v49, %v12992_v10 }
 0xd58   :  { %v13011_v52 = vmul.f32 0.0625, %v12987_v40  ;;  %v13010_v63 = vmul.f32 0.0625, %v12980_v7 }
 0xd59   :  { %v22722_v19 = vsub.f32 %v18319_v43, %v13009_v8  ;;  %v22724_v2 = vsub.f32 %v18321_v37, %v13009_v8  ;;  %v13012_v32 = vmul.f32 0.0625, %v12994_v16 }
 0xd5a   :  { %v22726_v30 = vsub.f32 %v18323_v45, %v13011_v52  ;;  %v22728_v33 = vsub.f32 %v18325_v51, %v13011_v52  ;;  %v22730_v60 = vsub.f32 %v18320_v62, %v13010_v63  ;;  %v22732_v22 = vsub.f32 %v18322_v1, %v13010_v63 }
 0xd5b   :  { %v13027_v57 = vmul.f32 %v22722_v19, %v22722_v19  ;;  %v13033_v20 = vmul.f32 %v22724_v2, %v22724_v2  ;;  %v22738_v5 = vsub.f32 %v18324_v56, %v13012_v32  ;;  %v22740_v43 = vsub.f32 %v18326_v6, %v13012_v32 }
 0xd5c   :  { %v13029_v37 = vmul.f32 %v22726_v30, %v22726_v30  ;;  %v13035_v45 = vmul.f32 %v22728_v33, %v22728_v33  ;;  %v13028_v62 = vmul.f32 %v22730_v60, %v22730_v60  ;;  %v13034_v51 = vmul.f32 %v22732_v22, %v22732_v22 }
 0xd5d   :  { %v13039_v1 = vadd.f32 %v13033_v20, %v13027_v57  ;;  %v13030_v21 = vmul.f32 %v22738_v5, %v22738_v5  ;;  %v13036_v56 = vmul.f32 %v22740_v43, %v22740_v43 }
 0xd5e   :  { %v13053_v6 = vadd.f32 %v13035_v45, %v13029_v37  ;;  %v13046_v54 = vadd.f32 %v13034_v51, %v13028_v62 }
 0xd5f   :  { %v13040_v36 = vrot.slane %v13039_v1, 4  ;;  %v13060_v4 = vadd.f32 %v13036_v56, %v13030_v21 }
 0xd60   :  { %v13054_v55 = vrot.slane %v13053_v6, 4  ;;  %v13047_v53 = vrot.slane %v13046_v54, 4 }
 0xd61   :  { %v13041_v42 = vadd.f32 %v13040_v36, %v13039_v1  ;;  %v13061_v48 = vrot.slane %v13060_v4, 4 }
 0xd62   :  { %v13055_v25 = vadd.f32 %v13054_v55, %v13053_v6  ;;  %v13048_v15 = vadd.f32 %v13047_v53, %v13046_v54 }
 0xd63   :  { %v13042_v3 = vrot.slane %v13041_v42, 2  ;;  %v13062_v39 = vadd.f32 %v13061_v48, %v13060_v4 }
 0xd64   :  { %v13056_v59 = vrot.slane %v13055_v25, 2  ;;  %v13049_v44 = vrot.slane %v13048_v15, 2 }
 0xd65   :  { %v13043_v24 = vadd.f32 %v13042_v3, %v13041_v42  ;;  %v13063_v10 = vrot.slane %v13062_v39, 2  ;;  %v20670_v3 = vld [vmem:[#allocation10 + $0x2d00] ss:$24 sps:$4 sm:$0xff]  }
 0xd66   :  { %v13057_v17 = vadd.f32 %v13056_v59, %v13055_v25  ;;  %v13050_v14 = vadd.f32 %v13049_v44, %v13048_v15  ;;  %v20672_v25 = vld [vmem:[#allocation10 + $0x2d04] ss:$24 sps:$4 sm:$0xff]   ;;  %v20678_v59 = vld [vmem:[#allocation10 + $0x2d34] ss:$24 sps:$4 sm:$0xff]  }
 0xd67   :  { %v13044_v61 = vrot.slane %v13043_v24, 1  ;;  %v13064_v49 = vadd.f32 %v13063_v10, %v13062_v39  ;;  %v20675_v15 = vld [vmem:[#allocation10 + $0x2d0c] ss:$24 sps:$4 sm:$0xff]   ;;  %v20673_v39 = vld [vmem:[#allocation10 + $0x2d08] ss:$24 sps:$4 sm:$0xff]   ;;  %15061 = vmatprep.subr.bf16.mxu0 %v20672_v25 }
 0xd68   :  { %v13058_v40 = vrot.slane %v13057_v17, 1  ;;  %v13051_v7 = vrot.slane %v13050_v14, 1  ;;  %15190 = vmatprep.subr.bf16.mxu1 %v20675_v15  ;;  %15062 = vmatpush1.bf16.msra.mxu0 %v20670_v3  ;;  %v20681_v44 = vld [vmem:[#allocation10 + $0x2d3c] ss:$24 sps:$4 sm:$0xff]   ;;  %v20679_v10 = vld [vmem:[#allocation10 + $0x2d38] ss:$24 sps:$4 sm:$0xff]  }
 0xd69   :  { %v13045_v8 = vadd.f32 %v13044_v61, %v13043_v24  ;;  %v13065_v16 = vrot.slane %v13064_v49, 1  ;;  %15191 = vmatpush1.bf16.msra.mxu1 %v20673_v39  ;;  %v20676_v24 = vld [vmem:[#allocation10 + $0x2d30] ss:$24 sps:$4 sm:$0xff]   ;;  %15063 = vmatprep.subr.bf16.mxu0 %v20678_v59  ;;  %v20682_v61 = vld [vmem:[#allocation10 + $0x2d60] ss:$24 sps:$4 sm:$0xff]  }
 0xd6a   :  { %v13059_v52 = vadd.f32 %v13058_v40, %v13057_v17  ;;  %v13052_v63 = vadd.f32 %v13051_v7, %v13050_v14  ;;  %15192 = vmatprep.subr.bf16.mxu1 %v20681_v44  ;;  %v20684_v17 = vld [vmem:[#allocation10 + $0x2d64] ss:$24 sps:$4 sm:$0xff]   ;;  %v20690_v40 = vld [vmem:[#allocation10 + $0x2d94] ss:$24 sps:$4 sm:$0xff]   ;;  %v20688_v7 = vld [vmem:[#allocation10 + $0x2d90] ss:$24 sps:$4 sm:$0xff]  }
 0xd6b   :  { %v13081_v32 = vmul.f32 0.0625, %v13045_v8  ;;  %v13066_v57 = vadd.f32 %v13065_v16, %v13064_v49  ;;  %v20687_v14 = vld [vmem:[#allocation10 + $0x2d6c] ss:$24 sps:$4 sm:$0xff]   ;;  %v20685_v49 = vld [vmem:[#allocation10 + $0x2d68] ss:$24 sps:$4 sm:$0xff]  }
 0xd6c   :  { %v13083_v20 = vmul.f32 0.0625, %v13059_v52  ;;  %v13082_v37 = vmul.f32 0.0625, %v13052_v63  ;;  %15064 = vmatpush1.bf16.msra.mxu0 %v20676_v24  ;;  %v20691_v8 = vld [vmem:[#allocation10 + $0x2d98] ss:$24 sps:$4 sm:$0xff]   ;;  %v20693_v16 = vld [vmem:[#allocation10 + $0x2d9c] ss:$24 sps:$4 sm:$0xff]  }
 0xd6d   :  { %v13087_v45 = vadd.f32 1e-05, %v13081_v32  ;;  %v13084_v62 = vmul.f32 0.0625, %v13066_v57  ;;  %15193 = vmatpush1.bf16.msra.mxu1 %v20679_v10  ;;  %15065 = vmatprep.subr.bf16.mxu0 %v20684_v17  ;;  %v20696_v52 = vld [vmem:[#allocation10 + $0x2dc4] ss:$24 sps:$4 sm:$0xff]  }
 0xd6e   :  { %v13089_v51 = vadd.f32 1e-05, %v13083_v20  ;;  %v13088_v1 = vadd.f32 1e-05, %v13082_v37  ;;  %15194 = vmatprep.subr.bf16.mxu1 %v20687_v14  ;;  %v20699_v63 = vld [vmem:[#allocation10 + $0x2dcc] ss:$24 sps:$4 sm:$0xff]  }
 0xd6f   :  { %21330 = vrsqrt.f32 %v13087_v45  ;;  %v13090_v21 = vadd.f32 1e-05, %v13084_v62  ;;  %v20694_v32 = vld [vmem:[#allocation10 + $0x2dc0] ss:$24 sps:$4 sm:$0xff]   ;;  %v20702_v20 = vld [vmem:[#allocation10 + $0x2df4] ss:$24 sps:$4 sm:$0xff]  }
 0xd70   :  { %21332 = vrsqrt.f32 %v13089_v51  ;;  %15066 = vmatpush1.bf16.msra.mxu0 %v20682_v61  ;;  %v20697_v57 = vld [vmem:[#allocation10 + $0x2dc8] ss:$24 sps:$4 sm:$0xff]   ;;  %v20705_v37 = vld [vmem:[#allocation10 + $0x2dfc] ss:$24 sps:$4 sm:$0xff]   ;;  %v20703_v62 = vld [vmem:[#allocation10 + $0x2df8] ss:$24 sps:$4 sm:$0xff]  }
 0xd71   :  { %21334 = vrsqrt.f32 %v13088_v1  ;;  %15195 = vmatpush1.bf16.msra.mxu1 %v20685_v49  ;;  %15067 = vmatprep.subr.bf16.mxu0 %v20690_v40  ;;  %v20700_v45 = vld [vmem:[#allocation10 + $0x2df0] ss:$24 sps:$4 sm:$0xff]   ;;  %v20708_v51 = vld [vmem:[#allocation10 + $0x2e24] ss:$24 sps:$4 sm:$0xff]   ;;  %v20718_v15 = vld [vmem:[#allocation10 + $0x2e80] ss:$24 sps:$4 sm:$0xff]  }
 0xd72   :  { %21336 = vrsqrt.f32 %v13090_v21  ;;  %15196 = vmatprep.subr.bf16.mxu1 %v20693_v16  ;;  %v20711_v1 = vld [vmem:[#allocation10 + $0x2e2c] ss:$24 sps:$4 sm:$0xff]   ;;  %v20706_v21 = vld [vmem:[#allocation10 + $0x2e20] ss:$24 sps:$4 sm:$0xff]   ;;  %v20729_v59 = vld [vmem:[#allocation10 + $0x2ebc] ss:$24 sps:$4 sm:$0xff]  }
 0xd73   :  { %v20723_v25 = vld [vmem:[#allocation10 + $0x2e8c] ss:$24 sps:$4 sm:$0xff]   ;;  %v20721_v3 = vld [vmem:[#allocation10 + $0x2e88] ss:$24 sps:$4 sm:$0xff]   ;;  %v20727_v24 = vld [vmem:[#allocation10 + $0x2eb8] ss:$24 sps:$4 sm:$0xff]  }
 0xd74   :  { %15068 = vmatpush1.bf16.msra.mxu0 %v20688_v7  ;;  %v20726_v39 = vld [vmem:[#allocation10 + $0x2eb4] ss:$24 sps:$4 sm:$0xff]   ;;  %v20724_v44 = vld [vmem:[#allocation10 + $0x2eb0] ss:$24 sps:$4 sm:$0xff]   ;;  %v20732_v10 = vld [vmem:[#allocation10 + $0x2ee4] ss:$24 sps:$4 sm:$0xff]  }
 0xd75   :  { %15197 = vmatpush1.bf16.msra.mxu1 %v20691_v8  ;;  %15069 = vmatprep.subr.bf16.mxu0 %v20696_v52  ;;  %v20735_v17 = vld [vmem:[#allocation10 + $0x2eec] ss:$24 sps:$4 sm:$0xff]   ;;  %v20730_v14 = vld [vmem:[#allocation10 + $0x2ee0] ss:$24 sps:$4 sm:$0xff]   ;;  %v20736_v40 = vld [vmem:[#allocation10 + $0x2f10] ss:$24 sps:$4 sm:$0xff]  }
 0xd76   :  { %15198 = vmatprep.subr.bf16.mxu1 %v20699_v63  ;;  %v20733_v61 = vld [vmem:[#allocation10 + $0x2ee8] ss:$24 sps:$4 sm:$0xff]   ;;  %v20738_v49 = vld [vmem:[#allocation10 + $0x2f14] ss:$24 sps:$4 sm:$0xff]   ;;  %v20739_v8 = vld [vmem:[#allocation10 + $0x2f18] ss:$24 sps:$4 sm:$0xff]  }
 0xd77   :  { %v20741_v7 = vld [vmem:[#allocation10 + $0x2f1c] ss:$24 sps:$4 sm:$0xff]   ;;  %v20747_v52 = vld [vmem:[#allocation10 + $0x2f4c] ss:$24 sps:$4 sm:$0xff]   ;;  %v20742_v63 = vld [vmem:[#allocation10 + $0x2f40] ss:$24 sps:$4 sm:$0xff]  }
 0xd78   :  { %15070 = vmatpush1.bf16.msra.mxu0 %v20694_v32  ;;  %v20744_v16 = vld [vmem:[#allocation10 + $0x2f44] ss:$24 sps:$4 sm:$0xff]   ;;  %v20745_v32 = vld [vmem:[#allocation10 + $0x2f48] ss:$24 sps:$4 sm:$0xff]  }
 0xd79   :  { %v21331_v56 = vpop.eup %21330  ;;  %15199 = vmatpush1.bf16.msra.mxu1 %v20697_v57  ;;  %15071 = vmatprep.subr.bf16.mxu0 %v20702_v20  ;;  %v20750_v57 = vld [vmem:[#allocation10 + $0x2f74] ss:$24 sps:$4 sm:$0xff]  }
 0xd7a   :  { %v21333_v6 = vpop.eup %21332  ;;  %15200 = vmatprep.subr.bf16.mxu1 %v20705_v37  ;;  %v20753_v20 = vld [vmem:[#allocation10 + $0x2f7c] ss:$24 sps:$4 sm:$0xff]   ;;  %v20748_v37 = vld [vmem:[#allocation10 + $0x2f70] ss:$24 sps:$4 sm:$0xff]  }
 0xd7b   :  { %v21335_v54 = vpop.eup %21334 }
 0xd7c   :  { %v21337_v36 = vpop.eup %21336  ;;  %v13105_v4 = vcombine.low %v21331_v56, %v21335_v54  ;;  %15072 = vmatpush1.bf16.msra.mxu0 %v20700_v45  ;;  %v20709_v56 = vld [vmem:[#allocation10 + $0x2e28] ss:$24 sps:$4 sm:$0xff]   ;;  %v20717_v54 = vld [vmem:[#allocation10 + $0x2e5c] ss:$24 sps:$4 sm:$0xff]   ;;  %v20751_v45 = vld [vmem:[#allocation10 + $0x2f78] ss:$24 sps:$4 sm:$0xff]  }
 0xd7d   :  { %v13106_v55 = vcombine.low %v21333_v6, %v21337_v36  ;;  %15201 = vmatpush1.bf16.msra.mxu1 %v20703_v62  ;;  %15073 = vmatprep.subr.bf16.mxu0 %v20708_v51  ;;  %v20714_v6 = vld [vmem:[#allocation10 + $0x2e54] ss:$24 sps:$4 sm:$0xff]   ;;  %v20712_v36 = vld [vmem:[#allocation10 + $0x2e50] ss:$24 sps:$4 sm:$0xff]   ;;  %v20756_v62 = vld [vmem:[#allocation10 + $0x2fa4] ss:$24 sps:$4 sm:$0xff]  }
 0xd7e   :  { %v22755_v53 = vrot.slane %v13105_v4, %v22018_v11  ;;  %15202 = vmatprep.subr.bf16.mxu1 %v20711_v1  ;;  %v20715_v4 = vld [vmem:[#allocation10 + $0x2e58] ss:$24 sps:$4 sm:$0xff]   ;;  %v20759_v51 = vld [vmem:[#allocation10 + $0x2fac] ss:$24 sps:$4 sm:$0xff]  }
 0xd7f   :  { %v22758_v42 = vrot.slane %v13106_v55, %v22018_v11  ;;  %v20720_v55 = vld [vmem:[#allocation10 + $0x2e84] ss:$24 sps:$4 sm:$0xff]   ;;  %v20754_v1 = vld [vmem:[#allocation10 + $0x2fa0] ss:$24 sps:$4 sm:$0xff]  }
 0xd80   :  { %15074 = vmatpush1.bf16.msra.mxu0 %v20706_v21  ;;  %v20757_v21 = vld [vmem:[#allocation10 + $0x2fa8] ss:$24 sps:$4 sm:$0xff]  }
 0xd81   :  { %v13129_v48 = vcombine.low %v22755_v53, %v22758_v42  ;;  %15203 = vmatpush1.bf16.msra.mxu1 %v20709_v56  ;;  %15075 = vmatprep.subr.bf16.mxu0 %v20714_v6  ;;  %v20762_v56 = vld [vmem:[#allocation10 + $0x2fd4] ss:$24 sps:$4 sm:$0xff]  }
 0xd82   :  { %15204 = vmatprep.subr.bf16.mxu1 %v20717_v54  ;;  %v20765_v6 = vld [vmem:[#allocation10 + $0x2fdc] ss:$24 sps:$4 sm:$0xff]   ;;  %v20760_v54 = vld [vmem:[#allocation10 + $0x2fd0] ss:$24 sps:$4 sm:$0xff]  }
 0xd84   :  { %15076 = vmatpush1.bf16.msra.mxu0 %v20712_v36  ;;  %v20763_v36 = vld [vmem:[#allocation10 + $0x2fd8] ss:$24 sps:$4 sm:$0xff]  }
 0xd85   :  { %15205 = vmatpush1.bf16.msra.mxu1 %v20715_v4  ;;  %15077 = vmatprep.subr.bf16.mxu0 %v20720_v55  ;;  %v20768_v4 = vld [vmem:[#allocation10 + $0x3004] ss:$24 sps:$4 sm:$0xff]  }
 0xd86   :  { %15206 = vmatprep.subr.bf16.mxu1 %v20723_v25  ;;  %v20771_v55 = vld [vmem:[#allocation10 + $0x300c] ss:$24 sps:$4 sm:$0xff]   ;;  %v11125_v25 = vrot.slane %v22712_v9, %v21976_v47 }
 0xd88   :  { %15078 = vmatpush1.bf16.msra.mxu0 %v20718_v15 }
 0xd89   :  { %15207 = vmatpush1.bf16.msra.mxu1 %v20721_v3  ;;  %15079 = vmatprep.subr.bf16.mxu0 %v20726_v39  ;;  %v11129_v3 = vrot.slane %v22712_v9, %v21979_v50 }
 0xd8a   :  { %15208 = vmatprep.subr.bf16.mxu1 %v20729_v59 }
 0xd8c   :  { %15080 = vmatpush1.bf16.msra.mxu0 %v20724_v44 }
 0xd8d   :  { %15209 = vmatpush1.bf16.msra.mxu1 %v20727_v24  ;;  %15081 = vmatprep.subr.bf16.mxu0 %v20732_v10 }
 0xd8e   :  { %15210 = vmatprep.subr.bf16.mxu1 %v20735_v17 }
 0xd90   :  { %15082 = vmatpush1.bf16.msra.mxu0 %v20730_v14 }
 0xd91   :  { %15211 = vmatpush1.bf16.msra.mxu1 %v20733_v61  ;;  %15083 = vmatprep.subr.bf16.mxu0 %v20738_v49 }
 0xd92   :  { %15212 = vmatprep.subr.bf16.mxu1 %v20741_v7 }
 0xd94   :  { %15084 = vmatpush1.bf16.msra.mxu0 %v20736_v40 }
 0xd95   :  { %15213 = vmatpush1.bf16.msra.mxu1 %v20739_v8  ;;  %15085 = vmatprep.subr.bf16.mxu0 %v20744_v16 }
 0xd96   :  { %15214 = vmatprep.subr.bf16.mxu1 %v20747_v52 }
 0xd98   :  { %15086 = vmatpush1.bf16.msra.mxu0 %v20742_v63 }
 0xd99   :  { %15215 = vmatpush1.bf16.msra.mxu1 %v20745_v32  ;;  %15087 = vmatprep.subr.bf16.mxu0 %v20750_v57 }
 0xd9a   :  { %15216 = vmatprep.subr.bf16.mxu1 %v20753_v20 }
 0xd9c   :  { %15088 = vmatpush1.bf16.msra.mxu0 %v20748_v37 }
 0xd9d   :  { %15217 = vmatpush1.bf16.msra.mxu1 %v20751_v45  ;;  %15089 = vmatprep.subr.bf16.mxu0 %v20756_v62 }
 0xd9e   :  { %15218 = vmatprep.subr.bf16.mxu1 %v20759_v51 }
 0xda0   :  { %15090 = vmatpush1.bf16.msra.mxu0 %v20754_v1 }
 0xda1   :  { %15219 = vmatpush1.bf16.msra.mxu1 %v20757_v21  ;;  %15091 = vmatprep.subr.bf16.mxu0 %v20762_v56 }
 0xda2   :  { %15220 = vmatprep.subr.bf16.mxu1 %v20765_v6 }
 0xda4   :  { %15092 = vmatpush1.bf16.msra.mxu0 %v20760_v54 }
 0xda5   :  { %15221 = vmatpush1.bf16.msra.mxu1 %v20763_v36  ;;  %15104 = vmatprep.subr.bf16.mxu0 %v20768_v4 }
 0xda6   :  { %15233 = vmatprep.subr.bf16.mxu1 %v20771_v55 }
 0xe04   :  { %v12954_v15 = vpop.f32.mrb[32].mxu1 }
 0xe05   :  { %v12956_v39 = vpop.f32.mrb[33].mxu1  ;;  %v18327_v44 = vadd.f32 %v12954_v15, %v11125_v25 }
 0xe06   :  { %v12958_v59 = vpop.f32.mrb[34].mxu1  ;;  %v18328_v17 = vadd.f32 %v12956_v39, %v11129_v3 }
 0xe07   :  { %v18329_v24 = vadd.f32 %v12958_v59, %v11125_v25  ;;  %v12960_v10 = vpop.f32.mrb[35].mxu1 }
 0xe08   :  { %v18330_v14 = vadd.f32 %v12960_v10, %v11129_v3 }
 0xe09   :  { %v12995_v61 = vadd.f32 %v18329_v24, %v18327_v44 }
 0xe0a   :  { %v13002_v49 = vadd.f32 %v18330_v14, %v18328_v17 }
 0xe0b   :  { %v12996_v40 = vrot.slane %v12995_v61, 4 }
 0xe0c   :  { %v13003_v7 = vrot.slane %v13002_v49, 4 }
 0xe0d   :  { %v12997_v8 = vadd.f32 %v12996_v40, %v12995_v61 }
 0xe0e   :  { %v13004_v16 = vadd.f32 %v13003_v7, %v13002_v49 }
 0xe0f   :  { %v12998_v52 = vrot.slane %v12997_v8, 2 }
 0xe10   :  { %v13005_v63 = vrot.slane %v13004_v16, 2 }
 0xe11   :  { %v12999_v32 = vadd.f32 %v12998_v52, %v12997_v8 }
 0xe12   :  { %v13006_v57 = vadd.f32 %v13005_v63, %v13004_v16 }
 0xe13   :  { %v13000_v20 = vrot.slane %v12999_v32, 1 }
 0xe14   :  { %v13007_v37 = vrot.slane %v13006_v57, 1 }
 0xe15   :  { %v13001_v9 = vadd.f32 %v13000_v20, %v12999_v32 }
 0xe16   :  { %v13008_v45 = vadd.f32 %v13007_v37, %v13006_v57 }
 0xe17   :  { %v13013_v62 = vmul.f32 0.0625, %v13001_v9  ;;  %v13136_v9 = vrot.slane %v13129_v48, %v22018_v11 }
 0xe18   :  { %v13014_v51 = vmul.f32 0.0625, %v13008_v45 }
 0xe19   :  { %v22766_v1 = vsub.f32 %v18327_v44, %v13013_v62  ;;  %v22768_v21 = vsub.f32 %v18329_v24, %v13013_v62  ;;  %v12964_v62 = vld [vmem:[#allocation7 + $0x1e] sm:$0x3f] }
 0xe1a   :  { %v13020_v56 = vsub.f32 %v18328_v17, %v13014_v51  ;;  %v13026_v6 = vsub.f32 %v18330_v14, %v13014_v51  ;;  %v12966_v51 = vld [vmem:[#allocation8 + $0x1e] sm:$0x3f] }
 0xe1b   :  { %v13031_v54 = vmul.f32 %v22766_v1, %v22766_v1  ;;  %v13037_v36 = vmul.f32 %v22768_v21, %v22768_v21  ;;  %v13194_v53 = vrot.slane %v12966_v51, %v21895_v27  ;;  %v13206_v42 = vrot.slane %v12966_v51, %v21898_v28 }
 0xe1c   :  { %v13032_v4 = vmul.f32 %v13020_v56, %v13020_v56  ;;  %v13038_v55 = vmul.f32 %v13026_v6, %v13026_v6 }
 0xe1d   :  { %v13067_v25 = vadd.f32 %v13037_v36, %v13031_v54 }
 0xe1e   :  { %v13074_v15 = vadd.f32 %v13038_v55, %v13032_v4  ;;  %v13214_v4 = vrot.slane %v12966_v51, %v21979_v50  ;;  %v13198_v55 = vrot.slane %v12966_v51, %v21901_v29 }
 0xe1f   :  { %v13068_v3 = vrot.slane %v13067_v25, 4 }
 0xe20   :  { %v13075_v39 = vrot.slane %v13074_v15, 4 }
 0xe21   :  { %v13069_v59 = vadd.f32 %v13068_v3, %v13067_v25 }
 0xe22   :  { %v13076_v10 = vadd.f32 %v13075_v39, %v13074_v15 }
 0xe23   :  { %v13070_v44 = vrot.slane %v13069_v59, 2 }
 0xe24   :  { %v13077_v61 = vrot.slane %v13076_v10, 2 }
 0xe25   :  { %v13071_v24 = vadd.f32 %v13070_v44, %v13069_v59 }
 0xe26   :  { %v13078_v49 = vadd.f32 %v13077_v61, %v13076_v10 }
 0xe27   :  { %v13072_v17 = vrot.slane %v13071_v24, 1 }
 0xe28   :  { %v13079_v14 = vrot.slane %v13078_v49, 1 }
 0xe29   :  { %v13073_v40 = vadd.f32 %v13072_v17, %v13071_v24 }
 0xe2a   :  { %v13080_v7 = vadd.f32 %v13079_v14, %v13078_v49 }
 0xe2b   :  { %v13085_v8 = vmul.f32 0.0625, %v13073_v40 }
 0xe2c   :  { %v13086_v16 = vmul.f32 0.0625, %v13080_v7 }
 0xe2d   :  { %v13091_v52 = vadd.f32 1e-05, %v13085_v8 }
 0xe2e   :  { %v13092_v63 = vadd.f32 1e-05, %v13086_v16 }
 0xe2f   :  { %21338 = vrsqrt.f32 %v13091_v52 }
 0xe30   :  { %21340 = vrsqrt.f32 %v13092_v63 }
 0xe39   :  { %v21339_v32 = vpop.eup %21338 }
 0xe3a   :  { %v21341_v57 = vpop.eup %21340 }
 0xe3b   :  { %v13107_v20 = vcombine.low %v21339_v32, %v21341_v57 }
 0xe3d   :  { %v13128_v37 = vrot.slane %v13107_v20, %v22018_v11 }
 0xe3f   :  { %v13143_v45 = vrot.slane %v13128_v37, %v22018_v11  ;;  %v13210_v37 = vrot.slane %v12966_v51, %v21976_v47 }
 0xe41   :  { %v13144_v54 = vcombine.low %v13136_v9, %v13143_v45 }
 0xe43   :  { %v13146_v36 = vmul.f32 %v13144_v54, %v12964_v62 }
 0xe45   :  { %v13171_v25 = vrot.slane %v13146_v36, %v21979_v50  ;;  %v13155_v15 = vrot.slane %v13146_v36, %v21901_v29  ;;  %v13151_v3 = vrot.slane %v13146_v36, %v21895_v27  ;;  %v13163_v39 = vrot.slane %v13146_v36, %v21898_v28 }
 0xe46   :  { %v13159_v48 = vrot.slane %v13146_v36, %v21890_v23 }
 0xe47   :  { %v13183_v59 = vmul.f32 %v13171_v25, %v13020_v56  ;;  %v13189_v10 = vmul.f32 %v13171_v25, %v13026_v6  ;;  %v13179_v44 = vmul.f32 %v13155_v15, %v22730_v60  ;;  %v13185_v61 = vmul.f32 %v13155_v15, %v22732_v22 }
 0xe48   :  { %v13178_v24 = vmul.f32 %v13151_v3, %v22722_v19  ;;  %v13184_v49 = vmul.f32 %v13151_v3, %v22724_v2  ;;  %v13181_v17 = vmul.f32 %v13163_v39, %v22738_v5  ;;  %v13187_v14 = vmul.f32 %v13163_v39, %v22740_v43 }
 0xe49   :  { %v22795_v40 = vadd.f32 %v13214_v4, %v13189_v10  ;;  %v13222_v7 = vadd.f32 %v13198_v55, %v13179_v44  ;;  %v13228_v8 = vadd.f32 %v13198_v55, %v13185_v61  ;;  %v13202_v6 = vrot.slane %v12966_v51, %v21890_v23 }
 0xe4a   :  { %v13221_v16 = vadd.f32 %v13194_v53, %v13178_v24  ;;  %v13227_v52 = vadd.f32 %v13194_v53, %v13184_v49  ;;  %v13224_v56 = vadd.f32 %v13206_v42, %v13181_v17  ;;  %v13230_v63 = vadd.f32 %v13206_v42, %v13187_v14 }
 0xe4b   :  { %v13256_v60 = vmul.f32 0.70710677, %v22795_v40  ;;  %v13246_v22 = vmul.f32 0.70710677, %v13222_v7  ;;  %v13180_v19 = vmul.f32 %v13159_v48, %v22726_v30  ;;  %v13252_v2 = vmul.f32 0.70710677, %v13228_v8 }
 0xe4c   :  { %v13245_v32 = vmul.f32 0.70710677, %v13221_v16  ;;  %v13167_v5 = vrot.slane %v13146_v36, %v21976_v47  ;;  %v13251_v43 = vmul.f32 0.70710677, %v13227_v52  ;;  %v13248_v57 = vmul.f32 0.70710677, %v13224_v56 }
 0xe4d   :  { %21342 = verf.f32 %v13256_v60  ;;  %v13186_v20 = vmul.f32 %v13159_v48, %v22728_v33  ;;  %v13254_v9 = vmul.f32 0.70710677, %v13230_v63  ;;  %v13223_v45 = vadd.f32 %v13202_v6, %v13180_v19 }
 0xe4e   :  { %21344 = verf.f32 %v13246_v22  ;;  %v22803_v62 = vadd.f32 %v13214_v4, %v13183_v59  ;;  %v13182_v30 = vmul.f32 %v13167_v5, %v22766_v1  ;;  %v13188_v55 = vmul.f32 %v13167_v5, %v22768_v21 }
 0xe4f   :  { %21346 = verf.f32 %v13252_v2  ;;  %v13229_v54 = vadd.f32 %v13202_v6, %v13186_v20  ;;  %v13247_v36 = vmul.f32 0.70710677, %v13223_v45  ;;  %v13234_v53 = vmul.f32 0.5, %v13222_v7  ;;  %v20766_v7 = vld [vmem:[#allocation10 + $0x3000] ss:$24 sps:$4 sm:$0xff]  }
 0xe50   :  { %21348 = verf.f32 %v13245_v32  ;;  %v13250_v15 = vmul.f32 0.70710677, %v22803_v62  ;;  %v13225_v33 = vadd.f32 %v13210_v37, %v13182_v30  ;;  %v22808_v51 = vadd.f32 %v13210_v37, %v13188_v55  ;;  %v20769_v30 = vld [vmem:[#allocation10 + $0x3008] ss:$24 sps:$4 sm:$0xff]  }
 0xe51   :  { %21350 = verf.f32 %v13251_v43  ;;  %v13253_v25 = vmul.f32 0.70710677, %v13229_v54  ;;  %v13240_v59 = vmul.f32 0.5, %v13228_v8  ;;  %v13233_v24 = vmul.f32 0.5, %v13221_v16 }
 0xe52   :  { %21352 = verf.f32 %v13248_v57  ;;  %v13249_v4 = vmul.f32 0.70710677, %v13225_v33  ;;  %v13255_v3 = vmul.f32 0.70710677, %v22808_v51  ;;  %v13239_v6 = vmul.f32 0.5, %v13227_v52 }
 0xe53   :  { %21354 = verf.f32 %v13254_v9  ;;  %v13236_v2 = vmul.f32 0.5, %v13224_v56  ;;  %v13242_v8 = vmul.f32 0.5, %v13230_v63  ;;  %v13235_v55 = vmul.f32 0.5, %v13223_v45  ;;  %v20774_v63 = vld [vmem:[#allocation10 + $0x3034] ss:$24 sps:$4 sm:$0xff]  }
 0xe54   :  { %21356 = verf.f32 %v13247_v36  ;;  %v13244_v52 = vmul.f32 0.5, %v22795_v40 }
 0xe55   :  { %21358 = verf.f32 %v13253_v25 }
 0xe56   :  { %21360 = verf.f32 %v13250_v15 }
 0xe57   :  { %v21343_v39 = vpop.eup %21342  ;;  %21362 = verf.f32 %v13249_v4  ;;  %v13241_v4 = vmul.f32 0.5, %v13229_v54  ;;  %v20772_v54 = vld [vmem:[#allocation10 + $0x3030] ss:$24 sps:$4 sm:$0xff]  }
 0xe58   :  { %v21345_v1 = vpop.eup %21344  ;;  %21364 = verf.f32 %v13255_v3  ;;  %v13280_v5 = vadd.f32 1.0, %v21343_v39 }
 0xe59   :  { %v21347_v21 = vpop.eup %21346  ;;  %v13270_v42 = vadd.f32 1.0, %v21345_v1  ;;  %v20777_v1 = vld [vmem:[#allocation10 + $0x303c] ss:$24 sps:$4 sm:$0xff]  }
 0xe5a   :  { %v21349_v48 = vpop.eup %21348  ;;  %v13276_v10 = vadd.f32 1.0, %v21347_v21 }
 0xe5b   :  { %v21351_v44 = vpop.eup %21350  ;;  %v13282_v61 = vmul.f32 %v13270_v42, %v13234_v53  ;;  %v13269_v49 = vadd.f32 1.0, %v21349_v48  ;;  %v13238_v53 = vmul.f32 0.5, %v22803_v62  ;;  %v13292_v42 = vmul.f32 %v13280_v5, %v13244_v52  ;;  %v20789_v5 = vld [vmem:[#allocation10 + $0x309c] ss:$24 sps:$4 sm:$0xff]  }
 0xe5c   :  { %v21353_v17 = vpop.eup %21352  ;;  %v13288_v14 = vmul.f32 %v13276_v10, %v13240_v59  ;;  %v13275_v60 = vadd.f32 1.0, %v21351_v44  ;;  %v13237_v10 = vmul.f32 0.5, %v13225_v33  ;;  %v20804_v52 = vld [vmem:[#allocation10 + $0x3124] ss:$24 sps:$4 sm:$0xff]  }
 0xe5d   :  { %v21355_v22 = vpop.eup %21354  ;;  %v13281_v19 = vmul.f32 %v13269_v49, %v13233_v24  ;;  %v13272_v32 = vadd.f32 1.0, %v21353_v17  ;;  %v13243_v49 = vmul.f32 0.5, %v22808_v51  ;;  %v20780_v17 = vld [vmem:[#allocation10 + $0x3064] ss:$24 sps:$4 sm:$0xff]  }
 0xe5e   :  { %v21357_v43 = vpop.eup %21356  ;;  %v22811_v57 = vpack.c.bf16 %v13288_v14, %v13282_v61  ;;  %v13287_v20 = vmul.f32 %v13275_v60, %v13239_v6  ;;  %v13278_v37 = vadd.f32 1.0, %v21355_v22  ;;  %v20775_v61 = vld [vmem:[#allocation10 + $0x3038] ss:$24 sps:$4 sm:$0xff]   ;;  %v20783_v14 = vld [vmem:[#allocation10 + $0x306c] ss:$24 sps:$4 sm:$0xff]  }
 0xe5f   :  { %v21359_v9 = vpop.eup %21358  ;;  %v13284_v16 = vmul.f32 %v13272_v32, %v13236_v2  ;;  %v13271_v36 = vadd.f32 1.0, %v21357_v43  ;;  %v20781_v2 = vld [vmem:[#allocation10 + $0x3068] ss:$24 sps:$4 sm:$0xff]   ;;  %v20786_v32 = vld [vmem:[#allocation10 + $0x3094] ss:$24 sps:$4 sm:$0xff]  }
 0xe60   :  { %v21361_v25 = vpop.eup %21360  ;;  %15093 = vmatprep.mubr.bf16.mxu0 %v22811_v57  ;;  %15222 = vmatprep.mubr.bf16.mxu1 %v22811_v57  ;;  %v22816_v56 = vpack.c.bf16 %v13287_v20, %v13281_v19  ;;  %v13290_v15 = vmul.f32 %v13278_v37, %v13242_v8  ;;  %v13277_v3 = vadd.f32 1.0, %v21359_v9  ;;  %v20778_v19 = vld [vmem:[#allocation10 + $0x3060] ss:$24 sps:$4 sm:$0xff]   ;;  %v20784_v43 = vld [vmem:[#allocation10 + $0x3090] ss:$24 sps:$4 sm:$0xff]  }
 0xe61   :  { %v21363_v39 = vpop.eup %21362  ;;  %v13283_v21 = vmul.f32 %v13271_v36, %v13235_v55  ;;  %v13274_v45 = vadd.f32 1.0, %v21361_v25  ;;  %v20792_v20 = vld [vmem:[#allocation10 + $0x30c4] ss:$24 sps:$4 sm:$0xff]   ;;  %v20790_v37 = vld [vmem:[#allocation10 + $0x30c0] ss:$24 sps:$4 sm:$0xff]  }
 0xe62   :  { %v21365_v48 = vpop.eup %21364  ;;  %15094 = vmatmul.mubr.bf16.vlgmr.msra.gmra.mrb[36].mxu0 %v22816_v56  ;;  %15223 = vmatmul.mubr.bf16.vlgmr.msra.gmra.mrb[36].mxu1 %v22816_v56  ;;  %v22821_v40 = vpack.c.bf16 %v13290_v15, %v13284_v16  ;;  %v13289_v59 = vmul.f32 %v13277_v3, %v13241_v4  ;;  %v13273_v44 = vadd.f32 1.0, %v21363_v39  ;;  %v20795_v8 = vld [vmem:[#allocation10 + $0x30cc] ss:$24 sps:$4 sm:$0xff]   ;;  %v20793_v9 = vld [vmem:[#allocation10 + $0x30c8] ss:$24 sps:$4 sm:$0xff]  }
 0xe63   :  { %15105 = vmatpush1.bf16.msra.mxu0 %v20766_v7  ;;  %15234 = vmatpush1.bf16.msra.mxu1 %v20769_v30  ;;  %v13286_v24 = vmul.f32 %v13274_v45, %v13238_v53  ;;  %v13279_v62 = vadd.f32 1.0, %v21365_v48  ;;  %v20787_v7 = vld [vmem:[#allocation10 + $0x3098] ss:$24 sps:$4 sm:$0xff]   ;;  %v20798_v30 = vld [vmem:[#allocation10 + $0x30f4] ss:$24 sps:$4 sm:$0xff]  }
 0xe64   :  { %15136 = vmatprep.mubr.bf16.mxu0 %v22821_v40  ;;  %15265 = vmatprep.mubr.bf16.mxu1 %v22821_v40  ;;  %v22826_v6 = vpack.c.bf16 %v13289_v59, %v13283_v21  ;;  %v13285_v60 = vmul.f32 %v13273_v44, %v13237_v10  ;;  %v20801_v16 = vld [vmem:[#allocation10 + $0x30fc] ss:$24 sps:$4 sm:$0xff]   ;;  %v20796_v55 = vld [vmem:[#allocation10 + $0x30f0] ss:$24 sps:$4 sm:$0xff]   ;;  %v20807_v25 = vld [vmem:[#allocation10 + $0x312c] ss:$24 sps:$4 sm:$0xff]  }
 0xe65   :  { %15106 = vmatprep.subr.bf16.mxu0 %v20774_v63  ;;  %15235 = vmatprep.subr.bf16.mxu1 %v20777_v1  ;;  %v22828_v33 = vpack.c.bf16 %v13292_v42, %v13286_v24  ;;  %v13291_v22 = vmul.f32 %v13279_v62, %v13243_v49  ;;  %v20799_v36 = vld [vmem:[#allocation10 + $0x30f8] ss:$24 sps:$4 sm:$0xff]   ;;  %v20805_v4 = vld [vmem:[#allocation10 + $0x3128] ss:$24 sps:$4 sm:$0xff]   ;;  %v20810_v3 = vld [vmem:[#allocation10 + $0x3154] ss:$24 sps:$4 sm:$0xff]  }
 0xe66   :  { %v20802_v15 = vld [vmem:[#allocation10 + $0x3120] ss:$24 sps:$4 sm:$0xff]   ;;  %v20813_v39 = vld [vmem:[#allocation10 + $0x315c] ss:$24 sps:$4 sm:$0xff]   ;;  %v20808_v63 = vld [vmem:[#allocation10 + $0x3150] ss:$24 sps:$4 sm:$0xff]  }
 0xe67   :  { %15107 = vmatpush1.bf16.msra.mxu0 %v20772_v54  ;;  %15236 = vmatpush1.bf16.msra.mxu1 %v20775_v61  ;;  %v22830_v51 = vpack.c.bf16 %v13291_v22, %v13285_v60  ;;  %v20811_v1 = vld [vmem:[#allocation10 + $0x3158] ss:$24 sps:$4 sm:$0xff]   ;;  %v20816_v21 = vld [vmem:[#allocation10 + $0x3184] ss:$24 sps:$4 sm:$0xff]   ;;  %v20817_v42 = vld [vmem:[#allocation10 + $0x3188] ss:$24 sps:$4 sm:$0xff]  }
 0xe68   :  { %15108 = vmatprep.subr.bf16.mxu0 %v20780_v17  ;;  %15237 = vmatprep.subr.bf16.mxu1 %v20783_v14  ;;  %v20819_v53 = vld [vmem:[#allocation10 + $0x318c] ss:$24 sps:$4 sm:$0xff]   ;;  %v20814_v45 = vld [vmem:[#allocation10 + $0x3180] ss:$24 sps:$4 sm:$0xff]   ;;  %v20825_v59 = vld [vmem:[#allocation10 + $0x31bc] ss:$24 sps:$4 sm:$0xff]  }
 0xe69   :  { %v20822_v48 = vld [vmem:[#allocation10 + $0x31b4] ss:$24 sps:$4 sm:$0xff]   ;;  %v20820_v10 = vld [vmem:[#allocation10 + $0x31b0] ss:$24 sps:$4 sm:$0xff]   ;;  %v20828_v54 = vld [vmem:[#allocation10 + $0x31e4] ss:$24 sps:$4 sm:$0xff]  }
 0xe6a   :  { %v20823_v44 = vld [vmem:[#allocation10 + $0x31b8] ss:$24 sps:$4 sm:$0xff]   ;;  %v20831_v61 = vld [vmem:[#allocation10 + $0x31ec] ss:$24 sps:$4 sm:$0xff]   ;;  %v20829_v49 = vld [vmem:[#allocation10 + $0x31e8] ss:$24 sps:$4 sm:$0xff]  }
 0xe6b   :  { %15109 = vmatpush1.bf16.msra.mxu0 %v20778_v19  ;;  %15238 = vmatpush1.bf16.msra.mxu1 %v20781_v2  ;;  %v20826_v24 = vld [vmem:[#allocation10 + $0x31e0] ss:$24 sps:$4 sm:$0xff]   ;;  %v20834_v62 = vld [vmem:[#allocation10 + $0x3214] ss:$24 sps:$4 sm:$0xff]   ;;  %v20832_v14 = vld [vmem:[#allocation10 + $0x3210] ss:$24 sps:$4 sm:$0xff]  }
 0xe6c   :  { %15110 = vmatprep.subr.bf16.mxu0 %v20786_v32  ;;  %15239 = vmatprep.subr.bf16.mxu1 %v20789_v5  ;;  %v20837_v17 = vld [vmem:[#allocation10 + $0x321c] ss:$24 sps:$4 sm:$0xff]   ;;  %v20835_v60 = vld [vmem:[#allocation10 + $0x3218] ss:$24 sps:$4 sm:$0xff]   ;;  %v20843_v19 = vld [vmem:[#allocation10 + $0x324c] ss:$24 sps:$4 sm:$0xff]  }
 0xe6d   :  { %v20840_v22 = vld [vmem:[#allocation10 + $0x3244] ss:$24 sps:$4 sm:$0xff]   ;;  %v20838_v2 = vld [vmem:[#allocation10 + $0x3240] ss:$24 sps:$4 sm:$0xff]   ;;  %v20846_v5 = vld [vmem:[#allocation10 + $0x3274] ss:$24 sps:$4 sm:$0xff]  }
 0xe6e   :  { %v20841_v32 = vld [vmem:[#allocation10 + $0x3248] ss:$24 sps:$4 sm:$0xff]  }
 0xe6f   :  { %15111 = vmatpush1.bf16.msra.mxu0 %v20784_v43  ;;  %15240 = vmatpush1.bf16.msra.mxu1 %v20787_v7  ;;  %v20849_v43 = vld [vmem:[#allocation10 + $0x327c] ss:$24 sps:$4 sm:$0xff]   ;;  %v20844_v7 = vld [vmem:[#allocation10 + $0x3270] ss:$24 sps:$4 sm:$0xff]  }
 0xe70   :  { %15112 = vmatprep.subr.bf16.mxu0 %v20792_v20  ;;  %15241 = vmatprep.subr.bf16.mxu1 %v20795_v8  ;;  %v20847_v20 = vld [vmem:[#allocation10 + $0x3278] ss:$24 sps:$4 sm:$0xff]   ;;  %v20852_v8 = vld [vmem:[#allocation10 + $0x32a4] ss:$24 sps:$4 sm:$0xff]  }
 0xe73   :  { %15113 = vmatpush1.bf16.msra.mxu0 %v20790_v37  ;;  %15242 = vmatpush1.bf16.msra.mxu1 %v20793_v9  ;;  %v20855_v37 = vld [vmem:[#allocation10 + $0x32ac] ss:$24 sps:$4 sm:$0xff]   ;;  %v20850_v9 = vld [vmem:[#allocation10 + $0x32a0] ss:$24 sps:$4 sm:$0xff]  }
 0xe74   :  { %15114 = vmatprep.subr.bf16.mxu0 %v20798_v30  ;;  %15243 = vmatprep.subr.bf16.mxu1 %v20801_v16  ;;  %v20853_v30 = vld [vmem:[#allocation10 + $0x32a8] ss:$24 sps:$4 sm:$0xff]   ;;  %v20858_v16 = vld [vmem:[#allocation10 + $0x32d4] ss:$24 sps:$4 sm:$0xff]  }
 0xe77   :  { %15115 = vmatpush1.bf16.msra.mxu0 %v20796_v55  ;;  %15244 = vmatpush1.bf16.msra.mxu1 %v20799_v36  ;;  %v20861_v55 = vld [vmem:[#allocation10 + $0x32dc] ss:$24 sps:$4 sm:$0xff]   ;;  %v20856_v36 = vld [vmem:[#allocation10 + $0x32d0] ss:$24 sps:$4 sm:$0xff]  }
 0xe78   :  { %15116 = vmatprep.subr.bf16.mxu0 %v20804_v52  ;;  %15245 = vmatprep.subr.bf16.mxu1 %v20807_v25  ;;  %v20859_v52 = vld [vmem:[#allocation10 + $0x32d8] ss:$24 sps:$4 sm:$0xff]   ;;  %v20864_v25 = vld [vmem:[#allocation10 + $0x3304] ss:$24 sps:$4 sm:$0xff]  }
 0xe7b   :  { %15117 = vmatpush1.bf16.msra.mxu0 %v20802_v15  ;;  %15246 = vmatpush1.bf16.msra.mxu1 %v20805_v4  ;;  %v20867_v15 = vld [vmem:[#allocation10 + $0x330c] ss:$24 sps:$4 sm:$0xff]   ;;  %v20862_v4 = vld [vmem:[#allocation10 + $0x3300] ss:$24 sps:$4 sm:$0xff]  }
 0xe7c   :  { %15118 = vmatprep.subr.bf16.mxu0 %v20810_v3  ;;  %15247 = vmatprep.subr.bf16.mxu1 %v20813_v39  ;;  %v20865_v3 = vld [vmem:[#allocation10 + $0x3308] ss:$24 sps:$4 sm:$0xff]   ;;  %v20870_v39 = vld [vmem:[#allocation10 + $0x3334] ss:$24 sps:$4 sm:$0xff]  }
 0xe7f   :  { %15119 = vmatpush1.bf16.msra.mxu0 %v20808_v63  ;;  %15248 = vmatpush1.bf16.msra.mxu1 %v20811_v1  ;;  %v20873_v63 = vld [vmem:[#allocation10 + $0x333c] ss:$24 sps:$4 sm:$0xff]   ;;  %v20868_v1 = vld [vmem:[#allocation10 + $0x3330] ss:$24 sps:$4 sm:$0xff]  }
 0xe80   :  { %15120 = vmatprep.subr.bf16.mxu0 %v20816_v21  ;;  %15249 = vmatprep.subr.bf16.mxu1 %v20819_v53  ;;  %v20871_v21 = vld [vmem:[#allocation10 + $0x3338] ss:$24 sps:$4 sm:$0xff]   ;;  %v20876_v53 = vld [vmem:[#allocation10 + $0x3364] ss:$24 sps:$4 sm:$0xff]  }
 0xe83   :  { %15121 = vmatpush1.bf16.msra.mxu0 %v20814_v45  ;;  %15250 = vmatpush1.bf16.msra.mxu1 %v20817_v42  ;;  %v20879_v45 = vld [vmem:[#allocation10 + $0x336c] ss:$24 sps:$4 sm:$0xff]   ;;  %v20874_v42 = vld [vmem:[#allocation10 + $0x3360] ss:$24 sps:$4 sm:$0xff]  }
 0xe84   :  { %15122 = vmatprep.subr.bf16.mxu0 %v20822_v48  ;;  %15251 = vmatprep.subr.bf16.mxu1 %v20825_v59  ;;  %v20877_v48 = vld [vmem:[#allocation10 + $0x3368] ss:$24 sps:$4 sm:$0xff]   ;;  %v20882_v59 = vld [vmem:[#allocation10 + $0x3394] ss:$24 sps:$4 sm:$0xff]  }
 0xe87   :  { %15123 = vmatpush1.bf16.msra.mxu0 %v20820_v10  ;;  %15252 = vmatpush1.bf16.msra.mxu1 %v20823_v44  ;;  %v20885_v10 = vld [vmem:[#allocation10 + $0x339c] ss:$24 sps:$4 sm:$0xff]   ;;  %v20880_v44 = vld [vmem:[#allocation10 + $0x3390] ss:$24 sps:$4 sm:$0xff]  }
 0xe88   :  { %15124 = vmatprep.subr.bf16.mxu0 %v20828_v54  ;;  %15253 = vmatprep.subr.bf16.mxu1 %v20831_v61  ;;  %v20883_v54 = vld [vmem:[#allocation10 + $0x3398] ss:$24 sps:$4 sm:$0xff]   ;;  %v20888_v61 = vld [vmem:[#allocation10 + $0x33c4] ss:$24 sps:$4 sm:$0xff]  }
 0xe8b   :  { %15125 = vmatpush1.bf16.msra.mxu0 %v20826_v24  ;;  %15254 = vmatpush1.bf16.msra.mxu1 %v20829_v49  ;;  %v20891_v24 = vld [vmem:[#allocation10 + $0x33cc] ss:$24 sps:$4 sm:$0xff]   ;;  %v20886_v49 = vld [vmem:[#allocation10 + $0x33c0] ss:$24 sps:$4 sm:$0xff]  }
 0xe8c   :  { %15126 = vmatprep.subr.bf16.mxu0 %v20834_v62  ;;  %15255 = vmatprep.subr.bf16.mxu1 %v20837_v17  ;;  %v20889_v62 = vld [vmem:[#allocation10 + $0x33c8] ss:$24 sps:$4 sm:$0xff]   ;;  %v20894_v17 = vld [vmem:[#allocation10 + $0x33f4] ss:$24 sps:$4 sm:$0xff]  }
 0xe8f   :  { %15127 = vmatpush1.bf16.msra.mxu0 %v20832_v14  ;;  %15256 = vmatpush1.bf16.msra.mxu1 %v20835_v60  ;;  %v20897_v14 = vld [vmem:[#allocation10 + $0x33fc] ss:$24 sps:$4 sm:$0xff]   ;;  %v20892_v60 = vld [vmem:[#allocation10 + $0x33f0] ss:$24 sps:$4 sm:$0xff]  }
 0xe90   :  { %15128 = vmatprep.subr.bf16.mxu0 %v20840_v22  ;;  %15257 = vmatprep.subr.bf16.mxu1 %v20843_v19  ;;  %v20895_v22 = vld [vmem:[#allocation10 + $0x33f8] ss:$24 sps:$4 sm:$0xff]   ;;  %v20900_v19 = vld [vmem:[#allocation10 + $0x3424] ss:$24 sps:$4 sm:$0xff]  }
 0xe93   :  { %15129 = vmatpush1.bf16.msra.mxu0 %v20838_v2  ;;  %15258 = vmatpush1.bf16.msra.mxu1 %v20841_v32  ;;  %v20903_v2 = vld [vmem:[#allocation10 + $0x342c] ss:$24 sps:$4 sm:$0xff]   ;;  %v20898_v32 = vld [vmem:[#allocation10 + $0x3420] ss:$24 sps:$4 sm:$0xff]  }
 0xe94   :  { %15130 = vmatprep.subr.bf16.mxu0 %v20846_v5  ;;  %15259 = vmatprep.subr.bf16.mxu1 %v20849_v43  ;;  %v20901_v5 = vld [vmem:[#allocation10 + $0x3428] ss:$24 sps:$4 sm:$0xff]   ;;  %v20906_v43 = vld [vmem:[#allocation10 + $0x3454] ss:$24 sps:$4 sm:$0xff]  }
 0xe97   :  { %15131 = vmatpush1.bf16.msra.mxu0 %v20844_v7  ;;  %15260 = vmatpush1.bf16.msra.mxu1 %v20847_v20  ;;  %v20909_v7 = vld [vmem:[#allocation10 + $0x345c] ss:$24 sps:$4 sm:$0xff]   ;;  %v20904_v20 = vld [vmem:[#allocation10 + $0x3450] ss:$24 sps:$4 sm:$0xff]  }
 0xe98   :  { %15132 = vmatprep.subr.bf16.mxu0 %v20852_v8  ;;  %15261 = vmatprep.subr.bf16.mxu1 %v20855_v37  ;;  %v20907_v8 = vld [vmem:[#allocation10 + $0x3458] ss:$24 sps:$4 sm:$0xff]   ;;  %v20912_v37 = vld [vmem:[#allocation10 + $0x3484] ss:$24 sps:$4 sm:$0xff]  }
 0xe9b   :  { %15133 = vmatpush1.bf16.msra.mxu0 %v20850_v9  ;;  %15262 = vmatpush1.bf16.msra.mxu1 %v20853_v30  ;;  %v20915_v9 = vld [vmem:[#allocation10 + $0x348c] ss:$24 sps:$4 sm:$0xff]   ;;  %v20910_v30 = vld [vmem:[#allocation10 + $0x3480] ss:$24 sps:$4 sm:$0xff]  }
 0xe9c   :  { %15134 = vmatprep.subr.bf16.mxu0 %v20858_v16  ;;  %15263 = vmatprep.subr.bf16.mxu1 %v20861_v55  ;;  %v20913_v16 = vld [vmem:[#allocation10 + $0x3488] ss:$24 sps:$4 sm:$0xff]   ;;  %v20918_v55 = vld [vmem:[#allocation10 + $0x34b4] ss:$24 sps:$4 sm:$0xff]  }
 0xe9f   :  { %15135 = vmatpush1.bf16.msra.mxu0 %v20856_v36  ;;  %15264 = vmatpush1.bf16.msra.mxu1 %v20859_v52  ;;  %v20921_v36 = vld [vmem:[#allocation10 + $0x34bc] ss:$24 sps:$4 sm:$0xff]   ;;  %v20916_v52 = vld [vmem:[#allocation10 + $0x34b0] ss:$24 sps:$4 sm:$0xff]  }
 0xea0   :  { %15147 = vmatprep.subr.bf16.mxu0 %v20864_v25  ;;  %15276 = vmatprep.subr.bf16.mxu1 %v20867_v15  ;;  %v20919_v25 = vld [vmem:[#allocation10 + $0x34b8] ss:$24 sps:$4 sm:$0xff]   ;;  %v20924_v15 = vld [vmem:[#allocation10 + $0x34e4] ss:$24 sps:$4 sm:$0xff]  }
 0xea2   :  { %15137 = vmatmul.mubr.bf16.vlgmr.msra.gmra.mrb[36].mxu0 %v22826_v6  ;;  %15266 = vmatmul.mubr.bf16.vlgmr.msra.gmra.mrb[36].mxu1 %v22826_v6 }
 0xea3   :  { %15148 = vmatpush1.bf16.msra.mxu0 %v20862_v4  ;;  %15179 = vmatprep.mubr.bf16.mxu0 %v22828_v33  ;;  %v20927_v4 = vld [vmem:[#allocation10 + $0x34ec] ss:$24 sps:$4 sm:$0xff]  }
 0xea4   :  { %15277 = vmatpush1.bf16.msra.mxu1 %v20865_v3  ;;  %15308 = vmatprep.mubr.bf16.mxu1 %v22828_v33  ;;  %v20922_v3 = vld [vmem:[#allocation10 + $0x34e0] ss:$24 sps:$4 sm:$0xff]  }
 0xea5   :  { %15149 = vmatprep.subr.bf16.mxu0 %v20870_v39  ;;  %15278 = vmatprep.subr.bf16.mxu1 %v20873_v63  ;;  %v20925_v39 = vld [vmem:[#allocation10 + $0x34e8] ss:$24 sps:$4 sm:$0xff]   ;;  %v20930_v63 = vld [vmem:[#allocation10 + $0x3514] ss:$24 sps:$4 sm:$0xff]  }
 0xea7   :  { %15150 = vmatpush1.bf16.msra.mxu0 %v20868_v1  ;;  %v20933_v1 = vld [vmem:[#allocation10 + $0x351c] ss:$24 sps:$4 sm:$0xff]  }
 0xea8   :  { %15279 = vmatpush1.bf16.msra.mxu1 %v20871_v21  ;;  %15151 = vmatprep.subr.bf16.mxu0 %v20876_v53  ;;  %v20928_v21 = vld [vmem:[#allocation10 + $0x3510] ss:$24 sps:$4 sm:$0xff]  }
 0xea9   :  { %15280 = vmatprep.subr.bf16.mxu1 %v20879_v45  ;;  %v20931_v53 = vld [vmem:[#allocation10 + $0x3518] ss:$24 sps:$4 sm:$0xff]   ;;  %v20936_v45 = vld [vmem:[#allocation10 + $0x3544] ss:$24 sps:$4 sm:$0xff]  }
 0xeab   :  { %15152 = vmatpush1.bf16.msra.mxu0 %v20874_v42  ;;  %v20939_v42 = vld [vmem:[#allocation10 + $0x354c] ss:$24 sps:$4 sm:$0xff]  }
 0xeac   :  { %15281 = vmatpush1.bf16.msra.mxu1 %v20877_v48  ;;  %15153 = vmatprep.subr.bf16.mxu0 %v20882_v59  ;;  %v20934_v48 = vld [vmem:[#allocation10 + $0x3540] ss:$24 sps:$4 sm:$0xff]  }
 0xead   :  { %15282 = vmatprep.subr.bf16.mxu1 %v20885_v10  ;;  %v20937_v59 = vld [vmem:[#allocation10 + $0x3548] ss:$24 sps:$4 sm:$0xff]   ;;  %v20942_v10 = vld [vmem:[#allocation10 + $0x3574] ss:$24 sps:$4 sm:$0xff]  }
 0xeaf   :  { %15154 = vmatpush1.bf16.msra.mxu0 %v20880_v44  ;;  %v20945_v44 = vld [vmem:[#allocation10 + $0x357c] ss:$24 sps:$4 sm:$0xff]  }
 0xeb0   :  { %15283 = vmatpush1.bf16.msra.mxu1 %v20883_v54  ;;  %15155 = vmatprep.subr.bf16.mxu0 %v20888_v61  ;;  %v20940_v54 = vld [vmem:[#allocation10 + $0x3570] ss:$24 sps:$4 sm:$0xff]  }
 0xeb1   :  { %15284 = vmatprep.subr.bf16.mxu1 %v20891_v24  ;;  %v20943_v61 = vld [vmem:[#allocation10 + $0x3578] ss:$24 sps:$4 sm:$0xff]   ;;  %v20948_v24 = vld [vmem:[#allocation10 + $0x35a4] ss:$24 sps:$4 sm:$0xff]  }
 0xeb3   :  { %15156 = vmatpush1.bf16.msra.mxu0 %v20886_v49  ;;  %v20951_v49 = vld [vmem:[#allocation10 + $0x35ac] ss:$24 sps:$4 sm:$0xff]  }
 0xeb4   :  { %15285 = vmatpush1.bf16.msra.mxu1 %v20889_v62  ;;  %15157 = vmatprep.subr.bf16.mxu0 %v20894_v17  ;;  %v20946_v62 = vld [vmem:[#allocation10 + $0x35a0] ss:$24 sps:$4 sm:$0xff]  }
 0xeb5   :  { %15286 = vmatprep.subr.bf16.mxu1 %v20897_v14  ;;  %v20949_v17 = vld [vmem:[#allocation10 + $0x35a8] ss:$24 sps:$4 sm:$0xff]   ;;  %v20954_v14 = vld [vmem:[#allocation10 + $0x35d4] ss:$24 sps:$4 sm:$0xff]  }
 0xeb7   :  { %15158 = vmatpush1.bf16.msra.mxu0 %v20892_v60  ;;  %v20957_v60 = vld [vmem:[#allocation10 + $0x35dc] ss:$24 sps:$4 sm:$0xff]  }
 0xeb8   :  { %15287 = vmatpush1.bf16.msra.mxu1 %v20895_v22  ;;  %15159 = vmatprep.subr.bf16.mxu0 %v20900_v19  ;;  %v20952_v22 = vld [vmem:[#allocation10 + $0x35d0] ss:$24 sps:$4 sm:$0xff]  }
 0xeb9   :  { %15288 = vmatprep.subr.bf16.mxu1 %v20903_v2  ;;  %v20955_v19 = vld [vmem:[#allocation10 + $0x35d8] ss:$24 sps:$4 sm:$0xff]   ;;  %v20960_v2 = vld [vmem:[#allocation10 + $0x2d14] ss:$24 sps:$4 sm:$0xff]  }
 0xebb   :  { %15160 = vmatpush1.bf16.msra.mxu0 %v20898_v32  ;;  %v20958_v32 = vld [vmem:[#allocation10 + $0x2d10] ss:$24 sps:$4 sm:$0xff]  }
 0xebc   :  { %15289 = vmatpush1.bf16.msra.mxu1 %v20901_v5  ;;  %15161 = vmatprep.subr.bf16.mxu0 %v20906_v43  ;;  %v20963_v5 = vld [vmem:[#allocation10 + $0x2d44] ss:$24 sps:$4 sm:$0xff]   ;;  %v20961_v43 = vld [vmem:[#allocation10 + $0x2d40] ss:$24 sps:$4 sm:$0xff]  }
 0xebd   :  { %15290 = vmatprep.subr.bf16.mxu1 %v20909_v7  ;;  %v20966_v7 = vld [vmem:[#allocation10 + $0x2d74] ss:$24 sps:$4 sm:$0xff]  }
 0xebf   :  { %15162 = vmatpush1.bf16.msra.mxu0 %v20904_v20  ;;  %v20964_v20 = vld [vmem:[#allocation10 + $0x2d70] ss:$24 sps:$4 sm:$0xff]  }
 0xec0   :  { %15291 = vmatpush1.bf16.msra.mxu1 %v20907_v8  ;;  %15163 = vmatprep.subr.bf16.mxu0 %v20912_v37  ;;  %v20969_v8 = vld [vmem:[#allocation10 + $0x2da4] ss:$24 sps:$4 sm:$0xff]   ;;  %v20967_v37 = vld [vmem:[#allocation10 + $0x2da0] ss:$24 sps:$4 sm:$0xff]  }
 0xec1   :  { %15292 = vmatprep.subr.bf16.mxu1 %v20915_v9  ;;  %v20972_v9 = vld [vmem:[#allocation10 + $0x2dd4] ss:$24 sps:$4 sm:$0xff]  }
 0xec3   :  { %15164 = vmatpush1.bf16.msra.mxu0 %v20910_v30  ;;  %v20970_v30 = vld [vmem:[#allocation10 + $0x2dd0] ss:$24 sps:$4 sm:$0xff]  }
 0xec4   :  { %15293 = vmatpush1.bf16.msra.mxu1 %v20913_v16  ;;  %15165 = vmatprep.subr.bf16.mxu0 %v20918_v55  ;;  %v20975_v16 = vld [vmem:[#allocation10 + $0x2e04] ss:$24 sps:$4 sm:$0xff]   ;;  %v20973_v55 = vld [vmem:[#allocation10 + $0x2e00] ss:$24 sps:$4 sm:$0xff]  }
 0xec5   :  { %15294 = vmatprep.subr.bf16.mxu1 %v20921_v36  ;;  %v20978_v36 = vld [vmem:[#allocation10 + $0x2e34] ss:$24 sps:$4 sm:$0xff]  }
 0xec7   :  { %15166 = vmatpush1.bf16.msra.mxu0 %v20916_v52  ;;  %v20981_v52 = vld [vmem:[#allocation10 + $0x2e64] ss:$24 sps:$4 sm:$0xff]  }
 0xec8   :  { %15295 = vmatpush1.bf16.msra.mxu1 %v20919_v25  ;;  %15167 = vmatprep.subr.bf16.mxu0 %v20924_v15  ;;  %v20979_v25 = vld [vmem:[#allocation10 + $0x2e60] ss:$24 sps:$4 sm:$0xff]   ;;  %v20984_v15 = vld [vmem:[#allocation10 + $0x2e94] ss:$24 sps:$4 sm:$0xff]  }
 0xec9   :  { %15296 = vmatprep.subr.bf16.mxu1 %v20927_v4  ;;  %v20982_v4 = vld [vmem:[#allocation10 + $0x2e90] ss:$24 sps:$4 sm:$0xff]  }
 0xecb   :  { %15168 = vmatpush1.bf16.msra.mxu0 %v20922_v3  ;;  %v20987_v3 = vld [vmem:[#allocation10 + $0x2ec4] ss:$24 sps:$4 sm:$0xff]  }
 0xecc   :  { %15297 = vmatpush1.bf16.msra.mxu1 %v20925_v39  ;;  %15169 = vmatprep.subr.bf16.mxu0 %v20930_v63  ;;  %v20985_v39 = vld [vmem:[#allocation10 + $0x2ec0] ss:$24 sps:$4 sm:$0xff]   ;;  %v20990_v63 = vld [vmem:[#allocation10 + $0x2ef4] ss:$24 sps:$4 sm:$0xff]  }
 0xecd   :  { %15298 = vmatprep.subr.bf16.mxu1 %v20933_v1  ;;  %v20988_v1 = vld [vmem:[#allocation10 + $0x2ef0] ss:$24 sps:$4 sm:$0xff]  }
 0xecf   :  { %15170 = vmatpush1.bf16.msra.mxu0 %v20928_v21  ;;  %v20993_v21 = vld [vmem:[#allocation10 + $0x2f24] ss:$24 sps:$4 sm:$0xff]  }
 0xed0   :  { %15299 = vmatpush1.bf16.msra.mxu1 %v20931_v53  ;;  %15171 = vmatprep.subr.bf16.mxu0 %v20936_v45  ;;  %v20991_v53 = vld [vmem:[#allocation10 + $0x2f20] ss:$24 sps:$4 sm:$0xff]   ;;  %v20996_v45 = vld [vmem:[#allocation10 + $0x2f54] ss:$24 sps:$4 sm:$0xff]  }
 0xed1   :  { %15300 = vmatprep.subr.bf16.mxu1 %v20939_v42  ;;  %v20994_v42 = vld [vmem:[#allocation10 + $0x2f50] ss:$24 sps:$4 sm:$0xff]  }
 0xed3   :  { %15172 = vmatpush1.bf16.msra.mxu0 %v20934_v48  ;;  %v20999_v48 = vld [vmem:[#allocation10 + $0x2f84] ss:$24 sps:$4 sm:$0xff]  }
 0xed4   :  { %15301 = vmatpush1.bf16.msra.mxu1 %v20937_v59  ;;  %15173 = vmatprep.subr.bf16.mxu0 %v20942_v10  ;;  %v20997_v59 = vld [vmem:[#allocation10 + $0x2f80] ss:$24 sps:$4 sm:$0xff]   ;;  %v21002_v10 = vld [vmem:[#allocation10 + $0x2fb4] ss:$24 sps:$4 sm:$0xff]  }
 0xed5   :  { %15302 = vmatprep.subr.bf16.mxu1 %v20945_v44  ;;  %v21000_v44 = vld [vmem:[#allocation10 + $0x2fb0] ss:$24 sps:$4 sm:$0xff]  }
 0xed7   :  { %15174 = vmatpush1.bf16.msra.mxu0 %v20940_v54  ;;  %v21005_v54 = vld [vmem:[#allocation10 + $0x2fe4] ss:$24 sps:$4 sm:$0xff]  }
 0xed8   :  { %15303 = vmatpush1.bf16.msra.mxu1 %v20943_v61  ;;  %15175 = vmatprep.subr.bf16.mxu0 %v20948_v24  ;;  %v21003_v61 = vld [vmem:[#allocation10 + $0x2fe0] ss:$24 sps:$4 sm:$0xff]   ;;  %v21008_v24 = vld [vmem:[#allocation10 + $0x3014] ss:$24 sps:$4 sm:$0xff]  }
 0xed9   :  { %15304 = vmatprep.subr.bf16.mxu1 %v20951_v49  ;;  %v21006_v49 = vld [vmem:[#allocation10 + $0x3010] ss:$24 sps:$4 sm:$0xff]  }
 0xedb   :  { %15176 = vmatpush1.bf16.msra.mxu0 %v20946_v62  ;;  %v21011_v62 = vld [vmem:[#allocation10 + $0x3044] ss:$24 sps:$4 sm:$0xff]  }
 0xedc   :  { %15305 = vmatpush1.bf16.msra.mxu1 %v20949_v17  ;;  %15177 = vmatprep.subr.bf16.mxu0 %v20954_v14  ;;  %v21009_v17 = vld [vmem:[#allocation10 + $0x3040] ss:$24 sps:$4 sm:$0xff]   ;;  %v21014_v14 = vld [vmem:[#allocation10 + $0x3074] ss:$24 sps:$4 sm:$0xff]  }
 0xedd   :  { %15306 = vmatprep.subr.bf16.mxu1 %v20957_v60  ;;  %v21012_v60 = vld [vmem:[#allocation10 + $0x3070] ss:$24 sps:$4 sm:$0xff]  }
 0xedf   :  { %15178 = vmatpush1.bf16.msra.mxu0 %v20952_v22  ;;  %v21017_v22 = vld [vmem:[#allocation10 + $0x30a4] ss:$24 sps:$4 sm:$0xff]  }
 0xee0   :  { %15307 = vmatpush1.bf16.msra.mxu1 %v20955_v19  ;;  %15319 = vmatprep.subr.bf16.mxu0 %v20960_v2  ;;  %v21015_v19 = vld [vmem:[#allocation10 + $0x30a0] ss:$24 sps:$4 sm:$0xff]   ;;  %v21020_v2 = vld [vmem:[#allocation10 + $0x30d4] ss:$24 sps:$4 sm:$0xff]  }
 0xee2   :  { %15180 = vmatmul.mubr.bf16.vlgmr.msra.gmra.mrb[36].mxu0 %v22830_v51 }
 0xee3   :  { %15309 = vmatmul.mubr.bf16.vlgmr.msra.gmra.mrb[36].mxu1 %v22830_v51  ;;  %15320 = vmatpush1.bf16.msra.mxu0 %v20958_v32  ;;  %v21018_v32 = vld [vmem:[#allocation10 + $0x30d0] ss:$24 sps:$4 sm:$0xff]  }
 0xee4   :  { %15351 = vmatprep.mubr.bf16.mxu0 %v22811_v57  ;;  %15321 = vmatprep.subr.bf16.mxu0 %v20963_v5  ;;  %v20976_v57 = vld [vmem:[#allocation10 + $0x2e30] ss:$24 sps:$4 sm:$0xff]   ;;  %v21023_v5 = vld [vmem:[#allocation10 + $0x3104] ss:$24 sps:$4 sm:$0xff]  }
 0xee7   :  { %15322 = vmatpush1.bf16.msra.mxu0 %v20961_v43  ;;  %v21026_v43 = vld [vmem:[#allocation10 + $0x3134] ss:$24 sps:$4 sm:$0xff]  }
 0xee8   :  { %15323 = vmatprep.subr.bf16.mxu0 %v20966_v7  ;;  %v21029_v7 = vld [vmem:[#allocation10 + $0x3164] ss:$24 sps:$4 sm:$0xff]  }
 0xeeb   :  { %15324 = vmatpush1.bf16.msra.mxu0 %v20964_v20  ;;  %v21027_v20 = vld [vmem:[#allocation10 + $0x3160] ss:$24 sps:$4 sm:$0xff]  }
 0xeec   :  { %15325 = vmatprep.subr.bf16.mxu0 %v20969_v8  ;;  %v21032_v8 = vld [vmem:[#allocation10 + $0x3194] ss:$24 sps:$4 sm:$0xff]  }
 0xeef   :  { %15326 = vmatpush1.bf16.msra.mxu0 %v20967_v37  ;;  %v21030_v37 = vld [vmem:[#allocation10 + $0x3190] ss:$24 sps:$4 sm:$0xff]  }
 0xef0   :  { %15327 = vmatprep.subr.bf16.mxu0 %v20972_v9  ;;  %v21035_v9 = vld [vmem:[#allocation10 + $0x31c4] ss:$24 sps:$4 sm:$0xff]  }
 0xef3   :  { %15328 = vmatpush1.bf16.msra.mxu0 %v20970_v30  ;;  %v21033_v30 = vld [vmem:[#allocation10 + $0x31c0] ss:$24 sps:$4 sm:$0xff]  }
 0xef4   :  { %15329 = vmatprep.subr.bf16.mxu0 %v20975_v16  ;;  %v21038_v16 = vld [vmem:[#allocation10 + $0x31f4] ss:$24 sps:$4 sm:$0xff]  }
 0xef7   :  { %15330 = vmatpush1.bf16.msra.mxu0 %v20973_v55  ;;  %v21036_v55 = vld [vmem:[#allocation10 + $0x31f0] ss:$24 sps:$4 sm:$0xff]  }
 0xef8   :  { %15331 = vmatprep.subr.bf16.mxu0 %v20978_v36  ;;  %v21041_v36 = vld [vmem:[#allocation10 + $0x3224] ss:$24 sps:$4 sm:$0xff]  }
 0xefb   :  { %15332 = vmatpush1.bf16.msra.mxu0 %v20976_v57  ;;  %v21039_v57 = vld [vmem:[#allocation10 + $0x3220] ss:$24 sps:$4 sm:$0xff]  }
 0xefc   :  { %15333 = vmatprep.subr.bf16.mxu0 %v20981_v52  ;;  %v21044_v52 = vld [vmem:[#allocation10 + $0x3254] ss:$24 sps:$4 sm:$0xff]  }
 0xeff   :  { %15334 = vmatpush1.bf16.msra.mxu0 %v20979_v25  ;;  %v21042_v25 = vld [vmem:[#allocation10 + $0x3250] ss:$24 sps:$4 sm:$0xff]  }
 0xf00   :  { %15335 = vmatprep.subr.bf16.mxu0 %v20984_v15  ;;  %v21047_v15 = vld [vmem:[#allocation10 + $0x3284] ss:$24 sps:$4 sm:$0xff]  }
 0xf03   :  { %15336 = vmatpush1.bf16.msra.mxu0 %v20982_v4  ;;  %v21045_v4 = vld [vmem:[#allocation10 + $0x3280] ss:$24 sps:$4 sm:$0xff]  }
 0xf04   :  { %15337 = vmatprep.subr.bf16.mxu0 %v20987_v3  ;;  %v21050_v3 = vld [vmem:[#allocation10 + $0x32b4] ss:$24 sps:$4 sm:$0xff]  }
 0xf07   :  { %15338 = vmatpush1.bf16.msra.mxu0 %v20985_v39  ;;  %v21048_v39 = vld [vmem:[#allocation10 + $0x32b0] ss:$24 sps:$4 sm:$0xff]  }
 0xf08   :  { %15339 = vmatprep.subr.bf16.mxu0 %v20990_v63  ;;  %v21053_v63 = vld [vmem:[#allocation10 + $0x32e4] ss:$24 sps:$4 sm:$0xff]  }
 0xf0b   :  { %15340 = vmatpush1.bf16.msra.mxu0 %v20988_v1  ;;  %v21051_v1 = vld [vmem:[#allocation10 + $0x32e0] ss:$24 sps:$4 sm:$0xff]  }
 0xf0c   :  { %15341 = vmatprep.subr.bf16.mxu0 %v20993_v21  ;;  %v21056_v21 = vld [vmem:[#allocation10 + $0x3314] ss:$24 sps:$4 sm:$0xff]  }
 0xf0f   :  { %15342 = vmatpush1.bf16.msra.mxu0 %v20991_v53  ;;  %v21054_v53 = vld [vmem:[#allocation10 + $0x3310] ss:$24 sps:$4 sm:$0xff]  }
 0xf10   :  { %15343 = vmatprep.subr.bf16.mxu0 %v20996_v45  ;;  %v21059_v45 = vld [vmem:[#allocation10 + $0x3344] ss:$24 sps:$4 sm:$0xff]  }
 0xf13   :  { %15344 = vmatpush1.bf16.msra.mxu0 %v20994_v42  ;;  %v21057_v42 = vld [vmem:[#allocation10 + $0x3340] ss:$24 sps:$4 sm:$0xff]  }
 0xf14   :  { %15345 = vmatprep.subr.bf16.mxu0 %v20999_v48  ;;  %v21062_v48 = vld [vmem:[#allocation10 + $0x3374] ss:$24 sps:$4 sm:$0xff]  }
 0xf17   :  { %15346 = vmatpush1.bf16.msra.mxu0 %v20997_v59  ;;  %v21060_v59 = vld [vmem:[#allocation10 + $0x3370] ss:$24 sps:$4 sm:$0xff]  }
 0xf18   :  { %15347 = vmatprep.subr.bf16.mxu0 %v21002_v10  ;;  %v21065_v10 = vld [vmem:[#allocation10 + $0x33a4] ss:$24 sps:$4 sm:$0xff]  }
 0xf1b   :  { %15348 = vmatpush1.bf16.msra.mxu0 %v21000_v44  ;;  %v21063_v44 = vld [vmem:[#allocation10 + $0x33a0] ss:$24 sps:$4 sm:$0xff]  }
 0xf1c   :  { %15349 = vmatprep.subr.bf16.mxu0 %v21005_v54  ;;  %v21068_v54 = vld [vmem:[#allocation10 + $0x33d4] ss:$24 sps:$4 sm:$0xff]  }
 0xf1f   :  { %15350 = vmatpush1.bf16.msra.mxu0 %v21003_v61  ;;  %v21066_v61 = vld [vmem:[#allocation10 + $0x33d0] ss:$24 sps:$4 sm:$0xff]  }
 0xf20   :  { %15362 = vmatprep.subr.bf16.mxu0 %v21008_v24  ;;  %v21071_v24 = vld [vmem:[#allocation10 + $0x3404] ss:$24 sps:$4 sm:$0xff]  }
 0xf22   :  { %15352 = vmatmul.mubr.bf16.vlgmr.msra.gmra.mrb[40].mxu0 %v22816_v56  ;;  %v21021_v56 = vld [vmem:[#allocation10 + $0x3100] ss:$24 sps:$4 sm:$0xff]  }
 0xf23   :  { %15363 = vmatpush1.bf16.msra.mxu0 %v21006_v49  ;;  %15394 = vmatprep.mubr.bf16.mxu0 %v22821_v40  ;;  %v21024_v40 = vld [vmem:[#allocation10 + $0x3130] ss:$24 sps:$4 sm:$0xff]   ;;  %v21074_v49 = vld [vmem:[#allocation10 + $0x3434] ss:$24 sps:$4 sm:$0xff]  }
 0xf24   :  { %15364 = vmatprep.subr.bf16.mxu0 %v21011_v62  ;;  %v21077_v62 = vld [vmem:[#allocation10 + $0x3464] ss:$24 sps:$4 sm:$0xff]  }
 0xf27   :  { %15365 = vmatpush1.bf16.msra.mxu0 %v21009_v17  ;;  %v21075_v17 = vld [vmem:[#allocation10 + $0x3460] ss:$24 sps:$4 sm:$0xff]  }
 0xf28   :  { %15366 = vmatprep.subr.bf16.mxu0 %v21014_v14  ;;  %v21080_v14 = vld [vmem:[#allocation10 + $0x3494] ss:$24 sps:$4 sm:$0xff]  }
 0xf2b   :  { %15367 = vmatpush1.bf16.msra.mxu0 %v21012_v60  ;;  %v21078_v60 = vld [vmem:[#allocation10 + $0x3490] ss:$24 sps:$4 sm:$0xff]  }
 0xf2c   :  { %15368 = vmatprep.subr.bf16.mxu0 %v21017_v22  ;;  %v21083_v22 = vld [vmem:[#allocation10 + $0x34c4] ss:$24 sps:$4 sm:$0xff]  }
 0xf2f   :  { %15369 = vmatpush1.bf16.msra.mxu0 %v21015_v19  ;;  %v21081_v19 = vld [vmem:[#allocation10 + $0x34c0] ss:$24 sps:$4 sm:$0xff]  }
 0xf30   :  { %15370 = vmatprep.subr.bf16.mxu0 %v21020_v2  ;;  %v21086_v2 = vld [vmem:[#allocation10 + $0x34f4] ss:$24 sps:$4 sm:$0xff]  }
 0xf33   :  { %15371 = vmatpush1.bf16.msra.mxu0 %v21018_v32  ;;  %v21084_v32 = vld [vmem:[#allocation10 + $0x34f0] ss:$24 sps:$4 sm:$0xff]  }
 0xf34   :  { %15372 = vmatprep.subr.bf16.mxu0 %v21023_v5  ;;  %v21089_v5 = vld [vmem:[#allocation10 + $0x3524] ss:$24 sps:$4 sm:$0xff]  }
 0xf37   :  { %15373 = vmatpush1.bf16.msra.mxu0 %v21021_v56  ;;  %v21087_v56 = vld [vmem:[#allocation10 + $0x3520] ss:$24 sps:$4 sm:$0xff]  }
 0xf38   :  { %15374 = vmatprep.subr.bf16.mxu0 %v21026_v43  ;;  %v21092_v43 = vld [vmem:[#allocation10 + $0x3554] ss:$24 sps:$4 sm:$0xff]  }
 0xf3b   :  { %15375 = vmatpush1.bf16.msra.mxu0 %v21024_v40  ;;  %v21090_v40 = vld [vmem:[#allocation10 + $0x3550] ss:$24 sps:$4 sm:$0xff]  }
 0xf3c   :  { %15376 = vmatprep.subr.bf16.mxu0 %v21029_v7  ;;  %v21095_v7 = vld [vmem:[#allocation10 + $0x3584] ss:$24 sps:$4 sm:$0xff]  }
 0xf3f   :  { %15377 = vmatpush1.bf16.msra.mxu0 %v21027_v20  ;;  %v21093_v20 = vld [vmem:[#allocation10 + $0x3580] ss:$24 sps:$4 sm:$0xff]  }
 0xf40   :  { %15378 = vmatprep.subr.bf16.mxu0 %v21032_v8  ;;  %v21098_v8 = vld [vmem:[#allocation10 + $0x35b4] ss:$24 sps:$4 sm:$0xff]  }
 0xf43   :  { %15379 = vmatpush1.bf16.msra.mxu0 %v21030_v37  ;;  %v21096_v37 = vld [vmem:[#allocation10 + $0x35b0] ss:$24 sps:$4 sm:$0xff]  }
 0xf44   :  { %15380 = vmatprep.subr.bf16.mxu0 %v21035_v9  ;;  %v21101_v9 = vld [vmem:[#allocation10 + $0x35e4] ss:$24 sps:$4 sm:$0xff]  }
 0xf47   :  { %15381 = vmatpush1.bf16.msra.mxu0 %v21033_v30  ;;  %v21099_v30 = vld [vmem:[#allocation10 + $0x35e0] ss:$24 sps:$4 sm:$0xff]  }
 0xf48   :  { %15382 = vmatprep.subr.bf16.mxu0 %v21038_v16  ;;  %v22844_v16 = vld [vmem:[#allocation11 + $0x1e] sm:$0x3f] }
 0xf4b   :  { %15383 = vmatpush1.bf16.msra.mxu0 %v21036_v55  ;;  %v13594_v55 = vrot.slane %v22844_v16, %v21895_v27 }
 0xf4c   :  { %15384 = vmatprep.subr.bf16.mxu0 %v21041_v36  ;;  %v13602_v36 = vrot.slane %v22844_v16, %v21890_v23 }
 0xf4f   :  { %15385 = vmatpush1.bf16.msra.mxu0 %v21039_v57  ;;  %v13598_v57 = vrot.slane %v22844_v16, %v21901_v29 }
 0xf50   :  { %15386 = vmatprep.subr.bf16.mxu0 %v21044_v52  ;;  %v13606_v52 = vrot.slane %v22844_v16, %v21898_v28 }
 0xf53   :  { %15387 = vmatpush1.bf16.msra.mxu0 %v21042_v25 }
 0xf54   :  { %15388 = vmatprep.subr.bf16.mxu0 %v21047_v15 }
 0xf57   :  { %15389 = vmatpush1.bf16.msra.mxu0 %v21045_v4 }
 0xf58   :  { %15390 = vmatprep.subr.bf16.mxu0 %v21050_v3 }
 0xf5b   :  { %15391 = vmatpush1.bf16.msra.mxu0 %v21048_v39 }
 0xf5c   :  { %15392 = vmatprep.subr.bf16.mxu0 %v21053_v63 }
 0xf5f   :  { %15393 = vmatpush1.bf16.msra.mxu0 %v21051_v1 }
 0xf60   :  { %15405 = vmatprep.subr.bf16.mxu0 %v21056_v21 }
 0xf62   :  { %15395 = vmatmul.mubr.bf16.vlgmr.msra.gmra.mrb[40].mxu0 %v22826_v6  ;;  %v21069_v6 = vld [vmem:[#allocation10 + $0x3400] ss:$24 sps:$4 sm:$0xff]  }
 0xf63   :  { %15406 = vmatpush1.bf16.msra.mxu0 %v21054_v53  ;;  %15437 = vmatprep.mubr.bf16.mxu0 %v22828_v33  ;;  %v21072_v33 = vld [vmem:[#allocation10 + $0x3430] ss:$24 sps:$4 sm:$0xff]  }
 0xf64   :  { %15407 = vmatprep.subr.bf16.mxu0 %v21059_v45 }
 0xf67   :  { %15408 = vmatpush1.bf16.msra.mxu0 %v21057_v42 }
 0xf68   :  { %15409 = vmatprep.subr.bf16.mxu0 %v21062_v48 }
 0xf6b   :  { %15410 = vmatpush1.bf16.msra.mxu0 %v21060_v59 }
 0xf6c   :  { %15411 = vmatprep.subr.bf16.mxu0 %v21065_v10 }
 0xf6f   :  { %15412 = vmatpush1.bf16.msra.mxu0 %v21063_v44 }
 0xf70   :  { %15413 = vmatprep.subr.bf16.mxu0 %v21068_v54 }
 0xf73   :  { %15414 = vmatpush1.bf16.msra.mxu0 %v21066_v61 }
 0xf74   :  { %15415 = vmatprep.subr.bf16.mxu0 %v21071_v24 }
 0xf77   :  { %15416 = vmatpush1.bf16.msra.mxu0 %v21069_v6 }
 0xf78   :  { %15417 = vmatprep.subr.bf16.mxu0 %v21074_v49 }
 0xf7b   :  { %15418 = vmatpush1.bf16.msra.mxu0 %v21072_v33 }
 0xf7c   :  { %15419 = vmatprep.subr.bf16.mxu0 %v21077_v62 }
 0xf7f   :  { %15420 = vmatpush1.bf16.msra.mxu0 %v21075_v17 }
 0xf80   :  { %15421 = vmatprep.subr.bf16.mxu0 %v21080_v14 }
 0xf83   :  { %15422 = vmatpush1.bf16.msra.mxu0 %v21078_v60 }
 0xf84   :  { %15423 = vmatprep.subr.bf16.mxu0 %v21083_v22 }
 0xf87   :  { %15424 = vmatpush1.bf16.msra.mxu0 %v21081_v19 }
 0xf88   :  { %15425 = vmatprep.subr.bf16.mxu0 %v21086_v2 }
 0xf8b   :  { %15426 = vmatpush1.bf16.msra.mxu0 %v21084_v32 }
 0xf8c   :  { %15427 = vmatprep.subr.bf16.mxu0 %v21089_v5 }
 0xf8f   :  { %15428 = vmatpush1.bf16.msra.mxu0 %v21087_v56 }
 0xf90   :  { %15429 = vmatprep.subr.bf16.mxu0 %v21092_v43 }
 0xf93   :  { %15430 = vmatpush1.bf16.msra.mxu0 %v21090_v40 }
 0xf94   :  { %15431 = vmatprep.subr.bf16.mxu0 %v21095_v7 }
 0xf97   :  { %15432 = vmatpush1.bf16.msra.mxu0 %v21093_v20 }
 0xf98   :  { %15433 = vmatprep.subr.bf16.mxu0 %v21098_v8 }
 0xf9b   :  { %15434 = vmatpush1.bf16.msra.mxu0 %v21096_v37 }
 0xf9c   :  { %15435 = vmatprep.subr.bf16.mxu0 %v21101_v9 }
 0xf9f   :  { %15436 = vmatpush1.bf16.msra.mxu0 %v21099_v30 }
 0xfa2   :  { %15438 = vmatmul.mubr.bf16.vlgmr.msra.gmra.mrb[40].mxu0 %v22830_v51 }
 0xfb5   :  { %v15181_v25 = vpop.f32.mrb[36].mxu0 }
 0xfb6   :  { %v18331_v15 = vadd.f32 %v15181_v25, %v13594_v55  ;;  %v15310_v4 = vpop.f32.mrb[36].mxu1  ;;  %v15183_v3 = vpop.f32.mrb[37].mxu0 }
 0xfb7   :  { %v18335_v39 = vadd.f32 %v15310_v4, %v13602_v36  ;;  %v18332_v51 = vadd.f32 %v15183_v3, %v13598_v57  ;;  %v15312_v63 = vpop.f32.mrb[37].mxu1  ;;  %v15185_v1 = vpop.f32.mrb[38].mxu0 }
 0xfb8   :  { %v18336_v21 = vadd.f32 %v15312_v63, %v13606_v52  ;;  %v18333_v53 = vadd.f32 %v15185_v1, %v13594_v55  ;;  %v15314_v45 = vpop.f32.mrb[38].mxu1  ;;  %v15187_v42 = vpop.f32.mrb[39].mxu0  ;;  %v15448_v44 = vadd.f32 %v18331_v15, %v22400_v26 }
 0xfb9   :  { %v18337_v48 = vadd.f32 %v15314_v45, %v13602_v36  ;;  %v18334_v59 = vadd.f32 %v15187_v42, %v13598_v57  ;;  %v15316_v10 = vpop.f32.mrb[39].mxu1  ;;  %v15450_v24 = vadd.f32 %v18335_v39, %v22406_v41  ;;  %v15449_v6 = vadd.f32 %v18332_v51, %v22412_v0 }
 0xfba   :  { %v15454_v54 = vadd.f32 %v18333_v53, %v22393_v12  ;;  %v18338_v61 = vadd.f32 %v15316_v10, %v13606_v52  ;;  %v15451_v62 = vadd.f32 %v18336_v21, %v22417_v46 }
 0xfbb   :  { %v15456_v49 = vadd.f32 %v18337_v48, %v22397_v18  ;;  %v15455_v33 = vadd.f32 %v18334_v59, %v22403_v35 }
 0xfbc   :  { %v15462_v17 = vadd.f32 %v15454_v54, %v15448_v44  ;;  %v15457_v14 = vadd.f32 %v18338_v61, %v22409_v34 }
 0xfbd   :  { %v15476_v60 = vadd.f32 %v15456_v49, %v15450_v24  ;;  %v15469_v22 = vadd.f32 %v15455_v33, %v15449_v6 }
 0xfbe   :  { %v15463_v19 = vrot.slane %v15462_v17, 4  ;;  %v15483_v26 = vadd.f32 %v15457_v14, %v15451_v62 }
 0xfbf   :  { %v15477_v2 = vrot.slane %v15476_v60, 4  ;;  %v15470_v12 = vrot.slane %v15469_v22, 4 }
 0xfc0   :  { %v15464_v32 = vadd.f32 %v15463_v19, %v15462_v17  ;;  %v15484_v5 = vrot.slane %v15483_v26, 4 }
 0xfc1   :  { %v15478_v41 = vadd.f32 %v15477_v2, %v15476_v60  ;;  %v15471_v56 = vadd.f32 %v15470_v12, %v15469_v22 }
 0xfc2   :  { %v15465_v0 = vrot.slane %v15464_v32, 2  ;;  %v15485_v43 = vadd.f32 %v15484_v5, %v15483_v26 }
 0xfc3   :  { %v15479_v18 = vrot.slane %v15478_v41, 2  ;;  %v15472_v40 = vrot.slane %v15471_v56, 2 }
 0xfc4   :  { %v15466_v35 = vadd.f32 %v15465_v0, %v15464_v32  ;;  %v15486_v7 = vrot.slane %v15485_v43, 2 }
 0xfc5   :  { %v15480_v46 = vadd.f32 %v15479_v18, %v15478_v41  ;;  %v15473_v20 = vadd.f32 %v15472_v40, %v15471_v56 }
 0xfc6   :  { %v15467_v8 = vrot.slane %v15466_v35, 1  ;;  %v15487_v34 = vadd.f32 %v15486_v7, %v15485_v43 }
 0xfc7   :  { %v15481_v37 = vrot.slane %v15480_v46, 1  ;;  %v15474_v9 = vrot.slane %v15473_v20, 1 }
 0xfc8   :  { %v15468_v30 = vadd.f32 %v15467_v8, %v15466_v35  ;;  %v15488_v55 = vrot.slane %v15487_v34, 1 }
 0xfc9   :  { %v15482_v36 = vadd.f32 %v15481_v37, %v15480_v46  ;;  %v15475_v57 = vadd.f32 %v15474_v9, %v15473_v20 }
 0xfca   :  { %v15504_v52 = vmul.f32 0.0625, %v15468_v30  ;;  %v15489_v25 = vadd.f32 %v15488_v55, %v15487_v34 }
 0xfcb   :  { %v15506_v15 = vmul.f32 0.0625, %v15482_v36  ;;  %v15505_v4 = vmul.f32 0.0625, %v15475_v57 }
 0xfcc   :  { %v22862_v3 = vsub.f32 %v15448_v44, %v15504_v52  ;;  %v22864_v39 = vsub.f32 %v15454_v54, %v15504_v52  ;;  %v15507_v51 = vmul.f32 0.0625, %v15489_v25 }
 0xfcd   :  { %v22866_v63 = vsub.f32 %v15450_v24, %v15506_v15  ;;  %v22868_v1 = vsub.f32 %v15456_v49, %v15506_v15  ;;  %v22870_v21 = vsub.f32 %v15449_v6, %v15505_v4  ;;  %v22872_v53 = vsub.f32 %v15455_v33, %v15505_v4 }
 0xfce   :  { %v15522_v45 = vmul.f32 %v22862_v3, %v22862_v3  ;;  %v15528_v42 = vmul.f32 %v22864_v39, %v22864_v39  ;;  %v22878_v48 = vsub.f32 %v15451_v62, %v15507_v51  ;;  %v22880_v59 = vsub.f32 %v15457_v14, %v15507_v51 }
 0xfcf   :  { %v15524_v10 = vmul.f32 %v22866_v63, %v22866_v63  ;;  %v15530_v44 = vmul.f32 %v22868_v1, %v22868_v1  ;;  %v15523_v54 = vmul.f32 %v22870_v21, %v22870_v21  ;;  %v15529_v61 = vmul.f32 %v22872_v53, %v22872_v53 }
 0xfd0   :  { %v15534_v24 = vadd.f32 %v15528_v42, %v15522_v45  ;;  %v15525_v6 = vmul.f32 %v22878_v48, %v22878_v48  ;;  %v15531_v49 = vmul.f32 %v22880_v59, %v22880_v59 }
 0xfd1   :  { %v15548_v33 = vadd.f32 %v15530_v44, %v15524_v10  ;;  %v15541_v62 = vadd.f32 %v15529_v61, %v15523_v54 }
 0xfd2   :  { %v15535_v17 = vrot.slane %v15534_v24, 4  ;;  %v15555_v14 = vadd.f32 %v15531_v49, %v15525_v6 }
 0xfd3   :  { %v15549_v60 = vrot.slane %v15548_v33, 4  ;;  %v15542_v22 = vrot.slane %v15541_v62, 4 }
 0xfd4   :  { %v15536_v19 = vadd.f32 %v15535_v17, %v15534_v24  ;;  %v15556_v26 = vrot.slane %v15555_v14, 4  ;;  %v21104_v17 = vld [vmem:[#allocation16 + $0xc0] sm:$0xff]  }
 0xfd5   :  { %v15550_v2 = vadd.f32 %v15549_v60, %v15548_v33  ;;  %v15543_v12 = vadd.f32 %v15542_v22, %v15541_v62  ;;  %v21102_v33 = vld [vmem:[#allocation16 + $0x40] sm:$0xff]   ;;  %18131 = vmatprep.subr.bf16.mxu0 %v21104_v17  ;;  %v21106_v60 = vld [vmem:[#allocation16 + $0x48] sm:$0xff]  }
 0xfd6   :  { %v15537_v32 = vrot.slane %v15536_v19, 2  ;;  %v15557_v5 = vadd.f32 %v15556_v26, %v15555_v14  ;;  %v21103_v62 = vld [vmem:[#allocation16] sm:$0xff]   ;;  %18109 = vmatprep.subr.bf16.mxu1 %v21102_v33  ;;  %v21107_v22 = vld [vmem:[#allocation16 + $0x8] sm:$0xff]  }
 0xfd7   :  { %v15551_v41 = vrot.slane %v15550_v2, 2  ;;  %v15544_v56 = vrot.slane %v15543_v12, 2  ;;  %v21105_v14 = vld [vmem:[#allocation16 + $0x80] sm:$0xff]   ;;  %18110 = vmatpush3.bf16.msra.mxu1 %v21103_v62  ;;  %v21109_v26 = vld [vmem:[#allocation16 + $0x88] sm:$0xff]  }
 0xfd8   :  { %v15538_v0 = vadd.f32 %v15537_v32, %v15536_v19  ;;  %v15558_v43 = vrot.slane %v15557_v5, 2  ;;  %18132 = vmatpush3.bf16.msra.mxu0 %v21105_v14  ;;  %v21108_v19 = vld [vmem:[#allocation16 + $0xc8] sm:$0xff]   ;;  %18111 = vmatprep.subr.bf16.mxu1 %v21106_v60  ;;  %v21112_v32 = vld [vmem:[#allocation16 + $0xd0] sm:$0xff]  }
 0xfd9   :  { %v15552_v18 = vadd.f32 %v15551_v41, %v15550_v2  ;;  %v15545_v40 = vadd.f32 %v15544_v56, %v15543_v12  ;;  %18133 = vmatprep.subr.bf16.mxu0 %v21108_v19  ;;  %v21110_v2 = vld [vmem:[#allocation16 + $0x50] sm:$0xff]   ;;  %v21114_v41 = vld [vmem:[#allocation16 + $0x58] sm:$0xff]  }
 0xfda   :  { %v15539_v35 = vrot.slane %v15538_v0, 1  ;;  %v15559_v7 = vadd.f32 %v15558_v43, %v15557_v5  ;;  %v21111_v12 = vld [vmem:[#allocation16 + $0x10] sm:$0xff]   ;;  %v21116_v56 = vld [vmem:[#allocation16 + $0xd8] sm:$0xff]  }
 0xfdb   :  { %v15553_v46 = vrot.slane %v15552_v18, 1  ;;  %v15546_v20 = vrot.slane %v15545_v40, 1  ;;  %18112 = vmatpush3.bf16.msra.mxu1 %v21107_v22  ;;  %v21113_v5 = vld [vmem:[#allocation16 + $0x90] sm:$0xff]   ;;  %v21117_v43 = vld [vmem:[#allocation16 + $0x98] sm:$0xff]  }
 0xfdc   :  { %v15540_v8 = vadd.f32 %v15539_v35, %v15538_v0  ;;  %v15560_v34 = vrot.slane %v15559_v7, 1  ;;  %18134 = vmatpush3.bf16.msra.mxu0 %v21109_v26  ;;  %18113 = vmatprep.subr.bf16.mxu1 %v21110_v2  ;;  %v21115_v0 = vld [vmem:[#allocation16 + $0x18] sm:$0xff]   ;;  %v21119_v35 = vld [vmem:[#allocation16 + $0x20] sm:$0xff]  }
 0xfdd   :  { %v15554_v37 = vadd.f32 %v15553_v46, %v15552_v18  ;;  %v15547_v9 = vadd.f32 %v15546_v20, %v15545_v40  ;;  %18135 = vmatprep.subr.bf16.mxu0 %v21112_v32  ;;  %v21118_v18 = vld [vmem:[#allocation16 + $0x60] sm:$0xff]   ;;  %v21122_v46 = vld [vmem:[#allocation16 + $0x68] sm:$0xff]  }
 0xfde   :  { %v15576_v30 = vmul.f32 0.0625, %v15540_v8  ;;  %v15561_v55 = vadd.f32 %v15560_v34, %v15559_v7  ;;  %v21120_v40 = vld [vmem:[#allocation16 + $0xe0] sm:$0xff]   ;;  %v21124_v20 = vld [vmem:[#allocation16 + $0xe8] sm:$0xff]  }
 0xfdf   :  { %v15578_v36 = vmul.f32 0.0625, %v15554_v37  ;;  %v15577_v57 = vmul.f32 0.0625, %v15547_v9  ;;  %18114 = vmatpush3.bf16.msra.mxu1 %v21111_v12  ;;  %v21121_v7 = vld [vmem:[#allocation16 + $0xa0] sm:$0xff]   ;;  %v21123_v8 = vld [vmem:[#allocation16 + $0x28] sm:$0xff]   ;;  %v21126_v37 = vld [vmem:[#allocation16 + $0x70] sm:$0xff]  }
 0xfe0   :  { %v15582_v52 = vadd.f32 1e-05, %v15576_v30  ;;  %v15579_v25 = vmul.f32 0.0625, %v15561_v55  ;;  %18136 = vmatpush3.bf16.msra.mxu0 %v21113_v5  ;;  %18115 = vmatprep.subr.bf16.mxu1 %v21114_v41  ;;  %v21125_v34 = vld [vmem:[#allocation16 + $0xa8] sm:$0xff]   ;;  %v21128_v9 = vld [vmem:[#allocation16 + $0xf0] sm:$0xff]  }
 0xfe1   :  { %v15584_v15 = vadd.f32 1e-05, %v15578_v36  ;;  %v15583_v4 = vadd.f32 1e-05, %v15577_v57  ;;  %18137 = vmatprep.subr.bf16.mxu0 %v21116_v56  ;;  %v21127_v30 = vld [vmem:[#allocation16 + $0x30] sm:$0xff]   ;;  %v21130_v36 = vld [vmem:[#allocation16 + $0x78] sm:$0xff]  }
 0xfe2   :  { %21366 = vrsqrt.f32 %v15582_v52  ;;  %v15585_v51 = vadd.f32 1e-05, %v15579_v25  ;;  %v21129_v55 = vld [vmem:[#allocation16 + $0xb0] sm:$0xff]   ;;  %v21132_v57 = vld [vmem:[#allocation16 + $0xf8] sm:$0xff]  }
 0xfe3   :  { %21368 = vrsqrt.f32 %v15584_v15  ;;  %18116 = vmatpush3.bf16.msra.mxu1 %v21115_v0  ;;  %v21131_v52 = vld [vmem:[#allocation16 + $0x38] sm:$0xff]   ;;  %v21134_v15 = vld [vmem:[#allocation16 + $0x140] sm:$0xff]  }
 0xfe4   :  { %21370 = vrsqrt.f32 %v15583_v4  ;;  %18138 = vmatpush3.bf16.msra.mxu0 %v21117_v43  ;;  %18117 = vmatprep.subr.bf16.mxu1 %v21118_v18  ;;  %v21133_v25 = vld [vmem:[#allocation16 + $0xb8] sm:$0xff]   ;;  %v13610_v4 = vrot.slane %v22844_v16, %v21976_v47 }
 0xfe5   :  { %21372 = vrsqrt.f32 %v15585_v51  ;;  %18139 = vmatprep.subr.bf16.mxu0 %v21120_v40  ;;  %v13614_v51 = vrot.slane %v22844_v16, %v21979_v50 }
 0xfe7   :  { %18118 = vmatpush3.bf16.msra.mxu1 %v21119_v35 }
 0xfe8   :  { %18140 = vmatpush3.bf16.msra.mxu0 %v21121_v7  ;;  %18119 = vmatprep.subr.bf16.mxu1 %v21122_v46 }
 0xfe9   :  { %18141 = vmatprep.subr.bf16.mxu0 %v21124_v20 }
 0xfeb   :  { %18120 = vmatpush3.bf16.msra.mxu1 %v21123_v8 }
 0xfec   :  { %v21367_v45 = vpop.eup %21366  ;;  %18142 = vmatpush3.bf16.msra.mxu0 %v21125_v34  ;;  %18121 = vmatprep.subr.bf16.mxu1 %v21126_v37 }
 0xfed   :  { %v21369_v42 = vpop.eup %21368  ;;  %18143 = vmatprep.subr.bf16.mxu0 %v21128_v9 }
 0xfee   :  { %v21371_v10 = vpop.eup %21370 }
 0xfef   :  { %v21373_v44 = vpop.eup %21372  ;;  %v15600_v54 = vcombine.low %v21367_v45, %v21371_v10  ;;  %18122 = vmatpush3.bf16.msra.mxu1 %v21127_v30 }
 0xff0   :  { %v15601_v61 = vcombine.low %v21369_v42, %v21373_v44  ;;  %18144 = vmatpush3.bf16.msra.mxu0 %v21129_v55  ;;  %18123 = vmatprep.subr.bf16.mxu1 %v21130_v36 }
 0xff1   :  { %v22895_v24 = vrot.slane %v15600_v54, %v22018_v11  ;;  %18145 = vmatprep.subr.bf16.mxu0 %v21132_v57 }
 0xff2   :  { %v22898_v6 = vrot.slane %v15601_v61, %v22018_v11 }
 0xff3   :  { %18124 = vmatpush3.bf16.msra.mxu1 %v21131_v52 }
 0xff4   :  { %v15624_v49 = vcombine.low %v22895_v24, %v22898_v6  ;;  %18146 = vmatpush3.bf16.msra.mxu0 %v21133_v25  ;;  %18153 = vmatprep.subr.bf16.mxu1 %v21134_v15 }
0x1075   :  { %v15439_v45 = vpop.f32.mrb[40].mxu0 }
0x1076   :  { %v18339_v42 = vadd.f32 %v15439_v45, %v13610_v4  ;;  %v15441_v10 = vpop.f32.mrb[41].mxu0 }
0x1077   :  { %v18340_v44 = vadd.f32 %v15441_v10, %v13614_v51  ;;  %v15443_v54 = vpop.f32.mrb[42].mxu0 }
0x1078   :  { %v18341_v61 = vadd.f32 %v15443_v54, %v13610_v4  ;;  %v15445_v33 = vpop.f32.mrb[43].mxu0  ;;  %v15452_v17 = vadd.f32 %v18339_v42, %v22470_v38 }
0x1079   :  { %v18342_v62 = vadd.f32 %v15445_v33, %v13614_v51  ;;  %v15453_v60 = vadd.f32 %v18340_v44, %v22476_v13 }
0x107a   :  { %v15458_v14 = vadd.f32 %v18341_v61, %v22473_v58 }
0x107b   :  { %v15459_v22 = vadd.f32 %v18342_v62, %v22479_v31 }
0x107c   :  { %v15490_v19 = vadd.f32 %v15458_v14, %v15452_v17 }
0x107d   :  { %v15497_v26 = vadd.f32 %v15459_v22, %v15453_v60 }
0x107e   :  { %v15491_v2 = vrot.slane %v15490_v19, 4 }
0x107f   :  { %v15498_v16 = vrot.slane %v15497_v26, 4 }
0x1080   :  { %v15492_v12 = vadd.f32 %v15491_v2, %v15490_v19  ;;  %v15631_v19 = vrot.slane %v15624_v49, %v22018_v11  ;;  %v15460_v2 = vld [vmem:[#allocation13] sm:$0x3f] }
0x1081   :  { %v15499_v32 = vadd.f32 %v15498_v16, %v15497_v26  ;;  %v15461_v16 = vld [vmem:[#allocation14] sm:$0x3f] }
0x1082   :  { %v15493_v5 = vrot.slane %v15492_v12, 2  ;;  %v15689_v24 = vrot.slane %v15461_v16, %v21895_v27 }
0x1083   :  { %v15500_v41 = vrot.slane %v15499_v32, 2 }
0x1084   :  { %v15494_v56 = vadd.f32 %v15493_v5, %v15492_v12  ;;  %v15693_v5 = vrot.slane %v15461_v16, %v21901_v29 }
0x1085   :  { %v15501_v0 = vadd.f32 %v15500_v41, %v15499_v32 }
0x1086   :  { %v15495_v43 = vrot.slane %v15494_v56, 1 }
0x1087   :  { %v15502_v18 = vrot.slane %v15501_v0, 1 }
0x1088   :  { %v15496_v40 = vadd.f32 %v15495_v43, %v15494_v56 }
0x1089   :  { %v15503_v38 = vadd.f32 %v15502_v18, %v15501_v0  ;;  %v15701_v18 = vrot.slane %v15461_v16, %v21898_v28 }
0x108a   :  { %v15508_v35 = vmul.f32 0.0625, %v15496_v40 }
0x108b   :  { %v15509_v58 = vmul.f32 0.0625, %v15503_v38 }
0x108c   :  { %v22910_v7 = vsub.f32 %v15452_v17, %v15508_v35  ;;  %v22912_v13 = vsub.f32 %v15458_v14, %v15508_v35 }
0x108d   :  { %v15515_v31 = vsub.f32 %v15453_v60, %v15509_v58  ;;  %v15521_v46 = vsub.f32 %v15459_v22, %v15509_v58 }
0x108e   :  { %v15526_v20 = vmul.f32 %v22910_v7, %v22910_v7  ;;  %v15532_v8 = vmul.f32 %v22912_v13, %v22912_v13 }
0x108f   :  { %v15527_v34 = vmul.f32 %v15515_v31, %v15515_v31  ;;  %v15533_v37 = vmul.f32 %v15521_v46, %v15521_v46 }
0x1090   :  { %v15562_v9 = vadd.f32 %v15532_v8, %v15526_v20 }
0x1091   :  { %v15569_v30 = vadd.f32 %v15533_v37, %v15527_v34 }
0x1092   :  { %v15563_v55 = vrot.slane %v15562_v9, 4 }
0x1093   :  { %v15570_v36 = vrot.slane %v15569_v30, 4 }
0x1094   :  { %v15564_v57 = vadd.f32 %v15563_v55, %v15562_v9 }
0x1095   :  { %v15571_v52 = vadd.f32 %v15570_v36, %v15569_v30 }
0x1096   :  { %v15565_v25 = vrot.slane %v15564_v57, 2 }
0x1097   :  { %v15572_v15 = vrot.slane %v15571_v52, 2 }
0x1098   :  { %v15566_v4 = vadd.f32 %v15565_v25, %v15564_v57 }
0x1099   :  { %v15573_v51 = vadd.f32 %v15572_v15, %v15571_v52  ;;  %v15705_v52 = vrot.slane %v15461_v16, %v21976_v47 }
0x109a   :  { %v15567_v45 = vrot.slane %v15566_v4, 1 }
0x109b   :  { %v15574_v42 = vrot.slane %v15573_v51, 1 }
0x109c   :  { %v15568_v10 = vadd.f32 %v15567_v45, %v15566_v4 }
0x109d   :  { %v15575_v44 = vadd.f32 %v15574_v42, %v15573_v51 }
0x109e   :  { %v15580_v54 = vmul.f32 0.0625, %v15568_v10 }
0x109f   :  { %v15581_v61 = vmul.f32 0.0625, %v15575_v44 }
0x10a0   :  { %v15586_v33 = vadd.f32 1e-05, %v15580_v54 }
0x10a1   :  { %v15587_v62 = vadd.f32 1e-05, %v15581_v61 }
0x10a2   :  { %21374 = vrsqrt.f32 %v15586_v33 }
0x10a3   :  { %21376 = vrsqrt.f32 %v15587_v62 }
0x10ac   :  { %v21375_v17 = vpop.eup %21374 }
0x10ad   :  { %v21377_v14 = vpop.eup %21376 }
0x10ae   :  { %v15602_v60 = vcombine.low %v21375_v17, %v21377_v14 }
0x10b0   :  { %v15623_v22 = vrot.slane %v15602_v60, %v22018_v11 }
0x10b2   :  { %v15638_v26 = vrot.slane %v15623_v22, %v22018_v11 }
0x10b4   :  { %v15639_v12 = vcombine.low %v15631_v19, %v15638_v26 }
0x10b6   :  { %v15641_v32 = vmul.f32 %v15639_v12, %v15460_v2 }
0x10b8   :  { %v15666_v41 = vrot.slane %v15641_v32, %v21979_v50  ;;  %v15650_v56 = vrot.slane %v15641_v32, %v21901_v29  ;;  %v15658_v0 = vrot.slane %v15641_v32, %v21898_v28  ;;  %v15646_v43 = vrot.slane %v15641_v32, %v21895_v27 }
0x10b9   :  { %v15654_v11 = vrot.slane %v15641_v32, %v21890_v23  ;;  %v15709_v28 = vrot.slane %v15461_v16, %v21979_v50 }
0x10ba   :  { %v15678_v6 = vmul.f32 %v15666_v41, %v15515_v31  ;;  %v15684_v49 = vmul.f32 %v15666_v41, %v15521_v46  ;;  %v15674_v40 = vmul.f32 %v15650_v56, %v22870_v21  ;;  %v15680_v38 = vmul.f32 %v15650_v56, %v22872_v53 }
0x10bb   :  { %v15676_v35 = vmul.f32 %v15658_v0, %v22878_v48  ;;  %v15682_v29 = vmul.f32 %v15658_v0, %v22880_v59  ;;  %v15673_v58 = vmul.f32 %v15646_v43, %v22862_v3  ;;  %v15679_v20 = vmul.f32 %v15646_v43, %v22864_v39 }
0x10bc   :  { %v15717_v8 = vadd.f32 %v15693_v5, %v15674_v40  ;;  %v15723_v27 = vadd.f32 %v15693_v5, %v15680_v38  ;;  %v15675_v34 = vmul.f32 %v15654_v11, %v22866_v63  ;;  %v15697_v53 = vrot.slane %v15461_v16, %v21890_v23 }
0x10bd   :  { %v15719_v31 = vadd.f32 %v15701_v18, %v15676_v35  ;;  %v15725_v46 = vadd.f32 %v15701_v18, %v15682_v29  ;;  %v15716_v37 = vadd.f32 %v15689_v24, %v15673_v58  ;;  %v15722_v21 = vadd.f32 %v15689_v24, %v15679_v20 }
0x10be   :  { %v15741_v9 = vmul.f32 0.70710677, %v15717_v8  ;;  %v15747_v48 = vmul.f32 0.70710677, %v15723_v27  ;;  %v15662_v59 = vrot.slane %v15641_v32, %v21976_v47  ;;  %v22942_v3 = vadd.f32 %v15709_v28, %v15684_v49 }
0x10bf   :  { %v15743_v30 = vmul.f32 0.70710677, %v15719_v31  ;;  %v15749_v39 = vmul.f32 0.70710677, %v15725_v46  ;;  %v15740_v50 = vmul.f32 0.70710677, %v15716_v37  ;;  %v15681_v63 = vmul.f32 %v15654_v11, %v22868_v1 }
0x10c0   :  { %21378 = verf.f32 %v15741_v9  ;;  %v15746_v55 = vmul.f32 0.70710677, %v15722_v21  ;;  %v15718_v36 = vadd.f32 %v15697_v53, %v15675_v34  ;;  %v15721_v57 = vadd.f32 %v15709_v28, %v15678_v6  ;;  %v21135_v34 = vld [vmem:[#allocation16 + $0x100] sm:$0xff]  }
0x10c1   :  { %21380 = verf.f32 %v15747_v48  ;;  %v15724_v23 = vadd.f32 %v15697_v53, %v15681_v63  ;;  %v15677_v25 = vmul.f32 %v15662_v59, %v22910_v7  ;;  %v15683_v15 = vmul.f32 %v15662_v59, %v22912_v13 }
0x10c2   :  { %21382 = verf.f32 %v15743_v30  ;;  %v15742_v4 = vmul.f32 0.70710677, %v15718_v36  ;;  %v15751_v51 = vmul.f32 0.70710677, %v22942_v3  ;;  %v15745_v42 = vmul.f32 0.70710677, %v15721_v57 }
0x10c3   :  { %21384 = verf.f32 %v15749_v39  ;;  %v15748_v45 = vmul.f32 0.70710677, %v15724_v23  ;;  %v15720_v1 = vadd.f32 %v15705_v52, %v15677_v25  ;;  %v15726_v10 = vadd.f32 %v15705_v52, %v15683_v15  ;;  %v21136_v30 = vld [vmem:[#allocation16 + $0x148] sm:$0xff]  }
0x10c4   :  { %21386 = verf.f32 %v15740_v50  ;;  %v15729_v61 = vmul.f32 0.5, %v15717_v8  ;;  %v15735_v62 = vmul.f32 0.5, %v15723_v27  ;;  %v15731_v22 = vmul.f32 0.5, %v15719_v31 }
0x10c5   :  { %21388 = verf.f32 %v15746_v55  ;;  %v15744_v44 = vmul.f32 0.70710677, %v15720_v1  ;;  %v15750_v47 = vmul.f32 0.70710677, %v15726_v10  ;;  %v15737_v16 = vmul.f32 0.5, %v15725_v46 }
0x10c6   :  { %21390 = verf.f32 %v15742_v4  ;;  %v15728_v41 = vmul.f32 0.5, %v15716_v37  ;;  %v15734_v24 = vmul.f32 0.5, %v15722_v21  ;;  %v15730_v40 = vmul.f32 0.5, %v15718_v36  ;;  %v21138_v4 = vld [vmem:[#allocation16 + $0x150] sm:$0xff]  }
0x10c7   :  { %21392 = verf.f32 %v15748_v45  ;;  %v15736_v20 = vmul.f32 0.5, %v15724_v23  ;;  %v15733_v31 = vmul.f32 0.5, %v15721_v57  ;;  %v15739_v53 = vmul.f32 0.5, %v22942_v3  ;;  %v21137_v57 = vld [vmem:[#allocation16 + $0x108] sm:$0xff]   ;;  %v21139_v45 = vld [vmem:[#allocation16 + $0x110] sm:$0xff]  }
0x10c8   :  { %21394 = verf.f32 %v15745_v42  ;;  %v15732_v50 = vmul.f32 0.5, %v15720_v1  ;;  %v15738_v52 = vmul.f32 0.5, %v15726_v10  ;;  %v21140_v42 = vld [vmem:[#allocation16 + $0x158] sm:$0xff]   ;;  %v21143_v10 = vld [vmem:[#allocation16 + $0x120] sm:$0xff]  }
0x10c9   :  { %21396 = verf.f32 %v15751_v51  ;;  %v21141_v1 = vld [vmem:[#allocation16 + $0x118] sm:$0xff]  }
0x10ca   :  { %v21379_v54 = vpop.eup %21378  ;;  %21398 = verf.f32 %v15744_v44  ;;  %v21142_v44 = vld [vmem:[#allocation16 + $0x160] sm:$0xff]  }
0x10cb   :  { %v21381_v7 = vpop.eup %21380  ;;  %v15765_v13 = vadd.f32 1.0, %v21379_v54  ;;  %21400 = verf.f32 %v15750_v47  ;;  %v21144_v47 = vld [vmem:[#allocation16 + $0x168] sm:$0xff]  }
0x10cc   :  { %v21383_v33 = vpop.eup %21382  ;;  %v15771_v17 = vadd.f32 1.0, %v21381_v7  ;;  %v21145_v54 = vld [vmem:[#allocation16 + $0x128] sm:$0xff]   ;;  %v21146_v7 = vld [vmem:[#allocation16 + $0x170] sm:$0xff]  }
0x10cd   :  { %v21385_v14 = vpop.eup %21384  ;;  %v15777_v60 = vmul.f32 %v15765_v13, %v15729_v61  ;;  %v15767_v19 = vadd.f32 1.0, %v21383_v33  ;;  %v21147_v61 = vld [vmem:[#allocation16 + $0x130] sm:$0xff]   ;;  %v21148_v13 = vld [vmem:[#allocation16 + $0x178] sm:$0xff]  }
0x10ce   :  { %v21387_v26 = vpop.eup %21386  ;;  %v15783_v2 = vmul.f32 %v15771_v17, %v15735_v62  ;;  %v15773_v12 = vadd.f32 1.0, %v21385_v14  ;;  %v21149_v33 = vld [vmem:[#allocation16 + $0x138] sm:$0xff]   ;;  %v18060_v17 = vld [vmem:[#allocation17] ss:$0 sm:$0xff] }
0x10cf   :  { %v21389_v32 = vpop.eup %21388  ;;  %v15779_v5 = vmul.f32 %v15767_v19, %v15731_v22  ;;  %v15764_v56 = vadd.f32 1.0, %v21387_v26 }
0x10d0   :  { %v21391_v0 = vpop.eup %21390  ;;  %v15789_v43 = vpack.c.bf16 %v15783_v2, %v15777_v60  ;;  %v15785_v18 = vmul.f32 %v15773_v12, %v15737_v16  ;;  %v15770_v11 = vadd.f32 1.0, %v21389_v32 }
0x10d1   :  { %v21393_v6 = vpop.eup %21392  ;;  %v15776_v49 = vmul.f32 %v15764_v56, %v15728_v41  ;;  %v15766_v38 = vadd.f32 1.0, %v21391_v0 }
0x10d2   :  { %v21395_v35 = vpop.eup %21394  ;;  %16217 = vmatprep.mubr.bf16.mxu1 %v15789_v43  ;;  %v15791_v29 = vpack.c.bf16 %v15785_v18, %v15779_v5  ;;  %v15782_v58 = vmul.f32 %v15770_v11, %v15734_v24  ;;  %v15772_v28 = vadd.f32 1.0, %v21393_v6 }
0x10d3   :  { %v21397_v8 = vpop.eup %21396  ;;  %v15778_v27 = vmul.f32 %v15766_v38, %v15730_v40  ;;  %v15769_v46 = vadd.f32 1.0, %v21395_v35 }
0x10d4   :  { %v21399_v37 = vpop.eup %21398  ;;  %16258 = vmatprep.mubr.bf16.mxu0 %v15791_v29  ;;  %v15788_v9 = vpack.c.bf16 %v15782_v58, %v15776_v49  ;;  %v15784_v21 = vmul.f32 %v15772_v28, %v15736_v20  ;;  %v15775_v48 = vadd.f32 1.0, %v21397_v8 }
0x10d5   :  { %v21401_v59 = vpop.eup %21400  ;;  %v15781_v39 = vmul.f32 %v15769_v46, %v15733_v31  ;;  %v15768_v55 = vadd.f32 1.0, %v21399_v37 }
0x10d6   :  { %16218 = vmatmul.mubr.bf16.vlgmr.msra.gmra.mrb[40].mxu1 %v15788_v9  ;;  %v15790_v63 = vpack.c.bf16 %v15784_v21, %v15778_v27  ;;  %v15787_v36 = vmul.f32 %v15775_v48, %v15739_v53  ;;  %v15774_v23 = vadd.f32 1.0, %v21401_v59 }
0x10d7   :  { %18154 = vmatpush3.bf16.msra.mxu1 %v21135_v34  ;;  %v15780_v25 = vmul.f32 %v15768_v55, %v15732_v50 }
0x10d8   :  { %16259 = vmatmul.mubr.bf16.vlgmr.msra.gmra.mrb[44].mxu0 %v15790_v63  ;;  %v15793_v15 = vpack.c.bf16 %v15787_v36, %v15781_v39  ;;  %18155 = vmatprep.subr.bf16.mxu1 %v21136_v30  ;;  %v15786_v51 = vmul.f32 %v15774_v23, %v15738_v52 }
0x10da   :  { %16299 = vmatprep.mubr.bf16.mxu1 %v15793_v15  ;;  %v15792_v3 = vpack.c.bf16 %v15786_v51, %v15780_v25 }
0x10db   :  { %18156 = vmatpush3.bf16.msra.mxu1 %v21137_v57 }
0x10dc   :  { %18157 = vmatprep.subr.bf16.mxu1 %v21138_v4 }
0x10df   :  { %18158 = vmatpush3.bf16.msra.mxu1 %v21139_v45 }
0x10e0   :  { %18159 = vmatprep.subr.bf16.mxu1 %v21140_v42 }
0x10e3   :  { %18160 = vmatpush3.bf16.msra.mxu1 %v21141_v1 }
0x10e4   :  { %18161 = vmatprep.subr.bf16.mxu1 %v21142_v44 }
0x10e7   :  { %18162 = vmatpush3.bf16.msra.mxu1 %v21143_v10 }
0x10e8   :  { %18163 = vmatprep.subr.bf16.mxu1 %v21144_v47 }
0x10eb   :  { %18164 = vmatpush3.bf16.msra.mxu1 %v21145_v54 }
0x10ec   :  { %18165 = vmatprep.subr.bf16.mxu1 %v21146_v7 }
0x10ef   :  { %18166 = vmatpush3.bf16.msra.mxu1 %v21147_v61 }
0x10f0   :  { %18167 = vmatprep.subr.bf16.mxu1 %v21148_v13 }
0x10f3   :  { %18168 = vmatpush3.bf16.msra.mxu1 %v21149_v33 }
0x10f6   :  { %16300 = vmatmul.mubr.bf16.vlgmr.msra.gmra.mrb[44].mxu1 %v15792_v3 }
0x11a9   :  { %v18125_v62 = vpop.f32.mrb[40].mxu1 }
0x11aa   :  { %v18126_v14 = vpop.f32.mrb[41].mxu1 }
0x11ab   :  { %v18147_v60 = vpop.f32.mrb[44].mxu0  ;;  %v18127_v22 = vadd.f32 %v18126_v14, %v18125_v62  ;;  %v18128_v19 = vpop.f32.mrb[42].mxu1 }
0x11ac   :  { %v18148_v26 = vpop.f32.mrb[45].mxu0  ;;  %v18129_v2 = vpop.f32.mrb[43].mxu1 }
0x11ad   :  { %v16220_v16 = vadd.f32 %v18127_v22, %v18060_v17  ;;  %v18149_v12 = vadd.f32 %v18148_v26, %v18147_v60  ;;  %v18150_v32 = vpop.f32.mrb[46].mxu0  ;;  %v18130_v5 = vadd.f32 %v18129_v2, %v18128_v19 }
0x11ae   :  { %v18151_v41 = vpop.f32.mrb[47].mxu0 }
0x11af   :  { %v16261_v56 = vadd.f32 %v18149_v12, %v16220_v16  ;;  %v16223_v0 = vadd.f32 %v18130_v5, %v18060_v17  ;;  %v18152_v43 = vadd.f32 %v18151_v41, %v18150_v32 }
0x11b1   :  { %v16264_v18 = vadd.f32 %v18152_v43, %v16223_v0 }
0x11c9   :  { %v18169_v24 = vpop.f32.mrb[44].mxu1 }
0x11ca   :  { %v18170_v11 = vpop.f32.mrb[45].mxu1 }
0x11cb   :  { %v18171_v6 = vadd.f32 %v18170_v11, %v18169_v24  ;;  %v18172_v49 = vpop.f32.mrb[46].mxu1 }
0x11cc   :  { %v18173_v40 = vpop.f32.mrb[47].mxu1 }
0x11cd   :  { %v16302_v38 = vadd.f32 %v18171_v6, %v16261_v56  ;;  %v18174_v35 = vadd.f32 %v18173_v40, %v18172_v49 }
0x11cf   :  { %16308 = vst [vmem:[#allocation19] sm:$0xff] %v16302_v38  ;;  %v16305_v29 = vadd.f32 %v18174_v35, %v16264_v18 }
0x11d1   :  { %16309 = vst [vmem:[#allocation19 + $0x8] sm:$0xff] %v16305_v29 }
0x11d2   :  { %21633 = shalt.err (!%p21630_p0)
}
0x11d3   :  { %s21634_s8 = scalar_lea.hbm %s22973_s11, 256 }
0x11d4   :  { %p21635_p1 = scmp.ne.s32.totalorder %s22973_s11, %s21634_s8  ;;  %p21638_p2 = scmp.lt.u32.totalorder %s21634_s8, %s22973_s11 }
0x11d6   :  { %p21640_p3 = pnand %p21638_p2, %p21635_p1 }
0x11d8   :  { %21643 = shalt.err (!%p21640_p3)
}
0x11d9   :  { %s21679_s3 = smov 128   ;;  %s21680_s18 = smov 8  }
0x11da   :  { %16321 = dma.vmem_to_hbm [thread:$0]  %s16316_s4, 256, %s22973_s11, [#allocation4], %s21679_s3, %s21679_s3, %s21680_s18  }
0x11db   :  { %21656 = dma.done.wait [#allocation4], 256  }
0x11dc   :  { %21657 = vsyncadd [#allocation4], 4294967040 }
0x11dd   :  { %16325 = vsyncpa [#allocation3], 1 }
0x11de   :  { %16326 = vsyncpa [#allocation6], 1 }
0x11df   :  { %16327 = vsyncpa [#allocation9], 1 }
0x11e0   :  { %16328 = vsyncpa [#allocation12], 1 }
0x11e1   :  { %16329 = vsyncpa [#allocation15], 1 }
0x11e2   :  { %16330 = vsyncpa [#allocation18], 1 }
0x11e3   :  { %16331 = vsyncpa [#allocation4], 1 }

</bundles_post_ra>
